<compile_context>
chip_gen: v7x
topology: tpu7x:2x2x1
jax: 0.10.0
libtpu: 0.0.40
codegen_flags: <defaults>
</compile_context>

<pallas_src>
import numpy as np
import jax
import jax.numpy as jnp
from jax import lax
from jax.experimental import pallas as pl
from jax.experimental.pallas import tpu as pltpu

_EPS_F32 = float(np.finfo(np.float32).eps)
_PALLAS_MIN_ELEMS = 64 * 1024          # below this, plain fused XLA is faster


# ----------------------------------------------------------------------------
# shared-range-reduction sincos (Cephes f32 coefficients, |err| ~ 1e-7)
# ----------------------------------------------------------------------------
def _sincos_f32(x):
    """Return (sin(x), cos(x)) with one shared Cody-Waite range reduction."""
    two_over_pi = np.float32(0.6366197723675814)
    # pi/2 split into f32-exact high parts + residual (2x Cephes pi/4 split)
    dp1 = np.float32(1.5703125)
    dp2 = np.float32(4.837512969970703125e-4)
    dp3 = np.float32(7.54978995489188216e-8)

    q = jnp.floor(x * two_over_pi + np.float32(0.5))
    qi = q.astype(jnp.int32)
    r = ((x - q * dp1) - q * dp2) - q * dp3          # |r| <= pi/4
    z = r * r

    sin_r = r + r * z * (np.float32(-1.6666654611e-1)
                         + z * (np.float32(8.3321608736e-3)
                                + z * np.float32(-1.9515295891e-4)))
    cos_r = (np.float32(1.0) - np.float32(0.5) * z
             + z * z * (np.float32(4.166664568298827e-2)
                        + z * (np.float32(-1.388731625493765e-3)
                               + z * np.float32(2.443315711809948e-5))))

    swap = (qi & 1) != 0
    s_base = jnp.where(swap, cos_r, sin_r)
    c_base = jnp.where(swap, sin_r, cos_r)
    s = jnp.where((qi & 2) != 0, -s_base, s_base)
    c = jnp.where(((qi + 1) & 2) != 0, -c_base, c_base)
    return s, c


# ----------------------------------------------------------------------------
# kernel
# ----------------------------------------------------------------------------
def _make_point_source_kernel(tC, uniform_amp, eps):
    eps = np.float32(eps)

    def kernel(k_ref, scale_ref, dist_ref, re_ref, im_ref):
        c0 = pl.program_id(2) * tC
        dist = dist_ref[...]                       # channel-invariant plane
        scale = scale_ref[0]                       # SMEM: amplitude * sqrt(power/field_power)
        if uniform_amp:
            amp = scale                            # paraxial: 1/(z+eps) folded into scale
        else:
            amp = scale / (dist + eps)             # non-paraxial: amplitude/(dist+eps)*norm
        # Static (unrolled) loop over fused wavelength channels: only the
        # phase = k*dist and its sincos differ per channel.
        for ci in range(tC):
            k = k_ref[c0 + ci]                     # SMEM scalar read
            s, c = _sincos_f32(k * dist)
            re_ref[ci] = (amp * c).astype(re_ref.dtype)
            im_ref[ci] = (amp * s).astype(im_ref.dtype)

    return kernel


# ----------------------------------------------------------------------------
# tiling helpers
# ----------------------------------------------------------------------------
def _largest_divisor(n, *, multiple_of, cap):
    """Largest d with d | n, d % multiple_of == 0 and d <= cap (or None)."""
    best = None
    d = 1
    while d * d <= n:
        if n % d == 0:
            for cand in (d, n // d):
                if cand % multiple_of == 0 and cand <= cap:
                    if best is None or cand > best:
                        best = cand
        d += 1
    return best


def _vmem_budget():
    """Per-grid-step double-buffered footprint budget (VMEM-aware)."""
    try:
        cap = int(pltpu.get_tpu_info().vmem_capacity_bytes)
    except Exception:
        cap = 64 << 20          # conservative: v7x per-core VMEM
    budget = max(4 << 20, min(24 << 20, cap // 3))
    return budget, cap


def _choose_tiles(C, H, W, budget_bytes):
    """Pick (tC, tH, tW). H is a multiple of 8, W a multiple of 128 (padded)."""
    # Lane dim: full width, or a big multiple of 128 dividing W (unmasked vst).
    if W <= 2048:
        tW = W
    else:
        tW = _largest_divisor(W, multiple_of=128, cap=2048) or 128
    # Sublane dim: reserve half the budget for the tC=1 footprint (24 B/elem:
    # 1 input plane + 2 output planes, each double-buffered, f32).
    cap_h = max(8, (budget_bytes // 2) // (24 * tW))
    tH = _largest_divisor(H, multiple_of=8, cap=cap_h) or 8
    # Fuse wavelength channels while the footprint fits the budget.
    tC = 1
    for d in range(1, C + 1):
        if C % d == 0 and tH * tW * (8 + 16 * d) <= budget_bytes:
            tC = d
    return tC, tH, tW


# ----------------------------------------------------------------------------
# pallas + plain-JAX execution paths
# ----------------------------------------------------------------------------
def _point_source_pallas(dist, k_vals, scale, C, H, W, eps, uniform_amp, out_dtype):
    # Zero-pad to (8, 128)-aligned spatial dims; slice the outputs afterwards.
    H_pad = ((H + 7) // 8) * 8
    W_pad = ((W + 127) // 128) * 128
    padded = (H_pad, W_pad) != (H, W)
    if padded:
        dist = jnp.pad(dist, ((0, H_pad - H), (0, W_pad - W)), constant_values=1.0)

    budget, vmem_cap = _vmem_budget()
    tC, tH, tW = _choose_tiles(C, H_pad, W_pad, budget)
    out_itemsize = jnp.dtype(out_dtype).itemsize
    footprint = tH * tW * (8 + 4 * out_itemsize * tC)      # double-buffered in + out
    vmem_limit = min(int(vmem_cap * 3 // 4), max(32 << 20, footprint + (8 << 20)))
    vmem_limit = max(vmem_limit, footprint + (2 << 20))

    kernel = _make_point_source_kernel(tC, uniform_amp, eps)
    grid = (H_pad // tH, W_pad // tW, C // tC)              # channel axis innermost

    grid_spec = pltpu.PrefetchScalarGridSpec(
        num_scalar_prefetch=2,                               # k_vals, scale -> SMEM
        grid=grid,
        in_specs=[
            pl.BlockSpec((tH, tW), lambda i, j, c, kref, sref: (i, j)),   # dist plane
        ],
        out_specs=[
            pl.BlockSpec((tC, tH, tW), lambda i, j, c, kref, sref: (c, i, j)),  # real
            pl.BlockSpec((tC, tH, tW), lambda i, j, c, kref, sref: (c, i, j)),  # imag
        ],
    )

    cost = pl.CostEstimate(
        flops=36 * C * H_pad * W_pad,
        transcendentals=2 * C * H_pad * W_pad,               # advisory (sincos)
        bytes_accessed=2 * C * H_pad * W_pad * out_itemsize + 4 * H_pad * W_pad,
    )

    scale_arr = jnp.reshape(scale, (1,)).astype(jnp.float32)

    re, im = pl.pallas_call(
        kernel,
        out_shape=(jax.ShapeDtypeStruct((C, H_pad, W_pad), out_dtype),
                   jax.ShapeDtypeStruct((C, H_pad, W_pad), out_dtype)),
        grid_spec=grid_spec,
        compiler_params=pltpu.CompilerParams(
            dimension_semantics=("parallel", "parallel", "arbitrary"),
            vmem_limit_bytes=int(vmem_limit)),
        cost_estimate=cost,
    )(k_vals, scale_arr, dist)

    if padded:
        re = re[:, :H, :W]
        im = im[:, :H, :W]
    return re, im


def _point_source_jax(dist, k_vals, scale, eps, uniform_amp, out_dtype):
    """Plain fused-XLA path for tiny problems (pure launch-overhead regime)."""
    phase = k_vals[:, None, None] * dist[None]
    amp = scale if uniform_amp else scale / (dist + np.float32(eps))
    re = (amp * jnp.cos(phase)).astype(out_dtype)
    im = (amp * jnp.sin(phase)).astype(out_dtype)
    return re, im


# ----------------------------------------------------------------------------
# public wrapper (PointSource.forward)
# ----------------------------------------------------------------------------
def point_source(x_grid, y_grid, lamb0, *, amplitude, ref_idx, src_loc, z,
                 power=1.0, paraxial=False, epsilon=_EPS_F32,
                 as_complex=True, out_dtype=jnp.float32, use_pallas=None):
    """Pallas implementation of PointSource.forward.

    as_complex=True  -> complex64 [1, C, H, W]   (module semantics; one extra
                        lax.complex combine pass).
    as_complex=False -> planar (re, im) float32/bf16 [1, C, H, W] each (fast
                        path, recommended for downstream consumers).
    """
    H, W = x_grid.shape
    C = int(lamb0.shape[0])
    eps = float(epsilon)
    if src_loc is None:
        sx, sy = 0.0, 0.0
    else:
        sx, sy = float(src_loc[0]), float(src_loc[1])

    x_grid = x_grid.astype(jnp.float32)
    y_grid = y_grid.astype(jnp.float32)

    # ---- channel-invariant geometry + power normalization scale ------------
    if paraxial:
        assert (src_loc is None) or (sx == 0.0 and sy == 0.0), \
            "In paraxial setting, please set the src_loc = 0 or None"
        dist = (x_grid * x_grid + y_grid * y_grid) * np.float32(1.0 / (2.0 * float(z) + eps))
        mag_const = float(amplitude) / (float(z) + eps)
        # field.power == sum(|field|^2) -> C*H*W*mag_const^2 (analytic, host-side)
        field_power = C * H * W * mag_const * mag_const
        scale = jnp.float32(mag_const * float(np.sqrt(float(power) / field_power)))
        uniform_amp = True
    else:
        dx = x_grid - sx
        dy = y_grid - sy
        dist = jnp.sqrt(dx * dx + dy * dy + float(z) * float(z))
        inv = 1.0 / (dist + np.float32(eps))
        # field.power: |exp(i*phase)| == 1, each of the C channels contributes
        # the same sum(mag^2) -> factor C (scalar reduction, no plane written).
        field_power = C * (float(amplitude) ** 2) * jnp.sum(inv * inv)
        scale = (float(amplitude) * jnp.sqrt(float(power) / field_power)).astype(jnp.float32)
        uniform_amp = False

    # Per-wavelength wavenumbers, scalar-prefetched into SMEM.
    k_vals = (2.0 * np.pi * float(ref_idx) / lamb0).astype(jnp.float32)

    if as_complex:
        out_dtype = jnp.float32            # complex64 needs f32 components

    if use_pallas is None:
        use_pallas = (C * H * W) >= _PALLAS_MIN_ELEMS

    if use_pallas:
        re, im = _point_source_pallas(dist, k_vals, scale, C, H, W, eps,
                                      uniform_amp, out_dtype)
    else:
        re, im = _point_source_jax(dist, k_vals, scale, eps, uniform_amp, out_dtype)

    if not as_complex:
        # Fast path: no extra HBM pass; downstream consumers take planar re/im.
        return re[None], im[None]
    # Compatibility path (module semantics). XLA has no f32->complex64 bitcast,
    # so this is one extra read+write pass over the output.
    return lax.complex(re, im)[None]       # unsqueeze(0) -> [1, C, H, W]


# ----------------------------------------------------------------------------
# demo / self-check
# ----------------------------------------------------------------------------
def _np_reference(x_grid, y_grid, lamb0, amplitude, ref_idx, src_loc, z, power,
                  paraxial, eps):
    xg = np.asarray(x_grid, np.float64)
    yg = np.asarray(y_grid, np.float64)
    l0 = np.asarray(lamb0, np.float64)
    k = 2.0 * np.pi * ref_idx / l0[:, None, None]
    sx, sy = (0.0, 0.0) if src_loc is None else (src_loc[0], src_loc[1])
    if paraxial:
        pdist = (xg ** 2 + yg ** 2) / (2.0 * z + eps)
        mag = (amplitude / (z + eps)) * np.ones_like(xg)
    else:
        d = np.sqrt((xg - sx) ** 2 + (yg - sy) ** 2 + z ** 2)
        pdist = d
        mag = amplitude / (d + eps)
    f = mag[None] * np.exp(1j * k * pdist[None])
    fp = np.sum(np.abs(f) ** 2)
    return (f * np.sqrt(power / fp))[None].astype(np.complex64)


if __name__ == "__main__":
    key = jax.random.PRNGKey(0)

    # C=4 wavelengths (0.4 .. 0.8 um), modest spatial grid (above the
    # fallback threshold so the Pallas kernel is exercised).
    C, H, W = 4, 64, 512
    lamb0 = 0.4 + 0.4 * jax.random.uniform(key, (C,), dtype=jnp.float32)

    xs = jnp.linspace(-2.0, 2.0, W, dtype=jnp.float32)
    ys = jnp.linspace(-2.0, 2.0, H, dtype=jnp.float32)
    y_grid, x_grid = jnp.meshgrid(ys, xs, indexing="ij")

    amplitude, ref_idx, z, power = 1.0, 1.5, 5.0, 1.0
    src_loc = (0.25, -0.5)
    eps = _EPS_F32

    # ----- non-paraxial: planar fast path (Pallas kernel) --------------------
    re, im = point_source(x_grid, y_grid, lamb0, amplitude=amplitude,
                          ref_idx=ref_idx, src_loc=src_loc, z=z, power=power,
                          paraxial=False, as_complex=False, use_pallas=True)
    re, im = jax.block_until_ready((re, im))
    assert re.shape == (1, C, H, W) and im.shape == (1, C, H, W)
    ref = _np_reference(x_grid, y_grid, lamb0, amplitude, ref_idx, src_loc, z,
                        power, False, eps)
    got = np.asarray(re[0]) + 1j * np.asarray(im[0])
    np.testing.assert_allclose(got, ref[0], rtol=2e-3, atol=1e-5)

    # ----- non-paraxial: complex64 output (module semantics) -----------------
    out_c = point_source(x_grid, y_grid, lamb0, amplitude=amplitude,
                         ref_idx=ref_idx, src_loc=src_loc, z=z, power=power,
                         paraxial=False, as_complex=True, use_pallas=True)
    out_c = jax.block_until_ready(out_c)
    assert out_c.shape == (1, C, H, W) and out_c.dtype == jnp.complex64
    np.testing.assert_allclose(np.asarray(out_c), ref, rtol=2e-3, atol=1e-5)

    # ----- paraxial, non-multiple-of-8 H (exercises the padding path) --------
    Hp, Wp = 60, 512
    xs2 = jnp.linspace(-2.0, 2.0, Wp, dtype=jnp.float32)
    ys2 = jnp.linspace(-2.0, 2.0, Hp, dtype=jnp.float32)
    y_grid2, x_grid2 = jnp.meshgrid(ys2, xs2, indexing="ij")
    re_p, im_p = point_source(x_grid2, y_grid2, lamb0, amplitude=amplitude,
                              ref_idx=ref_idx, src_loc=None, z=z, power=power,
                              paraxial=True, as_complex=False, use_pallas=True)
    re_p, im_p = jax.block_until_ready((re_p, im_p))
    ref_p = _np_reference(x_grid2, y_grid2, lamb0, amplitude, ref_idx, None, z,
                          power, True, eps)
    got_p = np.asarray(re_p[0]) + 1j * np.asarray(im_p[0])
    np.testing.assert_allclose(got_p, ref_p[0], rtol=2e-3, atol=1e-5)

    # ----- tiny problem: automatic plain-XLA fallback -------------------------
    Ct, Ht, Wt = 2, 16, 128
    xs3 = jnp.linspace(-1.0, 1.0, Wt, dtype=jnp.float32)
    ys3 = jnp.linspace(-1.0, 1.0, Ht, dtype=jnp.float32)
    y_grid3, x_grid3 = jnp.meshgrid(ys3, xs3, indexing="ij")
    out_t = point_source(x_grid3, y_grid3, lamb0[:Ct], amplitude=amplitude,
                         ref_idx=ref_idx, src_loc=src_loc, z=z, power=power,
                         paraxial=False, as_complex=True)      # auto -> XLA path
    out_t = jax.block_until_ready(out_t)
    ref_t = _np_reference(x_grid3, y_grid3, lamb0[:Ct], amplitude, ref_idx,
                          src_loc, z, power, False, eps)
    np.testing.assert_allclose(np.asarray(out_t), ref_t, rtol=2e-3, atol=1e-5)

    print("KERNEL_OK")
</pallas_src>

<mosaic_0001>
module attributes {stable_mosaic.version = 11 : i64} {
  func.func @kernel(%arg0: i32, %arg1: i32, %arg2: i32, %arg3: memref<4xf32, #tpu.memory_space<smem>>, %arg4: memref<1xf32, #tpu.memory_space<smem>>, %arg5: memref<64x512xf32, #tpu.memory_space<vmem>>, %arg6: memref<4x64x512xf32, #tpu.memory_space<vmem>>, %arg7: memref<4x64x512xf32, #tpu.memory_space<vmem>>) attributes {dimension_semantics = [#tpu.dimension_semantics<parallel>, #tpu.dimension_semantics<parallel>, #tpu.dimension_semantics<arbitrary>], iteration_bounds = array<i64: 1, 1, 1>, scalar_prefetch = 2 : i64, scratch_operands = 0 : i64, tpu.core_type = #tpu.core_type<tc>, window_params = [{transform_indices = @transform_0, window_bounds = array<i64: 64, 512>}, {transform_indices = @transform_1, window_bounds = array<i64: 4, 64, 512>}, {transform_indices = @transform_2, window_bounds = array<i64: 4, 64, 512>}]} {
    %c4_i32 = arith.constant 4 : i32
    %0 = arith.muli %arg2, %c4_i32 : i32
    %c0 = arith.constant 0 : index
    %c0_0 = arith.constant 0 : index
    %1 = vector.load %arg5[%c0, %c0_0] : memref<64x512xf32, #tpu.memory_space<vmem>>, vector<64x512xf32>
    %c0_1 = arith.constant 0 : index
    %2 = memref.load %arg4[%c0_1] : memref<1xf32, #tpu.memory_space<smem>>
    %cst = arith.constant 1.1920929E-7 : f32
    %3 = vector.broadcast %cst : f32 to vector<64x512xf32>
    %4 = arith.addf %1, %3 : vector<64x512xf32>
    %5 = vector.broadcast %2 : f32 to vector<64x512xf32>
    %6 = arith.divf %5, %4 : vector<64x512xf32>
    %c0_i32 = arith.constant 0 : i32
    %7 = arith.addi %0, %c0_i32 : i32
    %8 = arith.index_cast %7 : i32 to index
    %9 = memref.load %arg3[%8] : memref<4xf32, #tpu.memory_space<smem>>
    %10 = vector.broadcast %9 : f32 to vector<64x512xf32>
    %11 = arith.mulf %10, %1 : vector<64x512xf32>
    %cst_2 = arith.constant 0.636619746 : f32
    %12 = vector.broadcast %cst_2 : f32 to vector<64x512xf32>
    %13 = arith.mulf %11, %12 : vector<64x512xf32>
    %cst_3 = arith.constant 5.000000e-01 : f32
    %14 = vector.broadcast %cst_3 : f32 to vector<64x512xf32>
    %15 = arith.addf %13, %14 : vector<64x512xf32>
    %16 = math.floor %15 : vector<64x512xf32>
    %17 = arith.fptosi %16 : vector<64x512xf32> to vector<64x512xi32>
    %cst_4 = arith.constant 1.5703125 : f32
    %18 = vector.broadcast %cst_4 : f32 to vector<64x512xf32>
    %19 = arith.mulf %16, %18 : vector<64x512xf32>
    %20 = arith.subf %11, %19 : vector<64x512xf32>
    %cst_5 = arith.constant 4.83751297E-4 : f32
    %21 = vector.broadcast %cst_5 : f32 to vector<64x512xf32>
    %22 = arith.mulf %16, %21 : vector<64x512xf32>
    %23 = arith.subf %20, %22 : vector<64x512xf32>
    %cst_6 = arith.constant 7.549790e-08 : f32
    %24 = vector.broadcast %cst_6 : f32 to vector<64x512xf32>
    %25 = arith.mulf %16, %24 : vector<64x512xf32>
    %26 = arith.subf %23, %25 : vector<64x512xf32>
    %27 = arith.mulf %26, %26 : vector<64x512xf32>
    %28 = arith.mulf %26, %27 : vector<64x512xf32>
    %cst_7 = arith.constant -1.95152956E-4 : f32
    %29 = vector.broadcast %cst_7 : f32 to vector<64x512xf32>
    %30 = arith.mulf %27, %29 : vector<64x512xf32>
    %cst_8 = arith.constant 0.00833216123 : f32
    %31 = vector.broadcast %cst_8 : f32 to vector<64x512xf32>
    %32 = arith.addf %31, %30 : vector<64x512xf32>
    %33 = arith.mulf %27, %32 : vector<64x512xf32>
    %cst_9 = arith.constant -0.166666552 : f32
    %34 = vector.broadcast %cst_9 : f32 to vector<64x512xf32>
    %35 = arith.addf %34, %33 : vector<64x512xf32>
    %36 = arith.mulf %28, %35 : vector<64x512xf32>
    %37 = arith.addf %26, %36 : vector<64x512xf32>
    %cst_10 = arith.constant 5.000000e-01 : f32
    %38 = vector.broadcast %cst_10 : f32 to vector<64x512xf32>
    %39 = arith.mulf %38, %27 : vector<64x512xf32>
    %cst_11 = arith.constant 1.000000e+00 : f32
    %40 = vector.broadcast %cst_11 : f32 to vector<64x512xf32>
    %41 = arith.subf %40, %39 : vector<64x512xf32>
    %42 = arith.mulf %27, %27 : vector<64x512xf32>
    %cst_12 = arith.constant 2.44331568E-5 : f32
    %43 = vector.broadcast %cst_12 : f32 to vector<64x512xf32>
    %44 = arith.mulf %27, %43 : vector<64x512xf32>
    %cst_13 = arith.constant -0.00138873165 : f32
    %45 = vector.broadcast %cst_13 : f32 to vector<64x512xf32>
    %46 = arith.addf %45, %44 : vector<64x512xf32>
    %47 = arith.mulf %27, %46 : vector<64x512xf32>
    %cst_14 = arith.constant 0.0416666456 : f32
    %48 = vector.broadcast %cst_14 : f32 to vector<64x512xf32>
    %49 = arith.addf %48, %47 : vector<64x512xf32>
    %50 = arith.mulf %42, %49 : vector<64x512xf32>
    %51 = arith.addf %41, %50 : vector<64x512xf32>
    %c1_i32 = arith.constant 1 : i32
    %52 = vector.broadcast %c1_i32 : i32 to vector<64x512xi32>
    %53 = arith.andi %17, %52 : vector<64x512xi32>
    %c0_i32_15 = arith.constant 0 : i32
    %54 = vector.broadcast %c0_i32_15 : i32 to vector<64x512xi32>
    %55 = arith.cmpi ne, %53, %54 : vector<64x512xi32>
    %56 = arith.select %55, %51, %37 : vector<64x512xi1>, vector<64x512xf32>
    %57 = arith.select %55, %37, %51 : vector<64x512xi1>, vector<64x512xf32>
    %c2_i32 = arith.constant 2 : i32
    %58 = vector.broadcast %c2_i32 : i32 to vector<64x512xi32>
    %59 = arith.andi %17, %58 : vector<64x512xi32>
    %c0_i32_16 = arith.constant 0 : i32
    %60 = vector.broadcast %c0_i32_16 : i32 to vector<64x512xi32>
    %61 = arith.cmpi ne, %59, %60 : vector<64x512xi32>
    %cst_17 = arith.constant 0.000000e+00 : f32
    %62 = vector.broadcast %cst_17 : f32 to vector<64x512xf32>
    %63 = arith.subf %62, %56 : vector<64x512xf32>
    %64 = arith.select %61, %63, %56 : vector<64x512xi1>, vector<64x512xf32>
    %c1_i32_18 = arith.constant 1 : i32
    %65 = vector.broadcast %c1_i32_18 : i32 to vector<64x512xi32>
    %66 = arith.addi %17, %65 : vector<64x512xi32>
    %c2_i32_19 = arith.constant 2 : i32
    %67 = vector.broadcast %c2_i32_19 : i32 to vector<64x512xi32>
    %68 = arith.andi %66, %67 : vector<64x512xi32>
    %c0_i32_20 = arith.constant 0 : i32
    %69 = vector.broadcast %c0_i32_20 : i32 to vector<64x512xi32>
    %70 = arith.cmpi ne, %68, %69 : vector<64x512xi32>
    %cst_21 = arith.constant 0.000000e+00 : f32
    %71 = vector.broadcast %cst_21 : f32 to vector<64x512xf32>
    %72 = arith.subf %71, %57 : vector<64x512xf32>
    %73 = arith.select %70, %72, %57 : vector<64x512xi1>, vector<64x512xf32>
    %74 = arith.mulf %6, %73 : vector<64x512xf32>
    %c0_22 = arith.constant 0 : index
    %c0_23 = arith.constant 0 : index
    %c0_24 = arith.constant 0 : index
    %75 = vector.load %arg6[%c0_22, %c0_23, %c0_24] : memref<4x64x512xf32, #tpu.memory_space<vmem>>, vector<1x64x512xf32>
    %76 = vector.shape_cast %75 : vector<1x64x512xf32> to vector<64x512xf32>
    %77 = vector.shape_cast %74 : vector<64x512xf32> to vector<1x64x512xf32>
    tpu.vector_store %arg6[%c0_22, %c0_23, %c0_24], %77 {strides = array<i32>} : memref<4x64x512xf32, #tpu.memory_space<vmem>>, vector<1x64x512xf32>,
    %78 = arith.mulf %6, %64 : vector<64x512xf32>
    %c0_25 = arith.constant 0 : index
    %c0_26 = arith.constant 0 : index
    %c0_27 = arith.constant 0 : index
    %79 = vector.load %arg7[%c0_25, %c0_26, %c0_27] : memref<4x64x512xf32, #tpu.memory_space<vmem>>, vector<1x64x512xf32>
    %80 = vector.shape_cast %79 : vector<1x64x512xf32> to vector<64x512xf32>
    %81 = vector.shape_cast %78 : vector<64x512xf32> to vector<1x64x512xf32>
    tpu.vector_store %arg7[%c0_25, %c0_26, %c0_27], %81 {strides = array<i32>} : memref<4x64x512xf32, #tpu.memory_space<vmem>>, vector<1x64x512xf32>,
    %c1_i32_28 = arith.constant 1 : i32
    %82 = arith.addi %0, %c1_i32_28 : i32
    %83 = arith.index_cast %82 : i32 to index
    %84 = memref.load %arg3[%83] : memref<4xf32, #tpu.memory_space<smem>>
    %85 = vector.broadcast %84 : f32 to vector<64x512xf32>
    %86 = arith.mulf %85, %1 : vector<64x512xf32>
    %cst_29 = arith.constant 0.636619746 : f32
    %87 = vector.broadcast %cst_29 : f32 to vector<64x512xf32>
    %88 = arith.mulf %86, %87 : vector<64x512xf32>
    %cst_30 = arith.constant 5.000000e-01 : f32
    %89 = vector.broadcast %cst_30 : f32 to vector<64x512xf32>
    %90 = arith.addf %88, %89 : vector<64x512xf32>
    %91 = math.floor %90 : vector<64x512xf32>
    %92 = arith.fptosi %91 : vector<64x512xf32> to vector<64x512xi32>
    %cst_31 = arith.constant 1.5703125 : f32
    %93 = vector.broadcast %cst_31 : f32 to vector<64x512xf32>
    %94 = arith.mulf %91, %93 : vector<64x512xf32>
    %95 = arith.subf %86, %94 : vector<64x512xf32>
    %cst_32 = arith.constant 4.83751297E-4 : f32
    %96 = vector.broadcast %cst_32 : f32 to vector<64x512xf32>
    %97 = arith.mulf %91, %96 : vector<64x512xf32>
    %98 = arith.subf %95, %97 : vector<64x512xf32>
    %cst_33 = arith.constant 7.549790e-08 : f32
    %99 = vector.broadcast %cst_33 : f32 to vector<64x512xf32>
    %100 = arith.mulf %91, %99 : vector<64x512xf32>
    %101 = arith.subf %98, %100 : vector<64x512xf32>
    %102 = arith.mulf %101, %101 : vector<64x512xf32>
    %103 = arith.mulf %101, %102 : vector<64x512xf32>
    %cst_34 = arith.constant -1.95152956E-4 : f32
    %104 = vector.broadcast %cst_34 : f32 to vector<64x512xf32>
    %105 = arith.mulf %102, %104 : vector<64x512xf32>
    %cst_35 = arith.constant 0.00833216123 : f32
    %106 = vector.broadcast %cst_35 : f32 to vector<64x512xf32>
    %107 = arith.addf %106, %105 : vector<64x512xf32>
    %108 = arith.mulf %102, %107 : vector<64x512xf32>
    %cst_36 = arith.constant -0.166666552 : f32
    %109 = vector.broadcast %cst_36 : f32 to vector<64x512xf32>
    %110 = arith.addf %109, %108 : vector<64x512xf32>
    %111 = arith.mulf %103, %110 : vector<64x512xf32>
    %112 = arith.addf %101, %111 : vector<64x512xf32>
    %cst_37 = arith.constant 5.000000e-01 : f32
    %113 = vector.broadcast %cst_37 : f32 to vector<64x512xf32>
    %114 = arith.mulf %113, %102 : vector<64x512xf32>
    %cst_38 = arith.constant 1.000000e+00 : f32
    %115 = vector.broadcast %cst_38 : f32 to vector<64x512xf32>
    %116 = arith.subf %115, %114 : vector<64x512xf32>
    %117 = arith.mulf %102, %102 : vector<64x512xf32>
    %cst_39 = arith.constant 2.44331568E-5 : f32
    %118 = vector.broadcast %cst_39 : f32 to vector<64x512xf32>
    %119 = arith.mulf %102, %118 : vector<64x512xf32>
    %cst_40 = arith.constant -0.00138873165 : f32
    %120 = vector.broadcast %cst_40 : f32 to vector<64x512xf32>
    %121 = arith.addf %120, %119 : vector<64x512xf32>
    %122 = arith.mulf %102, %121 : vector<64x512xf32>
    %cst_41 = arith.constant 0.0416666456 : f32
    %123 = vector.broadcast %cst_41 : f32 to vector<64x512xf32>
    %124 = arith.addf %123, %122 : vector<64x512xf32>
    %125 = arith.mulf %117, %124 : vector<64x512xf32>
    %126 = arith.addf %116, %125 : vector<64x512xf32>
    %c1_i32_42 = arith.constant 1 : i32
    %127 = vector.broadcast %c1_i32_42 : i32 to vector<64x512xi32>
    %128 = arith.andi %92, %127 : vector<64x512xi32>
    %c0_i32_43 = arith.constant 0 : i32
    %129 = vector.broadcast %c0_i32_43 : i32 to vector<64x512xi32>
    %130 = arith.cmpi ne, %128, %129 : vector<64x512xi32>
    %131 = arith.select %130, %126, %112 : vector<64x512xi1>, vector<64x512xf32>
    %132 = arith.select %130, %112, %126 : vector<64x512xi1>, vector<64x512xf32>
    %c2_i32_44 = arith.constant 2 : i32
    %133 = vector.broadcast %c2_i32_44 : i32 to vector<64x512xi32>
    %134 = arith.andi %92, %133 : vector<64x512xi32>
    %c0_i32_45 = arith.constant 0 : i32
    %135 = vector.broadcast %c0_i32_45 : i32 to vector<64x512xi32>
    %136 = arith.cmpi ne, %134, %135 : vector<64x512xi32>
    %cst_46 = arith.constant 0.000000e+00 : f32
    %137 = vector.broadcast %cst_46 : f32 to vector<64x512xf32>
    %138 = arith.subf %137, %131 : vector<64x512xf32>
    %139 = arith.select %136, %138, %131 : vector<64x512xi1>, vector<64x512xf32>
    %c1_i32_47 = arith.constant 1 : i32
    %140 = vector.broadcast %c1_i32_47 : i32 to vector<64x512xi32>
    %141 = arith.addi %92, %140 : vector<64x512xi32>
    %c2_i32_48 = arith.constant 2 : i32
    %142 = vector.broadcast %c2_i32_48 : i32 to vector<64x512xi32>
    %143 = arith.andi %141, %142 : vector<64x512xi32>
    %c0_i32_49 = arith.constant 0 : i32
    %144 = vector.broadcast %c0_i32_49 : i32 to vector<64x512xi32>
    %145 = arith.cmpi ne, %143, %144 : vector<64x512xi32>
    %cst_50 = arith.constant 0.000000e+00 : f32
    %146 = vector.broadcast %cst_50 : f32 to vector<64x512xf32>
    %147 = arith.subf %146, %132 : vector<64x512xf32>
    %148 = arith.select %145, %147, %132 : vector<64x512xi1>, vector<64x512xf32>
    %149 = arith.mulf %6, %148 : vector<64x512xf32>
    %c1 = arith.constant 1 : index
    %c0_51 = arith.constant 0 : index
    %c0_52 = arith.constant 0 : index
    %150 = vector.load %arg6[%c1, %c0_51, %c0_52] : memref<4x64x512xf32, #tpu.memory_space<vmem>>, vector<1x64x512xf32>
    %151 = vector.shape_cast %150 : vector<1x64x512xf32> to vector<64x512xf32>
    %152 = vector.shape_cast %149 : vector<64x512xf32> to vector<1x64x512xf32>
    tpu.vector_store %arg6[%c1, %c0_51, %c0_52], %152 {strides = array<i32>} : memref<4x64x512xf32, #tpu.memory_space<vmem>>, vector<1x64x512xf32>,
    %153 = arith.mulf %6, %139 : vector<64x512xf32>
    %c1_53 = arith.constant 1 : index
    %c0_54 = arith.constant 0 : index
    %c0_55 = arith.constant 0 : index
    %154 = vector.load %arg7[%c1_53, %c0_54, %c0_55] : memref<4x64x512xf32, #tpu.memory_space<vmem>>, vector<1x64x512xf32>
    %155 = vector.shape_cast %154 : vector<1x64x512xf32> to vector<64x512xf32>
    %156 = vector.shape_cast %153 : vector<64x512xf32> to vector<1x64x512xf32>
    tpu.vector_store %arg7[%c1_53, %c0_54, %c0_55], %156 {strides = array<i32>} : memref<4x64x512xf32, #tpu.memory_space<vmem>>, vector<1x64x512xf32>,
    %c2_i32_56 = arith.constant 2 : i32
    %157 = arith.addi %0, %c2_i32_56 : i32
    %158 = arith.index_cast %157 : i32 to index
    %159 = memref.load %arg3[%158] : memref<4xf32, #tpu.memory_space<smem>>
    %160 = vector.broadcast %159 : f32 to vector<64x512xf32>
    %161 = arith.mulf %160, %1 : vector<64x512xf32>
    %cst_57 = arith.constant 0.636619746 : f32
    %162 = vector.broadcast %cst_57 : f32 to vector<64x512xf32>
    %163 = arith.mulf %161, %162 : vector<64x512xf32>
    %cst_58 = arith.constant 5.000000e-01 : f32
    %164 = vector.broadcast %cst_58 : f32 to vector<64x512xf32>
    %165 = arith.addf %163, %164 : vector<64x512xf32>
    %166 = math.floor %165 : vector<64x512xf32>
    %167 = arith.fptosi %166 : vector<64x512xf32> to vector<64x512xi32>
    %cst_59 = arith.constant 1.5703125 : f32
    %168 = vector.broadcast %cst_59 : f32 to vector<64x512xf32>
    %169 = arith.mulf %166, %168 : vector<64x512xf32>
    %170 = arith.subf %161, %169 : vector<64x512xf32>
    %cst_60 = arith.constant 4.83751297E-4 : f32
    %171 = vector.broadcast %cst_60 : f32 to vector<64x512xf32>
    %172 = arith.mulf %166, %171 : vector<64x512xf32>
    %173 = arith.subf %170, %172 : vector<64x512xf32>
    %cst_61 = arith.constant 7.549790e-08 : f32
    %174 = vector.broadcast %cst_61 : f32 to vector<64x512xf32>
    %175 = arith.mulf %166, %174 : vector<64x512xf32>
    %176 = arith.subf %173, %175 : vector<64x512xf32>
    %177 = arith.mulf %176, %176 : vector<64x512xf32>
    %178 = arith.mulf %176, %177 : vector<64x512xf32>
    %cst_62 = arith.constant -1.95152956E-4 : f32
    %179 = vector.broadcast %cst_62 : f32 to vector<64x512xf32>
    %180 = arith.mulf %177, %179 : vector<64x512xf32>
    %cst_63 = arith.constant 0.00833216123 : f32
    %181 = vector.broadcast %cst_63 : f32 to vector<64x512xf32>
    %182 = arith.addf %181, %180 : vector<64x512xf32>
    %183 = arith.mulf %177, %182 : vector<64x512xf32>
    %cst_64 = arith.constant -0.166666552 : f32
    %184 = vector.broadcast %cst_64 : f32 to vector<64x512xf32>
    %185 = arith.addf %184, %183 : vector<64x512xf32>
    %186 = arith.mulf %178, %185 : vector<64x512xf32>
    %187 = arith.addf %176, %186 : vector<64x512xf32>
    %cst_65 = arith.constant 5.000000e-01 : f32
    %188 = vector.broadcast %cst_65 : f32 to vector<64x512xf32>
    %189 = arith.mulf %188, %177 : vector<64x512xf32>
    %cst_66 = arith.constant 1.000000e+00 : f32
    %190 = vector.broadcast %cst_66 : f32 to vector<64x512xf32>
    %191 = arith.subf %190, %189 : vector<64x512xf32>
    %192 = arith.mulf %177, %177 : vector<64x512xf32>
    %cst_67 = arith.constant 2.44331568E-5 : f32
    %193 = vector.broadcast %cst_67 : f32 to vector<64x512xf32>
    %194 = arith.mulf %177, %193 : vector<64x512xf32>
    %cst_68 = arith.constant -0.00138873165 : f32
    %195 = vector.broadcast %cst_68 : f32 to vector<64x512xf32>
    %196 = arith.addf %195, %194 : vector<64x512xf32>
    %197 = arith.mulf %177, %196 : vector<64x512xf32>
    %cst_69 = arith.constant 0.0416666456 : f32
    %198 = vector.broadcast %cst_69 : f32 to vector<64x512xf32>
    %199 = arith.addf %198, %197 : vector<64x512xf32>
    %200 = arith.mulf %192, %199 : vector<64x512xf32>
    %201 = arith.addf %191, %200 : vector<64x512xf32>
    %c1_i32_70 = arith.constant 1 : i32
    %202 = vector.broadcast %c1_i32_70 : i32 to vector<64x512xi32>
    %203 = arith.andi %167, %202 : vector<64x512xi32>
    %c0_i32_71 = arith.constant 0 : i32
    %204 = vector.broadcast %c0_i32_71 : i32 to vector<64x512xi32>
    %205 = arith.cmpi ne, %203, %204 : vector<64x512xi32>
    %206 = arith.select %205, %201, %187 : vector<64x512xi1>, vector<64x512xf32>
    %207 = arith.select %205, %187, %201 : vector<64x512xi1>, vector<64x512xf32>
    %c2_i32_72 = arith.constant 2 : i32
    %208 = vector.broadcast %c2_i32_72 : i32 to vector<64x512xi32>
    %209 = arith.andi %167, %208 : vector<64x512xi32>
    %c0_i32_73 = arith.constant 0 : i32
    %210 = vector.broadcast %c0_i32_73 : i32 to vector<64x512xi32>
    %211 = arith.cmpi ne, %209, %210 : vector<64x512xi32>
    %cst_74 = arith.constant 0.000000e+00 : f32
    %212 = vector.broadcast %cst_74 : f32 to vector<64x512xf32>
    %213 = arith.subf %212, %206 : vector<64x512xf32>
    %214 = arith.select %211, %213, %206 : vector<64x512xi1>, vector<64x512xf32>
    %c1_i32_75 = arith.constant 1 : i32
    %215 = vector.broadcast %c1_i32_75 : i32 to vector<64x512xi32>
    %216 = arith.addi %167, %215 : vector<64x512xi32>
    %c2_i32_76 = arith.constant 2 : i32
    %217 = vector.broadcast %c2_i32_76 : i32 to vector<64x512xi32>
    %218 = arith.andi %216, %217 : vector<64x512xi32>
    %c0_i32_77 = arith.constant 0 : i32
    %219 = vector.broadcast %c0_i32_77 : i32 to vector<64x512xi32>
    %220 = arith.cmpi ne, %218, %219 : vector<64x512xi32>
    %cst_78 = arith.constant 0.000000e+00 : f32
    %221 = vector.broadcast %cst_78 : f32 to vector<64x512xf32>
    %222 = arith.subf %221, %207 : vector<64x512xf32>
    %223 = arith.select %220, %222, %207 : vector<64x512xi1>, vector<64x512xf32>
    %224 = arith.mulf %6, %223 : vector<64x512xf32>
    %c2 = arith.constant 2 : index
    %c0_79 = arith.constant 0 : index
    %c0_80 = arith.constant 0 : index
    %225 = vector.load %arg6[%c2, %c0_79, %c0_80] : memref<4x64x512xf32, #tpu.memory_space<vmem>>, vector<1x64x512xf32>
    %226 = vector.shape_cast %225 : vector<1x64x512xf32> to vector<64x512xf32>
    %227 = vector.shape_cast %224 : vector<64x512xf32> to vector<1x64x512xf32>
    tpu.vector_store %arg6[%c2, %c0_79, %c0_80], %227 {strides = array<i32>} : memref<4x64x512xf32, #tpu.memory_space<vmem>>, vector<1x64x512xf32>,
    %228 = arith.mulf %6, %214 : vector<64x512xf32>
    %c2_81 = arith.constant 2 : index
    %c0_82 = arith.constant 0 : index
    %c0_83 = arith.constant 0 : index
    %229 = vector.load %arg7[%c2_81, %c0_82, %c0_83] : memref<4x64x512xf32, #tpu.memory_space<vmem>>, vector<1x64x512xf32>
    %230 = vector.shape_cast %229 : vector<1x64x512xf32> to vector<64x512xf32>
    %231 = vector.shape_cast %228 : vector<64x512xf32> to vector<1x64x512xf32>
    tpu.vector_store %arg7[%c2_81, %c0_82, %c0_83], %231 {strides = array<i32>} : memref<4x64x512xf32, #tpu.memory_space<vmem>>, vector<1x64x512xf32>,
    %c3_i32 = arith.constant 3 : i32
    %232 = arith.addi %0, %c3_i32 : i32
    %233 = arith.index_cast %232 : i32 to index
    %234 = memref.load %arg3[%233] : memref<4xf32, #tpu.memory_space<smem>>
    %235 = vector.broadcast %234 : f32 to vector<64x512xf32>
    %236 = arith.mulf %235, %1 : vector<64x512xf32>
    %cst_84 = arith.constant 0.636619746 : f32
    %237 = vector.broadcast %cst_84 : f32 to vector<64x512xf32>
    %238 = arith.mulf %236, %237 : vector<64x512xf32>
    %cst_85 = arith.constant 5.000000e-01 : f32
    %239 = vector.broadcast %cst_85 : f32 to vector<64x512xf32>
    %240 = arith.addf %238, %239 : vector<64x512xf32>
    %241 = math.floor %240 : vector<64x512xf32>
    %242 = arith.fptosi %241 : vector<64x512xf32> to vector<64x512xi32>
    %cst_86 = arith.constant 1.5703125 : f32
    %243 = vector.broadcast %cst_86 : f32 to vector<64x512xf32>
    %244 = arith.mulf %241, %243 : vector<64x512xf32>
    %245 = arith.subf %236, %244 : vector<64x512xf32>
    %cst_87 = arith.constant 4.83751297E-4 : f32
    %246 = vector.broadcast %cst_87 : f32 to vector<64x512xf32>
    %247 = arith.mulf %241, %246 : vector<64x512xf32>
    %248 = arith.subf %245, %247 : vector<64x512xf32>
    %cst_88 = arith.constant 7.549790e-08 : f32
    %249 = vector.broadcast %cst_88 : f32 to vector<64x512xf32>
    %250 = arith.mulf %241, %249 : vector<64x512xf32>
    %251 = arith.subf %248, %250 : vector<64x512xf32>
    %252 = arith.mulf %251, %251 : vector<64x512xf32>
    %253 = arith.mulf %251, %252 : vector<64x512xf32>
    %cst_89 = arith.constant -1.95152956E-4 : f32
    %254 = vector.broadcast %cst_89 : f32 to vector<64x512xf32>
    %255 = arith.mulf %252, %254 : vector<64x512xf32>
    %cst_90 = arith.constant 0.00833216123 : f32
    %256 = vector.broadcast %cst_90 : f32 to vector<64x512xf32>
    %257 = arith.addf %256, %255 : vector<64x512xf32>
    %258 = arith.mulf %252, %257 : vector<64x512xf32>
    %cst_91 = arith.constant -0.166666552 : f32
    %259 = vector.broadcast %cst_91 : f32 to vector<64x512xf32>
    %260 = arith.addf %259, %258 : vector<64x512xf32>
    %261 = arith.mulf %253, %260 : vector<64x512xf32>
    %262 = arith.addf %251, %261 : vector<64x512xf32>
    %cst_92 = arith.constant 5.000000e-01 : f32
    %263 = vector.broadcast %cst_92 : f32 to vector<64x512xf32>
    %264 = arith.mulf %263, %252 : vector<64x512xf32>
    %cst_93 = arith.constant 1.000000e+00 : f32
    %265 = vector.broadcast %cst_93 : f32 to vector<64x512xf32>
    %266 = arith.subf %265, %264 : vector<64x512xf32>
    %267 = arith.mulf %252, %252 : vector<64x512xf32>
    %cst_94 = arith.constant 2.44331568E-5 : f32
    %268 = vector.broadcast %cst_94 : f32 to vector<64x512xf32>
    %269 = arith.mulf %252, %268 : vector<64x512xf32>
    %cst_95 = arith.constant -0.00138873165 : f32
    %270 = vector.broadcast %cst_95 : f32 to vector<64x512xf32>
    %271 = arith.addf %270, %269 : vector<64x512xf32>
    %272 = arith.mulf %252, %271 : vector<64x512xf32>
    %cst_96 = arith.constant 0.0416666456 : f32
    %273 = vector.broadcast %cst_96 : f32 to vector<64x512xf32>
    %274 = arith.addf %273, %272 : vector<64x512xf32>
    %275 = arith.mulf %267, %274 : vector<64x512xf32>
    %276 = arith.addf %266, %275 : vector<64x512xf32>
    %c1_i32_97 = arith.constant 1 : i32
    %277 = vector.broadcast %c1_i32_97 : i32 to vector<64x512xi32>
    %278 = arith.andi %242, %277 : vector<64x512xi32>
    %c0_i32_98 = arith.constant 0 : i32
    %279 = vector.broadcast %c0_i32_98 : i32 to vector<64x512xi32>
    %280 = arith.cmpi ne, %278, %279 : vector<64x512xi32>
    %281 = arith.select %280, %276, %262 : vector<64x512xi1>, vector<64x512xf32>
    %282 = arith.select %280, %262, %276 : vector<64x512xi1>, vector<64x512xf32>
    %c2_i32_99 = arith.constant 2 : i32
    %283 = vector.broadcast %c2_i32_99 : i32 to vector<64x512xi32>
    %284 = arith.andi %242, %283 : vector<64x512xi32>
    %c0_i32_100 = arith.constant 0 : i32
    %285 = vector.broadcast %c0_i32_100 : i32 to vector<64x512xi32>
    %286 = arith.cmpi ne, %284, %285 : vector<64x512xi32>
    %cst_101 = arith.constant 0.000000e+00 : f32
    %287 = vector.broadcast %cst_101 : f32 to vector<64x512xf32>
    %288 = arith.subf %287, %281 : vector<64x512xf32>
    %289 = arith.select %286, %288, %281 : vector<64x512xi1>, vector<64x512xf32>
    %c1_i32_102 = arith.constant 1 : i32
    %290 = vector.broadcast %c1_i32_102 : i32 to vector<64x512xi32>
    %291 = arith.addi %242, %290 : vector<64x512xi32>
    %c2_i32_103 = arith.constant 2 : i32
    %292 = vector.broadcast %c2_i32_103 : i32 to vector<64x512xi32>
    %293 = arith.andi %291, %292 : vector<64x512xi32>
    %c0_i32_104 = arith.constant 0 : i32
    %294 = vector.broadcast %c0_i32_104 : i32 to vector<64x512xi32>
    %295 = arith.cmpi ne, %293, %294 : vector<64x512xi32>
    %cst_105 = arith.constant 0.000000e+00 : f32
    %296 = vector.broadcast %cst_105 : f32 to vector<64x512xf32>
    %297 = arith.subf %296, %282 : vector<64x512xf32>
    %298 = arith.select %295, %297, %282 : vector<64x512xi1>, vector<64x512xf32>
    %299 = arith.mulf %6, %298 : vector<64x512xf32>
    %c3 = arith.constant 3 : index
    %c0_106 = arith.constant 0 : index
    %c0_107 = arith.constant 0 : index
    %300 = vector.load %arg6[%c3, %c0_106, %c0_107] : memref<4x64x512xf32, #tpu.memory_space<vmem>>, vector<1x64x512xf32>
    %301 = vector.shape_cast %300 : vector<1x64x512xf32> to vector<64x512xf32>
    %302 = vector.shape_cast %299 : vector<64x512xf32> to vector<1x64x512xf32>
    tpu.vector_store %arg6[%c3, %c0_106, %c0_107], %302 {strides = array<i32>} : memref<4x64x512xf32, #tpu.memory_space<vmem>>, vector<1x64x512xf32>,
    %303 = arith.mulf %6, %289 : vector<64x512xf32>
    %c3_108 = arith.constant 3 : index
    %c0_109 = arith.constant 0 : index
    %c0_110 = arith.constant 0 : index
    %304 = vector.load %arg7[%c3_108, %c0_109, %c0_110] : memref<4x64x512xf32, #tpu.memory_space<vmem>>, vector<1x64x512xf32>
    %305 = vector.shape_cast %304 : vector<1x64x512xf32> to vector<64x512xf32>
    %306 = vector.shape_cast %303 : vector<64x512xf32> to vector<1x64x512xf32>
    tpu.vector_store %arg7[%c3_108, %c0_109, %c0_110], %306 {strides = array<i32>} : memref<4x64x512xf32, #tpu.memory_space<vmem>>, vector<1x64x512xf32>,
    return
  }
  func.func @transform_0(%arg0: i32, %arg1: i32, %arg2: i32, %arg3: memref<4xf32, #tpu.memory_space<smem>>, %arg4: memref<1xf32, #tpu.memory_space<smem>>) -> (i32, i32) {
    %c0_i32 = arith.constant 0 : i32
    return %arg0, %arg1 : i32, i32
  }
  func.func @transform_1(%arg0: i32, %arg1: i32, %arg2: i32, %arg3: memref<4xf32, #tpu.memory_space<smem>>, %arg4: memref<1xf32, #tpu.memory_space<smem>>) -> (i32, i32, i32) {
    %c0_i32 = arith.constant 0 : i32
    return %arg2, %arg0, %arg1 : i32, i32, i32
  }
  func.func @transform_2(%arg0: i32, %arg1: i32, %arg2: i32, %arg3: memref<4xf32, #tpu.memory_space<smem>>, %arg4: memref<1xf32, #tpu.memory_space<smem>>) -> (i32, i32, i32) {
    %c0_i32 = arith.constant 0 : i32
    return %arg2, %arg0, %arg1 : i32, i32, i32
  }
}

</mosaic_0001>

<bundles_post_ra>
// kernel: tpu_custom_call.1
= control target key start
LH: loop header
LB: loop body
LE: loop exit
PB: predicated region body
PF: predicated region fallthrough
CT: control target
= control target key end

     0   :  { %s11059_s0 = inlined_call_operand.vmem [shape: f32[4], index: 0, kind: input, shape index: {}]   ;;  %s11060_s1 = inlined_call_operand.<no memory space> [shape: f32[1], index: 1, kind: input, shape index: {}]   ;;  %s11061_s2 = inlined_call_operand.hbm [shape: f32[64,512], index: 2, kind: input, shape index: {}]   ;;  %s11062_s3 = inlined_call_operand.hbm [shape: f32[4,64,512], index: 3, kind: output, shape index: {0}]   ;;  %s11063_s4 = inlined_call_operand.hbm [shape: f32[4,64,512], index: 4, kind: output, shape index: {1}]  }
   0x1   :  { %s10_s17 = sshll.u32 %s11059_s0, 4  ;;  %s11_s17 = int_to_ptr.vmem [resolvable:$true] %s10_s17 }
   0x2   :  { %s6401_s18 = scalar_lea.vmem %s11_s17, 16  ;;  %p6406_p1 = scmp.lt.s32.totalorder %s11_s17, %s11_s17 }
   0x3   :  { %p6402_p0 = scmp.ne.s32.totalorder %s11_s17, %s6401_s18  ;;  %p6407_p2 = scmp.lt.s32.totalorder %s6401_s18, %s6401_s18 }
   0x5   :  { %p6408_p3 = por %p6407_p2, %p6406_p1 }
   0x7   :  { %p6409_p4 = pnand %p6408_p3, %p6402_p0 }
   0x9   :  { %6412 = shalt.err (!%p6409_p4)  }
   0xa   :  { %s6487_s19 = smov [#allocation3]  }
   0xb   :  { %13 = dma.vmem_to_smem %s11_s17, 16, %s6487_s19, [#allocation2] }
   0xc   :  { %6479 = dma.done.wait [#allocation2], 16 }
   0xd   :  { %6480 = vsyncadd [#allocation2], 4294967280 }
   0xe   :  { %16 = sfence }
   0xf   :  { %17 = vsyncpa [#allocation6], 0 }
  0x10   :  { %18 = vsyncpa [#allocation7], 0 }
  0x11   :  { %19 = vsyncpa [#allocation10], 0  ;;  %s6488_s20 = smov [#allocation5]   ;;  %s6413_s23 = scalar_lea.hbm %s11061_s2, 4096 }
  0x12   :  { %s25_s21 = sshll.u32 %s6488_s20, 4  ;;  %p6414_p5 = scmp.ne.s32.totalorder %s11061_s2, %s6413_s23  ;;  %s26_s21 = int_to_ptr.vmem [resolvable:$true] %s25_s21 }
  0x13   :  { %p6417_p6 = scmp.lt.u32.totalorder %s6413_s23, %s11061_s2 }
  0x15   :  { %p6419_p7 = pnand %p6417_p6, %p6414_p5 }
  0x17   :  { %6422 = shalt.err (!%p6419_p7)
}
  0x18   :  { %s6423_s28 = scalar_lea.vmem %s26_s21, 4096  ;;  %p6428_p9 = scmp.lt.s32.totalorder %s26_s21, %s26_s21 }
  0x19   :  { %p6424_p8 = scmp.ne.s32.totalorder %s26_s21, %s6423_s28  ;;  %p6429_p10 = scmp.lt.s32.totalorder %s6423_s28, %s6423_s28 }
  0x1b   :  { %p6430_p11 = por %p6429_p10, %p6428_p9 }
  0x1d   :  { %p6431_p12 = pnand %p6430_p11, %p6424_p8 }
  0x1f   :  { %6434 = shalt.err (!%p6431_p12)
}
  0x20   :  { %s6489_s29 = smov 512   ;;  %s6490_s30 = smov 32  }
  0x21   :  { %31 = dma.hbm_to_vmem [thread:$0]  %s11061_s2, 4096, %s26_s21, [#allocation6], %s6489_s29, %s6489_s29, %s6490_s30  }
  0x22   :  { %6481 = dma.done.wait [#allocation6], 4096  }
  0x23   :  { %6482 = vsyncadd [#allocation6], 4294963200  ;;  %s166_s7 = sld [smem:[#allocation3]]  ;;  %v36_v0 = vld [vmem:[#allocation5] sm:$0xff]  ;;  %v37_v2 = vld [vmem:[#allocation5 + $0x8] sm:$0xff]  ;;  %v6559_v41 = vstv %s11060_s1  ;;  %s7711_s1 = sld [smem:[#allocation3 + $0x1]] }
  0x24   :  { %v38_v3 = vld [vmem:[#allocation5 + $0x10] sm:$0xff]  ;;  %v69_v4 = vadd.f32 1.1920929e-07, %v36_v0  ;;  %v39_v7 = vld [vmem:[#allocation5 + $0x18] sm:$0xff]  ;;  %v70_v8 = vadd.f32 1.1920929e-07, %v37_v2  ;;  %v40_v14 = vld [vmem:[#allocation5 + $0x20] sm:$0xff]  ;;  %s8802_s9 = sld [smem:[#allocation3 + $0x2]] }
  0x25   :  { %v71_v22 = vadd.f32 1.1920929e-07, %v38_v3  ;;  %v72_v23 = vadd.f32 1.1920929e-07, %v39_v7  ;;  %v41_v40 = vld [vmem:[#allocation5 + $0x28] sm:$0xff]  ;;  %v6561_v43 = vadd.f32 1.1920929e-07, %v40_v14  ;;  %s9904_s10 = sld [smem:[#allocation3 + $0x3]]  ;;  %s6491_s11 = smov [#allocation8]  }
  0x26   :  { %6241 = vrcp.f32 %v69_v4  ;;  %v6563_v46 = vadd.f32 1.1920929e-07, %v41_v40  ;;  %s5948_s12 = sshll.u32 %s6491_s11, 4  ;;  %s10875_s12 = int_to_ptr.vmem [resolvable:$true] %s5948_s12 }
  0x27   :  { %6243 = vrcp.f32 %v70_v8  ;;  %s6435_s13 = scalar_lea.vmem %s10875_s12, 16384  ;;  %p6440_p0 = scmp.lt.s32.totalorder %s10875_s12, %s10875_s12 }
  0x28   :  { %6245 = vrcp.f32 %v71_v22  ;;  %p6436_p13 = scmp.ne.s32.totalorder %s10875_s12, %s6435_s13  ;;  %p6441_p1 = scmp.lt.s32.totalorder %s6435_s13, %s6435_s13 }
  0x29   :  { %v6536_v1 = vstv %s166_s7  ;;  %6247 = vrcp.f32 %v72_v23 }
  0x2a   :  { %v168_v5 = vmul.f32 %v6536_v1, %v36_v0  ;;  %v169_v6 = vmul.f32 %v6536_v1, %v37_v2  ;;  %v6541_v9 = vmul.f32 %v6536_v1, %v38_v3  ;;  %v6544_v10 = vmul.f32 %v6536_v1, %v39_v7  ;;  %p6442_p2 = por %p6441_p1, %p6440_p0 }
  0x2b   :  { %v6549_v21 = vmul.f32 %v6536_v1, %v40_v14  ;;  %v6568_v51 = vmul.f32 %v6536_v1, %v41_v40  ;;  %6249 = vrcp.f32 %v6561_v43 }
  0x2c   :  { %v200_v11 = vmul.f32 0.63661975, %v168_v5  ;;  %v201_v12 = vmul.f32 0.63661975, %v169_v6  ;;  %v202_v13 = vmul.f32 0.63661975, %v6541_v9  ;;  %6251 = vrcp.f32 %v6563_v46  ;;  %p6443_p3 = pnand %p6442_p2, %p6436_p13 }
  0x2d   :  { %v203_v17 = vmul.f32 0.63661975, %v6544_v10  ;;  %v204_v35 = vmul.f32 0.63661975, %v6549_v21 }
  0x2e   :  { %v232_v15 = vadd.f32 0.5, %v200_v11  ;;  %v233_v16 = vadd.f32 0.5, %v201_v12  ;;  %v234_v18 = vadd.f32 0.5, %v202_v13 }
  0x2f   :  { %v235_v27 = vadd.f32 0.5, %v203_v17  ;;  %v6574_v56 = vadd.f32 0.5, %v204_v35 }
  0x30   :  { %v264_v19 = vfloor.f32 %v232_v15  ;;  %v265_v20 = vfloor.f32 %v233_v16  ;;  %v266_v31 = vfloor.f32 %v234_v18  ;;  %v6242_v47 = vpop.eup %6241 }
  0x31   :  { %v6244_v52 = vpop.eup %6243  ;;  %v6572_v55 = vfloor.f32 %v235_v27  ;;  %v6578_v61 = vmul.f32 %v6242_v47, %v6559_v41 }
  0x32   :  { %v5979_v24 = vtrunc.f32 %v264_v19  ;;  %v328_v25 = vmul.f32 1.5703125, %v264_v19  ;;  %v392_v26 = vmul.f32 0.0004837513, %v264_v19  ;;  %v5981_v28 = vtrunc.f32 %v265_v20  ;;  %v6246_v22 = vpop.eup %6245 }
  0x33   :  { %v329_v29 = vmul.f32 1.5703125, %v265_v20  ;;  %v393_v30 = vmul.f32 0.0004837513, %v265_v20  ;;  %v456_v34 = vmul.f32 7.54979e-08, %v264_v19  ;;  %v457_v38 = vmul.f32 7.54979e-08, %v265_v20  ;;  %v6597_v27 = vpop.eup %6247 }
  0x34   :  { %v6551_v32 = vcvt.f32.s32 %v5979_v24  ;;  %v360_v33 = vsub.f32 %v168_v5, %v328_v25  ;;  %v6554_v36 = vcvt.f32.s32 %v5981_v28  ;;  %v5983_v39 = vtrunc.f32 %v266_v31  ;;  %11587 = vst [vmem:[#allocation15_spill] sm:$0xff] %v6578_v61 }
  0x35   :  { %v361_v37 = vsub.f32 %v169_v6, %v329_v29  ;;  %v330_v45 = vmul.f32 1.5703125, %v266_v31  ;;  %v394_v59 = vmul.f32 0.0004837513, %v266_v31  ;;  %v458_v60 = vmul.f32 7.54979e-08, %v266_v31 }
  0x36   :  { %v424_v42 = vsub.f32 %v360_v33, %v392_v26  ;;  %v1320_v49 = vadd.s32 1, %v6551_v32  ;;  %v1321_v50 = vadd.s32 1, %v6554_v36  ;;  %v6570_v54 = vcvt.f32.s32 %v5983_v39 }
  0x37   :  { %v425_v44 = vsub.f32 %v361_v37, %v393_v30  ;;  %v1064_v58 = vand.u32 1, %v6551_v32  ;;  %v1065_v63 = vand.u32 1, %v6554_v36  ;;  %v362_v0 = vsub.f32 %v6541_v9, %v330_v45 }
  0x38   :  { %v488_v48 = vsub.f32 %v424_v42, %v456_v34  ;;  %v1352_v3 = vand.u32 2, %v1320_v49  ;;  %v6583_v4 = vmul.f32 %v6244_v52, %v6559_v41  ;;  %v1353_v5 = vand.u32 2, %v1321_v50 }
  0x39   :  { %v489_v53 = vsub.f32 %v425_v44, %v457_v38  ;;  %v1066_v11 = vand.u32 1, %v6570_v54  ;;  %vm6586_vm0 = vcmp.ne.s32.totalorder %v1064_v58, 0  ;;  %v6591_v9 = vadd.s32 1, %v6570_v54 }
  0x3a   :  { %v520_v57 = vmul.f32 %v488_v48, %v488_v48  ;;  %vm6593_vm1 = vcmp.ne.s32.totalorder %v1065_v63, 0  ;;  %v426_v20 = vsub.f32 %v362_v0, %v394_v59  ;;  %vm6599_vm2 = vcmp.ne.s32.totalorder %v1352_v3, 0 }
  0x3b   :  { %v521_v62 = vmul.f32 %v489_v53, %v489_v53  ;;  %v331_v38 = vmul.f32 1.5703125, %v6572_v55  ;;  %v395_v50 = vmul.f32 0.0004837513, %v6572_v55  ;;  %vm6606_vm3 = vcmp.ne.s32.totalorder %v1353_v5, 0 }
  0x3c   :  { %v584_v2 = vmul.f32 -0.00019515296, %v520_v57  ;;  %v776_v6 = vmul.f32 0.5, %v520_v57  ;;  %v872_v7 = vmul.f32 2.4433157e-05, %v520_v57  ;;  %v552_v12 = vmul.f32 %v520_v57, %v488_v48 }
  0x3d   :  { %v585_v8 = vmul.f32 -0.00019515296, %v521_v62  ;;  %v873_v15 = vmul.f32 2.4433157e-05, %v521_v62  ;;  %v777_v18 = vmul.f32 0.5, %v521_v62  ;;  %v840_v24 = vmul.f32 %v520_v57, %v520_v57 }
  0x3e   :  { %v616_v13 = vadd.f32 0.008332161, %v584_v2  ;;  %v904_v16 = vadd.f32 -0.0013887316, %v872_v7  ;;  %v553_v25 = vmul.f32 %v521_v62, %v489_v53  ;;  %v808_v28 = vsub.f32 1.0, %v776_v6 }
  0x3f   :  { %v617_v17 = vadd.f32 0.008332161, %v585_v8  ;;  %v905_v26 = vadd.f32 -0.0013887316, %v873_v15  ;;  %v490_v33 = vsub.f32 %v426_v20, %v458_v60  ;;  %v841_v35 = vmul.f32 %v521_v62, %v521_v62 }
  0x40   :  { %v648_v23 = vmul.f32 %v616_v13, %v520_v57  ;;  %v936_v29 = vmul.f32 %v904_v16, %v520_v57  ;;  %v809_v42 = vsub.f32 1.0, %v777_v18  ;;  %v363_v49 = vsub.f32 %v6544_v10, %v331_v38 }
  0x41   :  { %v649_v31 = vmul.f32 %v617_v17, %v521_v62  ;;  %v937_v37 = vmul.f32 %v905_v26, %v521_v62  ;;  %v522_v44 = vmul.f32 %v490_v33, %v490_v33  ;;  %v1354_v63 = vand.u32 2, %v6591_v9 }
  0x42   :  { %v680_v34 = vadd.f32 -0.16666655, %v648_v23  ;;  %v968_v39 = vadd.f32 0.041666646, %v936_v29  ;;  %v5985_v0 = vtrunc.f32 %v6572_v55  ;;  %v427_v8 = vsub.f32 %v363_v49, %v395_v50 }
  0x43   :  { %v681_v40 = vadd.f32 -0.16666655, %v649_v31  ;;  %v969_v47 = vadd.f32 0.041666646, %v937_v37  ;;  %v586_v59 = vmul.f32 -0.00019515296, %v522_v44  ;;  %v554_v13 = vmul.f32 %v522_v44, %v490_v33 }
  0x44   :  { %v712_v45 = vmul.f32 %v680_v34, %v552_v12  ;;  %v1000_v52 = vmul.f32 %v968_v39, %v840_v24  ;;  %v874_v6 = vmul.f32 2.4433157e-05, %v522_v44  ;;  %v778_v5 = vmul.f32 0.5, %v522_v44 }
  0x45   :  { %v713_v57 = vmul.f32 %v681_v40, %v553_v25  ;;  %v1001_v62 = vmul.f32 %v969_v47, %v841_v35  ;;  %v618_v10 = vadd.f32 0.008332161, %v586_v59  ;;  %v459_v12 = vmul.f32 7.54979e-08, %v6572_v55 }
  0x46   :  { %v6610_v60 = vadd.f32 %v712_v45, %v488_v48  ;;  %v6614_v2 = vadd.f32 %v1000_v52, %v808_v28  ;;  %v906_v9 = vadd.f32 -0.0013887316, %v874_v6  ;;  %v6629_v17 = vcvt.f32.s32 %v5985_v0 }
  0x47   :  { %v6616_v3 = vadd.f32 %v713_v57, %v489_v53  ;;  %v6618_v7 = vadd.f32 %v1001_v62, %v809_v42  ;;  %v650_v15 = vmul.f32 %v618_v10, %v522_v44  ;;  %v491_v18 = vsub.f32 %v427_v8, %v459_v12 }
  0x48   :  { %v1160_v48 = vsel %vm6586_vm0, %v6610_v60, %v6614_v2  ;;  %v842_v55 = vmul.f32 %v522_v44, %v522_v44  ;;  %v938_v24 = vmul.f32 %v906_v9, %v522_v44  ;;  %v6634_v26 = vmul.f32 %v6246_v22, %v6559_v41 }
  0x49   :  { %v1416_v16 = vsub.f32 0.0, %v1160_v48  ;;  %v1161_v53 = vsel %vm6593_vm1, %v6616_v3, %v6618_v7  ;;  %v682_v23 = vadd.f32 -0.16666655, %v650_v15  ;;  %v810_v28 = vsub.f32 1.0, %v778_v5 }
  0x4a   :  { %v1417_v20 = vsub.f32 0.0, %v1161_v53  ;;  %11596 = vst [vmem:[#allocation16_spill] sm:$0xff] %v6634_v26  ;;  %v523_v29 = vmul.f32 %v491_v18, %v491_v18  ;;  %v970_v37 = vadd.f32 0.041666646, %v938_v24  ;;  %vm6642_vm4 = vcmp.ne.s32.totalorder %v1066_v11, 0 }
  0x4b   :  { %v1448_v25 = vsel %vm6599_vm2, %v1416_v16, %v1160_v48  ;;  %v714_v35 = vmul.f32 %v682_v23, %v554_v13  ;;  %vm6646_vm5 = vcmp.ne.s32.totalorder %v1354_v63, 0  ;;  %v1067_v45 = vand.u32 1, %v6629_v17 }
  0x4c   :  { %v1480_v31 = vmul.f32 %v1448_v25, %v6578_v61  ;;  %v1449_v34 = vsel %vm6606_vm3, %v1417_v20, %v1161_v53  ;;  %v587_v30 = vmul.f32 -0.00019515296, %v523_v29  ;;  %v1002_v42 = vmul.f32 %v970_v37, %v842_v55  ;;  %v42_v37 = vld [vmem:[#allocation5 + $0x30] sm:$0xff] }
  0x4d   :  { %v1481_v38 = vmul.f32 %v1449_v34, %v6583_v4  ;;  %v6650_v40 = vadd.f32 %v714_v35, %v490_v33  ;;  %v875_v44 = vmul.f32 2.4433157e-05, %v523_v29  ;;  %v555_v47 = vmul.f32 %v523_v29, %v491_v18 }
  0x4e   :  { %1512 = vst [vmem:[#allocation8] sm:$0xff] %v1480_v31  ;;  %v619_v49 = vadd.f32 0.008332161, %v587_v30  ;;  %v1323_v11 = vadd.s32 1, %v6629_v17  ;;  %v268_v50 = vfloor.f32 %v6574_v56  ;;  %v6655_v52 = vadd.f32 %v1002_v42, %v810_v28 }
  0x4f   :  { %1513 = vst [vmem:[#allocation8 + $0x8] sm:$0xff] %v1481_v38  ;;  %v779_v57 = vmul.f32 0.5, %v523_v29  ;;  %v907_v58 = vadd.f32 -0.0013887316, %v875_v44  ;;  %v205_v59 = vmul.f32 0.63661975, %v6568_v51  ;;  %v843_v6 = vmul.f32 %v523_v29, %v523_v29 }
  0x50   :  { %v651_v62 = vmul.f32 %v619_v49, %v523_v29  ;;  %v5987_v33 = vtrunc.f32 %v268_v50  ;;  %v332_v63 = vmul.f32 1.5703125, %v268_v50  ;;  %v396_v0 = vmul.f32 0.0004837513, %v268_v50 }
  0x51   :  { %v1162_v10 = vsel %vm6642_vm4, %v6650_v40, %v6655_v52  ;;  %v939_v5 = vmul.f32 %v907_v58, %v523_v29  ;;  %v237_v8 = vadd.f32 0.5, %v205_v59  ;;  %v460_v13 = vmul.f32 7.54979e-08, %v268_v50 }
  0x52   :  { %v1418_v12 = vsub.f32 0.0, %v1162_v10  ;;  %v683_v56 = vadd.f32 -0.16666655, %v651_v62  ;;  %v364_v48 = vsub.f32 %v6549_v21, %v332_v63  ;;  %v811_v15 = vsub.f32 1.0, %v779_v57  ;;  %v43_v62 = vld [vmem:[#allocation5 + $0x38] sm:$0xff] }
  0x53   :  { %v971_v9 = vadd.f32 0.041666646, %v939_v5  ;;  %v6663_v16 = vcvt.f32.s32 %v5987_v33  ;;  %v269_v53 = vfloor.f32 %v237_v8  ;;  %vm6669_vm6 = vcmp.ne.s32.totalorder %v1067_v45, 0 }
  0x54   :  { %v1450_v20 = vsel %vm6646_vm5, %v1418_v12, %v1162_v10  ;;  %v715_v23 = vmul.f32 %v683_v56, %v555_v47  ;;  %v428_v55 = vsub.f32 %v364_v48, %v396_v0  ;;  %v1355_v21 = vand.u32 2, %v1323_v11  ;;  %v6250_v56 = vpop.eup %6249 }
  0x55   :  { %11601 = vst [vmem:[#allocation17_spill] sm:$0xff] %v6663_v16  ;;  %v1482_v24 = vmul.f32 %v1450_v20, %v6634_v26  ;;  %v1003_v25 = vmul.f32 %v971_v9, %v843_v6  ;;  %v5989_v34 = vtrunc.f32 %v269_v53  ;;  %v333_v35 = vmul.f32 1.5703125, %v269_v53 }
  0x56   :  { %v6673_v29 = vadd.f32 %v715_v23, %v491_v18  ;;  %v492_v31 = vsub.f32 %v428_v55, %v460_v13  ;;  %v6677_v38 = vmul.f32 %v6597_v27, %v6559_v41  ;;  %v1324_v22 = vadd.s32 1, %v6663_v16 }
  0x57   :  { %1514 = vst [vmem:[#allocation8 + $0x10] sm:$0xff] %v1482_v24  ;;  %v6679_v43 = vadd.f32 %v1003_v25, %v811_v15  ;;  %v397_v30 = vmul.f32 0.0004837513, %v269_v53  ;;  %v1068_v44 = vand.u32 1, %v6663_v16  ;;  %v365_v18 = vsub.f32 %v6568_v51, %v333_v35  ;;  %v44_v24 = vld [vmem:[#allocation5 + $0x40] sm:$0xff] }
  0x58   :  { %11604 = vst [vmem:[#allocation18_spill] sm:$0xff] %v6677_v38  ;;  %v524_v42 = vmul.f32 %v492_v31, %v492_v31  ;;  %v75_v45 = vadd.f32 1.1920929e-07, %v42_v37  ;;  %vm1387_vm7 = vcmp.ne.s32.totalorder %v1355_v21, 0  ;;  %v461_v49 = vmul.f32 7.54979e-08, %v269_v53 }
  0x59   :  { %v1163_v47 = vsel %vm6669_vm6, %v6673_v29, %v6679_v43  ;;  %v6689_v27 = vmul.f32 %v6536_v1, %v42_v37  ;;  %v6691_v57 = vcvt.f32.s32 %v5989_v34  ;;  %v1356_v59 = vand.u32 2, %v1324_v22 }
  0x5a   :  { %v1419_v11 = vsub.f32 0.0, %v1163_v47  ;;  %v588_v50 = vmul.f32 -0.00019515296, %v524_v42  ;;  %v876_v58 = vmul.f32 2.4433157e-05, %v524_v42  ;;  %v429_v51 = vsub.f32 %v365_v18, %v397_v30 }
  0x5b   :  { %11605 = vst [vmem:[#allocation19_spill] sm:$0xff] %v6691_v57  ;;  %v780_v0 = vmul.f32 0.5, %v524_v42  ;;  %vm6694_vm8 = vcmp.ne.s32.totalorder %v1068_v44, 0  ;;  %6253 = vrcp.f32 %v75_v45  ;;  %v206_v12 = vmul.f32 0.63661975, %v6689_v27 }
  0x5c   :  { %v1451_v33 = vsel %vm1387_vm7, %v1419_v11, %v1163_v47  ;;  %v620_v63 = vadd.f32 0.008332161, %v588_v50  ;;  %v908_v5 = vadd.f32 -0.0013887316, %v876_v58  ;;  %v493_v8 = vsub.f32 %v429_v51, %v461_v49  ;;  %v11833_v28 = vld [vmem:[#allocation17_spill] sm:$0xff] }
  0x5d   :  { %v1483_v6 = vmul.f32 %v1451_v33, %v6677_v38  ;;  %v556_v48 = vmul.f32 %v524_v42, %v492_v31  ;;  %v1069_v46 = vand.u32 1, %v6691_v57  ;;  %v6702_v15 = vmul.f32 %v6536_v1, %v43_v62 }
  0x5e   :  { %v652_v13 = vmul.f32 %v620_v63, %v524_v42  ;;  %v844_v9 = vmul.f32 %v524_v42, %v524_v42  ;;  %v940_v53 = vmul.f32 %v908_v5, %v524_v42  ;;  %vm6704_vm9 = vcmp.ne.s32.totalorder %v1356_v59, 0  ;;  %v6252_v63 = vpop.eup %6251 }
  0x5f   :  { %1515 = vst [vmem:[#allocation8 + $0x18] sm:$0xff] %v1483_v6  ;;  %v525_v23 = vmul.f32 %v493_v8, %v493_v8  ;;  %v238_v55 = vadd.f32 0.5, %v206_v12  ;;  %v812_v21 = vsub.f32 1.0, %v780_v0  ;;  %v1325_v34 = vadd.s32 1, %v6691_v57 }
  0x60   :  { %v684_v25 = vadd.f32 -0.16666655, %v652_v13  ;;  %v76_v35 = vadd.f32 1.1920929e-07, %v43_v62  ;;  %v6710_v37 = vmul.f32 %v6250_v56, %v6559_v41  ;;  %v972_v22 = vadd.f32 0.041666646, %v940_v53 }
  0x61   :  { %v589_v30 = vmul.f32 -0.00019515296, %v525_v23  ;;  %v207_v44 = vmul.f32 0.63661975, %v6702_v15  ;;  %v877_v18 = vmul.f32 2.4433157e-05, %v525_v23  ;;  %v270_v45 = vfloor.f32 %v238_v55 }
  0x62   :  { %11610 = vst [vmem:[#allocation20_spill] sm:$0xff] %v6710_v37  ;;  %v716_v42 = vmul.f32 %v684_v25, %v556_v48  ;;  %v6714_v47 = vmul.f32 %v6536_v1, %v44_v24  ;;  %v1004_v49 = vmul.f32 %v972_v22, %v844_v9  ;;  %v557_v11 = vmul.f32 %v525_v23, %v493_v8 }
  0x63   :  { %v621_v50 = vadd.f32 0.008332161, %v589_v30  ;;  %v781_v58 = vmul.f32 0.5, %v525_v23  ;;  %v845_v51 = vmul.f32 %v525_v23, %v525_v23  ;;  %v909_v62 = vadd.f32 -0.0013887316, %v877_v18 }
  0x64   :  { %v6716_v59 = vadd.f32 %v716_v42, %v492_v31  ;;  %v334_v33 = vmul.f32 1.5703125, %v270_v45  ;;  %v6718_v0 = vadd.f32 %v1004_v49, %v812_v21  ;;  %v5991_v5 = vtrunc.f32 %v270_v45 }
  0x65   :  { %v653_v6 = vmul.f32 %v621_v50, %v525_v23  ;;  %v398_v12 = vmul.f32 0.0004837513, %v270_v45  ;;  %v6254_v56 = vpop.eup %6253  ;;  %v941_v48 = vmul.f32 %v909_v62, %v525_v23  ;;  %v462_v53 = vmul.f32 7.54979e-08, %v270_v45 }
  0x66   :  { %v366_v13 = vsub.f32 %v6689_v27, %v334_v33  ;;  %v239_v9 = vadd.f32 0.5, %v207_v44  ;;  %v1164_v31 = vsel %vm6694_vm8, %v6716_v59, %v6718_v0  ;;  %v1357_v25 = vand.u32 2, %v1325_v34 }
  0x67   :  { %v685_v55 = vadd.f32 -0.16666655, %v653_v6  ;;  %v208_v22 = vmul.f32 0.63661975, %v6714_v47  ;;  %v1420_v21 = vsub.f32 0.0, %v1164_v31  ;;  %v813_v30 = vsub.f32 1.0, %v781_v58 }
  0x68   :  { %v973_v42 = vadd.f32 0.041666646, %v941_v48  ;;  %v430_v18 = vsub.f32 %v366_v13, %v398_v12  ;;  %6255 = vrcp.f32 %v76_v35  ;;  %v271_v23 = vfloor.f32 %v239_v9 }
  0x69   :  { %v717_v49 = vmul.f32 %v685_v55, %v557_v11  ;;  %v77_v50 = vadd.f32 1.1920929e-07, %v44_v24  ;;  %v1452_v27 = vsel %vm6704_vm9, %v1420_v21, %v1164_v31  ;;  %v6728_v45 = vcvt.f32.s32 %v5991_v5 }
  0x6a   :  { %v1005_v44 = vmul.f32 %v973_v42, %v845_v51  ;;  %v494_v62 = vsub.f32 %v430_v18, %v462_v53  ;;  %v1484_v33 = vmul.f32 %v1452_v27, %v6710_v37  ;;  %vm6733_vm10 = vcmp.ne.s32.totalorder %v1069_v46, 0 }
  0x6b   :  { %11611 = vst [vmem:[#allocation21_spill] sm:$0xff] %v6728_v45  ;;  %v6731_v34 = vadd.f32 %v717_v49, %v493_v8  ;;  %v11613_v6 = vmov 0  ;;  %v240_v58 = vadd.f32 0.5, %v208_v22  ;;  %v5993_v24 = vtrunc.f32 %v271_v23 }
  0x6c   :  { %v11614_v6 = vsel %vm6733_vm10, 4294967295, %v11613_v6  ;;  %v6737_v11 = vadd.f32 %v1005_v44, %v813_v30  ;;  %v526_v35 = vmul.f32 %v494_v62, %v494_v62  ;;  %v335_v12 = vmul.f32 1.5703125, %v271_v23  ;;  %1516 = vst [vmem:[#allocation8 + $0x20] sm:$0xff] %v1484_v33 }
  0x6d   :  { %11612 = vst [vmem:[#allocation22_spill] sm:$0xff] %v6731_v34  ;;  %11615 = vst [vmem:[#allocation23_spill] sm:$0xff] %v11614_v6  ;;  %v6740_v20 = vmul.f32 %v6252_v63, %v6559_v41  ;;  %vm1389_vm11 = vcmp.ne.s32.totalorder %v1357_v25, 0  ;;  %v6743_v51 = vmul.f32 %v6254_v56, %v6559_v41  ;;  %6257 = vrcp.f32 %v77_v50 }
  0x6e   :  { %11616 = vst [vmem:[#allocation24_spill] sm:$0xff] %v6737_v11  ;;  %v1165_v8 = vsel %vm6733_vm10, %v6731_v34, %v6737_v11  ;;  %v590_v46 = vmul.f32 -0.00019515296, %v526_v35  ;;  %v1070_v5 = vand.u32 1, %v6728_v45  ;;  %v399_v48 = vmul.f32 0.0004837513, %v271_v23 }
  0x6f   :  { %11617 = vst [vmem:[#allocation25_spill] sm:$0xff] %v6740_v20  ;;  %11618 = vst [vmem:[#allocation26_spill] sm:$0xff] %v6743_v51  ;;  %v1421_v13 = vsub.f32 0.0, %v1165_v8  ;;  %v878_v53 = vmul.f32 2.4433157e-05, %v526_v35  ;;  %v1326_v9 = vadd.s32 1, %v6728_v45  ;;  %v272_v63 = vfloor.f32 %v240_v58 }
  0x70   :  { %v622_v31 = vadd.f32 0.008332161, %v590_v46  ;;  %v6751_v55 = vcvt.f32.s32 %v5993_v24  ;;  %v367_v56 = vsub.f32 %v6702_v15, %v335_v12  ;;  %v463_v25 = vmul.f32 7.54979e-08, %v271_v23  ;;  %v45_v46 = vld [vmem:[#allocation5 + $0x48] sm:$0xff] }
  0x71   :  { %v1453_v22 = vsel %vm1389_vm11, %v1421_v13, %v1165_v8  ;;  %v782_v21 = vmul.f32 0.5, %v526_v35  ;;  %v910_v30 = vadd.f32 -0.0013887316, %v878_v53  ;;  %v5995_v42 = vtrunc.f32 %v272_v63 }
  0x72   :  { %11619 = vst [vmem:[#allocation27_spill] sm:$0xff] %v6751_v55  ;;  %v1485_v18 = vmul.f32 %v1453_v22, %v6740_v20  ;;  %v558_v49 = vmul.f32 %v526_v35, %v494_v62  ;;  %v654_v50 = vmul.f32 %v622_v31, %v526_v35  ;;  %v431_v27 = vsub.f32 %v367_v56, %v399_v48  ;;  %v6256_v44 = vpop.eup %6255 }
  0x73   :  { %v846_v33 = vmul.f32 %v526_v35, %v526_v35  ;;  %v942_v37 = vmul.f32 %v910_v30, %v526_v35  ;;  %vm6755_vm12 = vcmp.ne.s32.totalorder %v1070_v5, 0  ;;  %v11620_v58 = vmov 0 }
  0x74   :  { %v11621_v58 = vsel %vm6755_vm12, 4294967295, %v11620_v58  ;;  %v1358_v24 = vand.u32 2, %v1326_v9  ;;  %1517 = vst [vmem:[#allocation8 + $0x28] sm:$0xff] %v1485_v18  ;;  %v686_v15 = vadd.f32 -0.16666655, %v654_v50  ;;  %v495_v23 = vsub.f32 %v431_v27, %v463_v25 }
  0x75   :  { %11622 = vst [vmem:[#allocation28_spill] sm:$0xff] %v11621_v58  ;;  %v1327_v12 = vadd.s32 1, %v6751_v55  ;;  %v336_v8 = vmul.f32 1.5703125, %v272_v63  ;;  %v814_v13 = vsub.f32 1.0, %v782_v21  ;;  %v974_v53 = vadd.f32 0.041666646, %v942_v37 }
  0x76   :  { %v6760_v22 = vcvt.f32.s32 %v5995_v42  ;;  %v400_v48 = vmul.f32 0.0004837513, %v272_v63  ;;  %v718_v31 = vmul.f32 %v686_v15, %v558_v49  ;;  %v527_v56 = vmul.f32 %v495_v23, %v495_v23 }
  0x77   :  { %v1071_v35 = vand.u32 1, %v6751_v55  ;;  %v368_v5 = vsub.f32 %v6714_v47, %v336_v8  ;;  %v6764_v30 = vpop.eup %6257  ;;  %v1006_v9 = vmul.f32 %v974_v53, %v846_v33  ;;  %v6767_v25 = vmul.f32 %v6256_v44, %v6559_v41 }
  0x78   :  { %11623 = vst [vmem:[#allocation29_spill] sm:$0xff] %v6760_v22  ;;  %v464_v18 = vmul.f32 7.54979e-08, %v272_v63  ;;  %v6770_v50 = vmul.f32 %v6536_v1, %v45_v46  ;;  %v6772_v37 = vadd.f32 %v718_v31, %v494_v62  ;;  %vm6774_vm13 = vcmp.ne.s32.totalorder %v1358_v24, 0  ;;  %v46_v24 = vld [vmem:[#allocation5 + $0x50] sm:$0xff] }
  0x79   :  { %11624 = vst [vmem:[#allocation30_spill] sm:$0xff] %v6767_v25  ;;  %v591_v42 = vmul.f32 -0.00019515296, %v527_v56  ;;  %v1359_v49 = vand.u32 2, %v1327_v12  ;;  %v6778_v27 = vadd.f32 %v1006_v9, %v814_v13  ;;  %v879_v47 = vmul.f32 2.4433157e-05, %v527_v56 }
  0x7a   :  { %11625 = vst [vmem:[#allocation31_spill] sm:$0xff] %v6772_v37  ;;  %v432_v15 = vsub.f32 %v368_v5, %v400_v48  ;;  %v559_v44 = vmul.f32 %v527_v56, %v495_v23  ;;  %v783_v63 = vmul.f32 0.5, %v527_v56  ;;  %vm6781_vm14 = vcmp.ne.s32.totalorder %v1071_v35, 0 }
  0x7b   :  { %11628 = vst [vmem:[#allocation32_spill] sm:$0xff] %v6778_v27  ;;  %v623_v8 = vadd.f32 0.008332161, %v591_v42  ;;  %v11629_v53 = vmov 0  ;;  %v78_v62 = vadd.f32 1.1920929e-07, %v45_v46  ;;  %v1166_v12 = vsel %vm6755_vm12, %v6772_v37, %v6778_v27 }
  0x7c   :  { %v11630_v53 = vsel %vm6781_vm14, 4294967295, %v11629_v53  ;;  %v911_v13 = vadd.f32 -0.0013887316, %v879_v47  ;;  %v496_v31 = vsub.f32 %v432_v15, %v464_v18  ;;  %v209_v48 = vmul.f32 0.63661975, %v6770_v50 }
  0x7d   :  { %11631 = vst [vmem:[#allocation33_spill] sm:$0xff] %v11630_v53  ;;  %v1422_v5 = vsub.f32 0.0, %v1166_v12  ;;  %v655_v9 = vmul.f32 %v623_v8, %v527_v56  ;;  %v847_v33 = vmul.f32 %v527_v56, %v527_v56  ;;  %v79_v42 = vadd.f32 1.1920929e-07, %v46_v24 }
  0x7e   :  { %v943_v20 = vmul.f32 %v911_v13, %v527_v56  ;;  %vm6790_vm15 = vcmp.ne.s32.totalorder %v1359_v49, 0  ;;  %v528_v46 = vmul.f32 %v496_v31, %v496_v31  ;;  %v241_v55 = vadd.f32 0.5, %v209_v48 }
  0x7f   :  { %v6795_v45 = vmul.f32 %v6536_v1, %v46_v24  ;;  %v1454_v47 = vsel %vm6774_vm13, %v1422_v5, %v1166_v12  ;;  %v687_v18 = vadd.f32 -0.16666655, %v655_v9  ;;  %v815_v15 = vsub.f32 1.0, %v783_v63  ;;  %v47_v12 = vld [vmem:[#allocation5 + $0x58] sm:$0xff] }
  0x80   :  { %v1328_v58 = vadd.s32 1, %v6760_v22  ;;  %v1486_v8 = vmul.f32 %v1454_v47, %v6743_v51  ;;  %v975_v27 = vadd.f32 0.041666646, %v943_v20  ;;  %v592_v56 = vmul.f32 -0.00019515296, %v528_v46 }
  0x81   :  { %6259 = vrcp.f32 %v78_v62  ;;  %v719_v49 = vmul.f32 %v687_v18, %v559_v44  ;;  %v784_v13 = vmul.f32 0.5, %v528_v46  ;;  %v880_v37 = vmul.f32 2.4433157e-05, %v528_v46 }
  0x82   :  { %6261 = vrcp.f32 %v79_v42  ;;  %1518 = vst [vmem:[#allocation8 + $0x30] sm:$0xff] %v1486_v8  ;;  %v1007_v48 = vmul.f32 %v975_v27, %v847_v33  ;;  %v624_v24 = vadd.f32 0.008332161, %v592_v56  ;;  %v273_v57 = vfloor.f32 %v241_v55 }
  0x83   :  { %v210_v21 = vmul.f32 0.63661975, %v6795_v45  ;;  %v6802_v5 = vadd.f32 %v719_v49, %v495_v23  ;;  %v560_v63 = vmul.f32 %v528_v46, %v496_v31  ;;  %v912_v9 = vadd.f32 -0.0013887316, %v880_v37 }
  0x84   :  { %v80_v6 = vadd.f32 1.1920929e-07, %v47_v12  ;;  %v6804_v47 = vadd.f32 %v1007_v48, %v815_v15  ;;  %v656_v20 = vmul.f32 %v624_v24, %v528_v46  ;;  %v5997_v62 = vtrunc.f32 %v273_v57 }
  0x85   :  { %11634 = vst [vmem:[#allocation34_spill] sm:$0xff] %v6802_v5  ;;  %v337_v44 = vmul.f32 1.5703125, %v273_v57  ;;  %v848_v18 = vmul.f32 %v528_v46, %v528_v46  ;;  %v944_v51 = vmul.f32 %v912_v9, %v528_v46  ;;  %v401_v42 = vmul.f32 0.0004837513, %v273_v57 }
  0x86   :  { %11635 = vst [vmem:[#allocation35_spill] sm:$0xff] %v6804_v47  ;;  %v242_v8 = vadd.f32 0.5, %v210_v21  ;;  %v1167_v55 = vsel %vm6781_vm14, %v6802_v5, %v6804_v47  ;;  %v688_v27 = vadd.f32 -0.16666655, %v656_v20  ;;  %v816_v23 = vsub.f32 1.0, %v784_v13 }
  0x87   :  { %v465_v33 = vmul.f32 7.54979e-08, %v273_v57  ;;  %v1423_v56 = vsub.f32 0.0, %v1167_v55  ;;  %v976_v37 = vadd.f32 0.041666646, %v944_v51  ;;  %v369_v15 = vsub.f32 %v6770_v50, %v337_v44 }
  0x88   :  { %v274_v49 = vfloor.f32 %v242_v8  ;;  %v720_v48 = vmul.f32 %v688_v27, %v560_v63  ;;  %v1360_v24 = vand.u32 2, %v1328_v58  ;;  %v6811_v11 = vcvt.f32.s32 %v5997_v62 }
  0x89   :  { %6263 = vrcp.f32 %v80_v6  ;;  %v1455_v46 = vsel %vm6790_vm15, %v1423_v56, %v1167_v55  ;;  %v1008_v21 = vmul.f32 %v976_v37, %v848_v18  ;;  %v433_v9 = vsub.f32 %v369_v15, %v401_v42 }
  0x8a   :  { %11636 = vst [vmem:[#allocation36_spill] sm:$0xff] %v6811_v11  ;;  %v5999_v53 = vtrunc.f32 %v274_v49  ;;  %v1487_v13 = vmul.f32 %v1455_v46, %v6767_v25  ;;  %v6816_v57 = vadd.f32 %v720_v48, %v496_v31  ;;  %v11638_v51 = vand.u32 1, %v6760_v22  ;;  %v48_v46 = vld [vmem:[#allocation5 + $0x60] sm:$0xff] }
  0x8b   :  { %v6260_v47 = vpop.eup %6259  ;;  %v11639_v50 = vmov 0  ;;  %v6825_v58 = vmul.f32 %v6536_v1, %v47_v12  ;;  %v6829_v35 = vmul.f32 %v6764_v30, %v6559_v41  ;;  %v6831_v63 = vadd.f32 %v1008_v21, %v816_v23 }
  0x8c   :  { %11637 = vst [vmem:[#allocation37_spill] sm:$0xff] %v6816_v57  ;;  %vm6820_vm2 = vcmp.ne.s32.totalorder %v11638_v51, 0  ;;  %v6262_v6 = vpop.eup %6261  ;;  %v497_v20 = vsub.f32 %v433_v9, %v465_v33  ;;  %1519 = vst [vmem:[#allocation8 + $0x38] sm:$0xff] %v1487_v13  ;;  %vm1392_vm3 = vcmp.ne.s32.totalorder %v1360_v24, 0  ;;  %v1329_v31 = vadd.s32 1, %v6811_v11 }
  0x8d   :  { %v11640_v50 = vsel %vm6820_vm2, 4294967295, %v11639_v50  ;;  %11642 = vst [vmem:[#allocation39_spill] sm:$0xff] %v6829_v35  ;;  %11643 = vst [vmem:[#allocation40_spill] sm:$0xff] %v6831_v63  ;;  %v338_v62 = vmul.f32 1.5703125, %v274_v49  ;;  %v402_v44 = vmul.f32 0.0004837513, %v274_v49  ;;  %v1168_v12 = vsel %vm6820_vm2, %v6816_v57, %v6831_v63 }
  0x8e   :  { %11641 = vst [vmem:[#allocation38_spill] sm:$0xff] %v11640_v50  ;;  %v529_v18 = vmul.f32 %v497_v20, %v497_v20  ;;  %v1073_v42 = vand.u32 1, %v6811_v11  ;;  %v6839_v8 = vcvt.f32.s32 %v5999_v53  ;;  %v1424_v30 = vsub.f32 0.0, %v1168_v12 }
  0x8f   :  { %v370_v55 = vsub.f32 %v6795_v45, %v338_v62  ;;  %v466_v27 = vmul.f32 7.54979e-08, %v274_v49  ;;  %v211_v23 = vmul.f32 0.63661975, %v6825_v58  ;;  %v6844_v33 = vmul.f32 %v6260_v47, %v6559_v41 }
  0x90   :  { %11644 = vst [vmem:[#allocation41_spill] sm:$0xff] %v6839_v8  ;;  %v593_v56 = vmul.f32 -0.00019515296, %v529_v18  ;;  %v1456_v37 = vsel %vm1392_vm3, %v1424_v30, %v1168_v12  ;;  %v881_v15 = vmul.f32 2.4433157e-05, %v529_v18  ;;  %v1361_v48 = vand.u32 2, %v1329_v31 }
  0x91   :  { %11645 = vst [vmem:[#allocation42_spill] sm:$0xff] %v6844_v33  ;;  %v434_v24 = vsub.f32 %v370_v55, %v402_v44  ;;  %v1488_v21 = vmul.f32 %v1456_v37, %v6829_v35  ;;  %v785_v53 = vmul.f32 0.5, %v529_v18  ;;  %vm6847_vm5 = vcmp.ne.s32.totalorder %v1073_v42, 0 }
  0x92   :  { %v625_v9 = vadd.f32 0.008332161, %v593_v56  ;;  %v11646_v13 = vmov 0  ;;  %v6852_v45 = vadd.s32 1, %v6839_v8  ;;  %v913_v47 = vadd.f32 -0.0013887316, %v881_v15 }
  0x93   :  { %v11647_v13 = vsel %vm6847_vm5, 4294967295, %v11646_v13  ;;  %v6264_v49 = vpop.eup %6263  ;;  %v6855_v51 = vmul.f32 %v6262_v6, %v6559_v41  ;;  %v498_v62 = vsub.f32 %v434_v24, %v466_v27  ;;  %v243_v31 = vadd.f32 0.5, %v211_v23  ;;  %1520 = vst [vmem:[#allocation8 + $0x40] sm:$0xff] %v1488_v21  ;;  %v49_v6 = vld [vmem:[#allocation5 + $0x68] sm:$0xff] }
  0x94   :  { %11648 = vst [vmem:[#allocation43_spill] sm:$0xff] %v11647_v13  ;;  %v561_v44 = vmul.f32 %v529_v18, %v497_v20  ;;  %v657_v12 = vmul.f32 %v625_v9, %v529_v18  ;;  %v1074_v30 = vand.u32 1, %v6839_v8  ;;  %v6859_v42 = vmul.f32 %v6536_v1, %v48_v46 }
  0x95   :  { %11649 = vst [vmem:[#allocation44_spill] sm:$0xff] %v6855_v51  ;;  %v849_v55 = vmul.f32 %v529_v18, %v529_v18  ;;  %v945_v56 = vmul.f32 %v913_v47, %v529_v18  ;;  %vm6861_vm7 = vcmp.ne.s32.totalorder %v1361_v48, 0  ;;  %v530_v15 = vmul.f32 %v498_v62, %v498_v62 }
  0x96   :  { %v275_v35 = vfloor.f32 %v243_v31  ;;  %v689_v11 = vadd.f32 -0.16666655, %v657_v12  ;;  %v817_v27 = vsub.f32 1.0, %v785_v53  ;;  %v1362_v23 = vand.u32 2, %v6852_v45 }
  0x97   :  { %v81_v24 = vadd.f32 1.1920929e-07, %v48_v46  ;;  %v977_v21 = vadd.f32 0.041666646, %v945_v56  ;;  %v594_v9 = vmul.f32 -0.00019515296, %v530_v15  ;;  %v6867_v8 = vmul.f32 %v6264_v49, %v6559_v41 }
  0x98   :  { %v212_v25 = vmul.f32 0.63661975, %v6859_v42  ;;  %v721_v18 = vmul.f32 %v689_v11, %v561_v44  ;;  %v882_v48 = vmul.f32 2.4433157e-05, %v530_v15  ;;  %v6001_v47 = vtrunc.f32 %v275_v35 }
  0x99   :  { %11652 = vst [vmem:[#allocation45_spill] sm:$0xff] %v6867_v8  ;;  %v6871_v22 = vmul.f32 %v6536_v1, %v49_v6  ;;  %v1009_v31 = vmul.f32 %v977_v21, %v849_v55  ;;  %v562_v50 = vmul.f32 %v530_v15, %v498_v62  ;;  %v626_v12 = vadd.f32 0.008332161, %v594_v9 }
  0x9a   :  { %v339_v53 = vmul.f32 1.5703125, %v275_v35  ;;  %v6873_v63 = vadd.f32 %v721_v18, %v497_v20  ;;  %v786_v46 = vmul.f32 0.5, %v530_v15  ;;  %v914_v45 = vadd.f32 -0.0013887316, %v882_v48 }
  0x9b   :  { %v403_v56 = vmul.f32 0.0004837513, %v275_v35  ;;  %v6875_v57 = vadd.f32 %v1009_v31, %v817_v27  ;;  %v658_v49 = vmul.f32 %v626_v12, %v530_v15  ;;  %v467_v11 = vmul.f32 7.54979e-08, %v275_v35 }
  0x9c   :  { %v371_v5 = vsub.f32 %v6825_v58, %v339_v53  ;;  %v850_v44 = vmul.f32 %v530_v15, %v530_v15  ;;  %v946_v34 = vmul.f32 %v914_v45, %v530_v15  ;;  %v6878_v38 = vcvt.f32.s32 %v6001_v47 }
  0x9d   :  { %11653 = vst [vmem:[#allocation46_spill] sm:$0xff] %v6875_v57  ;;  %v244_v16 = vadd.f32 0.5, %v212_v25  ;;  %v1169_v20 = vsel %vm6847_vm5, %v6873_v63, %v6875_v57  ;;  %v690_v55 = vadd.f32 -0.16666655, %v658_v49  ;;  %v82_v9 = vadd.f32 1.1920929e-07, %v49_v6 }
  0x9e   :  { %11654 = vst [vmem:[#allocation47_spill] sm:$0xff] %v6878_v38  ;;  %v435_v21 = vsub.f32 %v371_v5, %v403_v56  ;;  %v1425_v18 = vsub.f32 0.0, %v1169_v20  ;;  %v818_v27 = vsub.f32 1.0, %v786_v46  ;;  %v978_v48 = vadd.f32 0.041666646, %v946_v34 }
  0x9f   :  { %6265 = vrcp.f32 %v81_v24  ;;  %v722_v31 = vmul.f32 %v690_v55, %v562_v50  ;;  %v276_v35 = vfloor.f32 %v244_v16  ;;  %v213_v15 = vmul.f32 0.63661975, %v6871_v22 }
  0xa0   :  { %v499_v58 = vsub.f32 %v435_v21, %v467_v11  ;;  %v1457_v25 = vsel %vm6861_vm7, %v1425_v18, %v1169_v20  ;;  %v1010_v47 = vmul.f32 %v978_v48, %v850_v44  ;;  %vm6887_vm9 = vcmp.ne.s32.totalorder %v1074_v30, 0 }
  0xa1   :  { %v11655_v12 = vmov 0  ;;  %v1075_v5 = vand.u32 1, %v6878_v38  ;;  %v1489_v6 = vmul.f32 %v1457_v25, %v6844_v33  ;;  %v6893_v53 = vadd.f32 %v722_v31, %v498_v62 }
  0xa2   :  { %v11656_v12 = vsel %vm6887_vm9, 4294967295, %v11655_v12  ;;  %v531_v34 = vmul.f32 %v499_v58, %v499_v58  ;;  %v6003_v50 = vtrunc.f32 %v276_v35  ;;  %v6895_v24 = vadd.f32 %v1010_v47, %v818_v27 }
  0xa3   :  { %11657 = vst [vmem:[#allocation48_spill] sm:$0xff] %v11656_v12  ;;  %11658 = vst [vmem:[#allocation49_spill] sm:$0xff] %v6893_v53  ;;  %v1331_v16 = vadd.s32 1, %v6878_v38  ;;  %v340_v46 = vmul.f32 1.5703125, %v276_v35  ;;  %v404_v37 = vmul.f32 0.0004837513, %v276_v35  ;;  %vm6898_vm11 = vcmp.ne.s32.totalorder %v1362_v23, 0 }
  0xa4   :  { %11659 = vst [vmem:[#allocation50_spill] sm:$0xff] %v6895_v24  ;;  %1521 = vst [vmem:[#allocation8 + $0x48] sm:$0xff] %v1489_v6  ;;  %v595_v45 = vmul.f32 -0.00019515296, %v531_v34  ;;  %6267 = vrcp.f32 %v82_v9  ;;  %v245_v56 = vadd.f32 0.5, %v213_v15  ;;  %v1170_v62 = vsel %vm6887_vm9, %v6893_v53, %v6895_v24 }
  0xa5   :  { %v883_v49 = vmul.f32 2.4433157e-05, %v531_v34  ;;  %v372_v11 = vsub.f32 %v6859_v42, %v340_v46  ;;  %v468_v44 = vmul.f32 7.54979e-08, %v276_v35  ;;  %v1426_v20 = vsub.f32 0.0, %v1170_v62 }
  0xa6   :  { %v627_v55 = vadd.f32 0.008332161, %v595_v45  ;;  %v787_v21 = vmul.f32 0.5, %v531_v34  ;;  %v6907_v18 = vcvt.f32.s32 %v6003_v50  ;;  %vm6909_vm13 = vcmp.ne.s32.totalorder %v1075_v5, 0 }
  0xa7   :  { %v915_v23 = vadd.f32 -0.0013887316, %v883_v49  ;;  %v11663_v27 = vmov 0  ;;  %v1363_v9 = vand.u32 2, %v1331_v16  ;;  %v436_v48 = vsub.f32 %v372_v11, %v404_v37 }
  0xa8   :  { %11662 = vst [vmem:[#allocation51_spill] sm:$0xff] %v6907_v18  ;;  %v11664_v27 = vsel %vm6909_vm13, 4294967295, %v11663_v27  ;;  %v1458_v31 = vsel %vm6898_vm11, %v1426_v20, %v1170_v62  ;;  %v563_v15 = vmul.f32 %v531_v34, %v499_v58  ;;  %v659_v25 = vmul.f32 %v627_v55, %v531_v34 }
  0xa9   :  { %11665 = vst [vmem:[#allocation52_spill] sm:$0xff] %v11664_v27  ;;  %v277_v47 = vfloor.f32 %v245_v56  ;;  %v6266_v42 = vpop.eup %6265  ;;  %v1490_v35 = vmul.f32 %v1458_v31, %v6855_v51  ;;  %v851_v6 = vmul.f32 %v531_v34, %v531_v34  ;;  %v947_v46 = vmul.f32 %v915_v23, %v531_v34 }
  0xaa   :  { %v500_v50 = vsub.f32 %v436_v48, %v468_v44  ;;  %v691_v45 = vadd.f32 -0.16666655, %v659_v25  ;;  %v819_v49 = vsub.f32 1.0, %v787_v21  ;;  %v1332_v5 = vadd.s32 1, %v6907_v18 }
  0xab   :  { %v341_v33 = vmul.f32 1.5703125, %v277_v47  ;;  %1522 = vst [vmem:[#allocation8 + $0x50] sm:$0xff] %v1490_v35  ;;  %v979_v16 = vadd.f32 0.041666646, %v947_v46  ;;  %v6005_v11 = vtrunc.f32 %v277_v47  ;;  %v405_v30 = vmul.f32 0.0004837513, %v277_v47  ;;  %v50_v46 = vld [vmem:[#allocation5 + $0x70] sm:$0xff] }
  0xac   :  { %v532_v37 = vmul.f32 %v500_v50, %v500_v50  ;;  %v723_v62 = vmul.f32 %v691_v45, %v563_v15  ;;  %v1076_v20 = vand.u32 1, %v6907_v18  ;;  %v469_v55 = vmul.f32 7.54979e-08, %v277_v47 }
  0xad   :  { %v373_v56 = vsub.f32 %v6871_v22, %v341_v33  ;;  %v1011_v31 = vmul.f32 %v979_v16, %v851_v6  ;;  %vm6919_vm15 = vcmp.ne.s32.totalorder %v1363_v9, 0  ;;  %v6924_v44 = vmul.f32 %v6266_v42, %v6559_v41 }
  0xae   :  { %v596_v21 = vmul.f32 -0.00019515296, %v532_v37  ;;  %v6926_v23 = vpop.eup %6267  ;;  %v6928_v48 = vadd.f32 %v723_v62, %v499_v58  ;;  %v884_v25 = vmul.f32 2.4433157e-05, %v532_v37  ;;  %v1364_v15 = vand.u32 2, %v1332_v5  ;;  %v51_v62 = vld [vmem:[#allocation5 + $0x78] sm:$0xff] }
  0xaf   :  { %11668 = vst [vmem:[#allocation53_spill] sm:$0xff] %v6924_v44  ;;  %v437_v35 = vsub.f32 %v373_v56, %v405_v30  ;;  %v6930_v45 = vadd.f32 %v1011_v31, %v819_v49  ;;  %v788_v33 = vmul.f32 0.5, %v532_v37  ;;  %v6932_v9 = vcvt.f32.s32 %v6005_v11 }
  0xb0   :  { %11669 = vst [vmem:[#allocation54_spill] sm:$0xff] %v6928_v48  ;;  %v628_v22 = vadd.f32 0.008332161, %v596_v21  ;;  %v916_v47 = vadd.f32 -0.0013887316, %v884_v25  ;;  %vm6934_vm3 = vcmp.ne.s32.totalorder %v1076_v20, 0  ;;  %v564_v5 = vmul.f32 %v532_v37, %v500_v50 }
  0xb1   :  { %11670 = vst [vmem:[#allocation55_spill] sm:$0xff] %v6930_v45  ;;  %11671 = vst [vmem:[#allocation56_spill] sm:$0xff] %v6932_v9  ;;  %v11672_v6 = vmov 0  ;;  %v501_v42 = vsub.f32 %v437_v35, %v469_v55  ;;  %v83_v16 = vadd.f32 1.1920929e-07, %v50_v46  ;;  %v1171_v58 = vsel %vm6909_vm13, %v6928_v48, %v6930_v45 }
  0xb2   :  { %v11673_v6 = vsel %vm6934_vm3, 4294967295, %v11672_v6  ;;  %v660_v30 = vmul.f32 %v628_v22, %v532_v37  ;;  %v182_v49 = vmul.f32 %v6536_v1, %v50_v46  ;;  %v1427_v56 = vsub.f32 0.0, %v1171_v58 }
  0xb3   :  { %11674 = vst [vmem:[#allocation57_spill] sm:$0xff] %v11673_v6  ;;  %v852_v11 = vmul.f32 %v532_v37, %v532_v37  ;;  %v948_v31 = vmul.f32 %v916_v47, %v532_v37  ;;  %vm6943_vm7 = vcmp.ne.s32.totalorder %v1364_v15, 0  ;;  %v533_v21 = vmul.f32 %v501_v42, %v501_v42 }
  0xb4   :  { %v692_v55 = vadd.f32 -0.16666655, %v660_v30  ;;  %v820_v25 = vsub.f32 1.0, %v788_v33  ;;  %v1077_v35 = vand.u32 1, %v6932_v9  ;;  %v214_v51 = vmul.f32 0.63661975, %v182_v49 }
  0xb5   :  { %v1459_v18 = vsel %vm6919_vm15, %v1427_v56, %v1171_v58  ;;  %v980_v22 = vadd.f32 0.041666646, %v948_v31  ;;  %v597_v38 = vmul.f32 -0.00019515296, %v533_v21  ;;  %v6951_v46 = vmul.f32 %v6536_v1, %v51_v62 }
  0xb6   :  { %v1491_v37 = vmul.f32 %v1459_v18, %v6867_v8  ;;  %v724_v15 = vmul.f32 %v692_v55, %v564_v5  ;;  %v789_v47 = vmul.f32 0.5, %v533_v21  ;;  %v1333_v27 = vadd.s32 1, %v6932_v9 }
  0xb7   :  { %v1012_v45 = vmul.f32 %v980_v22, %v852_v11  ;;  %v629_v30 = vadd.f32 0.008332161, %v597_v38  ;;  %v885_v33 = vmul.f32 2.4433157e-05, %v533_v21  ;;  %6269 = vrcp.f32 %v83_v16 }
  0xb8   :  { %1523 = vst [vmem:[#allocation8 + $0x58] sm:$0xff] %v1491_v37  ;;  %v6955_v48 = vadd.f32 %v724_v15, %v500_v50  ;;  %v565_v34 = vmul.f32 %v533_v21, %v501_v42  ;;  %v246_v58 = vadd.f32 0.5, %v214_v51  ;;  %v84_v56 = vadd.f32 1.1920929e-07, %v51_v62 }
  0xb9   :  { %v6957_v31 = vadd.f32 %v1012_v45, %v820_v25  ;;  %v661_v12 = vmul.f32 %v629_v30, %v533_v21  ;;  %v917_v24 = vadd.f32 -0.0013887316, %v885_v33  ;;  %v215_v18 = vmul.f32 0.63661975, %v6951_v46  ;;  %v52_v25 = vld [vmem:[#allocation5 + $0x80] sm:$0xff] }
  0xba   :  { %11677 = vst [vmem:[#allocation58_spill] sm:$0xff] %v6955_v48  ;;  %v821_v5 = vsub.f32 1.0, %v789_v47  ;;  %v853_v55 = vmul.f32 %v533_v21, %v533_v21  ;;  %v1365_v8 = vand.u32 2, %v1333_v27  ;;  %v278_v9 = vfloor.f32 %v246_v58 }
  0xbb   :  { %11678 = vst [vmem:[#allocation59_spill] sm:$0xff] %v6957_v31  ;;  %v1172_v38 = vsel %vm6934_vm3, %v6955_v48, %v6957_v31  ;;  %v693_v50 = vadd.f32 -0.16666655, %v661_v12  ;;  %v949_v16 = vmul.f32 %v917_v24, %v533_v21  ;;  %v247_v11 = vadd.f32 0.5, %v215_v18 }
  0xbc   :  { %v1428_v51 = vsub.f32 0.0, %v1172_v38  ;;  %v6007_v62 = vtrunc.f32 %v278_v9  ;;  %v342_v45 = vmul.f32 1.5703125, %v278_v9  ;;  %6271 = vrcp.f32 %v84_v56 }
  0xbd   :  { %v725_v22 = vmul.f32 %v693_v50, %v565_v34  ;;  %v981_v37 = vadd.f32 0.041666646, %v949_v16  ;;  %v406_v15 = vmul.f32 0.0004837513, %v278_v9  ;;  %v470_v47 = vmul.f32 7.54979e-08, %v278_v9 }
  0xbe   :  { %v1460_v27 = vsel %vm6943_vm7, %v1428_v51, %v1172_v38  ;;  %v6966_v30 = vcvt.f32.s32 %v6007_v62  ;;  %v374_v33 = vsub.f32 %v182_v49, %v342_v45  ;;  %v279_v58 = vfloor.f32 %v247_v11 }
  0xbf   :  { %v1492_v12 = vmul.f32 %v1460_v27, %v6924_v44  ;;  %v6969_v24 = vadd.f32 %v725_v22, %v501_v42  ;;  %v1013_v21 = vmul.f32 %v981_v37, %v853_v55  ;;  %v6972_v18 = vmul.f32 %v6536_v1, %v52_v25  ;;  %v53_v37 = vld [vmem:[#allocation5 + $0x88] sm:$0xff] }
  0xc0   :  { %11679 = vst [vmem:[#allocation60_spill] sm:$0xff] %v6966_v30  ;;  %vm6974_vm11 = vcmp.ne.s32.totalorder %v1077_v35, 0  ;;  %v11681_v34 = vmov 0  ;;  %v438_v9 = vsub.f32 %v374_v33, %v406_v15  ;;  %v6980_v20 = vmul.f32 %v6926_v23, %v6559_v41 }
  0xc1   :  { %11680 = vst [vmem:[#allocation61_spill] sm:$0xff] %v6969_v24  ;;  %v11682_v34 = vsel %vm6974_vm11, 4294967295, %v11681_v34  ;;  %v6270_v56 = vpop.eup %6269  ;;  %1524 = vst [vmem:[#allocation8 + $0x60] sm:$0xff] %v1492_v12  ;;  %v6982_v49 = vadd.f32 %v1013_v21, %v821_v5  ;;  %v343_v38 = vmul.f32 1.5703125, %v279_v58  ;;  %v407_v42 = vmul.f32 0.0004837513, %v279_v58 }
  0xc2   :  { %11683 = vst [vmem:[#allocation62_spill] sm:$0xff] %v11682_v34  ;;  %11684 = vst [vmem:[#allocation63_spill] sm:$0xff] %v6980_v20  ;;  %vm6984_vm15 = vcmp.ne.s32.totalorder %v1365_v8, 0  ;;  %v502_v50 = vsub.f32 %v438_v9, %v470_v47  ;;  %v1334_v35 = vadd.s32 1, %v6966_v30  ;;  %v6009_v16 = vtrunc.f32 %v279_v58 }
  0xc3   :  { %11685 = vst [vmem:[#allocation64_spill] sm:$0xff] %v6982_v49  ;;  %v1173_v11 = vsel %vm6974_vm11, %v6969_v24, %v6982_v49  ;;  %v375_v23 = vsub.f32 %v6951_v46, %v343_v38  ;;  %v471_v51 = vmul.f32 7.54979e-08, %v279_v58  ;;  %v216_v5 = vmul.f32 0.63661975, %v6972_v18 }
  0xc4   :  { %v1429_v62 = vsub.f32 0.0, %v1173_v11  ;;  %v534_v45 = vmul.f32 %v502_v50, %v502_v50  ;;  %v1078_v8 = vand.u32 1, %v6966_v30  ;;  %v85_v22 = vadd.f32 1.1920929e-07, %v52_v25 }
  0xc5   :  { %v439_v15 = vsub.f32 %v375_v23, %v407_v42  ;;  %v248_v47 = vadd.f32 0.5, %v216_v5  ;;  %v86_v27 = vadd.f32 1.1920929e-07, %v53_v37  ;;  %v1366_v9 = vand.u32 2, %v1334_v35 }
  0xc6   :  { %v6272_v33 = vpop.eup %6271  ;;  %v1461_v12 = vsel %vm6984_vm15, %v1429_v62, %v1173_v11  ;;  %v598_v21 = vmul.f32 -0.00019515296, %v534_v45  ;;  %v6998_v44 = vcvt.f32.s32 %v6009_v16  ;;  %v790_v58 = vmul.f32 0.5, %v534_v45 }
  0xc7   :  { %v1493_v46 = vmul.f32 %v1461_v12, %v6980_v20  ;;  %v886_v38 = vmul.f32 2.4433157e-05, %v534_v45  ;;  %v503_v34 = vsub.f32 %v439_v15, %v471_v51  ;;  %v7002_v30 = vmul.f32 %v6270_v56, %v6559_v41 }
  0xc8   :  { %11688 = vst [vmem:[#allocation65_spill] sm:$0xff] %v6998_v44  ;;  %v630_v25 = vadd.f32 0.008332161, %v598_v21  ;;  %vm7004_vm7 = vcmp.ne.s32.totalorder %v1078_v8, 0  ;;  %v11690_v42 = vmov 0  ;;  %6273 = vrcp.f32 %v85_v22 }
  0xc9   :  { %11689 = vst [vmem:[#allocation66_spill] sm:$0xff] %v7002_v30  ;;  %v11691_v42 = vsel %vm7004_vm7, 4294967295, %v11690_v42  ;;  %1525 = vst [vmem:[#allocation8 + $0x68] sm:$0xff] %v1493_v46  ;;  %v918_v55 = vadd.f32 -0.0013887316, %v886_v38  ;;  %v7009_v35 = vmul.f32 %v6272_v33, %v6559_v41  ;;  %v535_v16 = vmul.f32 %v503_v34, %v503_v34 }
  0xca   :  { %11692 = vst [vmem:[#allocation67_spill] sm:$0xff] %v11691_v42  ;;  %v280_v11 = vfloor.f32 %v248_v47  ;;  %v566_v23 = vmul.f32 %v534_v45, %v502_v50  ;;  %v662_v5 = vmul.f32 %v630_v25, %v534_v45  ;;  %v1079_v51 = vand.u32 1, %v6998_v44 }
  0xcb   :  { %11693 = vst [vmem:[#allocation68_spill] sm:$0xff] %v7009_v35  ;;  %v1335_v56 = vadd.s32 1, %v6998_v44  ;;  %v822_v62 = vsub.f32 1.0, %v790_v58  ;;  %v854_v15 = vmul.f32 %v534_v45, %v534_v45  ;;  %v950_v8 = vmul.f32 %v918_v55, %v534_v45 }
  0xcc   :  { %vm7013_vm15 = vcmp.ne.s32.totalorder %v1366_v9, 0  ;;  %v599_v22 = vmul.f32 -0.00019515296, %v535_v16  ;;  %v694_v21 = vadd.f32 -0.16666655, %v662_v5  ;;  %v567_v46 = vmul.f32 %v535_v16, %v503_v34 }
  0xcd   :  { %v887_v33 = vmul.f32 2.4433157e-05, %v535_v16  ;;  %v7018_v38 = vmul.f32 %v6536_v1, %v53_v37  ;;  %v982_v47 = vadd.f32 0.041666646, %v950_v8  ;;  %v6011_v20 = vtrunc.f32 %v280_v11 }
  0xce   :  { %v631_v25 = vadd.f32 0.008332161, %v599_v22  ;;  %v344_v49 = vmul.f32 1.5703125, %v280_v11  ;;  %v726_v24 = vmul.f32 %v694_v21, %v566_v23  ;;  %v791_v44 = vmul.f32 0.5, %v535_v16 }
  0xcf   :  { %v919_v58 = vadd.f32 -0.0013887316, %v887_v33  ;;  %v408_v6 = vmul.f32 0.0004837513, %v280_v11  ;;  %v1014_v45 = vmul.f32 %v982_v47, %v854_v15  ;;  %v472_v31 = vmul.f32 7.54979e-08, %v280_v11  ;;  %v54_v47 = vld [vmem:[#allocation5 + $0x90] sm:$0xff] }
  0xd0   :  { %v663_v9 = vmul.f32 %v631_v25, %v535_v16  ;;  %v376_v55 = vsub.f32 %v6972_v18, %v344_v49  ;;  %v7021_v48 = vadd.f32 %v726_v24, %v502_v50  ;;  %v855_v5 = vmul.f32 %v535_v16, %v535_v16 }
  0xd1   :  { %v951_v53 = vmul.f32 %v919_v58, %v535_v16  ;;  %v1367_v13 = vand.u32 2, %v1335_v56  ;;  %v7023_v37 = vadd.f32 %v1014_v45, %v822_v62  ;;  %v7025_v22 = vcvt.f32.s32 %v6011_v20  ;;  %v55_v62 = vld [vmem:[#allocation5 + $0x98] sm:$0xff] }
  0xd2   :  { %11696 = vst [vmem:[#allocation69_spill] sm:$0xff] %v7021_v48  ;;  %v695_v8 = vadd.f32 -0.16666655, %v663_v9  ;;  %v440_v57 = vsub.f32 %v376_v55, %v408_v6  ;;  %v6274_v23 = vpop.eup %6273  ;;  %v823_v21 = vsub.f32 1.0, %v791_v44  ;;  %6275 = vrcp.f32 %v86_v27 }
  0xd3   :  { %11697 = vst [vmem:[#allocation70_spill] sm:$0xff] %v7023_v37  ;;  %11698 = vst [vmem:[#allocation71_spill] sm:$0xff] %v7025_v22  ;;  %v983_v33 = vadd.f32 0.041666646, %v951_v53  ;;  %v217_v15 = vmul.f32 0.63661975, %v7018_v38  ;;  %v1174_v24 = vsel %vm7004_vm7, %v7021_v48, %v7023_v37  ;;  %v7057_v9 = vmul.f32 %v6536_v1, %v55_v62 }
  0xd4   :  { %v727_v18 = vmul.f32 %v695_v8, %v567_v46  ;;  %v504_v49 = vsub.f32 %v440_v57, %v472_v31  ;;  %v87_v50 = vadd.f32 1.1920929e-07, %v54_v47  ;;  %v1430_v16 = vsub.f32 0.0, %v1174_v24 }
  0xd5   :  { %v1015_v11 = vmul.f32 %v983_v33, %v855_v5  ;;  %vm7032_vm11 = vcmp.ne.s32.totalorder %v1079_v51, 0  ;;  %v11699_v20 = vmov 0  ;;  %v249_v44 = vadd.f32 0.5, %v217_v15 }
  0xd6   :  { %v11700_v20 = vsel %vm7032_vm11, 4294967295, %v11699_v20  ;;  %v7036_v53 = vadd.f32 %v727_v18, %v503_v34  ;;  %vm7038_vm3 = vcmp.ne.s32.totalorder %v1367_v13, 0  ;;  %v536_v27 = vmul.f32 %v504_v49, %v504_v49 }
  0xd7   :  { %11701 = vst [vmem:[#allocation72_spill] sm:$0xff] %v11700_v20  ;;  %v1080_v56 = vand.u32 1, %v7025_v22  ;;  %v1462_v57 = vsel %vm7013_vm15, %v1430_v16, %v1174_v24  ;;  %v7045_v31 = vadd.f32 %v1015_v11, %v823_v21  ;;  %v1336_v51 = vadd.s32 1, %v7025_v22 }
  0xd8   :  { %11702 = vst [vmem:[#allocation73_spill] sm:$0xff] %v7036_v53  ;;  %v281_v46 = vfloor.f32 %v249_v44  ;;  %v1494_v25 = vmul.f32 %v1462_v57, %v7002_v30  ;;  %v600_v34 = vmul.f32 -0.00019515296, %v536_v27  ;;  %6277 = vrcp.f32 %v87_v50 }
  0xd9   :  { %11705 = vst [vmem:[#allocation74_spill] sm:$0xff] %v7045_v31  ;;  %v7050_v13 = vmul.f32 %v6536_v1, %v54_v47  ;;  %v1175_v58 = vsel %vm7032_vm11, %v7036_v53, %v7045_v31  ;;  %v888_v45 = vmul.f32 2.4433157e-05, %v536_v27  ;;  %v568_v5 = vmul.f32 %v536_v27, %v504_v49 }
  0xda   :  { %v6013_v12 = vtrunc.f32 %v281_v46  ;;  %1526 = vst [vmem:[#allocation8 + $0x70] sm:$0xff] %v1494_v25  ;;  %v1431_v55 = vsub.f32 0.0, %v1175_v58  ;;  %v632_v8 = vadd.f32 0.008332161, %v600_v34  ;;  %v345_v21 = vmul.f32 1.5703125, %v281_v46 }
  0xdb   :  { %v792_v33 = vmul.f32 0.5, %v536_v27  ;;  %v920_v15 = vadd.f32 -0.0013887316, %v888_v45  ;;  %v409_v24 = vmul.f32 0.0004837513, %v281_v46  ;;  %v473_v47 = vmul.f32 7.54979e-08, %v281_v46 }
  0xdc   :  { %v1463_v18 = vsel %vm7038_vm3, %v1431_v55, %v1175_v58  ;;  %v664_v50 = vmul.f32 %v632_v8, %v536_v27  ;;  %v377_v16 = vsub.f32 %v7018_v38, %v345_v21  ;;  %v218_v11 = vmul.f32 0.63661975, %v7050_v13  ;;  %v6276_v44 = vpop.eup %6275 }
  0xdd   :  { %v1495_v57 = vmul.f32 %v1463_v18, %v7009_v35  ;;  %v856_v25 = vmul.f32 %v536_v27, %v536_v27  ;;  %v952_v30 = vmul.f32 %v920_v15, %v536_v27  ;;  %v7064_v22 = vcvt.f32.s32 %v6013_v12 }
  0xde   :  { %v7067_v34 = vmul.f32 %v6274_v23, %v6559_v41  ;;  %v696_v45 = vadd.f32 -0.16666655, %v664_v50  ;;  %v441_v46 = vsub.f32 %v377_v16, %v409_v24  ;;  %v250_v20 = vadd.f32 0.5, %v218_v11 }
  0xdf   :  { %11706 = vst [vmem:[#allocation75_spill] sm:$0xff] %v7064_v22  ;;  %1527 = vst [vmem:[#allocation8 + $0x78] sm:$0xff] %v1495_v57  ;;  %v824_v6 = vsub.f32 1.0, %v792_v33  ;;  %v984_v58 = vadd.f32 0.041666646, %v952_v30  ;;  %v1368_v55 = vand.u32 2, %v1336_v51  ;;  %v7075_v23 = vmul.f32 %v6276_v44, %v6559_v41 }
  0xe0   :  { %11707 = vst [vmem:[#allocation76_spill] sm:$0xff] %v7067_v34  ;;  %v88_v38 = vadd.f32 1.1920929e-07, %v55_v62  ;;  %v728_v8 = vmul.f32 %v696_v45, %v568_v5  ;;  %v505_v21 = vsub.f32 %v441_v46, %v473_v47  ;;  %v282_v31 = vfloor.f32 %v250_v20 }
  0xe1   :  { %v219_v18 = vmul.f32 0.63661975, %v7057_v9  ;;  %v1016_v35 = vmul.f32 %v984_v58, %v856_v25  ;;  %vm7070_vm3 = vcmp.ne.s32.totalorder %v1080_v56, 0  ;;  %v11708_v27 = vmov 0  ;;  %11711 = vst [vmem:[#allocation78_spill] sm:$0xff] %v7075_v23 }
  0xe2   :  { %v11709_v27 = vsel %vm7070_vm3, 4294967295, %v11708_v27  ;;  %v1081_v12 = vand.u32 1, %v7064_v22  ;;  %v6278_v15 = vpop.eup %6277  ;;  %v7078_v33 = vadd.f32 %v728_v8, %v504_v49  ;;  %v537_v30 = vmul.f32 %v505_v21, %v505_v21 }
  0xe3   :  { %11710 = vst [vmem:[#allocation77_spill] sm:$0xff] %v11709_v27  ;;  %v6015_v62 = vtrunc.f32 %v282_v31  ;;  %v346_v51 = vmul.f32 1.5703125, %v282_v31  ;;  %v7080_v5 = vadd.f32 %v1016_v35, %v824_v6  ;;  %v1337_v20 = vadd.s32 1, %v7064_v22 }
  0xe4   :  { %11712 = vst [vmem:[#allocation79_spill] sm:$0xff] %v7078_v33  ;;  %v410_v24 = vmul.f32 0.0004837513, %v282_v31  ;;  %v251_v56 = vadd.f32 0.5, %v219_v18  ;;  %vm7083_vm15 = vcmp.ne.s32.totalorder %v1368_v55, 0  ;;  %v601_v50 = vmul.f32 -0.00019515296, %v537_v30 }
  0xe5   :  { %11713 = vst [vmem:[#allocation80_spill] sm:$0xff] %v7080_v5  ;;  %v474_v16 = vmul.f32 7.54979e-08, %v282_v31  ;;  %6279 = vrcp.f32 %v88_v38  ;;  %v1176_v49 = vsel %vm7070_vm3, %v7078_v33, %v7080_v5  ;;  %v793_v11 = vmul.f32 0.5, %v537_v30 }
  0xe6   :  { %v889_v44 = vmul.f32 2.4433157e-05, %v537_v30  ;;  %v378_v35 = vsub.f32 %v7050_v13, %v346_v51  ;;  %v1432_v57 = vsub.f32 0.0, %v1176_v49  ;;  %v633_v25 = vadd.f32 0.008332161, %v601_v50 }
  0xe7   :  { %vm7092_vm11 = vcmp.ne.s32.totalorder %v1081_v12, 0  ;;  %v11716_v45 = vmov 0  ;;  %v7096_v46 = vcvt.f32.s32 %v6015_v62  ;;  %v283_v6 = vfloor.f32 %v251_v56 }
  0xe8   :  { %v11717_v45 = vsel %vm7092_vm11, 4294967295, %v11716_v45  ;;  %v921_v31 = vadd.f32 -0.0013887316, %v889_v44  ;;  %v1369_v58 = vand.u32 2, %v1337_v20  ;;  %v7099_v55 = vmul.f32 %v6278_v15, %v6559_v41  ;;  %v56_v15 = vld [vmem:[#allocation5 + $0xa0] sm:$0xff] }
  0xe9   :  { %11718 = vst [vmem:[#allocation81_spill] sm:$0xff] %v11717_v45  ;;  %11719 = vst [vmem:[#allocation82_spill] sm:$0xff] %v7096_v46  ;;  %v442_v38 = vsub.f32 %v378_v35, %v410_v24  ;;  %v1464_v8 = vsel %vm7083_vm15, %v1432_v57, %v1176_v49  ;;  %v569_v18 = vmul.f32 %v537_v30, %v505_v21  ;;  %v347_v51 = vmul.f32 1.5703125, %v283_v6 }
  0xea   :  { %11720 = vst [vmem:[#allocation83_spill] sm:$0xff] %v7099_v55  ;;  %v665_v13 = vmul.f32 %v633_v25, %v537_v30  ;;  %v1496_v12 = vmul.f32 %v1464_v8, %v7067_v34  ;;  %v857_v50 = vmul.f32 %v537_v30, %v537_v30  ;;  %v953_v22 = vmul.f32 %v921_v31, %v537_v30 }
  0xeb   :  { %v506_v27 = vsub.f32 %v442_v38, %v474_v16  ;;  %v825_v5 = vsub.f32 1.0, %v793_v11  ;;  %v1082_v56 = vand.u32 1, %v7096_v46  ;;  %v1338_v20 = vadd.s32 1, %v7096_v46  ;;  %v57_v46 = vld [vmem:[#allocation5 + $0xa8] sm:$0xff] }
  0xec   :  { %v697_v62 = vadd.f32 -0.16666655, %v665_v13  ;;  %1528 = vst [vmem:[#allocation8 + $0x80] sm:$0xff] %v1496_v12  ;;  %v985_v24 = vadd.f32 0.041666646, %v953_v22  ;;  %v379_v47 = vsub.f32 %v7057_v9, %v347_v51  ;;  %v411_v49 = vmul.f32 0.0004837513, %v283_v6 }
  0xed   :  { %v538_v44 = vmul.f32 %v506_v27, %v506_v27  ;;  %vm7107_vm15 = vcmp.ne.s32.totalorder %v1369_v58, 0  ;;  %v6017_v30 = vtrunc.f32 %v283_v6  ;;  %v475_v16 = vmul.f32 7.54979e-08, %v283_v6 }
  0xee   :  { %v729_v35 = vmul.f32 %v697_v62, %v569_v18  ;;  %v1017_v25 = vmul.f32 %v985_v24, %v857_v50  ;;  %v89_v31 = vadd.f32 1.1920929e-07, %v56_v15  ;;  %v7112_v38 = vmul.f32 %v6536_v1, %v56_v15 }
  0xef   :  { %v602_v11 = vmul.f32 -0.00019515296, %v538_v44  ;;  %v7114_v8 = vpop.eup %6279  ;;  %v890_v13 = vmul.f32 2.4433157e-05, %v538_v44  ;;  %v1370_v9 = vand.u32 2, %v1338_v20  ;;  %v443_v51 = vsub.f32 %v379_v47, %v411_v49 }
  0xf0   :  { %v7116_v22 = vadd.f32 %v729_v35, %v505_v21  ;;  %v7118_v18 = vadd.f32 %v1017_v25, %v825_v5  ;;  %v794_v12 = vmul.f32 0.5, %v538_v44  ;;  %vm7120_vm3 = vcmp.ne.s32.totalorder %v1082_v56, 0 }
  0xf1   :  { %v634_v58 = vadd.f32 0.008332161, %v602_v11  ;;  %v11725_v62 = vmov 0  ;;  %v570_v6 = vmul.f32 %v538_v44, %v506_v27  ;;  %v922_v50 = vadd.f32 -0.0013887316, %v890_v13 }
  0xf2   :  { %11723 = vst [vmem:[#allocation84_spill] sm:$0xff] %v7116_v22  ;;  %11724 = vst [vmem:[#allocation85_spill] sm:$0xff] %v7118_v18  ;;  %v11726_v62 = vsel %vm7120_vm3, 4294967295, %v11725_v62  ;;  %v7124_v24 = vcvt.f32.s32 %v6017_v30  ;;  %v507_v15 = vsub.f32 %v443_v51, %v475_v16  ;;  %v1177_v21 = vsel %vm7092_vm11, %v7116_v22, %v7118_v18 }
  0xf3   :  { %11727 = vst [vmem:[#allocation86_spill] sm:$0xff] %v11726_v62  ;;  %v666_v20 = vmul.f32 %v634_v58, %v538_v44  ;;  %v858_v5 = vmul.f32 %v538_v44, %v538_v44  ;;  %v220_v47 = vmul.f32 0.63661975, %v7112_v38  ;;  %v1433_v49 = vsub.f32 0.0, %v1177_v21  ;;  %v58_v62 = vld [vmem:[#allocation5 + $0xb0] sm:$0xff] }
  0xf4   :  { %11728 = vst [vmem:[#allocation87_spill] sm:$0xff] %v7124_v24  ;;  %v954_v56 = vmul.f32 %v922_v50, %v538_v44  ;;  %vm7131_vm7 = vcmp.ne.s32.totalorder %v1370_v9, 0  ;;  %v539_v25 = vmul.f32 %v507_v15, %v507_v15  ;;  %v90_v30 = vadd.f32 1.1920929e-07, %v57_v46 }
  0xf5   :  { %v698_v11 = vadd.f32 -0.16666655, %v666_v20  ;;  %v826_v16 = vsub.f32 1.0, %v794_v12  ;;  %v252_v13 = vadd.f32 0.5, %v220_v47  ;;  %v7136_v51 = vmul.f32 %v6536_v1, %v57_v46 }
  0xf6   :  { %v1465_v58 = vsel %vm7107_vm15, %v1433_v49, %v1177_v21  ;;  %v986_v34 = vadd.f32 0.041666646, %v954_v56  ;;  %v603_v45 = vmul.f32 -0.00019515296, %v539_v25  ;;  %6281 = vrcp.f32 %v89_v31 }
  0xf7   :  { %v1497_v44 = vmul.f32 %v1465_v58, %v7075_v23  ;;  %v730_v9 = vmul.f32 %v698_v11, %v570_v6  ;;  %v1083_v50 = vand.u32 1, %v7124_v24  ;;  %v1339_v18 = vadd.s32 1, %v7124_v24 }
  0xf8   :  { %v1018_v22 = vmul.f32 %v986_v34, %v858_v5  ;;  %v635_v20 = vadd.f32 0.008332161, %v603_v45  ;;  %v891_v12 = vmul.f32 2.4433157e-05, %v539_v25  ;;  %6283 = vrcp.f32 %v90_v30 }
  0xf9   :  { %1529 = vst [vmem:[#allocation8 + $0x88] sm:$0xff] %v1497_v44  ;;  %v7143_v46 = vadd.f32 %v730_v9, %v506_v27  ;;  %v571_v47 = vmul.f32 %v539_v25, %v507_v15  ;;  %v284_v57 = vfloor.f32 %v252_v13  ;;  %v221_v21 = vmul.f32 0.63661975, %v7136_v51 }
  0xfa   :  { %v7146_v49 = vadd.f32 %v1018_v22, %v826_v16  ;;  %v667_v31 = vmul.f32 %v635_v20, %v539_v25  ;;  %v795_v56 = vmul.f32 0.5, %v539_v25  ;;  %v923_v6 = vadd.f32 -0.0013887316, %v891_v12 }
  0xfb   :  { %11731 = vst [vmem:[#allocation88_spill] sm:$0xff] %v7143_v46  ;;  %v859_v11 = vmul.f32 %v539_v25, %v539_v25  ;;  %v6019_v58 = vtrunc.f32 %v284_v57  ;;  %v348_v23 = vmul.f32 1.5703125, %v284_v57  ;;  %v412_v24 = vmul.f32 0.0004837513, %v284_v57 }
  0xfc   :  { %11732 = vst [vmem:[#allocation89_spill] sm:$0xff] %v7146_v49  ;;  %v1178_v34 = vsel %vm7120_vm3, %v7143_v46, %v7146_v49  ;;  %v699_v27 = vadd.f32 -0.16666655, %v667_v31  ;;  %v955_v45 = vmul.f32 %v923_v6, %v539_v25  ;;  %v253_v5 = vadd.f32 0.5, %v221_v21 }
  0xfd   :  { %v1434_v30 = vsub.f32 0.0, %v1178_v34  ;;  %v1371_v13 = vand.u32 2, %v1339_v18  ;;  %v380_v22 = vsub.f32 %v7112_v38, %v348_v23  ;;  %v476_v16 = vmul.f32 7.54979e-08, %v284_v57 }
  0xfe   :  { %v731_v44 = vmul.f32 %v699_v27, %v571_v47  ;;  %v827_v9 = vsub.f32 1.0, %v795_v56  ;;  %v987_v20 = vadd.f32 0.041666646, %v955_v45  ;;  %v285_v12 = vfloor.f32 %v253_v5 }
  0xff   :  { %v1466_v33 = vsel %vm7131_vm7, %v1434_v30, %v1178_v34  ;;  %v7155_v53 = vcvt.f32.s32 %v6019_v58  ;;  %v444_v42 = vsub.f32 %v380_v22, %v412_v24  ;;  %v91_v31 = vadd.f32 1.1920929e-07, %v58_v62 }
 0x100   :  { %v6282_v49 = vpop.eup %6281  ;;  %v1498_v25 = vmul.f32 %v1466_v33, %v7099_v55  ;;  %v7158_v21 = vadd.f32 %v731_v44, %v507_v15  ;;  %v1019_v18 = vmul.f32 %v987_v20, %v859_v11  ;;  %v7162_v23 = vmul.f32 %v7114_v8, %v6559_v41  ;;  %v59_v11 = vld [vmem:[#allocation5 + $0xb8] sm:$0xff] }
 0x101   :  { %11733 = vst [vmem:[#allocation90_spill] sm:$0xff] %v7155_v53  ;;  %vm7164_vm15 = vcmp.ne.s32.totalorder %v1083_v50, 0  ;;  %v11736_v38 = vmov 0  ;;  %v508_v35 = vsub.f32 %v444_v42, %v476_v16  ;;  %vm7170_vm7 = vcmp.ne.s32.totalorder %v1371_v13, 0 }
 0x102   :  { %11734 = vst [vmem:[#allocation91_spill] sm:$0xff] %v7158_v21  ;;  %11735 = vst [vmem:[#allocation92_spill] sm:$0xff] %v7162_v23  ;;  %v11737_v38 = vsel %vm7164_vm15, 4294967295, %v11736_v38  ;;  %v6284_v47 = vpop.eup %6283  ;;  %v7168_v24 = vadd.f32 %v1019_v18, %v827_v9  ;;  %v349_v33 = vmul.f32 1.5703125, %v285_v12  ;;  %v413_v15 = vmul.f32 0.0004837513, %v285_v12 }
 0x103   :  { %11738 = vst [vmem:[#allocation93_spill] sm:$0xff] %v11737_v38  ;;  %1530 = vst [vmem:[#allocation8 + $0x90] sm:$0xff] %v1498_v25  ;;  %v7175_v56 = vmul.f32 %v6282_v49, %v6559_v41  ;;  %v540_v8 = vmul.f32 %v508_v35, %v508_v35  ;;  %v1340_v50 = vadd.s32 1, %v7155_v53  ;;  %v6021_v6 = vtrunc.f32 %v285_v12 }
 0x104   :  { %11739 = vst [vmem:[#allocation94_spill] sm:$0xff] %v7168_v24  ;;  %v1179_v42 = vsel %vm7164_vm15, %v7158_v21, %v7168_v24  ;;  %v381_v58 = vsub.f32 %v7136_v51, %v349_v33  ;;  %v477_v34 = vmul.f32 7.54979e-08, %v285_v12  ;;  %6285 = vrcp.f32 %v91_v31 }
 0x105   :  { %11742 = vst [vmem:[#allocation95_spill] sm:$0xff] %v7175_v56  ;;  %v1435_v27 = vsub.f32 0.0, %v1179_v42  ;;  %v604_v45 = vmul.f32 -0.00019515296, %v540_v8  ;;  %v1084_v5 = vand.u32 1, %v7155_v53  ;;  %v190_v49 = vmul.f32 %v6536_v1, %v58_v62 }
 0x106   :  { %v892_v30 = vmul.f32 2.4433157e-05, %v540_v8  ;;  %v7186_v13 = vmul.f32 %v6284_v47, %v6559_v41  ;;  %v445_v22 = vsub.f32 %v381_v58, %v413_v15  ;;  %v7189_v16 = vmul.f32 %v6536_v1, %v59_v11 }
 0x107   :  { %v1467_v44 = vsel %vm7170_vm7, %v1435_v27, %v1179_v42  ;;  %v636_v51 = vadd.f32 0.008332161, %v604_v45  ;;  %v1372_v9 = vand.u32 2, %v1340_v50  ;;  %v7193_v20 = vcvt.f32.s32 %v6021_v6 }
 0x108   :  { %11743 = vst [vmem:[#allocation96_spill] sm:$0xff] %v7186_v13  ;;  %v1499_v12 = vmul.f32 %v1467_v44, %v7162_v23  ;;  %v796_v25 = vmul.f32 0.5, %v540_v8  ;;  %v924_v18 = vadd.f32 -0.0013887316, %v892_v30  ;;  %v509_v62 = vsub.f32 %v445_v22, %v477_v34 }
 0x109   :  { %11744 = vst [vmem:[#allocation97_spill] sm:$0xff] %v7193_v20  ;;  %v572_v31 = vmul.f32 %v540_v8, %v508_v35  ;;  %v668_v33 = vmul.f32 %v636_v51, %v540_v8  ;;  %vm7196_vm15 = vcmp.ne.s32.totalorder %v1084_v5, 0  ;;  %v11745_v47 = vmov 0 }
 0x10a   :  { %v11746_v47 = vsel %vm7196_vm15, 4294967295, %v11745_v47  ;;  %v222_v15 = vmul.f32 0.63661975, %v190_v49  ;;  %1531 = vst [vmem:[#allocation8 + $0x98] sm:$0xff] %v1499_v12  ;;  %v860_v58 = vmul.f32 %v540_v8, %v540_v8  ;;  %v956_v57 = vmul.f32 %v924_v18, %v540_v8 }
 0x10b   :  { %11747 = vst [vmem:[#allocation98_spill] sm:$0xff] %v11746_v47  ;;  %v541_v42 = vmul.f32 %v509_v62, %v509_v62  ;;  %v223_v50 = vmul.f32 0.63661975, %v7189_v16  ;;  %v700_v6 = vadd.f32 -0.16666655, %v668_v33  ;;  %vm7201_vm7 = vcmp.ne.s32.totalorder %v1372_v9, 0 }
 0x10c   :  { %v1085_v34 = vand.u32 1, %v7193_v20  ;;  %v254_v45 = vadd.f32 0.5, %v222_v15  ;;  %v828_v30 = vsub.f32 1.0, %v796_v25  ;;  %v988_v5 = vadd.f32 0.041666646, %v956_v57 }
 0x10d   :  { %v605_v22 = vmul.f32 -0.00019515296, %v541_v42  ;;  %v1341_v44 = vadd.s32 1, %v7193_v20  ;;  %v732_v51 = vmul.f32 %v700_v6, %v572_v31  ;;  %v573_v12 = vmul.f32 %v541_v42, %v509_v62 }
 0x10e   :  { %v893_v23 = vmul.f32 2.4433157e-05, %v541_v42  ;;  %v286_v8 = vfloor.f32 %v254_v45  ;;  %v6286_v18 = vpop.eup %6285  ;;  %v1020_v55 = vmul.f32 %v988_v5, %v860_v58  ;;  %v797_v33 = vmul.f32 0.5, %v541_v42  ;;  %v60_v45 = vld [vmem:[#allocation5 + $0xc0] sm:$0xff] }
 0x10f   :  { %v637_v53 = vadd.f32 0.008332161, %v605_v22  ;;  %v255_v9 = vadd.f32 0.5, %v223_v50  ;;  %v7207_v38 = vadd.f32 %v732_v51, %v508_v35  ;;  %v861_v57 = vmul.f32 %v541_v42, %v541_v42 }
 0x110   :  { %v925_v24 = vadd.f32 -0.0013887316, %v893_v23  ;;  %v6023_v21 = vtrunc.f32 %v286_v8  ;;  %v350_v46 = vmul.f32 1.5703125, %v286_v8  ;;  %v7209_v15 = vadd.f32 %v1020_v55, %v828_v30 }
 0x111   :  { %v669_v25 = vmul.f32 %v637_v53, %v541_v42  ;;  %v414_v37 = vmul.f32 0.0004837513, %v286_v8  ;;  %v478_v6 = vmul.f32 7.54979e-08, %v286_v8  ;;  %v287_v48 = vfloor.f32 %v255_v9 }
 0x112   :  { %11750 = vst [vmem:[#allocation99_spill] sm:$0xff] %v7209_v15  ;;  %v957_v20 = vmul.f32 %v925_v24, %v541_v42  ;;  %v382_v31 = vsub.f32 %v190_v49, %v350_v46  ;;  %v1180_v58 = vsel %vm7196_vm15, %v7207_v38, %v7209_v15  ;;  %v829_v50 = vsub.f32 1.0, %v797_v33 }
 0x113   :  { %v701_v35 = vadd.f32 -0.16666655, %v669_v25  ;;  %v92_v23 = vadd.f32 1.1920929e-07, %v59_v11  ;;  %v1436_v5 = vsub.f32 0.0, %v1180_v58  ;;  %v7215_v55 = vcvt.f32.s32 %v6023_v21 }
 0x114   :  { %v989_v22 = vadd.f32 0.041666646, %v957_v20  ;;  %v446_v53 = vsub.f32 %v382_v31, %v414_v37  ;;  %vm7217_vm3 = vcmp.ne.s32.totalorder %v1085_v34, 0  ;;  %v11752_v24 = vmov 0 }
 0x115   :  { %11751 = vst [vmem:[#allocation100_spill] sm:$0xff] %v7215_v55  ;;  %v733_v30 = vmul.f32 %v701_v35, %v573_v12  ;;  %v11753_v24 = vsel %vm7217_vm3, 4294967295, %v11752_v24  ;;  %v351_v46 = vmul.f32 1.5703125, %v287_v48  ;;  %v7222_v49 = vmul.f32 %v6536_v1, %v60_v45 }
 0x116   :  { %11754 = vst [vmem:[#allocation101_spill] sm:$0xff] %v11753_v24  ;;  %v1468_v42 = vsel %vm7201_vm7, %v1436_v5, %v1180_v58  ;;  %v1021_v51 = vmul.f32 %v989_v22, %v861_v57  ;;  %v1373_v8 = vand.u32 2, %v1341_v44  ;;  %v510_v11 = vsub.f32 %v446_v53, %v478_v6 }
 0x117   :  { %v1500_v20 = vmul.f32 %v1468_v42, %v7175_v56  ;;  %v7227_v21 = vadd.f32 %v733_v30, %v509_v62  ;;  %v7230_v37 = vmul.f32 %v6286_v18, %v6559_v41  ;;  %v6025_v34 = vtrunc.f32 %v287_v48 }
 0x118   :  { %v7232_v12 = vadd.f32 %v1021_v51, %v829_v50  ;;  %v542_v33 = vmul.f32 %v510_v11, %v510_v11  ;;  %v1342_v9 = vadd.s32 1, %v7215_v55  ;;  %v383_v25 = vsub.f32 %v7189_v16, %v351_v46 }
 0x119   :  { %11755 = vst [vmem:[#allocation102_spill] sm:$0xff] %v7227_v21  ;;  %11756 = vst [vmem:[#allocation103_spill] sm:$0xff] %v7230_v37  ;;  %6287 = vrcp.f32 %v92_v23  ;;  %v415_v27 = vmul.f32 0.0004837513, %v287_v48  ;;  %v479_v44 = vmul.f32 7.54979e-08, %v287_v48  ;;  %vm1405_vm7 = vcmp.ne.s32.totalorder %v1373_v8, 0 }
 0x11a   :  { %11757 = vst [vmem:[#allocation104_spill] sm:$0xff] %v7232_v12  ;;  %1532 = vst [vmem:[#allocation8 + $0xa0] sm:$0xff] %v1500_v20  ;;  %v224_v57 = vmul.f32 0.63661975, %v7222_v49  ;;  %v1181_v62 = vsel %vm7217_vm3, %v7227_v21, %v7232_v12  ;;  %v606_v18 = vmul.f32 -0.00019515296, %v542_v33  ;;  %v7241_v35 = vcvt.f32.s32 %v6025_v34 }
 0x11b   :  { %v93_v31 = vadd.f32 1.1920929e-07, %v60_v45  ;;  %v1437_v6 = vsub.f32 0.0, %v1181_v62  ;;  %v894_v58 = vmul.f32 2.4433157e-05, %v542_v33  ;;  %v447_v50 = vsub.f32 %v383_v25, %v415_v27  ;;  %v61_v25 = vld [vmem:[#allocation5 + $0xc8] sm:$0xff]  ;;  %v62_v12 = vld [vmem:[#allocation5 + $0xd0] sm:$0xff] }
 0x11c   :  { %11758 = vst [vmem:[#allocation105_spill] sm:$0xff] %v7241_v35  ;;  %v638_v16 = vadd.f32 0.008332161, %v606_v18  ;;  %v798_v5 = vmul.f32 0.5, %v542_v33  ;;  %v1086_v23 = vand.u32 1, %v7215_v55  ;;  %v1374_v48 = vand.u32 2, %v1342_v9 }
 0x11d   :  { %v1469_v22 = vsel %vm1405_vm7, %v1437_v6, %v1181_v62  ;;  %v926_v53 = vadd.f32 -0.0013887316, %v894_v58  ;;  %v511_v30 = vsub.f32 %v447_v50, %v479_v44  ;;  %v256_v46 = vadd.f32 0.5, %v224_v57 }
 0x11e   :  { %v1501_v42 = vmul.f32 %v1469_v22, %v7186_v13  ;;  %v574_v51 = vmul.f32 %v542_v33, %v510_v11  ;;  %v670_v8 = vmul.f32 %v638_v16, %v542_v33  ;;  %v862_v20 = vmul.f32 %v542_v33, %v542_v33 }
 0x11f   :  { %v958_v45 = vmul.f32 %v926_v53, %v542_v33  ;;  %v543_v56 = vmul.f32 %v511_v30, %v511_v30  ;;  %v1087_v34 = vand.u32 1, %v7241_v35  ;;  %v288_v24 = vfloor.f32 %v256_v46 }
 0x120   :  { %1533 = vst [vmem:[#allocation8 + $0xa8] sm:$0xff] %v1501_v42  ;;  %v702_v27 = vadd.f32 -0.16666655, %v670_v8  ;;  %vm7246_vm3 = vcmp.ne.s32.totalorder %v1086_v23, 0  ;;  %v11759_v18 = vmov 0  ;;  %vm7250_vm7 = vcmp.ne.s32.totalorder %v1374_v48, 0 }
 0x121   :  { %v11760_v18 = vsel %vm7246_vm3, 4294967295, %v11759_v18  ;;  %6289 = vrcp.f32 %v93_v31  ;;  %v830_v44 = vsub.f32 1.0, %v798_v5  ;;  %v990_v57 = vadd.f32 0.041666646, %v958_v45 }
 0x122   :  { %11761 = vst [vmem:[#allocation106_spill] sm:$0xff] %v11760_v18  ;;  %v607_v62 = vmul.f32 -0.00019515296, %v543_v56  ;;  %v1343_v33 = vadd.s32 1, %v7241_v35  ;;  %v734_v6 = vmul.f32 %v702_v27, %v574_v51  ;;  %v575_v58 = vmul.f32 %v543_v56, %v511_v30 }
 0x123   :  { %v895_v50 = vmul.f32 2.4433157e-05, %v543_v56  ;;  %v7256_v16 = vmul.f32 %v6536_v1, %v61_v25  ;;  %v6288_v23 = vpop.eup %6287  ;;  %v1022_v22 = vmul.f32 %v990_v57, %v862_v20  ;;  %v799_v46 = vmul.f32 0.5, %v543_v56 }
 0x124   :  { %v639_v53 = vadd.f32 0.008332161, %v607_v62  ;;  %vm7258_vm15 = vcmp.ne.s32.totalorder %v1087_v34, 0  ;;  %v11764_v48 = vmov 0  ;;  %v352_v31 = vmul.f32 1.5703125, %v288_v24 }
 0x125   :  { %v11765_v48 = vsel %vm7258_vm15, 4294967295, %v11764_v48  ;;  %v7262_v5 = vadd.f32 %v734_v6, %v510_v11  ;;  %v927_v42 = vadd.f32 -0.0013887316, %v895_v50  ;;  %v6027_v8 = vtrunc.f32 %v288_v24 }
 0x126   :  { %11766 = vst [vmem:[#allocation107_spill] sm:$0xff] %v11765_v48  ;;  %v416_v45 = vmul.f32 0.0004837513, %v288_v24  ;;  %v7264_v51 = vadd.f32 %v1022_v22, %v830_v44  ;;  %v671_v27 = vmul.f32 %v639_v53, %v543_v56  ;;  %v384_v13 = vsub.f32 %v7222_v49, %v352_v31 }
 0x127   :  { %11767 = vst [vmem:[#allocation108_spill] sm:$0xff] %v7262_v5  ;;  %v480_v35 = vmul.f32 7.54979e-08, %v288_v24  ;;  %v863_v55 = vmul.f32 %v543_v56, %v543_v56  ;;  %v959_v20 = vmul.f32 %v927_v42, %v543_v56  ;;  %v1375_v57 = vand.u32 2, %v1343_v33 }
 0x128   :  { %11768 = vst [vmem:[#allocation109_spill] sm:$0xff] %v7264_v51  ;;  %v94_v62 = vadd.f32 1.1920929e-07, %v61_v25  ;;  %v1182_v34 = vsel %vm7246_vm3, %v7262_v5, %v7264_v51  ;;  %v703_v11 = vadd.f32 -0.16666655, %v671_v27  ;;  %v448_v6 = vsub.f32 %v384_v13, %v416_v45 }
 0x129   :  { %v225_v50 = vmul.f32 0.63661975, %v7256_v16  ;;  %v1438_v44 = vsub.f32 0.0, %v1182_v34  ;;  %v831_v22 = vsub.f32 1.0, %v799_v46  ;;  %v991_v53 = vadd.f32 0.041666646, %v959_v20 }
 0x12a   :  { %v7272_v21 = vcvt.f32.s32 %v6027_v8  ;;  %v735_v24 = vmul.f32 %v703_v11, %v575_v58  ;;  %v512_v49 = vsub.f32 %v448_v6, %v480_v35  ;;  %v95_v33 = vadd.f32 1.1920929e-07, %v62_v12 }
 0x12b   :  { %v257_v56 = vadd.f32 0.5, %v225_v50  ;;  %v6290_v25 = vpop.eup %6289  ;;  %v1470_v31 = vsel %vm7250_vm7, %v1438_v44, %v1182_v34  ;;  %v1023_v42 = vmul.f32 %v991_v53, %v863_v55  ;;  %6291 = vrcp.f32 %v94_v62 }
 0x12c   :  { %11769 = vst [vmem:[#allocation110_spill] sm:$0xff] %v7272_v21  ;;  %v7277_v13 = vmul.f32 %v6536_v1, %v62_v12  ;;  %v1502_v45 = vmul.f32 %v1470_v31, %v7230_v37  ;;  %v7280_v27 = vadd.f32 %v735_v24, %v511_v30  ;;  %v544_v46 = vmul.f32 %v512_v49, %v512_v49 }
 0x12d   :  { %v289_v8 = vfloor.f32 %v257_v56  ;;  %v7283_v58 = vmul.f32 %v6288_v23, %v6559_v41  ;;  %v7285_v35 = vadd.f32 %v1023_v42, %v831_v22  ;;  %vm7287_vm3 = vcmp.ne.s32.totalorder %v1375_v57, 0 }
 0x12e   :  { %11770 = vst [vmem:[#allocation111_spill] sm:$0xff] %v7280_v27  ;;  %v1088_v55 = vand.u32 1, %v7272_v21  ;;  %1534 = vst [vmem:[#allocation8 + $0xb0] sm:$0xff] %v1502_v45  ;;  %v608_v12 = vmul.f32 -0.00019515296, %v544_v46  ;;  %v1344_v9 = vadd.s32 1, %v7272_v21  ;;  %6293 = vrcp.f32 %v95_v33 }
 0x12f   :  { %11771 = vst [vmem:[#allocation112_spill] sm:$0xff] %v7283_v58  ;;  %11772 = vst [vmem:[#allocation113_spill] sm:$0xff] %v7285_v35  ;;  %v226_v30 = vmul.f32 0.63661975, %v7277_v13  ;;  %v1183_v23 = vsel %vm7258_vm15, %v7280_v27, %v7285_v35  ;;  %v896_v62 = vmul.f32 2.4433157e-05, %v544_v46  ;;  %v6029_v34 = vtrunc.f32 %v289_v8 }
 0x130   :  { %v353_v57 = vmul.f32 1.5703125, %v289_v8  ;;  %v1439_v11 = vsub.f32 0.0, %v1183_v23  ;;  %v576_v6 = vmul.f32 %v544_v46, %v512_v49  ;;  %v640_v50 = vadd.f32 0.008332161, %v608_v12 }
 0x131   :  { %v417_v44 = vmul.f32 0.0004837513, %v289_v8  ;;  %v800_v22 = vmul.f32 0.5, %v544_v46  ;;  %v928_v53 = vadd.f32 -0.0013887316, %v896_v62  ;;  %v481_v56 = vmul.f32 7.54979e-08, %v289_v8 }
 0x132   :  { %v385_v24 = vsub.f32 %v7256_v16, %v353_v57  ;;  %v1471_v33 = vsel %vm7287_vm3, %v1439_v11, %v1183_v23  ;;  %v672_v31 = vmul.f32 %v640_v50, %v544_v46  ;;  %v7301_v42 = vcvt.f32.s32 %v6029_v34  ;;  %v63_v16 = vld [vmem:[#allocation5 + $0xd8] sm:$0xff] }
 0x133   :  { %v258_v45 = vadd.f32 0.5, %v226_v30  ;;  %v1503_v37 = vmul.f32 %v1471_v33, %v7283_v58  ;;  %v864_v21 = vmul.f32 %v544_v46, %v544_v46  ;;  %v960_v48 = vmul.f32 %v928_v53, %v544_v46 }
 0x134   :  { %11775 = vst [vmem:[#allocation114_spill] sm:$0xff] %v7301_v42  ;;  %v449_v35 = vsub.f32 %v385_v24, %v417_v44  ;;  %v7305_v12 = vmul.f32 %v6290_v25, %v6559_v41  ;;  %v704_v27 = vadd.f32 -0.16666655, %v672_v31  ;;  %v1376_v62 = vand.u32 2, %v1344_v9 }
 0x135   :  { %v290_v18 = vfloor.f32 %v258_v45  ;;  %v6292_v8 = vpop.eup %6291  ;;  %1535 = vst [vmem:[#allocation8 + $0xb8] sm:$0xff] %v1503_v37  ;;  %v832_v20 = vsub.f32 1.0, %v800_v22  ;;  %v992_v23 = vadd.f32 0.041666646, %v960_v48  ;;  %v96_v34 = vadd.f32 1.1920929e-07, %v63_v16 }
 0x136   :  { %11776 = vst [vmem:[#allocation115_spill] sm:$0xff] %v7305_v12  ;;  %v513_v57 = vsub.f32 %v449_v35, %v481_v56  ;;  %v736_v11 = vmul.f32 %v704_v27, %v576_v6  ;;  %vm7307_vm3 = vcmp.ne.s32.totalorder %v1088_v55, 0  ;;  %v11777_v30 = vmov 0 }
 0x137   :  { %v11778_v30 = vsel %vm7307_vm3, 4294967295, %v11777_v30  ;;  %v1345_v46 = vadd.s32 1, %v7301_v42  ;;  %v354_v50 = vmul.f32 1.5703125, %v290_v18  ;;  %v1024_v25 = vmul.f32 %v992_v23, %v864_v21 }
 0x138   :  { %11779 = vst [vmem:[#allocation116_spill] sm:$0xff] %v11778_v30  ;;  %v545_v44 = vmul.f32 %v513_v57, %v513_v57  ;;  %v1089_v9 = vand.u32 1, %v7301_v42  ;;  %v6031_v53 = vtrunc.f32 %v290_v18  ;;  %v6294_v24 = vpop.eup %6293  ;;  %v7313_v33 = vadd.f32 %v736_v11, %v512_v49 }
 0x139   :  { %vm7315_vm7 = vcmp.ne.s32.totalorder %v1376_v62, 0  ;;  %v7320_v48 = vmul.f32 %v6292_v8, %v6559_v41  ;;  %v418_v27 = vmul.f32 0.0004837513, %v290_v18  ;;  %v7322_v35 = vadd.f32 %v1024_v25, %v832_v20 }
 0x13a   :  { %11780 = vst [vmem:[#allocation117_spill] sm:$0xff] %v7313_v33  ;;  %v609_v55 = vmul.f32 -0.00019515296, %v545_v44  ;;  %6295 = vrcp.f32 %v96_v34  ;;  %v7325_v21 = vmul.f32 %v6536_v1, %v63_v16  ;;  %v897_v6 = vmul.f32 2.4433157e-05, %v545_v44  ;;  %v64_v16 = vld [vmem:[#allocation5 + $0xe0] sm:$0xff] }
 0x13b   :  { %11783 = vst [vmem:[#allocation118_spill] sm:$0xff] %v7320_v48  ;;  %11784 = vst [vmem:[#allocation119_spill] sm:$0xff] %v7322_v35  ;;  %v1377_v22 = vand.u32 2, %v1345_v46  ;;  %v386_v49 = vsub.f32 %v7277_v13, %v354_v50  ;;  %v482_v56 = vmul.f32 7.54979e-08, %v290_v18  ;;  %v1184_v31 = vsel %vm7307_vm3, %v7313_v33, %v7322_v35 }
 0x13c   :  { %v577_v45 = vmul.f32 %v545_v44, %v513_v57  ;;  %v641_v62 = vadd.f32 0.008332161, %v609_v55  ;;  %vm7332_vm15 = vcmp.ne.s32.totalorder %v1089_v9, 0  ;;  %v11785_v8 = vmov 0 }
 0x13d   :  { %v11786_v8 = vsel %vm7332_vm15, 4294967295, %v11785_v8  ;;  %v7336_v20 = vcvt.f32.s32 %v6031_v53  ;;  %v1440_v23 = vsub.f32 0.0, %v1184_v31  ;;  %v801_v34 = vmul.f32 0.5, %v545_v44 }
 0x13e   :  { %11787 = vst [vmem:[#allocation120_spill] sm:$0xff] %v11786_v8  ;;  %v929_v11 = vadd.f32 -0.0013887316, %v897_v6  ;;  %v450_v46 = vsub.f32 %v386_v49, %v418_v27  ;;  %v673_v13 = vmul.f32 %v641_v62, %v545_v44  ;;  %v865_v18 = vmul.f32 %v545_v44, %v545_v44 }
 0x13f   :  { %11788 = vst [vmem:[#allocation121_spill] sm:$0xff] %v7336_v20  ;;  %v227_v50 = vmul.f32 0.63661975, %v7325_v21  ;;  %v97_v25 = vadd.f32 1.1920929e-07, %v64_v16  ;;  %v1472_v42 = vsel %vm7315_vm7, %v1440_v23, %v1184_v31  ;;  %v7342_v58 = vmul.f32 %v6536_v1, %v64_v16 }
 0x140   :  { %v961_v55 = vmul.f32 %v929_v11, %v545_v44  ;;  %v514_v9 = vsub.f32 %v450_v46, %v482_v56  ;;  %v1504_v53 = vmul.f32 %v1472_v42, %v7305_v12  ;;  %v705_v30 = vadd.f32 -0.16666655, %v673_v13 }
 0x141   :  { %vm7345_vm3 = vcmp.ne.s32.totalorder %v1377_v22, 0  ;;  %v7350_v27 = vmul.f32 %v6294_v24, %v6559_v41  ;;  %v833_v6 = vsub.f32 1.0, %v801_v34  ;;  %v259_v37 = vadd.f32 0.5, %v227_v50 }
 0x142   :  { %v993_v49 = vadd.f32 0.041666646, %v961_v55  ;;  %v546_v62 = vmul.f32 %v514_v9, %v514_v9  ;;  %1536 = vst [vmem:[#allocation8 + $0xc0] sm:$0xff] %v1504_v53  ;;  %v737_v44 = vmul.f32 %v705_v30, %v577_v45  ;;  %v1090_v56 = vand.u32 1, %v7336_v20 }
 0x143   :  { %11791 = vst [vmem:[#allocation122_spill] sm:$0xff] %v7350_v27  ;;  %v1346_v31 = vadd.s32 1, %v7336_v20  ;;  %v228_v42 = vmul.f32 0.63661975, %v7342_v58  ;;  %6297 = vrcp.f32 %v97_v25  ;;  %v291_v13 = vfloor.f32 %v259_v37 }
 0x144   :  { %v1025_v16 = vmul.f32 %v993_v49, %v865_v18  ;;  %v578_v22 = vmul.f32 %v546_v62, %v514_v9  ;;  %v610_v23 = vmul.f32 -0.00019515296, %v546_v62  ;;  %v6296_v11 = vpop.eup %6295  ;;  %v7355_v46 = vadd.f32 %v737_v44, %v513_v57 }
 0x145   :  { %v802_v24 = vmul.f32 0.5, %v546_v62  ;;  %v898_v34 = vmul.f32 2.4433157e-05, %v546_v62  ;;  %v866_v30 = vmul.f32 %v546_v62, %v546_v62  ;;  %v260_v45 = vadd.f32 0.5, %v228_v42 }
 0x146   :  { %11792 = vst [vmem:[#allocation123_spill] sm:$0xff] %v7355_v46  ;;  %v7357_v55 = vadd.f32 %v1025_v16, %v833_v6  ;;  %v642_v50 = vadd.f32 0.008332161, %v610_v23  ;;  %v6033_v12 = vtrunc.f32 %v291_v13  ;;  %v355_v20 = vmul.f32 1.5703125, %v291_v13  ;;  %v65_v16 = vld [vmem:[#allocation5 + $0xe8] sm:$0xff] }
 0x147   :  { %v930_v53 = vadd.f32 -0.0013887316, %v898_v34  ;;  %v419_v33 = vmul.f32 0.0004837513, %v291_v13  ;;  %v483_v57 = vmul.f32 7.54979e-08, %v291_v13  ;;  %v292_v49 = vfloor.f32 %v260_v45 }
 0x148   :  { %11793 = vst [vmem:[#allocation124_spill] sm:$0xff] %v7357_v55  ;;  %v1185_v18 = vsel %vm7332_vm15, %v7355_v46, %v7357_v55  ;;  %v674_v25 = vmul.f32 %v642_v50, %v546_v62  ;;  %v7363_v37 = vcvt.f32.s32 %v6033_v12  ;;  %v387_v6 = vsub.f32 %v7325_v21, %v355_v20 }
 0x149   :  { %v1441_v44 = vsub.f32 0.0, %v1185_v18  ;;  %v962_v51 = vmul.f32 %v930_v53, %v546_v62  ;;  %v834_v23 = vsub.f32 1.0, %v802_v24  ;;  %v1378_v34 = vand.u32 2, %v1346_v31 }
 0x14a   :  { %11794 = vst [vmem:[#allocation125_spill] sm:$0xff] %v7363_v37  ;;  %v706_v42 = vadd.f32 -0.16666655, %v674_v25  ;;  %v356_v5 = vmul.f32 1.5703125, %v292_v49  ;;  %v451_v8 = vsub.f32 %v387_v6, %v419_v33  ;;  %v6035_v55 = vtrunc.f32 %v292_v49 }
 0x14b   :  { %v1473_v47 = vsel %vm7345_vm3, %v1441_v44, %v1185_v18  ;;  %v994_v15 = vadd.f32 0.041666646, %v962_v51  ;;  %v420_v45 = vmul.f32 0.0004837513, %v292_v49  ;;  %v7370_v12 = vmul.f32 %v6536_v1, %v65_v16 }
 0x14c   :  { %v1505_v13 = vmul.f32 %v1473_v47, %v7320_v48  ;;  %v738_v50 = vmul.f32 %v706_v42, %v578_v22  ;;  %vm7372_vm7 = vcmp.ne.s32.totalorder %v1090_v56, 0  ;;  %v11795_v21 = vmov 0 }
 0x14d   :  { %v1026_v62 = vmul.f32 %v994_v15, %v866_v30  ;;  %v11796_v21 = vsel %vm7372_vm7, 4294967295, %v11795_v21  ;;  %v515_v20 = vsub.f32 %v451_v8, %v483_v57  ;;  %v7377_v31 = vadd.s32 1, %v7363_v37  ;;  %v6298_v35 = vpop.eup %6297 }
 0x14e   :  { %11797 = vst [vmem:[#allocation126_spill] sm:$0xff] %v11796_v21  ;;  %1537 = vst [vmem:[#allocation8 + $0xc8] sm:$0xff] %v1505_v13  ;;  %v7379_v51 = vadd.f32 %v738_v50, %v514_v9  ;;  %v388_v47 = vsub.f32 %v7342_v58, %v356_v5  ;;  %v484_v33 = vmul.f32 7.54979e-08, %v292_v49  ;;  %v98_v22 = vadd.f32 1.1920929e-07, %v65_v16 }
 0x14f   :  { %v7382_v24 = vadd.f32 %v1026_v62, %v834_v23  ;;  %v547_v53 = vmul.f32 %v515_v20, %v515_v20  ;;  %v1091_v15 = vand.u32 1, %v7363_v37  ;;  %v7385_v56 = vcvt.f32.s32 %v6035_v55 }
 0x150   :  { %11798 = vst [vmem:[#allocation127_spill] sm:$0xff] %v7379_v51  ;;  %vm7387_vm3 = vcmp.ne.s32.totalorder %v1378_v34, 0  ;;  %v7392_v30 = vmul.f32 %v6296_v11, %v6559_v41  ;;  %v452_v9 = vsub.f32 %v388_v47, %v420_v45  ;;  %v229_v18 = vmul.f32 0.63661975, %v7370_v12 }
 0x151   :  { %11799 = vst [vmem:[#allocation128_spill] sm:$0xff] %v7382_v24  ;;  %11800 = vst [vmem:[#allocation129_spill] sm:$0xff] %v7385_v56  ;;  %v1186_v5 = vsel %vm7372_vm7, %v7379_v51, %v7382_v24  ;;  %v611_v58 = vmul.f32 -0.00019515296, %v547_v53  ;;  %v1379_v25 = vand.u32 2, %v7377_v31  ;;  %v7401_v55 = vmul.f32 %v6298_v35, %v6559_v41 }
 0x152   :  { %11803 = vst [vmem:[#allocation130_spill] sm:$0xff] %v7392_v30  ;;  %v1442_v57 = vsub.f32 0.0, %v1186_v5  ;;  %v803_v49 = vmul.f32 0.5, %v547_v53  ;;  %v899_v44 = vmul.f32 2.4433157e-05, %v547_v53  ;;  %v516_v6 = vsub.f32 %v452_v9, %v484_v33  ;;  %v66_v33 = vld [vmem:[#allocation5 + $0xf0] sm:$0xff] }
 0x153   :  { %11804 = vst [vmem:[#allocation131_spill] sm:$0xff] %v7401_v55  ;;  %v643_v11 = vadd.f32 0.008332161, %v611_v58  ;;  %vm7403_vm15 = vcmp.ne.s32.totalorder %v1091_v15, 0  ;;  %v11805_v16 = vmov 0  ;;  %v1092_v42 = vand.u32 1, %v7385_v56 }
 0x154   :  { %v11806_v16 = vsel %vm7403_vm15, 4294967295, %v11805_v16  ;;  %v1348_v23 = vadd.s32 1, %v7385_v56  ;;  %6299 = vrcp.f32 %v98_v22  ;;  %v1474_v34 = vsel %vm7387_vm3, %v1442_v57, %v1186_v5 }
 0x155   :  { %v931_v13 = vadd.f32 -0.0013887316, %v899_v44  ;;  %v548_v50 = vmul.f32 %v516_v6, %v516_v6  ;;  %v261_v45 = vadd.f32 0.5, %v229_v18  ;;  %v1506_v62 = vmul.f32 %v1474_v34, %v7350_v27 }
 0x156   :  { %v579_v31 = vmul.f32 %v547_v53, %v515_v20  ;;  %v675_v35 = vmul.f32 %v643_v11, %v547_v53  ;;  %v867_v47 = vmul.f32 %v547_v53, %v547_v53  ;;  %v835_v15 = vsub.f32 1.0, %v803_v49 }
 0x157   :  { %v963_v9 = vmul.f32 %v931_v13, %v547_v53  ;;  %v612_v58 = vmul.f32 -0.00019515296, %v548_v50  ;;  %v99_v48 = vadd.f32 1.1920929e-07, %v66_v33  ;;  %1538 = vst [vmem:[#allocation8 + $0xd0] sm:$0xff] %v1506_v62  ;;  %v580_v56 = vmul.f32 %v548_v50, %v516_v6 }
 0x158   :  { %v707_v37 = vadd.f32 -0.16666655, %v675_v35  ;;  %v900_v22 = vmul.f32 2.4433157e-05, %v548_v50  ;;  %v293_v21 = vfloor.f32 %v261_v45  ;;  %v804_v57 = vmul.f32 0.5, %v548_v50 }
 0x159   :  { %v995_v8 = vadd.f32 0.041666646, %v963_v9  ;;  %v644_v5 = vadd.f32 0.008332161, %v612_v58  ;;  %v868_v44 = vmul.f32 %v548_v50, %v548_v50  ;;  %6301 = vrcp.f32 %v99_v48 }
 0x15a   :  { %v739_v18 = vmul.f32 %v707_v37, %v579_v31  ;;  %v932_v24 = vadd.f32 -0.0013887316, %v900_v22  ;;  %v6037_v34 = vtrunc.f32 %v293_v21  ;;  %v357_v27 = vmul.f32 1.5703125, %v293_v21 }
 0x15b   :  { %v1027_v11 = vmul.f32 %v995_v8, %v867_v47  ;;  %v676_v51 = vmul.f32 %v644_v5, %v548_v50  ;;  %v421_v46 = vmul.f32 0.0004837513, %v293_v21  ;;  %v485_v62 = vmul.f32 7.54979e-08, %v293_v21 }
 0x15c   :  { %v7412_v53 = vadd.f32 %v739_v18, %v515_v20  ;;  %v964_v49 = vmul.f32 %v932_v24, %v548_v50  ;;  %v7414_v13 = vcvt.f32.s32 %v6037_v34  ;;  %v389_v9 = vsub.f32 %v7370_v12, %v357_v27 }
 0x15d   :  { %v7416_v35 = vadd.f32 %v1027_v11, %v835_v15  ;;  %v708_v45 = vadd.f32 -0.16666655, %v676_v51  ;;  %v198_v37 = vmul.f32 %v6536_v1, %v66_v33  ;;  %vm7420_vm3 = vcmp.ne.s32.totalorder %v1379_v25, 0  ;;  %v67_v15 = vld [vmem:[#allocation5 + $0xf8] sm:$0xff] }
 0x15e   :  { %v6300_v31 = vpop.eup %6299  ;;  %v836_v47 = vsub.f32 1.0, %v804_v57  ;;  %v996_v48 = vadd.f32 0.041666646, %v964_v49  ;;  %v1380_v20 = vand.u32 2, %v1348_v23  ;;  %v453_v50 = vsub.f32 %v389_v9, %v421_v46 }
 0x15f   :  { %v1187_v21 = vsel %vm7403_vm15, %v7412_v53, %v7416_v35  ;;  %v740_v24 = vmul.f32 %v708_v45, %v580_v56  ;;  %v230_v51 = vmul.f32 0.63661975, %v198_v37  ;;  %v1349_v33 = vadd.s32 1, %v7414_v13 }
 0x160   :  { %v1443_v27 = vsub.f32 0.0, %v1187_v21  ;;  %v1028_v12 = vmul.f32 %v996_v48, %v868_v44  ;;  %v100_v25 = vadd.f32 1.1920929e-07, %v67_v15  ;;  %vm7431_vm7 = vcmp.ne.s32.totalorder %v1092_v42, 0 }
 0x161   :  { %v7429_v22 = vadd.f32 %v740_v24, %v516_v6  ;;  %v11809_v8 = vmov 0  ;;  %v517_v23 = vsub.f32 %v453_v50, %v485_v62  ;;  %v262_v5 = vadd.f32 0.5, %v230_v51 }
 0x162   :  { %v11810_v8 = vsel %vm7431_vm7, 4294967295, %v11809_v8  ;;  %v1475_v57 = vsel %vm7420_vm3, %v1443_v27, %v1187_v21  ;;  %v7437_v56 = vadd.f32 %v1028_v12, %v836_v47  ;;  %vm7439_vm15 = vcmp.ne.s32.totalorder %v1380_v20, 0 }
 0x163   :  { %v7444_v44 = vmul.f32 %v6536_v1, %v67_v15  ;;  %v1507_v6 = vmul.f32 %v1475_v57, %v7392_v30  ;;  %v549_v42 = vmul.f32 %v517_v23, %v517_v23  ;;  %v1093_v18 = vand.u32 1, %v7414_v13  ;;  %v6302_v45 = vpop.eup %6301 }
 0x164   :  { %v294_v34 = vfloor.f32 %v262_v5  ;;  %v1188_v11 = vsel %vm7431_vm7, %v7429_v22, %v7437_v56  ;;  %v7453_v49 = vmul.f32 %v6300_v31, %v6559_v41  ;;  %v1381_v62 = vand.u32 2, %v1349_v33 }
 0x165   :  { %6303 = vrcp.f32 %v100_v25  ;;  %1539 = vst [vmem:[#allocation8 + $0xd8] sm:$0xff] %v1507_v6  ;;  %v1444_v1 = vsub.f32 0.0, %v1188_v11  ;;  %v613_v9 = vmul.f32 -0.00019515296, %v549_v42  ;;  %v231_v58 = vmul.f32 0.63661975, %v7444_v44 }
 0x166   :  { %11813 = vst [vmem:[#allocation132_spill] sm:$0xff] %v7453_v49  ;;  %v7460_v47 = vsel %vm6586_vm0, %v6614_v2, %v6610_v60  ;;  %v901_v48 = vmul.f32 2.4433157e-05, %v549_v42  ;;  %v6039_v20 = vtrunc.f32 %v294_v34  ;;  %v358_v21 = vmul.f32 1.5703125, %v294_v34 }
 0x167   :  { %v1192_v31 = vand.u32 2, %v6551_v32  ;;  %v1476_v24 = vsel %vm7439_vm15, %v1444_v1, %v1188_v11  ;;  %v645_v50 = vadd.f32 0.008332161, %v613_v9  ;;  %v805_v51 = vmul.f32 0.5, %v549_v42 }
 0x168   :  { %vm7465_vm3 = vcmp.ne.s32.totalorder %v1093_v18, 0  ;;  %v11814_v15 = vmov 0  ;;  %v422_v27 = vmul.f32 0.0004837513, %v294_v34  ;;  %v1508_v12 = vmul.f32 %v1476_v24, %v7401_v55 }
 0x169   :  { %v11815_v15 = vsel %vm7465_vm3, 4294967295, %v11814_v15  ;;  %v933_v14 = vadd.f32 -0.0013887316, %v901_v48  ;;  %v7470_v60 = vcvt.f32.s32 %v6039_v20  ;;  %v390_v2 = vsub.f32 %v198_v37, %v358_v21 }
 0x16a   :  { %v581_v33 = vmul.f32 %v549_v42, %v517_v23  ;;  %v677_v25 = vmul.f32 %v645_v50, %v549_v42  ;;  %v486_v5 = vmul.f32 7.54979e-08, %v294_v34  ;;  %v263_v32 = vadd.f32 0.5, %v231_v58  ;;  %1540 = vst [vmem:[#allocation8 + $0xe0] sm:$0xff] %v1508_v12 }
 0x16b   :  { %11816 = vst [vmem:[#allocation133_spill] sm:$0xff] %v7470_v60  ;;  %v869_v57 = vmul.f32 %v549_v42, %v549_v42  ;;  %v965_v46 = vmul.f32 %v933_v14, %v549_v42  ;;  %vm7472_vm0 = vcmp.ne.s32.totalorder %v1381_v62, 0  ;;  %v7477_v18 = vmul.f32 %v6302_v45, %v6559_v41 }
 0x16c   :  { %v454_v11 = vsub.f32 %v390_v2, %v422_v27  ;;  %v709_v1 = vadd.f32 -0.16666655, %v677_v25  ;;  %v837_v9 = vsub.f32 1.0, %v805_v51  ;;  %v295_v48 = vfloor.f32 %v263_v32 }
 0x16d   :  { %11819 = vst [vmem:[#allocation134_spill] sm:$0xff] %v7477_v18  ;;  %vm7479_vm15 = vcmp.ne.s32.totalorder %v1192_v31, 0  ;;  %v997_v34 = vadd.f32 0.041666646, %v965_v46  ;;  %v1094_v20 = vand.u32 1, %v7470_v60  ;;  %v1350_v42 = vadd.s32 1, %v7470_v60 }
 0x16e   :  { %v518_v58 = vsub.f32 %v454_v11, %v486_v5  ;;  %v741_v62 = vmul.f32 %v709_v1, %v581_v33  ;;  %v6041_v21 = vtrunc.f32 %v295_v48  ;;  %v359_v24 = vmul.f32 1.5703125, %v295_v48 }
 0x16f   :  { %v1256_v45 = vsub.f32 0.0, %v7460_v47  ;;  %v6304_v50 = vpop.eup %6303  ;;  %v1029_v27 = vmul.f32 %v997_v34, %v869_v57  ;;  %v423_v51 = vmul.f32 0.0004837513, %v295_v48  ;;  %v1129_v31 = vsel %vm6593_vm1, %v6618_v7, %v6616_v3 }
 0x170   :  { %v550_v12 = vmul.f32 %v518_v58, %v518_v58  ;;  %v7490_v14 = vadd.f32 %v741_v62, %v517_v23  ;;  %v7492_v2 = vcvt.f32.s32 %v6041_v21  ;;  %v391_v25 = vsub.f32 %v7444_v44, %v359_v24 }
 0x171   :  { %v487_v33 = vmul.f32 7.54979e-08, %v295_v48  ;;  %v7495_v5 = vadd.f32 %v1029_v27, %v837_v9  ;;  %v1382_v11 = vand.u32 2, %v1350_v42  ;;  %v7498_v34 = vmul.f32 %v6304_v50, %v6559_v41 }
 0x172   :  { %v614_v32 = vmul.f32 -0.00019515296, %v550_v12  ;;  %v806_v46 = vmul.f32 0.5, %v550_v12  ;;  %v582_v57 = vmul.f32 %v550_v12, %v518_v58  ;;  %v902_v1 = vmul.f32 2.4433157e-05, %v550_v12 }
 0x173   :  { %11822 = vst [vmem:[#allocation135_spill] sm:$0xff] %v7498_v34  ;;  %v455_v60 = vsub.f32 %v391_v25, %v423_v51  ;;  %v1189_v19 = vsel %vm7465_vm3, %v7490_v14, %v7495_v5  ;;  %v870_v7 = vmul.f32 %v550_v12, %v550_v12  ;;  %vm7504_vm1 = vcmp.ne.s32.totalorder %v1094_v20, 0  ;;  %v11838_v51 = vld [vmem:[#allocation19_spill] sm:$0xff] }
 0x174   :  { %v646_v3 = vadd.f32 0.008332161, %v614_v32  ;;  %v1351_v44 = vadd.s32 1, %v7492_v2  ;;  %v1445_v9 = vsub.f32 0.0, %v1189_v19  ;;  %v934_v48 = vadd.f32 -0.0013887316, %v902_v1 }
 0x175   :  { %v519_v42 = vsub.f32 %v455_v60, %v487_v33  ;;  %v1095_v41 = vand.u32 1, %v7492_v2  ;;  %v838_v21 = vsub.f32 1.0, %v806_v46  ;;  %v1288_v24 = vsel %vm7479_vm15, %v1256_v45, %v7460_v47 }
 0x176   :  { %v678_v62 = vmul.f32 %v646_v3, %v550_v12  ;;  %v1193_v50 = vand.u32 2, %v6554_v36  ;;  %v1477_v20 = vsel %vm7472_vm0, %v1445_v9, %v1189_v19  ;;  %v966_v27 = vmul.f32 %v934_v48, %v550_v12 }
 0x177   :  { %vm7516_vm3 = vcmp.ne.s32.totalorder %v1382_v11, 0  ;;  %v551_v25 = vmul.f32 %v519_v42, %v519_v42  ;;  %v1544_v60 = vmul.f32 %v1288_v24, %v6578_v61  ;;  %v1509_v33 = vmul.f32 %v1477_v20, %v7453_v49 }
 0x178   :  { %v710_v32 = vadd.f32 -0.16666655, %v678_v62  ;;  %v1383_v46 = vand.u32 2, %v1351_v44  ;;  %vm7522_vm7 = vcmp.ne.s32.totalorder %v1193_v50, 0  ;;  %v998_v36 = vadd.f32 0.041666646, %v966_v27 }
 0x179   :  { %v583_v47 = vmul.f32 %v551_v25, %v519_v42  ;;  %v615_v6 = vmul.f32 -0.00019515296, %v551_v25  ;;  %v807_v45 = vmul.f32 0.5, %v551_v25  ;;  %1576 = vst [vmem:[#allocation9] sm:$0xff] %v1544_v60  ;;  %1541 = vst [vmem:[#allocation8 + $0xe8] sm:$0xff] %v1509_v33  ;;  %v871_v11 = vmul.f32 %v551_v25, %v551_v25 }
 0x17a   :  { %v742_v12 = vmul.f32 %v710_v32, %v582_v57  ;;  %v903_v1 = vmul.f32 2.4433157e-05, %v551_v25  ;;  %v1257_v19 = vsub.f32 0.0, %v1129_v31  ;;  %v1030_v3 = vmul.f32 %v998_v36, %v870_v7  ;;  %v11857_v32 = vld [vmem:[#allocation36_spill] sm:$0xff] }
 0x17b   :  { %v647_v9 = vadd.f32 0.008332161, %v615_v6  ;;  %v839_v48 = vsub.f32 1.0, %v807_v45  ;;  %vm7526_vm0 = vcmp.ne.s32.totalorder %v1095_v41, 0  ;;  %v1130_v44 = vsel %vm6642_vm4, %v6655_v52, %v6650_v40  ;;  %v11834_v45 = vld [vmem:[#allocation18_spill] sm:$0xff] }
 0x17c   :  { %v7534_v24 = vadd.f32 %v742_v12, %v518_v58  ;;  %v935_v50 = vadd.f32 -0.0013887316, %v903_v1  ;;  %v1289_v57 = vsel %vm7522_vm7, %v1257_v19, %v1129_v31  ;;  %v1194_v20 = vand.u32 2, %v6570_v54 }
 0x17d   :  { %v7539_v7 = vadd.f32 %v1030_v3, %v838_v21  ;;  %v679_v27 = vmul.f32 %v647_v9, %v551_v25  ;;  %v1545_v41 = vmul.f32 %v1289_v57, %v6583_v4  ;;  %v1258_v60 = vsub.f32 0.0, %v1130_v44  ;;  %v11836_v9 = vld [vmem:[#allocation24_spill] sm:$0xff] }
 0x17e   :  { %v967_v33 = vmul.f32 %v935_v50, %v551_v25  ;;  %vm7542_vm15 = vcmp.ne.s32.totalorder %v1383_v46, 0  ;;  %vm1226_vm4 = vcmp.ne.s32.totalorder %v1194_v20, 0  ;;  %v1131_v39 = vsel %vm6669_vm6, %v6679_v43, %v6673_v29  ;;  %v11839_v57 = vld [vmem:[#allocation20_spill] sm:$0xff] }
 0x17f   :  { %v1195_v40 = vand.u32 2, %v6629_v17  ;;  %v1190_v54 = vsel %vm7504_vm1, %v7534_v24, %v7539_v7  ;;  %v711_v52 = vadd.f32 -0.16666655, %v679_v27  ;;  %1577 = vst [vmem:[#allocation9 + $0x8] sm:$0xff] %v1545_v41  ;;  %v1290_v58 = vsel %vm1226_vm4, %v1258_v60, %v1130_v44  ;;  %v11840_v27 = vld [vmem:[#allocation31_spill] sm:$0xff]  ;;  %v11841_v41 = vld [vmem:[#allocation32_spill] sm:$0xff] }
 0x180   :  { %v1259_v31 = vsub.f32 0.0, %v1131_v39  ;;  %v1446_v21 = vsub.f32 0.0, %v1190_v54  ;;  %v999_v25 = vadd.f32 0.041666646, %v967_v33  ;;  %v1546_v46 = vmul.f32 %v1290_v58, %v6634_v26  ;;  %v11843_v33 = vld [vmem:[#allocation21_spill] sm:$0xff] }
 0x181   :  { %vm1227_vm7 = vcmp.ne.s32.totalorder %v1195_v40, 0  ;;  %v743_v37 = vmul.f32 %v711_v52, %v583_v47  ;;  %v1132_v17 = vsel %vm6694_vm8, %v6718_v0, %v6716_v59  ;;  %v1196_v29 = vand.u32 2, %v11833_v28  ;;  %v11835_v47 = vld [vmem:[#allocation22_spill] sm:$0xff] }
 0x182   :  { %v1291_v36 = vsel %vm1227_vm7, %v1259_v31, %v1131_v39  ;;  %v1478_v43 = vsel %vm7516_vm3, %v1446_v21, %v1190_v54  ;;  %v1031_v6 = vmul.f32 %v999_v25, %v871_v11  ;;  %1578 = vst [vmem:[#allocation9 + $0x10] sm:$0xff] %v1546_v46  ;;  %v1260_v1 = vsub.f32 0.0, %v1132_v17  ;;  %v11844_v40 = vld [vmem:[#allocation34_spill] sm:$0xff]  ;;  %v11845_v54 = vld [vmem:[#allocation35_spill] sm:$0xff] }
 0x183   :  { %v1547_v12 = vmul.f32 %v1291_v36, %v11834_v45  ;;  %v1510_v19 = vmul.f32 %v1478_v43, %v7477_v18  ;;  %v7565_v3 = vadd.f32 %v743_v37, %v519_v42  ;;  %vm1228_vm6 = vcmp.ne.s32.totalorder %v1196_v29, 0  ;;  %v11847_v21 = vld [vmem:[#allocation27_spill] sm:$0xff]  ;;  %v11849_v43 = vld [vmem:[#allocation37_spill] sm:$0xff] }
 0x184   :  { %v1133_v10 = vsel %vm6733_vm10, %v11836_v9, %v11835_v47  ;;  %v7571_v59 = vadd.f32 %v1031_v6, %v839_v48  ;;  %v1292_v0 = vsel %vm1228_vm6, %v1260_v1, %v1132_v17  ;;  %v1197_v11 = vand.u32 2, %v11838_v51  ;;  %v11848_v17 = vld [vmem:[#allocation25_spill] sm:$0xff]  ;;  %v11850_v6 = vld [vmem:[#allocation40_spill] sm:$0xff]  ;;  %v11852_v47 = vld [vmem:[#allocation26_spill] sm:$0xff] }
 0x185   :  { %1579 = vst [vmem:[#allocation9 + $0x18] sm:$0xff] %v1547_v12  ;;  %v1261_v50 = vsub.f32 0.0, %v1133_v10  ;;  %1542 = vst [vmem:[#allocation8 + $0xf0] sm:$0xff] %v1510_v19  ;;  %v1548_v20 = vmul.f32 %v1292_v0, %v11839_v57  ;;  %v1134_v60 = vsel %vm6755_vm12, %v11841_v41, %v11840_v27  ;;  %v1198_v39 = vand.u32 2, %v11843_v33  ;;  %v11853_v0 = vld [vmem:[#allocation29_spill] sm:$0xff]  ;;  %v11855_v27 = vld [vmem:[#allocation46_spill] sm:$0xff] }
 0x186   :  { %v1135_v48 = vsel %vm6781_vm14, %v11845_v54, %v11844_v40  ;;  %v1191_v58 = vsel %vm7526_vm0, %v7565_v3, %v7571_v59  ;;  %vm1229_vm8 = vcmp.ne.s32.totalorder %v1197_v11, 0  ;;  %v1262_v31 = vsub.f32 0.0, %v1134_v60  ;;  %v11854_v11 = vld [vmem:[#allocation30_spill] sm:$0xff]  ;;  %v11873_v41 = vld [vmem:[#allocation44_spill] sm:$0xff]  ;;  %v11878_v54 = vld [vmem:[#allocation45_spill] sm:$0xff] }
 0x187   :  { %v1199_v25 = vand.u32 2, %v11847_v21  ;;  %v1447_v46 = vsub.f32 0.0, %v1191_v58  ;;  %1580 = vst [vmem:[#allocation9 + $0x20] sm:$0xff] %v1548_v20  ;;  %v1293_v37 = vsel %vm1229_vm8, %v1261_v50, %v1133_v10  ;;  %vm1230_vm10 = vcmp.ne.s32.totalorder %v1198_v39, 0  ;;  %v11858_v39 = vld [vmem:[#allocation49_spill] sm:$0xff]  ;;  %v11859_v40 = vld [vmem:[#allocation50_spill] sm:$0xff] }
 0x188   :  { %v1263_v36 = vsub.f32 0.0, %v1135_v48  ;;  %v1549_v28 = vmul.f32 %v1293_v37, %v11848_v17  ;;  %v1294_v29 = vsel %vm1230_vm10, %v1262_v31, %v1134_v60  ;;  %v1136_v1 = vsel %vm6820_vm2, %v11850_v6, %v11849_v43  ;;  %v11881_v37 = vld [vmem:[#allocation69_spill] sm:$0xff] }
 0x189   :  { %vm1231_vm12 = vcmp.ne.s32.totalorder %v1199_v25, 0  ;;  %v1479_v19 = vsel %vm7542_vm15, %v1447_v46, %v1191_v58  ;;  %v1550_v9 = vmul.f32 %v1294_v29, %v11852_v47  ;;  %v1200_v51 = vand.u32 2, %v11853_v0  ;;  %v11861_v58 = vld [vmem:[#allocation41_spill] sm:$0xff]  ;;  %v11862_v25 = vld [vmem:[#allocation54_spill] sm:$0xff]  ;;  %v11863_v46 = vld [vmem:[#allocation55_spill] sm:$0xff] }
 0x18a   :  { %v1295_v44 = vsel %vm1231_vm12, %v1263_v36, %v1135_v48  ;;  %v1511_v10 = vmul.f32 %v1479_v19, %v7498_v34  ;;  %1581 = vst [vmem:[#allocation9 + $0x28] sm:$0xff] %v1549_v28  ;;  %v1264_v20 = vsub.f32 0.0, %v1136_v1  ;;  %v1137_v42 = vsel %vm6847_vm5, %v11855_v27, %v6873_v63  ;;  %v11865_v36 = vld [vmem:[#allocation39_spill] sm:$0xff]  ;;  %v11867_v19 = vld [vmem:[#allocation58_spill] sm:$0xff] }
 0x18b   :  { %v1551_v50 = vmul.f32 %v1295_v44, %v11854_v11  ;;  %1582 = vst [vmem:[#allocation9 + $0x30] sm:$0xff] %v1550_v9  ;;  %vm1232_vm14 = vcmp.ne.s32.totalorder %v1200_v51, 0  ;;  %v1201_v60 = vand.u32 2, %v11857_v32  ;;  %v1265_v33 = vsub.f32 0.0, %v1137_v42  ;;  %v11866_v29 = vld [vmem:[#allocation47_spill] sm:$0xff]  ;;  %v11869_v44 = vld [vmem:[#allocation57_spill] sm:$0xff] }
 0x18c   :  { %v1138_v52 = vsel %vm6887_vm9, %v11859_v40, %v11858_v39  ;;  %1543 = vst [vmem:[#allocation8 + $0xf8] sm:$0xff] %v1511_v10  ;;  %v1296_v48 = vsel %vm1232_vm14, %v1264_v20, %v1136_v1  ;;  %v1202_v31 = vand.u32 2, %v11861_v58  ;;  %v1139_v63 = vsel %vm6909_vm13, %v11863_v46, %v11862_v25  ;;  %v11868_v9 = vld [vmem:[#allocation59_spill] sm:$0xff]  ;;  %v11872_v10 = vld [vmem:[#allocation42_spill] sm:$0xff]  ;;  %v11874_v39 = vld [vmem:[#allocation61_spill] sm:$0xff] }
 0x18d   :  { %1583 = vst [vmem:[#allocation9 + $0x38] sm:$0xff] %v1551_v50  ;;  %v1266_v21 = vsub.f32 0.0, %v1138_v52  ;;  %v1552_v28 = vmul.f32 %v1296_v48, %v11865_v36  ;;  %vm1233_vm2 = vcmp.ne.s32.totalorder %v1201_v60, 0  ;;  %v1203_v43 = vand.u32 2, %v11866_v29  ;;  %v11871_v0 = vld [vmem:[#allocation51_spill] sm:$0xff] }
 0x18e   :  { %v1267_v6 = vsub.f32 0.0, %v1139_v63  ;;  %v1297_v12 = vsel %vm1233_vm2, %v1265_v33, %v1137_v42  ;;  %vm1234_vm5 = vcmp.ne.s32.totalorder %v1202_v31, 0  ;;  %vm11870_vm9 = vnez %v11869_v44  ;;  %v11875_v42 = vld [vmem:[#allocation64_spill] sm:$0xff]  ;;  %v11876_v33 = vld [vmem:[#allocation62_spill] sm:$0xff]  ;;  %v11883_v29 = vld [vmem:[#allocation67_spill] sm:$0xff] }
 0x18f   :  { %v1140_v1 = vsel %vm11870_vm9, %v11868_v9, %v11867_v19  ;;  %v1204_v51 = vand.u32 2, %v11871_v0  ;;  %1584 = vst [vmem:[#allocation9 + $0x40] sm:$0xff] %v1552_v28  ;;  %v1553_v50 = vmul.f32 %v1297_v12, %v11872_v10  ;;  %v1298_v20 = vsel %vm1234_vm5, %v1266_v21, %v1138_v52  ;;  %v11879_v31 = vld [vmem:[#allocation56_spill] sm:$0xff]  ;;  %v11880_v52 = vld [vmem:[#allocation53_spill] sm:$0xff]  ;;  %v11882_v28 = vld [vmem:[#allocation70_spill] sm:$0xff] }
 0x190   :  { %vm1235_vm13 = vcmp.ne.s32.totalorder %v1203_v43, 0  ;;  %v1268_v27 = vsub.f32 0.0, %v1140_v1  ;;  %v1554_v32 = vmul.f32 %v1298_v20, %v11873_v41  ;;  %vm11877_vm15 = vnez %v11876_v33  ;;  %v11885_v43 = vld [vmem:[#allocation60_spill] sm:$0xff]  ;;  %v11886_v12 = vld [vmem:[#allocation73_spill] sm:$0xff]  ;;  %v11887_v19 = vld [vmem:[#allocation74_spill] sm:$0xff] }
 0x191   :  { %v1299_v60 = vsel %vm1235_vm13, %v1267_v6, %v1139_v63  ;;  %vm1236_vm3 = vcmp.ne.s32.totalorder %v1204_v51, 0  ;;  %v1141_v40 = vsel %vm11877_vm15, %v11875_v42, %v11874_v39  ;;  %1585 = vst [vmem:[#allocation9 + $0x48] sm:$0xff] %v1553_v50  ;;  %v1205_v25 = vand.u32 2, %v11879_v31  ;;  %v11888_v9 = vld [vmem:[#allocation72_spill] sm:$0xff]  ;;  %v11890_v0 = vld [vmem:[#allocation65_spill] sm:$0xff]  ;;  %v11895_v42 = vld [vmem:[#allocation71_spill] sm:$0xff] }
 0x192   :  { %v1555_v48 = vmul.f32 %v1299_v60, %v11878_v54  ;;  %v1300_v58 = vsel %vm1236_vm3, %v1268_v27, %v1140_v1  ;;  %v1269_v46 = vsub.f32 0.0, %v1141_v40  ;;  %1586 = vst [vmem:[#allocation9 + $0x50] sm:$0xff] %v1554_v32  ;;  %vm11884_vm4 = vnez %v11883_v29  ;;  %v11891_v27 = vld [vmem:[#allocation79_spill] sm:$0xff]  ;;  %v11892_v32 = vld [vmem:[#allocation80_spill] sm:$0xff]  ;;  %v11893_v60 = vld [vmem:[#allocation77_spill] sm:$0xff] }
 0x193   :  { %v1556_v21 = vmul.f32 %v1300_v58, %v11880_v52  ;;  %v1142_v63 = vsel %vm11884_vm4, %v11882_v28, %v11881_v37  ;;  %v1206_v6 = vand.u32 2, %v11885_v43  ;;  %vm11889_vm7 = vnez %v11888_v9  ;;  %v11896_v58 = vld [vmem:[#allocation63_spill] sm:$0xff]  ;;  %v11898_v43 = vld [vmem:[#allocation84_spill] sm:$0xff] }
 0x194   :  { %v1143_v44 = vsel %vm11889_vm7, %v11887_v19, %v11886_v12  ;;  %1587 = vst [vmem:[#allocation9 + $0x58] sm:$0xff] %v1555_v48  ;;  %vm1237_vm6 = vcmp.ne.s32.totalorder %v1205_v25, 0  ;;  %v1270_v1 = vsub.f32 0.0, %v1142_v63  ;;  %v1207_v51 = vand.u32 2, %v11890_v0  ;;  %v11897_v25 = vld [vmem:[#allocation66_spill] sm:$0xff]  ;;  %v11902_v9 = vld [vmem:[#allocation75_spill] sm:$0xff] }
 0x195   :  { %v1271_v50 = vsub.f32 0.0, %v1143_v44  ;;  %1588 = vst [vmem:[#allocation9 + $0x60] sm:$0xff] %v1556_v21  ;;  %v1301_v20 = vsel %vm1237_vm6, %v1269_v46, %v1141_v40  ;;  %vm1238_vm8 = vcmp.ne.s32.totalorder %v1206_v6, 0  ;;  %vm11894_vm10 = vnez %v11893_v60  ;;  %v11899_v21 = vld [vmem:[#allocation85_spill] sm:$0xff]  ;;  %v11901_v6 = vld [vmem:[#allocation68_spill] sm:$0xff]  ;;  %v11915_v40 = vld [vmem:[#allocation98_spill] sm:$0xff] }
 0x196   :  { %v1144_v39 = vsel %vm11894_vm10, %v11892_v32, %v11891_v27  ;;  %v1208_v33 = vand.u32 2, %v11895_v42  ;;  %v1557_v31 = vmul.f32 %v1301_v20, %v11896_v58  ;;  %v1302_v37 = vsel %vm1238_vm8, %v1270_v1, %v1142_v63  ;;  %v11903_v63 = vld [vmem:[#allocation76_spill] sm:$0xff]  ;;  %v11905_v20 = vld [vmem:[#allocation89_spill] sm:$0xff]  ;;  %v11906_v32 = vld [vmem:[#allocation86_spill] sm:$0xff] }
 0x197   :  { %vm1239_vm12 = vcmp.ne.s32.totalorder %v1207_v51, 0  ;;  %v1272_v48 = vsub.f32 0.0, %v1144_v39  ;;  %v1558_v28 = vmul.f32 %v1302_v37, %v11897_v25  ;;  %v1145_v46 = vsel %vm7092_vm11, %v11899_v21, %v11898_v43  ;;  %v11904_v51 = vld [vmem:[#allocation88_spill] sm:$0xff]  ;;  %v11909_v42 = vld [vmem:[#allocation91_spill] sm:$0xff]  ;;  %v11911_v37 = vld [vmem:[#allocation93_spill] sm:$0xff] }
 0x198   :  { %v1303_v29 = vsel %vm1239_vm12, %v1271_v50, %v1143_v44  ;;  %vm1240_vm14 = vcmp.ne.s32.totalorder %v1208_v33, 0  ;;  %1589 = vst [vmem:[#allocation9 + $0x68] sm:$0xff] %v1557_v31  ;;  %v1209_v0 = vand.u32 2, %v11902_v9  ;;  %v1273_v27 = vsub.f32 0.0, %v1145_v46  ;;  %v11908_v50 = vld [vmem:[#allocation82_spill] sm:$0xff]  ;;  %v11914_v21 = vld [vmem:[#allocation99_spill] sm:$0xff] }
 0x199   :  { %v1559_v12 = vmul.f32 %v1303_v29, %v11901_v6  ;;  %v1304_v19 = vsel %vm1240_vm14, %v1272_v48, %v1144_v39  ;;  %1590 = vst [vmem:[#allocation9 + $0x70] sm:$0xff] %v1558_v28  ;;  %vm11907_vm2 = vnez %v11906_v32  ;;  %v1210_v60 = vand.u32 2, %v11908_v50  ;;  %v11910_v33 = vld [vmem:[#allocation94_spill] sm:$0xff]  ;;  %v11913_v48 = vld [vmem:[#allocation87_spill] sm:$0xff] }
 0x19a   :  { %v1560_v1 = vmul.f32 %v1304_v19, %v11903_v63  ;;  %v1146_v44 = vsel %vm11907_vm2, %v11905_v20, %v11904_v51  ;;  %vm11912_vm11 = vnez %v11911_v37  ;;  %vm1241_vm5 = vcmp.ne.s32.totalorder %v1209_v0, 0  ;;  %v11917_v9 = vld [vmem:[#allocation90_spill] sm:$0xff]  ;;  %v11919_v0 = vld [vmem:[#allocation83_spill] sm:$0xff] }
 0x19b   :  { %v1147_v31 = vsel %vm11912_vm11, %v11910_v33, %v11909_v42  ;;  %1591 = vst [vmem:[#allocation9 + $0x78] sm:$0xff] %v1559_v12  ;;  %v1274_v39 = vsub.f32 0.0, %v1146_v44  ;;  %v1211_v29 = vand.u32 2, %v11913_v48  ;;  %v1305_v43 = vsel %vm1241_vm5, %v1273_v27, %v1145_v46  ;;  %v11918_v20 = vld [vmem:[#allocation78_spill] sm:$0xff]  ;;  %v11922_v46 = vld [vmem:[#allocation101_spill] sm:$0xff] }
 0x19c   :  { %v1275_v28 = vsub.f32 0.0, %v1147_v31  ;;  %1592 = vst [vmem:[#allocation9 + $0x80] sm:$0xff] %v1560_v1  ;;  %vm1242_vm9 = vcmp.ne.s32.totalorder %v1210_v60, 0  ;;  %vm11916_vm13 = vnez %v11915_v40  ;;  %v1212_v51 = vand.u32 2, %v11917_v9  ;;  %v11920_v37 = vld [vmem:[#allocation102_spill] sm:$0xff]  ;;  %v11921_v1 = vld [vmem:[#allocation104_spill] sm:$0xff] }
 0x19d   :  { %v1148_v19 = vsel %vm11916_vm13, %v11914_v21, %v7207_v38  ;;  %v1561_v32 = vmul.f32 %v1305_v43, %v11918_v20  ;;  %v1306_v50 = vsel %vm1242_vm9, %v1274_v39, %v1146_v44  ;;  %vm1243_vm3 = vcmp.ne.s32.totalorder %v1211_v29, 0  ;;  %v11924_v60 = vld [vmem:[#allocation92_spill] sm:$0xff]  ;;  %v11925_v21 = vld [vmem:[#allocation97_spill] sm:$0xff]  ;;  %v11926_v44 = vld [vmem:[#allocation95_spill] sm:$0xff] }
 0x19e   :  { %v1276_v12 = vsub.f32 0.0, %v1148_v19  ;;  %v1562_v42 = vmul.f32 %v1306_v50, %v11919_v0  ;;  %v1307_v33 = vsel %vm1243_vm3, %v1275_v28, %v1147_v31  ;;  %vm1244_vm15 = vcmp.ne.s32.totalorder %v1212_v51, 0  ;;  %v11927_v29 = vld [vmem:[#allocation108_spill] sm:$0xff]  ;;  %v11928_v43 = vld [vmem:[#allocation109_spill] sm:$0xff]  ;;  %v11929_v50 = vld [vmem:[#allocation106_spill] sm:$0xff] }
 0x19f   :  { %vm11923_vm4 = vnez %v11922_v46  ;;  %1593 = vst [vmem:[#allocation9 + $0x88] sm:$0xff] %v1561_v32  ;;  %v1563_v48 = vmul.f32 %v1307_v33, %v11924_v60  ;;  %v1213_v40 = vand.u32 2, %v11925_v21  ;;  %vm11930_vm7 = vnez %v11929_v50  ;;  %v11931_v28 = vld [vmem:[#allocation100_spill] sm:$0xff]  ;;  %v11932_v0 = vld [vmem:[#allocation111_spill] sm:$0xff]  ;;  %v11933_v46 = vld [vmem:[#allocation113_spill] sm:$0xff] }
 0x1a0   :  { %v1149_v27 = vsel %vm11923_vm4, %v11921_v1, %v11920_v37  ;;  %v1308_v38 = vsel %vm1244_vm15, %v1276_v12, %v1148_v19  ;;  %1594 = vst [vmem:[#allocation9 + $0x90] sm:$0xff] %v1562_v42  ;;  %v1150_v31 = vsel %vm11930_vm7, %v11928_v43, %v11927_v29  ;;  %v1214_v51 = vand.u32 2, %v11931_v28  ;;  %v11934_v37 = vld [vmem:[#allocation107_spill] sm:$0xff]  ;;  %v11936_v12 = vld [vmem:[#allocation105_spill] sm:$0xff]  ;;  %v11939_v50 = vld [vmem:[#allocation116_spill] sm:$0xff] }
 0x1a1   :  { %v1277_v9 = vsub.f32 0.0, %v1149_v27  ;;  %v1564_v39 = vmul.f32 %v1308_v38, %v11926_v44  ;;  %vm11935_vm6 = vnez %v11934_v37  ;;  %1595 = vst [vmem:[#allocation9 + $0x98] sm:$0xff] %v1563_v48  ;;  %vm1245_vm8 = vcmp.ne.s32.totalorder %v1213_v40, 0  ;;  %v11937_v38 = vld [vmem:[#allocation117_spill] sm:$0xff]  ;;  %v11938_v21 = vld [vmem:[#allocation119_spill] sm:$0xff]  ;;  %v11941_v43 = vld [vmem:[#allocation110_spill] sm:$0xff] }
 0x1a2   :  { %v1151_v32 = vsel %vm11935_vm6, %v11933_v46, %v11932_v0  ;;  %v1278_v19 = vsub.f32 0.0, %v1150_v31  ;;  %v1215_v33 = vand.u32 2, %v11936_v12  ;;  %vm1246_vm10 = vcmp.ne.s32.totalorder %v1214_v51, 0  ;;  %v11942_v44 = vld [vmem:[#allocation96_spill] sm:$0xff]  ;;  %v11943_v48 = vld [vmem:[#allocation103_spill] sm:$0xff] }
 0x1a3   :  { %v1279_v42 = vsub.f32 0.0, %v1151_v32  ;;  %1596 = vst [vmem:[#allocation9 + $0xa0] sm:$0xff] %v1564_v39  ;;  %v1309_v1 = vsel %vm1245_vm8, %v1277_v9, %v1149_v27  ;;  %vm11940_vm12 = vnez %v11939_v50  ;;  %v1216_v28 = vand.u32 2, %v11941_v43  ;;  %v11944_v12 = vld [vmem:[#allocation123_spill] sm:$0xff]  ;;  %v11945_v39 = vld [vmem:[#allocation124_spill] sm:$0xff] }
 0x1a4   :  { %v1152_v29 = vsel %vm11940_vm12, %v11938_v21, %v11937_v38  ;;  %v1565_v60 = vmul.f32 %v1309_v1, %v11942_v44  ;;  %v1310_v37 = vsel %vm1246_vm10, %v1278_v19, %v1150_v31  ;;  %vm1247_vm14 = vcmp.ne.s32.totalorder %v1215_v33, 0  ;;  %v11946_v27 = vld [vmem:[#allocation120_spill] sm:$0xff]  ;;  %v11949_v21 = vld [vmem:[#allocation114_spill] sm:$0xff]  ;;  %v11950_v31 = vld [vmem:[#allocation115_spill] sm:$0xff] }
 0x1a5   :  { %v1280_v0 = vsub.f32 0.0, %v1152_v29  ;;  %v1566_v40 = vmul.f32 %v1310_v37, %v11943_v48  ;;  %v1311_v46 = vsel %vm1247_vm14, %v1279_v42, %v1151_v32  ;;  %vm1248_vm2 = vcmp.ne.s32.totalorder %v1216_v28, 0  ;;  %v11948_v51 = vld [vmem:[#allocation112_spill] sm:$0xff]  ;;  %v11951_v33 = vld [vmem:[#allocation127_spill] sm:$0xff]  ;;  %v11953_v37 = vld [vmem:[#allocation126_spill] sm:$0xff] }
 0x1a6   :  { %vm11947_vm11 = vnez %v11946_v27  ;;  %1597 = vst [vmem:[#allocation9 + $0xa8] sm:$0xff] %v1565_v60  ;;  %v1567_v50 = vmul.f32 %v1311_v46, %v11948_v51  ;;  %v1217_v43 = vand.u32 2, %v11949_v21  ;;  %v11952_v1 = vld [vmem:[#allocation128_spill] sm:$0xff]  ;;  %vm11954_vm5 = vnez %v11953_v37  ;;  %v11955_v42 = vld [vmem:[#allocation121_spill] sm:$0xff]  ;;  %v11961_v21 = vld [vmem:[#allocation122_spill] sm:$0xff] }
 0x1a7   :  { %v1153_v9 = vsel %vm11947_vm11, %v11945_v39, %v11944_v12  ;;  %v1312_v38 = vsel %vm1248_vm2, %v1280_v0, %v1152_v29  ;;  %1598 = vst [vmem:[#allocation9 + $0xb0] sm:$0xff] %v1566_v40  ;;  %v1154_v32 = vsel %vm11954_vm5, %v11952_v1, %v11951_v33  ;;  %v1218_v28 = vand.u32 2, %v11955_v42  ;;  %v11957_v0 = vld [vmem:[#allocation125_spill] sm:$0xff] }
 0x1a8   :  { %v1281_v20 = vsub.f32 0.0, %v1153_v9  ;;  %v1568_v19 = vmul.f32 %v1312_v38, %v11950_v31  ;;  %vm11956_vm9 = vnez %v11806_v16  ;;  %1599 = vst [vmem:[#allocation9 + $0xb8] sm:$0xff] %v1567_v50  ;;  %vm1249_vm13 = vcmp.ne.s32.totalorder %v1217_v43, 0  ;;  %v11959_v27 = vld [vmem:[#allocation129_spill] sm:$0xff]  ;;  %v11960_v16 = vld [vmem:[#allocation118_spill] sm:$0xff] }
 0x1a9   :  { %v1155_v60 = vsel %vm11956_vm9, %v7416_v35, %v7412_v53  ;;  %v1282_v29 = vsub.f32 0.0, %v1154_v32  ;;  %v1219_v40 = vand.u32 2, %v11957_v0  ;;  %vm1250_vm3 = vcmp.ne.s32.totalorder %v1218_v28, 0  ;;  %v11963_v37 = vld [vmem:[#allocation133_spill] sm:$0xff] }
 0x1aa   :  { %v1283_v46 = vsub.f32 0.0, %v1155_v60  ;;  %1600 = vst [vmem:[#allocation9 + $0xc0] sm:$0xff] %v1568_v19  ;;  %v1313_v12 = vsel %vm1249_vm13, %v1281_v20, %v1153_v9  ;;  %vm11958_vm15 = vnez %v11810_v8  ;;  %v1220_v38 = vand.u32 2, %v11959_v27 }
 0x1ab   :  { %v1156_v39 = vsel %vm11958_vm15, %v7437_v56, %v7429_v22  ;;  %v1569_v53 = vmul.f32 %v1313_v12, %v11960_v16  ;;  %v1314_v35 = vsel %vm1250_vm3, %v1282_v29, %v1154_v32  ;;  %vm1251_vm4 = vcmp.ne.s32.totalorder %v1219_v40, 0 }
 0x1ac   :  { %v1284_v50 = vsub.f32 0.0, %v1156_v39  ;;  %v1570_v43 = vmul.f32 %v1314_v35, %v11961_v21  ;;  %v1315_v33 = vsel %vm1251_vm4, %v1283_v46, %v1155_v60  ;;  %vm1252_vm7 = vcmp.ne.s32.totalorder %v1220_v38, 0  ;;  %v6308_v38 = vld [vmem:[#allocation5 + $0x18] sm:$0xff] }
 0x1ad   :  { %vm11962_vm6 = vnez %v11815_v15  ;;  %1601 = vst [vmem:[#allocation9 + $0xc8] sm:$0xff] %v1569_v53  ;;  %v1571_v8 = vmul.f32 %v1315_v33, %v7392_v30  ;;  %v1221_v56 = vand.u32 2, %v7414_v13  ;;  %v1158_v1 = vsel %vm7504_vm1, %v7539_v7, %v7534_v24  ;;  %v6305_v7 = vld [vmem:[#allocation5] sm:$0xff] }
 0x1ae   :  { %v1157_v20 = vsel %vm11962_vm6, %v7495_v5, %v7490_v14  ;;  %v1316_v22 = vsel %vm1252_vm7, %v1284_v50, %v1156_v39  ;;  %1602 = vst [vmem:[#allocation9 + $0xd0] sm:$0xff] %v1570_v43  ;;  %v1222_v32 = vand.u32 2, %v11963_v37  ;;  %v1159_v15 = vsel %vm7526_vm0, %v7571_v59, %v7565_v3  ;;  %v6306_v59 = vld [vmem:[#allocation5 + $0x8] sm:$0xff]  ;;  %v6309_v33 = vld [vmem:[#allocation5 + $0x20] sm:$0xff] }
 0x1af   :  { %v1285_v9 = vsub.f32 0.0, %v1157_v20  ;;  %v1572_v19 = vmul.f32 %v1316_v22, %v7401_v55  ;;  %1603 = vst [vmem:[#allocation9 + $0xd8] sm:$0xff] %v1571_v8  ;;  %vm1253_vm8 = vcmp.ne.s32.totalorder %v1221_v56, 0  ;;  %v1286_v14 = vsub.f32 0.0, %v1158_v1  ;;  %v6310_v56 = vld [vmem:[#allocation5 + $0x28] sm:$0xff] }
 0x1b0   :  { %v1223_v13 = vand.u32 2, %v7492_v2  ;;  %v1287_v5 = vsub.f32 0.0, %v1159_v15  ;;  %vm1254_vm10 = vcmp.ne.s32.totalorder %v1222_v32, 0  ;;  %v7739_v28 = vstv %s7711_s1  ;;  %v6307_v2 = vld [vmem:[#allocation5 + $0x10] sm:$0xff] }
 0x1b1   :  { %1604 = vst [vmem:[#allocation9 + $0xe0] sm:$0xff] %v1572_v19  ;;  %v1317_v42 = vsel %vm1253_vm8, %v1285_v9, %v1157_v20  ;;  %v1318_v24 = vsel %vm1254_vm10, %v1286_v14, %v1158_v1  ;;  %v1611_v60 = vmul.f32 %v6305_v7, %v7739_v28  ;;  %v1612_v29 = vmul.f32 %v6306_v59, %v7739_v28  ;;  %v6311_v19 = vld [vmem:[#allocation5 + $0x30] sm:$0xff] }
 0x1b2   :  { %v1573_v23 = vmul.f32 %v1317_v42, %v7453_v49  ;;  %vm1255_vm1 = vcmp.ne.s32.totalorder %v1223_v13, 0  ;;  %v1574_v62 = vmul.f32 %v1318_v24, %v7477_v18  ;;  %v1613_v0 = vmul.f32 %v6307_v2, %v7739_v28 }
 0x1b3   :  { %v1319_v3 = vsel %vm1255_vm1, %v1287_v5, %v1159_v15  ;;  %v1643_v46 = vmul.f32 0.63661975, %v1611_v60  ;;  %v1644_v12 = vmul.f32 0.63661975, %v1612_v29  ;;  %v7748_v53 = vmul.f32 %v6308_v38, %v7739_v28 }
 0x1b4   :  { %1605 = vst [vmem:[#allocation9 + $0xe8] sm:$0xff] %v1573_v23  ;;  %v1575_v40 = vmul.f32 %v1319_v3, %v7498_v34  ;;  %1606 = vst [vmem:[#allocation9 + $0xf0] sm:$0xff] %v1574_v62  ;;  %v1645_v39 = vmul.f32 0.63661975, %v1613_v0  ;;  %v7751_v20 = vmul.f32 %v6309_v33, %v7739_v28  ;;  %v7754_v9 = vmul.f32 %v6310_v56, %v7739_v28 }
 0x1b5   :  { %v1675_v27 = vadd.f32 0.5, %v1643_v46  ;;  %v1676_v35 = vadd.f32 0.5, %v1644_v12  ;;  %v7757_v1 = vmul.f32 %v6311_v19, %v7739_v28  ;;  %v1646_v14 = vmul.f32 0.63661975, %v7748_v53 }
 0x1b6   :  { %1607 = vst [vmem:[#allocation9 + $0xf8] sm:$0xff] %v1575_v40  ;;  %v1677_v50 = vadd.f32 0.5, %v1645_v39  ;;  %v1647_v39 = vmul.f32 0.63661975, %v7751_v20 }
 0x1b7   :  { %v1707_v43 = vfloor.f32 %v1675_v27  ;;  %v1708_v8 = vfloor.f32 %v1676_v35  ;;  %v6312_v27 = vld [vmem:[#allocation5 + $0x38] sm:$0xff] }
 0x1b8   :  { %v1709_v22 = vfloor.f32 %v1677_v50  ;;  %v7766_v38 = vmul.f32 %v6312_v27, %v7739_v28 }
 0x1b9   :  { %v6043_v37 = vtrunc.f32 %v1707_v43  ;;  %v1771_v32 = vmul.f32 1.5703125, %v1707_v43  ;;  %v1835_v15 = vmul.f32 0.0004837513, %v1707_v43  ;;  %v1899_v13 = vmul.f32 7.54979e-08, %v1707_v43 }
 0x1ba   :  { %v6045_v5 = vtrunc.f32 %v1708_v8  ;;  %v1772_v42 = vmul.f32 1.5703125, %v1708_v8  ;;  %v1836_v23 = vmul.f32 0.0004837513, %v1708_v8  ;;  %v6047_v62 = vtrunc.f32 %v1709_v22 }
 0x1bb   :  { %v7760_v24 = vcvt.f32.s32 %v6043_v37  ;;  %v1803_v7 = vsub.f32 %v1611_v60, %v1771_v32  ;;  %v1773_v3 = vmul.f32 1.5703125, %v1709_v22  ;;  %v1900_v40 = vmul.f32 7.54979e-08, %v1708_v8 }
 0x1bc   :  { %v7762_v59 = vcvt.f32.s32 %v6045_v5  ;;  %v1804_v2 = vsub.f32 %v1612_v29, %v1772_v42  ;;  %v1837_v46 = vmul.f32 0.0004837513, %v1709_v22  ;;  %v1901_v33 = vmul.f32 7.54979e-08, %v1709_v22 }
 0x1bd   :  { %11964 = vst [vmem:[#allocation17_spill] sm:$0xff] %v7760_v24  ;;  %v1867_v12 = vsub.f32 %v1803_v7, %v1835_v15  ;;  %v2763_v35 = vadd.s32 1, %v7760_v24  ;;  %v1805_v43 = vsub.f32 %v1613_v0, %v1773_v3  ;;  %v7770_v19 = vcvt.f32.s32 %v6047_v62 }
 0x1be   :  { %11965 = vst [vmem:[#allocation22_spill] sm:$0xff] %v7762_v59  ;;  %v1868_v50 = vsub.f32 %v1804_v2, %v1836_v23  ;;  %v2764_v56 = vadd.s32 1, %v7762_v59  ;;  %v7773_v29 = vmul.f32 0.63661975, %v7754_v9  ;;  %v1678_v32 = vadd.f32 0.5, %v1646_v14 }
 0x1bf   :  { %v1931_v60 = vsub.f32 %v1867_v12, %v1899_v13  ;;  %v1869_v37 = vsub.f32 %v1805_v43, %v1837_v46  ;;  %v7776_v15 = vmul.f32 0.63661975, %v7757_v1  ;;  %v2507_v42 = vand.u32 1, %v7760_v24 }
 0x1c0   :  { %v1932_v8 = vsub.f32 %v1868_v50, %v1900_v40  ;;  %v7779_v23 = vadd.f32 0.5, %v1647_v39  ;;  %v7782_v0 = vmul.f32 0.63661975, %v7766_v38  ;;  %v2795_v22 = vand.u32 2, %v2763_v35 }
 0x1c1   :  { %v1963_v5 = vmul.f32 %v1931_v60, %v1931_v60  ;;  %v2508_v7 = vand.u32 1, %v7762_v59  ;;  %v7785_v62 = vsub.f32 %v1869_v37, %v1901_v33  ;;  %v2796_v14 = vand.u32 2, %v2764_v56 }
 0x1c2   :  { %v1964_v13 = vmul.f32 %v1932_v8, %v1932_v8  ;;  %v7789_v27 = vadd.s32 1, %v7770_v19  ;;  %v1710_v39 = vfloor.f32 %v1678_v32  ;;  %vm7791_vm0 = vcmp.ne.s32.totalorder %v2507_v42, 0 }
 0x1c3   :  { %v2027_v3 = vmul.f32 -0.00019515296, %v1963_v5  ;;  %v2219_v2 = vmul.f32 0.5, %v1963_v5  ;;  %v2315_v46 = vmul.f32 2.4433157e-05, %v1963_v5  ;;  %v1995_v50 = vmul.f32 %v1963_v5, %v1931_v60 }
 0x1c4   :  { %v2028_v12 = vmul.f32 -0.00019515296, %v1964_v13  ;;  %v2220_v34 = vmul.f32 0.5, %v1964_v13  ;;  %v2316_v33 = vmul.f32 2.4433157e-05, %v1964_v13  ;;  %v2283_v37 = vmul.f32 %v1963_v5, %v1963_v5 }
 0x1c5   :  { %v2059_v43 = vadd.f32 0.008332161, %v2027_v3  ;;  %v2347_v18 = vadd.f32 -0.0013887316, %v2315_v46  ;;  %vm7795_vm12 = vcmp.ne.s32.totalorder %v2508_v7, 0  ;;  %v1965_v40 = vmul.f32 %v7785_v62, %v7785_v62 }
 0x1c6   :  { %v2060_v49 = vadd.f32 0.008332161, %v2028_v12  ;;  %v2251_v32 = vsub.f32 1.0, %v2219_v2  ;;  %v1996_v24 = vmul.f32 %v1964_v13, %v1932_v8  ;;  %v2348_v3 = vadd.f32 -0.0013887316, %v2316_v33 }
 0x1c7   :  { %v2091_v59 = vmul.f32 %v2059_v43, %v1963_v5  ;;  %v2379_v42 = vmul.f32 %v2347_v18, %v1963_v5  ;;  %vm7801_vm14 = vcmp.ne.s32.totalorder %v2795_v22, 0  ;;  %v2284_v21 = vmul.f32 %v1964_v13, %v1964_v13 }
 0x1c8   :  { %v2092_v30 = vmul.f32 %v2060_v49, %v1964_v13  ;;  %v2029_v46 = vmul.f32 -0.00019515296, %v1965_v40  ;;  %v2252_v7 = vsub.f32 1.0, %v2220_v34  ;;  %v2380_v16 = vmul.f32 %v2348_v3, %v1964_v13 }
 0x1c9   :  { %v2123_v12 = vadd.f32 -0.16666655, %v2091_v59  ;;  %vm7805_vm2 = vcmp.ne.s32.totalorder %v2796_v14, 0  ;;  %v6049_v51 = vtrunc.f32 %v1710_v39  ;;  %v2411_v43 = vadd.f32 0.041666646, %v2379_v42 }
 0x1ca   :  { %v2124_v2 = vadd.f32 -0.16666655, %v2092_v30  ;;  %v1997_v33 = vmul.f32 %v1965_v40, %v7785_v62  ;;  %v2061_v18 = vadd.f32 0.008332161, %v2029_v46  ;;  %v2412_v22 = vadd.f32 0.041666646, %v2380_v16 }
 0x1cb   :  { %v2155_v5 = vmul.f32 %v2123_v12, %v1995_v50  ;;  %v2221_v48 = vmul.f32 0.5, %v1965_v40  ;;  %v2317_v44 = vmul.f32 2.4433157e-05, %v1965_v40  ;;  %v2443_v49 = vmul.f32 %v2411_v43, %v2283_v37 }
 0x1cc   :  { %v2156_v63 = vmul.f32 %v2124_v2, %v1996_v24  ;;  %v2093_v6 = vmul.f32 %v2061_v18, %v1965_v40  ;;  %v2285_v59 = vmul.f32 %v1965_v40, %v1965_v40  ;;  %v2444_v13 = vmul.f32 %v2412_v22, %v2284_v21 }
 0x1cd   :  { %v7810_v34 = vadd.f32 %v2155_v5, %v1931_v60  ;;  %v2349_v14 = vadd.f32 -0.0013887316, %v2317_v44  ;;  %v1774_v3 = vmul.f32 1.5703125, %v1710_v39  ;;  %v7812_v25 = vadd.f32 %v2443_v49, %v2251_v32 }
 0x1ce   :  { %v7814_v42 = vadd.f32 %v2156_v63, %v1932_v8  ;;  %v2125_v30 = vadd.f32 -0.16666655, %v2093_v6  ;;  %v1838_v58 = vmul.f32 0.0004837513, %v1710_v39  ;;  %v7816_v46 = vadd.f32 %v2444_v13, %v2252_v7 }
 0x1cf   :  { %v2381_v16 = vmul.f32 %v2349_v14, %v1965_v40  ;;  %v1806_v50 = vsub.f32 %v7748_v53, %v1774_v3  ;;  %v1902_v37 = vmul.f32 7.54979e-08, %v1710_v39  ;;  %v2603_v24 = vsel %vm7791_vm0, %v7810_v34, %v7812_v25 }
 0x1d0   :  { %v2157_v21 = vmul.f32 %v2125_v30, %v1997_v33  ;;  %v2253_v44 = vsub.f32 1.0, %v2221_v48  ;;  %v7823_v60 = vcvt.f32.s32 %v6049_v51  ;;  %v2859_v32 = vsub.f32 0.0, %v2603_v24 }
 0x1d1   :  { %v2604_v6 = vsel %vm7795_vm12, %v7814_v42, %v7816_v46  ;;  %v2413_v63 = vadd.f32 0.041666646, %v2381_v16  ;;  %v1870_v8 = vsub.f32 %v1806_v50, %v1838_v58  ;;  %v2797_v39 = vand.u32 2, %v7789_v27 }
 0x1d2   :  { %11974 = vst [vmem:[#allocation24_spill] sm:$0xff] %v7823_v60  ;;  %v2860_v40 = vsub.f32 0.0, %v2604_v6  ;;  %v7830_v53 = vadd.f32 %v2157_v21, %v7785_v62  ;;  %v1680_v12 = vadd.f32 0.5, %v7773_v29  ;;  %v2891_v48 = vsel %vm7801_vm14, %v2859_v32, %v2603_v24 }
 0x1d3   :  { %v2445_v51 = vmul.f32 %v2413_v63, %v2285_v59  ;;  %v1934_v7 = vsub.f32 %v1870_v8, %v1902_v37  ;;  %v1711_v43 = vfloor.f32 %v7779_v23  ;;  %v2923_v2 = vmul.f32 %v2891_v48, %v6578_v61 }
 0x1d4   :  { %v2892_v58 = vsel %vm7805_vm2, %v2860_v40, %v2604_v6  ;;  %v11975_v33 = vand.u32 1, %v7770_v19  ;;  %v2766_v29 = vadd.s32 1, %v7823_v60  ;;  %vm7850_vm5 = vcmp.ne.s32.totalorder %v2797_v39, 0 }
 0x1d5   :  { %v2924_v55 = vmul.f32 %v2892_v58, %v6583_v4  ;;  %v7848_v27 = vadd.f32 %v2445_v51, %v2253_v44  ;;  %v1966_v18 = vmul.f32 %v1934_v7, %v1934_v7  ;;  %v6051_v5 = vtrunc.f32 %v1711_v43  ;;  %2956 = vst [vmem:[#allocation8 + $0x100] sm:$0xff] %v2923_v2 }
 0x1d6   :  { %vm7842_vm11 = vcmp.ne.s32.totalorder %v11975_v33, 0  ;;  %v2510_v31 = vand.u32 1, %v7823_v60  ;;  %v1775_v22 = vmul.f32 1.5703125, %v1711_v43  ;;  %v1681_v49 = vadd.f32 0.5, %v7776_v15 }
 0x1d7   :  { %2957 = vst [vmem:[#allocation8 + $0x108] sm:$0xff] %v2924_v55  ;;  %v2605_v59 = vsel %vm7842_vm11, %v7830_v53, %v7848_v27  ;;  %v2030_v13 = vmul.f32 -0.00019515296, %v1966_v18  ;;  %v1839_v14 = vmul.f32 0.0004837513, %v1711_v43  ;;  %v1712_v3 = vfloor.f32 %v1680_v12 }
 0x1d8   :  { %v2861_v30 = vsub.f32 0.0, %v2605_v59  ;;  %v2318_v16 = vmul.f32 2.4433157e-05, %v1966_v18  ;;  %v2798_v50 = vand.u32 2, %v2766_v29  ;;  %v7860_v37 = vcvt.f32.s32 %v6051_v5 }
 0x1d9   :  { %v2062_v24 = vadd.f32 0.008332161, %v2030_v13  ;;  %v1807_v21 = vsub.f32 %v7751_v20, %v1775_v22  ;;  %v1903_v44 = vmul.f32 7.54979e-08, %v1711_v43  ;;  %v6053_v32 = vtrunc.f32 %v1712_v3  ;;  %v12187_v62 = vld [vmem:[#allocation24_spill] sm:$0xff] }
 0x1da   :  { %11980 = vst [vmem:[#allocation23_spill] sm:$0xff] %v7860_v37  ;;  %v2893_v15 = vsel %vm7850_vm5, %v2861_v30, %v2605_v59  ;;  %v1998_v6 = vmul.f32 %v1966_v18, %v1934_v7  ;;  %v2222_v63 = vmul.f32 0.5, %v1966_v18  ;;  %v2350_v8 = vadd.f32 -0.0013887316, %v2318_v16 }
 0x1db   :  { %v2925_v40 = vmul.f32 %v2893_v15, %v6634_v26  ;;  %v2094_v39 = vmul.f32 %v2062_v24, %v1966_v18  ;;  %v1871_v12 = vsub.f32 %v1807_v21, %v1839_v14  ;;  %v1776_v48 = vmul.f32 1.5703125, %v1712_v3 }
 0x1dc   :  { %v2286_v51 = vmul.f32 %v1966_v18, %v1966_v18  ;;  %v2382_v2 = vmul.f32 %v2350_v8, %v1966_v18  ;;  %v2767_v58 = vadd.s32 1, %v7860_v37  ;;  %v1840_v33 = vmul.f32 0.0004837513, %v1712_v3 }
 0x1dd   :  { %2958 = vst [vmem:[#allocation8 + $0x110] sm:$0xff] %v2925_v40  ;;  %v2126_v20 = vadd.f32 -0.16666655, %v2094_v39  ;;  %v1935_v43 = vsub.f32 %v1871_v12, %v1903_v44  ;;  %v7867_v29 = vcvt.f32.s32 %v6053_v32  ;;  %v1808_v55 = vsub.f32 %v7754_v9, %v1776_v48 }
 0x1de   :  { %v2254_v5 = vsub.f32 1.0, %v2222_v63  ;;  %v2414_v23 = vadd.f32 0.041666646, %v2382_v2  ;;  %v1904_v22 = vmul.f32 7.54979e-08, %v1712_v3  ;;  %v2511_v14 = vand.u32 1, %v7860_v37 }
 0x1df   :  { %11981 = vst [vmem:[#allocation19_spill] sm:$0xff] %v7867_v29  ;;  %v2158_v59 = vmul.f32 %v2126_v20, %v1998_v6  ;;  %v1967_v13 = vmul.f32 %v1935_v43, %v1935_v43  ;;  %v1872_v30 = vsub.f32 %v1808_v55, %v1840_v33  ;;  %vm7871_vm9 = vcmp.ne.s32.totalorder %v2510_v31, 0 }
 0x1e0   :  { %v2446_v16 = vmul.f32 %v2414_v23, %v2286_v51  ;;  %v11982_v18 = vmov 0  ;;  %vm7875_vm13 = vcmp.ne.s32.totalorder %v2798_v50, 0  ;;  %v2799_v21 = vand.u32 2, %v2767_v58 }
 0x1e1   :  { %v11983_v18 = vsel %vm7871_vm9, 4294967295, %v11982_v18  ;;  %v7879_v44 = vadd.f32 %v2158_v59, %v1934_v7  ;;  %v2031_v9 = vmul.f32 -0.00019515296, %v1967_v13  ;;  %v2512_v3 = vand.u32 1, %v7867_v29 }
 0x1e2   :  { %11984 = vst [vmem:[#allocation31_spill] sm:$0xff] %v11983_v18  ;;  %v1713_v32 = vfloor.f32 %v1681_v49  ;;  %v7882_v15 = vadd.f32 %v2446_v16, %v2254_v5  ;;  %v2223_v6 = vmul.f32 0.5, %v1967_v13  ;;  %v2319_v63 = vmul.f32 2.4433157e-05, %v1967_v13 }
 0x1e3   :  { %v1936_v8 = vsub.f32 %v1872_v30, %v1904_v22  ;;  %v2063_v31 = vadd.f32 0.008332161, %v2031_v9  ;;  %vm7884_vm3 = vcmp.ne.s32.totalorder %v2511_v14, 0  ;;  %v7889_v50 = vadd.s32 1, %v7867_v29 }
 0x1e4   :  { %v6055_v39 = vtrunc.f32 %v1713_v32  ;;  %v1682_v7 = vadd.f32 0.5, %v7782_v0  ;;  %v2606_v49 = vsel %vm7871_vm9, %v7879_v44, %v7882_v15  ;;  %v1999_v12 = vmul.f32 %v1967_v13, %v1935_v43 }
 0x1e5   :  { %v2351_v48 = vadd.f32 -0.0013887316, %v2319_v63  ;;  %v1968_v51 = vmul.f32 %v1936_v8, %v1936_v8  ;;  %v2862_v2 = vsub.f32 0.0, %v2606_v49  ;;  %v2095_v58 = vmul.f32 %v2063_v31, %v1967_v13 }
 0x1e6   :  { %v2287_v33 = vmul.f32 %v1967_v13, %v1967_v13  ;;  %v1777_v20 = vmul.f32 1.5703125, %v1713_v32  ;;  %v2255_v55 = vsub.f32 1.0, %v2223_v6  ;;  %vm7896_vm15 = vcmp.ne.s32.totalorder %v2799_v21, 0  ;;  %v12197_v40 = vld [vmem:[#allocation19_spill] sm:$0xff] }
 0x1e7   :  { %v2383_v5 = vmul.f32 %v2351_v48, %v1967_v13  ;;  %v2032_v22 = vmul.f32 -0.00019515296, %v1968_v51  ;;  %v7900_v0 = vcvt.f32.s32 %v6055_v39  ;;  %v2894_v59 = vsel %vm7875_vm13, %v2862_v2, %v2606_v49 }
 0x1e8   :  { %v2127_v14 = vadd.f32 -0.16666655, %v2095_v58  ;;  %v2320_v30 = vmul.f32 2.4433157e-05, %v1968_v51  ;;  %v1841_v16 = vmul.f32 0.0004837513, %v1713_v32  ;;  %v2926_v9 = vmul.f32 %v2894_v59, %v11834_v45 }
 0x1e9   :  { %11991 = vst [vmem:[#allocation32_spill] sm:$0xff] %v7900_v0  ;;  %v2415_v63 = vadd.f32 0.041666646, %v2383_v5  ;;  %v2064_v31 = vadd.f32 0.008332161, %v2032_v22  ;;  %v2224_v29 = vmul.f32 0.5, %v1968_v51  ;;  %v1809_v21 = vsub.f32 %v7757_v1, %v1777_v20 }
 0x1ea   :  { %v2159_v6 = vmul.f32 %v2127_v14, %v1999_v12  ;;  %v2352_v13 = vadd.f32 -0.0013887316, %v2320_v30  ;;  %v1905_v48 = vmul.f32 7.54979e-08, %v1713_v32  ;;  %2959 = vst [vmem:[#allocation8 + $0x118] sm:$0xff] %v2926_v9  ;;  %v2000_v39 = vmul.f32 %v1968_v51, %v1936_v8 }
 0x1eb   :  { %v2447_v37 = vmul.f32 %v2415_v63, %v2287_v33  ;;  %v2096_v26 = vmul.f32 %v2064_v31, %v1968_v51  ;;  %v2288_v60 = vmul.f32 %v1968_v51, %v1968_v51  ;;  %v1873_v2 = vsub.f32 %v1809_v21, %v1841_v16  ;;  %v6313_v31 = vld [vmem:[#allocation5 + $0x40] sm:$0xff] }
 0x1ec   :  { %v7906_v24 = vadd.f32 %v2159_v6, %v1935_v43  ;;  %v2384_v49 = vmul.f32 %v2352_v13, %v1968_v51  ;;  %v1714_v58 = vfloor.f32 %v1682_v7  ;;  %vm7910_vm4 = vcmp.ne.s32.totalorder %v2512_v3, 0 }
 0x1ed   :  { %v7908_v18 = vadd.f32 %v2447_v37, %v2255_v55  ;;  %v2128_v5 = vadd.f32 -0.16666655, %v2096_v26  ;;  %v2800_v1 = vand.u32 2, %v7889_v50  ;;  %v2256_v32 = vsub.f32 1.0, %v2224_v29 }
 0x1ee   :  { %v2416_v12 = vadd.f32 0.041666646, %v2384_v49  ;;  %v1937_v33 = vsub.f32 %v1873_v2, %v1905_v48  ;;  %v1778_v20 = vmul.f32 1.5703125, %v1714_v58  ;;  %v2513_v37 = vand.u32 1, %v7900_v0 }
 0x1ef   :  { %v2607_v43 = vsel %vm7884_vm3, %v7906_v24, %v7908_v18  ;;  %v2160_v51 = vmul.f32 %v2128_v5, %v2000_v39  ;;  %v2769_v26 = vadd.s32 1, %v7900_v0  ;;  %v1842_v59 = vmul.f32 0.0004837513, %v1714_v58 }
 0x1f0   :  { %v2863_v3 = vsub.f32 0.0, %v2607_v43  ;;  %v2448_v7 = vmul.f32 %v2416_v12, %v2288_v60  ;;  %v1969_v55 = vmul.f32 %v1937_v33, %v1937_v33  ;;  %v6057_v29 = vtrunc.f32 %v1714_v58 }
 0x1f1   :  { %v7921_v14 = vadd.f32 %v2160_v51, %v1936_v8  ;;  %v1810_v50 = vsub.f32 %v7766_v38, %v1778_v20  ;;  %v1906_v30 = vmul.f32 7.54979e-08, %v1714_v58  ;;  %v7929_v6 = vmul.f32 %v6313_v31, %v7739_v28 }
 0x1f2   :  { %v2895_v16 = vsel %vm7896_vm15, %v2863_v3, %v2607_v43  ;;  %v7926_v9 = vadd.f32 %v2448_v7, %v2256_v32  ;;  %v2033_v63 = vmul.f32 -0.00019515296, %v1969_v55  ;;  %vm7932_vm7 = vcmp.ne.s32.totalorder %v2800_v1, 0  ;;  %v6314_v3 = vld [vmem:[#allocation5 + $0x48] sm:$0xff] }
 0x1f3   :  { %v2927_v60 = vmul.f32 %v2895_v16, %v11839_v57  ;;  %v2321_v8 = vmul.f32 2.4433157e-05, %v1969_v55  ;;  %v2801_v21 = vand.u32 2, %v2769_v26  ;;  %vm7940_vm6 = vcmp.ne.s32.totalorder %v2513_v37, 0 }
 0x1f4   :  { %v2608_v38 = vsel %vm7910_vm4, %v7921_v14, %v7926_v9  ;;  %v2065_v23 = vadd.f32 0.008332161, %v2033_v63  ;;  %v11996_v48 = vmov 0  ;;  %v1874_v39 = vsub.f32 %v1810_v50, %v1842_v59 }
 0x1f5   :  { %v11997_v48 = vsel %vm7940_vm6, 4294967295, %v11996_v48  ;;  %2960 = vst [vmem:[#allocation8 + $0x120] sm:$0xff] %v2927_v60  ;;  %v2864_v49 = vsub.f32 0.0, %v2608_v38  ;;  %v2225_v2 = vmul.f32 0.5, %v1969_v55  ;;  %v2353_v58 = vadd.f32 -0.0013887316, %v2321_v8 }
 0x1f6   :  { %11998 = vst [vmem:[#allocation28_spill] sm:$0xff] %v11997_v48  ;;  %v7944_v5 = vcvt.f32.s32 %v6057_v29  ;;  %v2001_v1 = vmul.f32 %v1969_v55, %v1937_v33  ;;  %v2097_v32 = vmul.f32 %v2065_v23, %v1969_v55  ;;  %v1938_v12 = vsub.f32 %v1874_v39, %v1906_v30  ;;  %v6315_v48 = vld [vmem:[#allocation5 + $0x50] sm:$0xff] }
 0x1f7   :  { %v1651_v20 = vmul.f32 0.63661975, %v7929_v6  ;;  %v2896_v43 = vsel %vm7932_vm7, %v2864_v49, %v2608_v38  ;;  %v2289_v51 = vmul.f32 %v1969_v55, %v1969_v55  ;;  %v2385_v37 = vmul.f32 %v2353_v58, %v1969_v55 }
 0x1f8   :  { %11999 = vst [vmem:[#allocation21_spill] sm:$0xff] %v7944_v5  ;;  %vm7949_vm8 = vcmp.ne.s32.totalorder %v2801_v21, 0  ;;  %v1620_v7 = vmul.f32 %v6314_v3, %v7739_v28  ;;  %v2928_v59 = vmul.f32 %v2896_v43, %v11848_v17  ;;  %v2129_v29 = vadd.f32 -0.16666655, %v2097_v32 }
 0x1f9   :  { %v1970_v50 = vmul.f32 %v1938_v12, %v1938_v12  ;;  %v1683_v16 = vadd.f32 0.5, %v1651_v20  ;;  %v2257_v30 = vsub.f32 1.0, %v2225_v2  ;;  %v2417_v63 = vadd.f32 0.041666646, %v2385_v37 }
 0x1fa   :  { %v2514_v31 = vand.u32 1, %v7944_v5  ;;  %v1652_v60 = vmul.f32 0.63661975, %v1620_v7  ;;  %2961 = vst [vmem:[#allocation8 + $0x128] sm:$0xff] %v2928_v59  ;;  %v2161_v13 = vmul.f32 %v2129_v29, %v2001_v1  ;;  %v2770_v21 = vadd.s32 1, %v7944_v5 }
 0x1fb   :  { %v2002_v55 = vmul.f32 %v1970_v50, %v1938_v12  ;;  %v2034_v8 = vmul.f32 -0.00019515296, %v1970_v50  ;;  %v2449_v38 = vmul.f32 %v2417_v63, %v2289_v51  ;;  %v2226_v23 = vmul.f32 0.5, %v1970_v50 }
 0x1fc   :  { %v2322_v39 = vmul.f32 2.4433157e-05, %v1970_v50  ;;  %v1715_v49 = vfloor.f32 %v1683_v16  ;;  %v7957_v58 = vadd.f32 %v2161_v13, %v1937_v33  ;;  %v2290_v43 = vmul.f32 %v1970_v50, %v1970_v50 }
 0x1fd   :  { %v2066_v32 = vadd.f32 0.008332161, %v2034_v8  ;;  %v1684_v20 = vadd.f32 0.5, %v1652_v60  ;;  %v7959_v2 = vadd.f32 %v2449_v38, %v2257_v30  ;;  %v2802_v13 = vand.u32 2, %v2770_v21 }
 0x1fe   :  { %12002 = vst [vmem:[#allocation34_spill] sm:$0xff] %v7957_v58  ;;  %v2354_v37 = vadd.f32 -0.0013887316, %v2322_v39  ;;  %v6059_v3 = vtrunc.f32 %v1715_v49  ;;  %v1779_v17 = vmul.f32 1.5703125, %v1715_v49  ;;  %v1843_v1 = vmul.f32 0.0004837513, %v1715_v49 }
 0x1ff   :  { %12003 = vst [vmem:[#allocation35_spill] sm:$0xff] %v7959_v2  ;;  %v2098_v59 = vmul.f32 %v2066_v32, %v1970_v50  ;;  %v1907_v29 = vmul.f32 7.54979e-08, %v1715_v49  ;;  %v1716_v0 = vfloor.f32 %v1684_v20  ;;  %v2609_v51 = vsel %vm7940_vm6, %v7957_v58, %v7959_v2 }
 0x200   :  { %v2386_v16 = vmul.f32 %v2354_v37, %v1970_v50  ;;  %v7965_v33 = vcvt.f32.s32 %v6059_v3  ;;  %v1811_v63 = vsub.f32 %v7929_v6, %v1779_v17  ;;  %v2865_v60 = vsub.f32 0.0, %v2609_v51 }
 0x201   :  { %v2130_v30 = vadd.f32 -0.16666655, %v2098_v59  ;;  %v1780_v8 = vmul.f32 1.5703125, %v1716_v0  ;;  %v2258_v38 = vsub.f32 1.0, %v2226_v23  ;;  %v6061_v5 = vtrunc.f32 %v1716_v0 }
 0x202   :  { %12004 = vst [vmem:[#allocation33_spill] sm:$0xff] %v7965_v33  ;;  %v2418_v39 = vadd.f32 0.041666646, %v2386_v16  ;;  %v1875_v32 = vsub.f32 %v1811_v63, %v1843_v1  ;;  %v2897_v49 = vsel %vm7949_vm8, %v2865_v60, %v2609_v51  ;;  %v7971_v50 = vmul.f32 %v6315_v48, %v7739_v28  ;;  %v6316_v16 = vld [vmem:[#allocation5 + $0x58] sm:$0xff] }
 0x203   :  { %v2162_v20 = vmul.f32 %v2130_v30, %v2002_v55  ;;  %v1812_v57 = vsub.f32 %v1620_v7, %v1780_v8  ;;  %v2929_v37 = vmul.f32 %v2897_v49, %v11852_v47  ;;  %v2771_v21 = vadd.s32 1, %v7965_v33 }
 0x204   :  { %v2450_v17 = vmul.f32 %v2418_v39, %v2290_v43  ;;  %v1939_v6 = vsub.f32 %v1875_v32, %v1907_v29  ;;  %vm7977_vm10 = vcmp.ne.s32.totalorder %v2514_v31, 0  ;;  %v12006_v23 = vmov 0 }
 0x205   :  { %v7975_v3 = vadd.f32 %v2162_v20, %v1938_v12  ;;  %v12007_v23 = vsel %vm7977_vm10, 4294967295, %v12006_v23  ;;  %v1844_v26 = vmul.f32 0.0004837513, %v1716_v0  ;;  %v1908_v59 = vmul.f32 7.54979e-08, %v1716_v0  ;;  %2962 = vst [vmem:[#allocation8 + $0x130] sm:$0xff] %v2929_v37 }
 0x206   :  { %12008 = vst [vmem:[#allocation37_spill] sm:$0xff] %v12007_v23  ;;  %v7981_v7 = vadd.f32 %v2450_v17, %v2258_v38  ;;  %v1971_v55 = vmul.f32 %v1939_v6, %v1939_v6  ;;  %v2515_v48 = vand.u32 1, %v7965_v33  ;;  %v7984_v1 = vcvt.f32.s32 %v6061_v5 }
 0x207   :  { %12005 = vst [vmem:[#allocation27_spill] sm:$0xff] %v7975_v3  ;;  %vm7986_vm1 = vcmp.ne.s32.totalorder %v2802_v13, 0  ;;  %v1876_v12 = vsub.f32 %v1812_v57, %v1844_v26  ;;  %v1653_v31 = vmul.f32 0.63661975, %v7971_v50  ;;  %v2803_v51 = vand.u32 2, %v2771_v21 }
 0x208   :  { %12009 = vst [vmem:[#allocation40_spill] sm:$0xff] %v7981_v7  ;;  %12010 = vst [vmem:[#allocation38_spill] sm:$0xff] %v7984_v1  ;;  %v2610_v0 = vsel %vm7977_vm10, %v7975_v3, %v7981_v7  ;;  %v2035_v29 = vmul.f32 -0.00019515296, %v1971_v55  ;;  %v7996_v63 = vmul.f32 %v6316_v16, %v7739_v28  ;;  %v2227_v60 = vmul.f32 0.5, %v1971_v55 }
 0x209   :  { %v2866_v5 = vsub.f32 0.0, %v2610_v0  ;;  %v2323_v30 = vmul.f32 2.4433157e-05, %v1971_v55  ;;  %v1940_v13 = vsub.f32 %v1876_v12, %v1908_v59  ;;  %vm7998_vm14 = vcmp.ne.s32.totalorder %v2515_v48, 0 }
 0x20a   :  { %v2067_v8 = vadd.f32 0.008332161, %v2035_v29  ;;  %v2516_v38 = vand.u32 1, %v7984_v1  ;;  %v8004_v39 = vadd.s32 1, %v7984_v1  ;;  %v1685_v37 = vadd.f32 0.5, %v1653_v31 }
 0x20b   :  { %v2898_v32 = vsel %vm7986_vm1, %v2866_v5, %v2610_v0  ;;  %v2355_v49 = vadd.f32 -0.0013887316, %v2323_v30  ;;  %v1972_v20 = vmul.f32 %v1940_v13, %v1940_v13  ;;  %v2003_v21 = vmul.f32 %v1971_v55, %v1939_v6 }
 0x20c   :  { %v2930_v17 = vmul.f32 %v2898_v32, %v11854_v11  ;;  %v2099_v26 = vmul.f32 %v2067_v8, %v1971_v55  ;;  %v1654_v59 = vmul.f32 0.63661975, %v7996_v63  ;;  %v2259_v48 = vsub.f32 1.0, %v2227_v60 }
 0x20d   :  { %v2291_v12 = vmul.f32 %v1971_v55, %v1971_v55  ;;  %v2387_v29 = vmul.f32 %v2355_v49, %v1971_v55  ;;  %vm8010_vm2 = vcmp.ne.s32.totalorder %v2803_v51, 0  ;;  %v2036_v1 = vmul.f32 -0.00019515296, %v1972_v20 }
 0x20e   :  { %2963 = vst [vmem:[#allocation8 + $0x138] sm:$0xff] %v2930_v17  ;;  %v2131_v43 = vadd.f32 -0.16666655, %v2099_v26  ;;  %v2004_v0 = vmul.f32 %v1972_v20, %v1940_v13  ;;  %v2324_v5 = vmul.f32 2.4433157e-05, %v1972_v20  ;;  %v1717_v30 = vfloor.f32 %v1685_v37 }
 0x20f   :  { %v2419_v31 = vadd.f32 0.041666646, %v2387_v29  ;;  %v2068_v47 = vadd.f32 0.008332161, %v2036_v1  ;;  %v2228_v32 = vmul.f32 0.5, %v1972_v20  ;;  %v1686_v11 = vadd.f32 0.5, %v1654_v59 }
 0x210   :  { %v2163_v8 = vmul.f32 %v2131_v43, %v2003_v21  ;;  %v2356_v33 = vadd.f32 -0.0013887316, %v2324_v5  ;;  %v6063_v23 = vtrunc.f32 %v1717_v30  ;;  %v1781_v60 = vmul.f32 1.5703125, %v1717_v30  ;;  %v12212_v57 = vld [vmem:[#allocation38_spill] sm:$0xff] }
 0x211   :  { %v2451_v7 = vmul.f32 %v2419_v31, %v2291_v12  ;;  %v2100_v55 = vmul.f32 %v2068_v47, %v1972_v20  ;;  %v2292_v51 = vmul.f32 %v1972_v20, %v1972_v20  ;;  %v1845_v49 = vmul.f32 0.0004837513, %v1717_v30 }
 0x212   :  { %v8014_v3 = vadd.f32 %v2163_v8, %v1939_v6  ;;  %v2388_v2 = vmul.f32 %v2356_v33, %v1972_v20  ;;  %v1813_v17 = vsub.f32 %v7971_v50, %v1781_v60  ;;  %v1909_v26 = vmul.f32 7.54979e-08, %v1717_v30 }
 0x213   :  { %v8017_v58 = vadd.f32 %v2451_v7, %v2259_v48  ;;  %v2132_v37 = vadd.f32 -0.16666655, %v2100_v55  ;;  %v8019_v1 = vcvt.f32.s32 %v6063_v23  ;;  %v1718_v59 = vfloor.f32 %v1686_v11 }
 0x214   :  { %v2260_v21 = vsub.f32 1.0, %v2228_v32  ;;  %v2420_v29 = vadd.f32 0.041666646, %v2388_v2  ;;  %vm8021_vm5 = vcmp.ne.s32.totalorder %v2516_v38, 0  ;;  %v12018_v43 = vmov 0 }
 0x215   :  { %12017 = vst [vmem:[#allocation29_spill] sm:$0xff] %v8019_v1  ;;  %v12019_v43 = vsel %vm8021_vm5, 4294967295, %v12018_v43  ;;  %v1877_v47 = vsub.f32 %v1813_v17, %v1845_v49  ;;  %v2611_v33 = vsel %vm7998_vm14, %v8014_v3, %v8017_v58  ;;  %v2164_v50 = vmul.f32 %v2132_v37, %v2004_v0 }
 0x216   :  { %12020 = vst [vmem:[#allocation46_spill] sm:$0xff] %v12019_v43  ;;  %v6065_v6 = vtrunc.f32 %v1718_v59  ;;  %v1782_v7 = vmul.f32 1.5703125, %v1718_v59  ;;  %v2867_v20 = vsub.f32 0.0, %v2611_v33  ;;  %v2452_v48 = vmul.f32 %v2420_v29, %v2292_v51 }
 0x217   :  { %v2804_v23 = vand.u32 2, %v8004_v39  ;;  %v1941_v11 = vsub.f32 %v1877_v47, %v1909_v26  ;;  %v8030_v12 = vadd.f32 %v2164_v50, %v1940_v13  ;;  %v2773_v2 = vadd.s32 1, %v8019_v1  ;;  %v6317_v39 = vld [vmem:[#allocation5 + $0x60] sm:$0xff] }
 0x218   :  { %v8033_v38 = vcvt.f32.s32 %v6065_v6  ;;  %v1814_v5 = vsub.f32 %v7996_v63, %v1782_v7  ;;  %v2899_v30 = vsel %vm8010_vm2, %v2867_v20, %v2611_v33  ;;  %v8038_v31 = vadd.f32 %v2452_v48, %v2260_v21  ;;  %v6318_v48 = vld [vmem:[#allocation5 + $0x68] sm:$0xff] }
 0x219   :  { %v1973_v0 = vmul.f32 %v1941_v11, %v1941_v11  ;;  %v1846_v32 = vmul.f32 0.0004837513, %v1718_v59  ;;  %v2931_v8 = vmul.f32 %v2899_v30, %v11865_v36  ;;  %v1910_v60 = vmul.f32 7.54979e-08, %v1718_v59 }
 0x21a   :  { %12021 = vst [vmem:[#allocation43_spill] sm:$0xff] %v8033_v38  ;;  %12022 = vst [vmem:[#allocation36_spill] sm:$0xff] %v8038_v31  ;;  %v8042_v13 = vmul.f32 %v6317_v39, %v7739_v28  ;;  %v2612_v55 = vsel %vm8021_vm5, %v8030_v12, %v8038_v31  ;;  %vm2836_vm13 = vcmp.ne.s32.totalorder %v2804_v23, 0  ;;  %v2517_v49 = vand.u32 1, %v8019_v1 }
 0x21b   :  { %v2037_v63 = vmul.f32 -0.00019515296, %v1973_v0  ;;  %2964 = vst [vmem:[#allocation8 + $0x140] sm:$0xff] %v2931_v8  ;;  %v2868_v16 = vsub.f32 0.0, %v2612_v55  ;;  %v2325_v51 = vmul.f32 2.4433157e-05, %v1973_v0  ;;  %v1878_v17 = vsub.f32 %v1814_v5, %v1846_v32 }
 0x21c   :  { %v2229_v37 = vmul.f32 0.5, %v1973_v0  ;;  %v2805_v59 = vand.u32 2, %v2773_v2  ;;  %v2518_v21 = vand.u32 1, %v8033_v38  ;;  %v1655_v50 = vmul.f32 0.63661975, %v8042_v13 }
 0x21d   :  { %v2069_v26 = vadd.f32 0.008332161, %v2037_v63  ;;  %v2900_v29 = vsel %vm2836_vm13, %v2868_v16, %v2612_v55  ;;  %v2357_v47 = vadd.f32 -0.0013887316, %v2325_v51  ;;  %v1942_v33 = vsub.f32 %v1878_v17, %v1910_v60 }
 0x21e   :  { %v2932_v6 = vmul.f32 %v2900_v29, %v11872_v10  ;;  %v2005_v7 = vmul.f32 %v1973_v0, %v1941_v11  ;;  %v8053_v23 = vmul.f32 %v6318_v48, %v7739_v28  ;;  %v2293_v30 = vmul.f32 %v1973_v0, %v1973_v0 }
 0x21f   :  { %v2101_v20 = vmul.f32 %v2069_v26, %v1973_v0  ;;  %v2389_v5 = vmul.f32 %v2357_v47, %v1973_v0  ;;  %v1974_v32 = vmul.f32 %v1942_v33, %v1942_v33  ;;  %v1687_v8 = vadd.f32 0.5, %v1655_v50 }
 0x220   :  { %2965 = vst [vmem:[#allocation8 + $0x148] sm:$0xff] %v2932_v6  ;;  %vm8055_vm15 = vcmp.ne.s32.totalorder %v2517_v49, 0  ;;  %v12023_v39 = vmov 0  ;;  %vm8059_vm7 = vcmp.ne.s32.totalorder %v2805_v59, 0  ;;  %v1656_v55 = vmul.f32 0.63661975, %v8053_v23 }
 0x221   :  { %v2133_v2 = vadd.f32 -0.16666655, %v2101_v20  ;;  %v12024_v39 = vsel %vm8055_vm15, 4294967295, %v12023_v39  ;;  %v2261_v63 = vsub.f32 1.0, %v2229_v37  ;;  %v2421_v16 = vadd.f32 0.041666646, %v2389_v5 }
 0x222   :  { %12025 = vst [vmem:[#allocation49_spill] sm:$0xff] %v12024_v39  ;;  %v2038_v51 = vmul.f32 -0.00019515296, %v1974_v32  ;;  %v2774_v17 = vadd.s32 1, %v8033_v38  ;;  %v2006_v26 = vmul.f32 %v1974_v32, %v1942_v33  ;;  %v2326_v29 = vmul.f32 2.4433157e-05, %v1974_v32 }
 0x223   :  { %v2165_v0 = vmul.f32 %v2133_v2, %v2005_v7  ;;  %v1719_v47 = vfloor.f32 %v1687_v8  ;;  %v2453_v50 = vmul.f32 %v2421_v16, %v2293_v30  ;;  %v2230_v6 = vmul.f32 0.5, %v1974_v32 }
 0x224   :  { %v2070_v49 = vadd.f32 0.008332161, %v2038_v51  ;;  %vm8065_vm8 = vcmp.ne.s32.totalorder %v2518_v21, 0  ;;  %v12028_v20 = vmov 0  ;;  %v1688_v59 = vadd.f32 0.5, %v1656_v55 }
 0x225   :  { %v12029_v20 = vsel %vm8065_vm8, 4294967295, %v12028_v20  ;;  %v8069_v48 = vadd.f32 %v2165_v0, %v1941_v11  ;;  %v2358_v10 = vadd.f32 -0.0013887316, %v2326_v29  ;;  %v6067_v37 = vtrunc.f32 %v1719_v47 }
 0x226   :  { %12030 = vst [vmem:[#allocation50_spill] sm:$0xff] %v12029_v20  ;;  %v1783_v5 = vmul.f32 1.5703125, %v1719_v47  ;;  %v8071_v1 = vadd.f32 %v2453_v50, %v2261_v63  ;;  %v2102_v38 = vmul.f32 %v2070_v49, %v1974_v32  ;;  %v2294_v7 = vmul.f32 %v1974_v32, %v1974_v32 }
 0x227   :  { %12031 = vst [vmem:[#allocation48_spill] sm:$0xff] %v8069_v48  ;;  %v1847_v2 = vmul.f32 0.0004837513, %v1719_v47  ;;  %v2390_v36 = vmul.f32 %v2358_v10, %v1974_v32  ;;  %v1911_v8 = vmul.f32 7.54979e-08, %v1719_v47  ;;  %v1720_v16 = vfloor.f32 %v1688_v59  ;;  %v6319_v32 = vld [vmem:[#allocation5 + $0x70] sm:$0xff] }
 0x228   :  { %12032 = vst [vmem:[#allocation41_spill] sm:$0xff] %v8071_v1  ;;  %v1815_v30 = vsub.f32 %v8042_v13, %v1783_v5  ;;  %v2613_v21 = vsel %vm8055_vm15, %v8069_v48, %v8071_v1  ;;  %v2134_v11 = vadd.f32 -0.16666655, %v2102_v38  ;;  %v2806_v55 = vand.u32 2, %v2774_v17  ;;  %v6320_v38 = vld [vmem:[#allocation5 + $0x78] sm:$0xff] }
 0x229   :  { %v8078_v51 = vcvt.f32.s32 %v6067_v37  ;;  %v2869_v0 = vsub.f32 0.0, %v2613_v21  ;;  %v2262_v63 = vsub.f32 1.0, %v2230_v6  ;;  %v2422_v29 = vadd.f32 0.041666646, %v2390_v36 }
 0x22a   :  { %v1879_v50 = vsub.f32 %v1815_v30, %v1847_v2  ;;  %v2166_v49 = vmul.f32 %v2134_v11, %v2006_v26  ;;  %v6069_v43 = vtrunc.f32 %v1720_v16  ;;  %v1784_v10 = vmul.f32 1.5703125, %v1720_v16 }
 0x22b   :  { %12033 = vst [vmem:[#allocation54_spill] sm:$0xff] %v8078_v51  ;;  %v8081_v13 = vmul.f32 %v6319_v32, %v7739_v28  ;;  %v2901_v47 = vsel %vm8059_vm7, %v2869_v0, %v2613_v21  ;;  %v2454_v59 = vmul.f32 %v2422_v29, %v2294_v7  ;;  %v8086_v17 = vmul.f32 %v6320_v38, %v7739_v28 }
 0x22c   :  { %v1943_v5 = vsub.f32 %v1879_v50, %v1911_v8  ;;  %v2933_v6 = vmul.f32 %v2901_v47, %v11873_v41  ;;  %v8089_v36 = vadd.f32 %v2166_v49, %v1942_v33  ;;  %v2775_v26 = vadd.s32 1, %v8078_v51 }
 0x22d   :  { %v8092_v37 = vcvt.f32.s32 %v6069_v43  ;;  %v8094_v2 = vadd.f32 %v2454_v59, %v2262_v63  ;;  %v1816_v60 = vsub.f32 %v8053_v23, %v1784_v10  ;;  %v1848_v21 = vmul.f32 0.0004837513, %v1720_v16 }
 0x22e   :  { %12034 = vst [vmem:[#allocation55_spill] sm:$0xff] %v8089_v36  ;;  %v1975_v30 = vmul.f32 %v1943_v5, %v1943_v5  ;;  %2966 = vst [vmem:[#allocation8 + $0x150] sm:$0xff] %v2933_v6  ;;  %v1912_v7 = vmul.f32 7.54979e-08, %v1720_v16  ;;  %v1657_v8 = vmul.f32 0.63661975, %v8081_v13 }
 0x22f   :  { %12035 = vst [vmem:[#allocation52_spill] sm:$0xff] %v8092_v37  ;;  %12036 = vst [vmem:[#allocation47_spill] sm:$0xff] %v8094_v2  ;;  %v2614_v33 = vsel %vm8065_vm8, %v8089_v36, %v8094_v2  ;;  %vm2838_vm1 = vcmp.ne.s32.totalorder %v2806_v55, 0  ;;  %v1658_v43 = vmul.f32 0.63661975, %v8086_v17  ;;  %v2519_v29 = vand.u32 1, %v8078_v51 }
 0x230   :  { %v2039_v11 = vmul.f32 -0.00019515296, %v1975_v30  ;;  %v2870_v0 = vsub.f32 0.0, %v2614_v33  ;;  %v2327_v63 = vmul.f32 2.4433157e-05, %v1975_v30  ;;  %v1880_v50 = vsub.f32 %v1816_v60, %v1848_v21 }
 0x231   :  { %v2231_v49 = vmul.f32 0.5, %v1975_v30  ;;  %v2807_v10 = vand.u32 2, %v2775_v26  ;;  %v2520_v16 = vand.u32 1, %v8092_v37  ;;  %v1689_v38 = vadd.f32 0.5, %v1657_v8 }
 0x232   :  { %v2071_v23 = vadd.f32 0.008332161, %v2039_v11  ;;  %v2902_v32 = vsel %vm2838_vm1, %v2870_v0, %v2614_v33  ;;  %v2359_v47 = vadd.f32 -0.0013887316, %v2327_v63  ;;  %v1944_v59 = vsub.f32 %v1880_v50, %v1912_v7 }
 0x233   :  { %v2934_v6 = vmul.f32 %v2902_v32, %v11878_v54  ;;  %v2007_v55 = vmul.f32 %v1975_v30, %v1943_v5  ;;  %v1690_v20 = vadd.f32 0.5, %v1658_v43  ;;  %v2295_v2 = vmul.f32 %v1975_v30, %v1975_v30 }
 0x234   :  { %v2103_v41 = vmul.f32 %v2071_v23, %v1975_v30  ;;  %v2391_v36 = vmul.f32 %v2359_v47, %v1975_v30  ;;  %v1976_v39 = vmul.f32 %v1944_v59, %v1944_v59  ;;  %v1721_v1 = vfloor.f32 %v1689_v38 }
 0x235   :  { %2967 = vst [vmem:[#allocation8 + $0x158] sm:$0xff] %v2934_v6  ;;  %vm8106_vm2 = vcmp.ne.s32.totalorder %v2519_v29, 0  ;;  %v12037_v21 = vmov 0  ;;  %vm8110_vm13 = vcmp.ne.s32.totalorder %v2807_v10, 0  ;;  %v2776_v7 = vadd.s32 1, %v8092_v37 }
 0x236   :  { %v2135_v60 = vadd.f32 -0.16666655, %v2103_v41  ;;  %v12038_v21 = vsel %vm8106_vm2, 4294967295, %v12037_v21  ;;  %v2263_v8 = vsub.f32 1.0, %v2231_v49  ;;  %v2423_v33 = vadd.f32 0.041666646, %v2391_v36 }
 0x237   :  { %12039 = vst [vmem:[#allocation58_spill] sm:$0xff] %v12038_v21  ;;  %v2040_v11 = vmul.f32 -0.00019515296, %v1976_v39  ;;  %v1722_v43 = vfloor.f32 %v1690_v20  ;;  %v2008_v30 = vmul.f32 %v1976_v39, %v1944_v59  ;;  %v2328_v63 = vmul.f32 2.4433157e-05, %v1976_v39 }
 0x238   :  { %v2167_v0 = vmul.f32 %v2135_v60, %v2007_v55  ;;  %v6071_v50 = vtrunc.f32 %v1721_v1  ;;  %v2455_v23 = vmul.f32 %v2423_v33, %v2295_v2  ;;  %v2232_v29 = vmul.f32 0.5, %v1976_v39 }
 0x239   :  { %v2072_v41 = vadd.f32 0.008332161, %v2040_v11  ;;  %vm8115_vm7 = vcmp.ne.s32.totalorder %v2520_v16, 0  ;;  %v12042_v32 = vmov 0  ;;  %v1785_v10 = vmul.f32 1.5703125, %v1721_v1 }
 0x23a   :  { %v12043_v32 = vsel %vm8115_vm7, 4294967295, %v12042_v32  ;;  %v8119_v47 = vadd.f32 %v2167_v0, %v1943_v5  ;;  %v2360_v38 = vadd.f32 -0.0013887316, %v2328_v63  ;;  %v8121_v6 = vcvt.f32.s32 %v6071_v50 }
 0x23b   :  { %12044 = vst [vmem:[#allocation59_spill] sm:$0xff] %v12043_v32  ;;  %v1849_v36 = vmul.f32 0.0004837513, %v1721_v1  ;;  %v8123_v49 = vadd.f32 %v2455_v23, %v2263_v8  ;;  %v2104_v20 = vmul.f32 %v2072_v41, %v1976_v39  ;;  %v1817_v55 = vsub.f32 %v8081_v13, %v1785_v10 }
 0x23c   :  { %12045 = vst [vmem:[#allocation57_spill] sm:$0xff] %v8119_v47  ;;  %12046 = vst [vmem:[#allocation51_spill] sm:$0xff] %v8121_v6  ;;  %v1913_v60 = vmul.f32 7.54979e-08, %v1721_v1  ;;  %v2296_v2 = vmul.f32 %v1976_v39, %v1976_v39  ;;  %v2392_v33 = vmul.f32 %v2360_v38, %v1976_v39  ;;  %v2808_v11 = vand.u32 2, %v2776_v7 }
 0x23d   :  { %12047 = vst [vmem:[#allocation61_spill] sm:$0xff] %v8123_v49  ;;  %v6073_v16 = vtrunc.f32 %v1722_v43  ;;  %v2615_v5 = vsel %vm8106_vm2, %v8119_v47, %v8123_v49  ;;  %v2136_v0 = vadd.f32 -0.16666655, %v2104_v20  ;;  %v1881_v63 = vsub.f32 %v1817_v55, %v1849_v36 }
 0x23e   :  { %v1786_v50 = vmul.f32 1.5703125, %v1722_v43  ;;  %v2871_v54 = vsub.f32 0.0, %v2615_v5  ;;  %v2264_v37 = vsub.f32 1.0, %v2232_v29  ;;  %v2424_v8 = vadd.f32 0.041666646, %v2392_v33 }
 0x23f   :  { %v2521_v23 = vand.u32 1, %v8121_v6  ;;  %v2168_v41 = vmul.f32 %v2136_v0, %v2008_v30  ;;  %v1945_v13 = vsub.f32 %v1881_v63, %v1913_v60  ;;  %v2777_v1 = vadd.s32 1, %v8121_v6  ;;  %v6321_v60 = vld [vmem:[#allocation5 + $0x80] sm:$0xff] }
 0x240   :  { %v1818_v39 = vsub.f32 %v8086_v17, %v1786_v50  ;;  %v2903_v7 = vsel %vm8110_vm13, %v2871_v54, %v2615_v5  ;;  %v2456_v10 = vmul.f32 %v2424_v8, %v2296_v2  ;;  %v8135_v38 = vcvt.f32.s32 %v6073_v16  ;;  %v6322_v17 = vld [vmem:[#allocation5 + $0x88] sm:$0xff]  ;;  %v6323_v16 = vld [vmem:[#allocation5 + $0x90] sm:$0xff] }
 0x241   :  { %v1850_v20 = vmul.f32 0.0004837513, %v1722_v43  ;;  %v2935_v36 = vmul.f32 %v2903_v7, %v11880_v52  ;;  %v8138_v55 = vadd.f32 %v2168_v41, %v1944_v59  ;;  %v1977_v29 = vmul.f32 %v1945_v13, %v1945_v13 }
 0x242   :  { %12048 = vst [vmem:[#allocation64_spill] sm:$0xff] %v8135_v38  ;;  %v1914_v33 = vmul.f32 7.54979e-08, %v1722_v43  ;;  %v8140_v51 = vadd.f32 %v2456_v10, %v2264_v37  ;;  %v8143_v0 = vmul.f32 %v6321_v60, %v7739_v28  ;;  %v8146_v54 = vmul.f32 %v6322_v17, %v7739_v28 }
 0x243   :  { %12049 = vst [vmem:[#allocation62_spill] sm:$0xff] %v8138_v55  ;;  %v1882_v30 = vsub.f32 %v1818_v39, %v1850_v20  ;;  %2968 = vst [vmem:[#allocation8 + $0x160] sm:$0xff] %v2935_v36  ;;  %vm8148_vm1 = vcmp.ne.s32.totalorder %v2808_v11, 0  ;;  %v2041_v59 = vmul.f32 -0.00019515296, %v1977_v29  ;;  %v2809_v2 = vand.u32 2, %v2777_v1 }
 0x244   :  { %12050 = vst [vmem:[#allocation56_spill] sm:$0xff] %v8140_v51  ;;  %v8153_v37 = vmul.f32 %v6323_v16, %v7739_v28  ;;  %v2616_v43 = vsel %vm8115_vm7, %v8138_v55, %v8140_v51  ;;  %v2233_v5 = vmul.f32 0.5, %v1977_v29  ;;  %v2329_v63 = vmul.f32 2.4433157e-05, %v1977_v29 }
 0x245   :  { %v1946_v50 = vsub.f32 %v1882_v30, %v1914_v33  ;;  %v2872_v8 = vsub.f32 0.0, %v2616_v43  ;;  %v2073_v41 = vadd.f32 0.008332161, %v2041_v59  ;;  %vm8159_vm13 = vcmp.ne.s32.totalorder %v2521_v23, 0  ;;  %v12056_v23 = vld [vmem:[#allocation63_spill] sm:$0xff] }
 0x246   :  { %v12053_v11 = vmov 0  ;;  %v2522_v1 = vand.u32 1, %v8135_v38  ;;  %v2778_v39 = vadd.s32 1, %v8135_v38  ;;  %v2361_v7 = vadd.f32 -0.0013887316, %v2329_v63 }
 0x247   :  { %v12054_v11 = vsel %vm8159_vm13, 4294967295, %v12053_v11  ;;  %v1978_v10 = vmul.f32 %v1946_v50, %v1946_v50  ;;  %v1659_v20 = vmul.f32 0.63661975, %v8143_v0  ;;  %v1660_v36 = vmul.f32 0.63661975, %v8146_v54 }
 0x248   :  { %12055 = vst [vmem:[#allocation69_spill] sm:$0xff] %v12054_v11  ;;  %v2904_v60 = vsel %vm8148_vm1, %v2872_v8, %v2616_v43  ;;  %v2009_v33 = vmul.f32 %v1977_v29, %v1945_v13  ;;  %v2105_v30 = vmul.f32 %v2073_v41, %v1977_v29  ;;  %v2297_v17 = vmul.f32 %v1977_v29, %v1977_v29 }
 0x249   :  { %v2936_v59 = vmul.f32 %v2904_v60, %v12056_v23  ;;  %v2265_v16 = vsub.f32 1.0, %v2233_v5  ;;  %v2393_v52 = vmul.f32 %v2361_v7, %v1977_v29  ;;  %vm8170_vm7 = vcmp.ne.s32.totalorder %v2809_v2, 0 }
 0x24a   :  { %v2042_v63 = vmul.f32 -0.00019515296, %v1978_v10  ;;  %v2137_v38 = vadd.f32 -0.16666655, %v2105_v30  ;;  %v2234_v32 = vmul.f32 0.5, %v1978_v10  ;;  %v2810_v55 = vand.u32 2, %v2778_v39 }
 0x24b   :  { %v2330_v51 = vmul.f32 2.4433157e-05, %v1978_v10  ;;  %2969 = vst [vmem:[#allocation8 + $0x168] sm:$0xff] %v2936_v59  ;;  %v2425_v21 = vadd.f32 0.041666646, %v2393_v52  ;;  %v1691_v43 = vadd.f32 0.5, %v1659_v20  ;;  %v2010_v49 = vmul.f32 %v1978_v10, %v1946_v50 }
 0x24c   :  { %v2074_v26 = vadd.f32 0.008332161, %v2042_v63  ;;  %v1692_v8 = vadd.f32 0.5, %v1660_v36  ;;  %v2169_v41 = vmul.f32 %v2137_v38, %v2009_v33  ;;  %v1661_v5 = vmul.f32 0.63661975, %v8153_v37 }
 0x24d   :  { %v2362_v47 = vadd.f32 -0.0013887316, %v2330_v51  ;;  %v2457_v29 = vmul.f32 %v2425_v21, %v2297_v17  ;;  %v2298_v7 = vmul.f32 %v1978_v10, %v1978_v10  ;;  %v1723_v60 = vfloor.f32 %v1691_v43 }
 0x24e   :  { %v2106_v2 = vmul.f32 %v2074_v26, %v1978_v10  ;;  %v8175_v23 = vadd.f32 %v2169_v41, %v1945_v13  ;;  %v2266_v30 = vsub.f32 1.0, %v2234_v32  ;;  %v1724_v31 = vfloor.f32 %v1692_v8 }
 0x24f   :  { %v2394_v48 = vmul.f32 %v2362_v47, %v1978_v10  ;;  %v8177_v39 = vadd.f32 %v2457_v29, %v2265_v16  ;;  %v6075_v59 = vtrunc.f32 %v1723_v60  ;;  %v1787_v20 = vmul.f32 1.5703125, %v1723_v60 }
 0x250   :  { %12059 = vst [vmem:[#allocation70_spill] sm:$0xff] %v8175_v23  ;;  %v2138_v52 = vadd.f32 -0.16666655, %v2106_v2  ;;  %v1851_v38 = vmul.f32 0.0004837513, %v1723_v60  ;;  %v1915_v33 = vmul.f32 7.54979e-08, %v1723_v60  ;;  %v6077_v51 = vtrunc.f32 %v1724_v31 }
 0x251   :  { %12060 = vst [vmem:[#allocation67_spill] sm:$0xff] %v8177_v39  ;;  %v2426_v36 = vadd.f32 0.041666646, %v2394_v48  ;;  %v2617_v21 = vsel %vm8159_vm13, %v8175_v23, %v8177_v39  ;;  %v8183_v13 = vcvt.f32.s32 %v6075_v59  ;;  %v1819_v32 = vsub.f32 %v8143_v0, %v1787_v20  ;;  %v12067_v2 = vld [vmem:[#allocation66_spill] sm:$0xff] }
 0x252   :  { %v2170_v17 = vmul.f32 %v2138_v52, %v2010_v49  ;;  %v2873_v47 = vsub.f32 0.0, %v2617_v21  ;;  %v1788_v16 = vmul.f32 1.5703125, %v1724_v31  ;;  %v1693_v63 = vadd.f32 0.5, %v1661_v5 }
 0x253   :  { %12061 = vst [vmem:[#allocation60_spill] sm:$0xff] %v8183_v13  ;;  %v2458_v10 = vmul.f32 %v2426_v36, %v2298_v7  ;;  %vm8188_vm1 = vcmp.ne.s32.totalorder %v2522_v1, 0  ;;  %v12063_v48 = vmov 0  ;;  %v1883_v43 = vsub.f32 %v1819_v32, %v1851_v38  ;;  %v6324_v38 = vld [vmem:[#allocation5 + $0x98] sm:$0xff]  ;;  %v12069_v32 = vld [vmem:[#allocation68_spill] sm:$0xff] }
 0x254   :  { %v8186_v26 = vadd.f32 %v2170_v17, %v1946_v50  ;;  %v12064_v48 = vsel %vm8188_vm1, 4294967295, %v12063_v48  ;;  %v2779_v8 = vadd.s32 1, %v8183_v13  ;;  %v2905_v49 = vsel %vm8170_vm7, %v2873_v47, %v2617_v21 }
 0x255   :  { %12065 = vst [vmem:[#allocation74_spill] sm:$0xff] %v12064_v48  ;;  %v8195_v41 = vadd.f32 %v2458_v10, %v2266_v30  ;;  %v1820_v0 = vsub.f32 %v8146_v54, %v1788_v16  ;;  %v1852_v29 = vmul.f32 0.0004837513, %v1724_v31  ;;  %v2937_v7 = vmul.f32 %v2905_v49, %v12067_v2 }
 0x256   :  { %12062 = vst [vmem:[#allocation73_spill] sm:$0xff] %v8186_v26  ;;  %vm2842_vm13 = vcmp.ne.s32.totalorder %v2810_v55, 0  ;;  %v1947_v50 = vsub.f32 %v1883_v43, %v1915_v33  ;;  %v8199_v5 = vcvt.f32.s32 %v6077_v51  ;;  %v1916_v52 = vmul.f32 7.54979e-08, %v1724_v31 }
 0x257   :  { %12066 = vst [vmem:[#allocation72_spill] sm:$0xff] %v8195_v41  ;;  %v2618_v1 = vsel %vm8188_vm1, %v8186_v26, %v8195_v41  ;;  %v1884_v60 = vsub.f32 %v1820_v0, %v1852_v29  ;;  %v1725_v6 = vfloor.f32 %v1693_v63  ;;  %2970 = vst [vmem:[#allocation8 + $0x170] sm:$0xff] %v2937_v7  ;;  %v2523_v54 = vand.u32 1, %v8183_v13 }
 0x258   :  { %12068 = vst [vmem:[#allocation65_spill] sm:$0xff] %v8199_v5  ;;  %v2874_v30 = vsub.f32 0.0, %v2618_v1  ;;  %v1979_v59 = vmul.f32 %v1947_v50, %v1947_v50  ;;  %v2811_v20 = vand.u32 2, %v2779_v8  ;;  %v8207_v55 = vmul.f32 %v6324_v38, %v7739_v28 }
 0x259   :  { %v1948_v36 = vsub.f32 %v1884_v60, %v1916_v52  ;;  %v2780_v17 = vadd.s32 1, %v8199_v5  ;;  %v1789_v16 = vmul.f32 1.5703125, %v1725_v6  ;;  %vm8211_vm7 = vcmp.ne.s32.totalorder %v2523_v54, 0 }
 0x25a   :  { %v2906_v33 = vsel %vm2842_vm13, %v2874_v30, %v2618_v1  ;;  %v2043_v51 = vmul.f32 -0.00019515296, %v1979_v59  ;;  %v2235_v21 = vmul.f32 0.5, %v1979_v59  ;;  %v2331_v31 = vmul.f32 2.4433157e-05, %v1979_v59 }
 0x25b   :  { %v2938_v47 = vmul.f32 %v2906_v33, %v12069_v32  ;;  %v1980_v10 = vmul.f32 %v1948_v36, %v1948_v36  ;;  %v12070_v43 = vmov 0  ;;  %v2524_v8 = vand.u32 1, %v8199_v5 }
 0x25c   :  { %v2075_v63 = vadd.f32 0.008332161, %v2043_v51  ;;  %v12071_v43 = vsel %vm8211_vm7, 4294967295, %v12070_v43  ;;  %v6079_v49 = vtrunc.f32 %v1725_v6  ;;  %v2011_v0 = vmul.f32 %v1979_v59, %v1947_v50 }
 0x25d   :  { %12072 = vst [vmem:[#allocation79_spill] sm:$0xff] %v12071_v43  ;;  %2971 = vst [vmem:[#allocation8 + $0x178] sm:$0xff] %v2938_v47  ;;  %v2299_v29 = vmul.f32 %v1979_v59, %v1979_v59  ;;  %v2363_v7 = vadd.f32 -0.0013887316, %v2331_v31  ;;  %v2044_v1 = vmul.f32 -0.00019515296, %v1980_v10  ;;  %v1821_v2 = vsub.f32 %v8153_v37, %v1789_v16 }
 0x25e   :  { %v2107_v60 = vmul.f32 %v2075_v63, %v1979_v59  ;;  %v2267_v52 = vsub.f32 1.0, %v2235_v21  ;;  %v2332_v30 = vmul.f32 2.4433157e-05, %v1980_v10  ;;  %v2812_v38 = vand.u32 2, %v2780_v17 }
 0x25f   :  { %v2395_v33 = vmul.f32 %v2363_v7, %v1979_v59  ;;  %vm8216_vm13 = vcmp.ne.s32.totalorder %v2811_v20, 0  ;;  %v2076_v54 = vadd.f32 0.008332161, %v2044_v1  ;;  %v2236_v51 = vmul.f32 0.5, %v1980_v10 }
 0x260   :  { %v2139_v5 = vadd.f32 -0.16666655, %v2107_v60  ;;  %v2364_v13 = vadd.f32 -0.0013887316, %v2332_v30  ;;  %v8221_v47 = vcvt.f32.s32 %v6079_v49  ;;  %v1853_v48 = vmul.f32 0.0004837513, %v1725_v6  ;;  %v6325_v49 = vld [vmem:[#allocation5 + $0xa0] sm:$0xff] }
 0x261   :  { %v2427_v31 = vadd.f32 0.041666646, %v2395_v33  ;;  %v2012_v41 = vmul.f32 %v1980_v10, %v1948_v36  ;;  %v2108_v63 = vmul.f32 %v2076_v54, %v1980_v10  ;;  %v1917_v21 = vmul.f32 7.54979e-08, %v1725_v6 }
 0x262   :  { %12075 = vst [vmem:[#allocation80_spill] sm:$0xff] %v8221_v47  ;;  %v2171_v26 = vmul.f32 %v2139_v5, %v2011_v0  ;;  %v2300_v17 = vmul.f32 %v1980_v10, %v1980_v10  ;;  %v2396_v59 = vmul.f32 %v2364_v13, %v1980_v10  ;;  %v1885_v20 = vsub.f32 %v1821_v2, %v1853_v48 }
 0x263   :  { %v2459_v7 = vmul.f32 %v2427_v31, %v2299_v29  ;;  %v2140_v11 = vadd.f32 -0.16666655, %v2108_v63  ;;  %v2268_v39 = vsub.f32 1.0, %v2236_v51  ;;  %v1662_v1 = vmul.f32 0.63661975, %v8207_v55 }
 0x264   :  { %v8224_v23 = vadd.f32 %v2171_v26, %v1947_v50  ;;  %v2428_v37 = vadd.f32 0.041666646, %v2396_v59  ;;  %v1949_v16 = vsub.f32 %v1885_v20, %v1917_v21  ;;  %v8227_v60 = vmul.f32 %v6325_v49, %v7739_v28  ;;  %v12085_v59 = vld [vmem:[#allocation76_spill] sm:$0xff] }
 0x265   :  { %v8229_v30 = vadd.f32 %v2459_v7, %v2267_v52  ;;  %v2172_v6 = vmul.f32 %v2140_v11, %v2012_v41  ;;  %vm8231_vm1 = vcmp.ne.s32.totalorder %v2524_v8, 0  ;;  %v12078_v5 = vmov 0 }
 0x266   :  { %12076 = vst [vmem:[#allocation77_spill] sm:$0xff] %v8224_v23  ;;  %v12079_v5 = vsel %vm8231_vm1, 4294967295, %v12078_v5  ;;  %v1694_v13 = vadd.f32 0.5, %v1662_v1  ;;  %v2460_v48 = vmul.f32 %v2428_v37, %v2300_v17  ;;  %vm8235_vm2 = vcmp.ne.s32.totalorder %v2812_v38, 0 }
 0x267   :  { %12077 = vst [vmem:[#allocation71_spill] sm:$0xff] %v8229_v30  ;;  %12080 = vst [vmem:[#allocation84_spill] sm:$0xff] %v12079_v5  ;;  %v1981_v26 = vmul.f32 %v1949_v16, %v1949_v16  ;;  %v2525_v50 = vand.u32 1, %v8221_v47  ;;  %v2619_v10 = vsel %vm8211_vm7, %v8224_v23, %v8229_v30  ;;  %v8244_v0 = vadd.f32 %v2172_v6, %v1948_v36 }
 0x268   :  { %v2781_v11 = vadd.s32 1, %v8221_v47  ;;  %v1726_v41 = vfloor.f32 %v1694_v13  ;;  %v2875_v8 = vsub.f32 0.0, %v2619_v10  ;;  %v8247_v29 = vadd.f32 %v2460_v48, %v2268_v39 }
 0x269   :  { %12083 = vst [vmem:[#allocation85_spill] sm:$0xff] %v8244_v0  ;;  %v2045_v52 = vmul.f32 -0.00019515296, %v1981_v26  ;;  %v1663_v38 = vmul.f32 0.63661975, %v8227_v60  ;;  %v2013_v33 = vmul.f32 %v1981_v26, %v1949_v16  ;;  %v2237_v54 = vmul.f32 0.5, %v1981_v26 }
 0x26a   :  { %12084 = vst [vmem:[#allocation81_spill] sm:$0xff] %v8247_v29  ;;  %v2333_v51 = vmul.f32 2.4433157e-05, %v1981_v26  ;;  %v6081_v31 = vtrunc.f32 %v1726_v41  ;;  %v2907_v63 = vsel %vm8216_vm13, %v2875_v8, %v2619_v10  ;;  %v2620_v36 = vsel %vm8231_vm1, %v8244_v0, %v8247_v29 }
 0x26b   :  { %v2077_v21 = vadd.f32 0.008332161, %v2045_v52  ;;  %v1790_v17 = vmul.f32 1.5703125, %v1726_v41  ;;  %v2939_v39 = vmul.f32 %v2907_v63, %v12085_v59  ;;  %v2876_v20 = vsub.f32 0.0, %v2620_v36  ;;  %v12087_v52 = vld [vmem:[#allocation78_spill] sm:$0xff] }
 0x26c   :  { %v2301_v7 = vmul.f32 %v1981_v26, %v1981_v26  ;;  %v2365_v1 = vadd.f32 -0.0013887316, %v2333_v51  ;;  %v8257_v49 = vcvt.f32.s32 %v6081_v31  ;;  %v1854_v13 = vmul.f32 0.0004837513, %v1726_v41  ;;  %v6326_v31 = vld [vmem:[#allocation5 + $0xa8] sm:$0xff] }
 0x26d   :  { %v2109_v37 = vmul.f32 %v2077_v21, %v1981_v26  ;;  %v1822_v6 = vsub.f32 %v8207_v55, %v1790_v17  ;;  %2972 = vst [vmem:[#allocation8 + $0x180] sm:$0xff] %v2939_v39  ;;  %v2908_v32 = vsel %vm8235_vm2, %v2876_v20, %v2620_v36  ;;  %v1918_v10 = vmul.f32 7.54979e-08, %v1726_v41  ;;  %v6327_v41 = vld [vmem:[#allocation5 + $0xb0] sm:$0xff] }
 0x26e   :  { %12086 = vst [vmem:[#allocation75_spill] sm:$0xff] %v8257_v49  ;;  %v2397_v48 = vmul.f32 %v2365_v1, %v1981_v26  ;;  %v1695_v8 = vadd.f32 0.5, %v1663_v38  ;;  %v2940_v47 = vmul.f32 %v2908_v32, %v12087_v52  ;;  %v2813_v63 = vand.u32 2, %v2781_v11  ;;  %v12096_v52 = vld [vmem:[#allocation83_spill] sm:$0xff] }
 0x26f   :  { %v2141_v5 = vadd.f32 -0.16666655, %v2109_v37  ;;  %v1886_v59 = vsub.f32 %v1822_v6, %v1854_v13  ;;  %v2269_v29 = vsub.f32 1.0, %v2237_v54  ;;  %v8264_v0 = vmul.f32 %v6326_v31, %v7739_v28 }
 0x270   :  { %v2429_v51 = vadd.f32 0.041666646, %v2397_v48  ;;  %v1727_v21 = vfloor.f32 %v1695_v8  ;;  %2973 = vst [vmem:[#allocation8 + $0x188] sm:$0xff] %v2940_v47  ;;  %vm8266_vm13 = vcmp.ne.s32.totalorder %v2525_v50, 0  ;;  %v12088_v2 = vmov 0 }
 0x271   :  { %v2173_v55 = vmul.f32 %v2141_v5, %v2013_v33  ;;  %v12089_v2 = vsel %vm8266_vm13, 4294967295, %v12088_v2  ;;  %v1950_v26 = vsub.f32 %v1886_v59, %v1918_v10  ;;  %v8271_v38 = vmul.f32 %v6327_v41, %v7739_v28 }
 0x272   :  { %12090 = vst [vmem:[#allocation88_spill] sm:$0xff] %v12089_v2  ;;  %v2461_v11 = vmul.f32 %v2429_v51, %v2301_v7  ;;  %v2782_v54 = vadd.s32 1, %v8257_v49  ;;  %v6083_v36 = vtrunc.f32 %v1727_v21  ;;  %v1791_v17 = vmul.f32 1.5703125, %v1727_v21 }
 0x273   :  { %v8274_v39 = vadd.f32 %v2173_v55, %v1949_v16  ;;  %vm8276_vm2 = vcmp.ne.s32.totalorder %v2813_v63, 0  ;;  %v1982_v47 = vmul.f32 %v1950_v26, %v1950_v26  ;;  %v1855_v5 = vmul.f32 0.0004837513, %v1727_v21 }
 0x274   :  { %v8280_v50 = vadd.f32 %v2461_v11, %v2269_v29  ;;  %v1823_v33 = vsub.f32 %v8227_v60, %v1791_v17  ;;  %v1919_v59 = vmul.f32 7.54979e-08, %v1727_v21  ;;  %v1664_v1 = vmul.f32 0.63661975, %v8264_v0 }
 0x275   :  { %12091 = vst [vmem:[#allocation89_spill] sm:$0xff] %v8274_v39  ;;  %v2046_v7 = vmul.f32 -0.00019515296, %v1982_v47  ;;  %v2526_v37 = vand.u32 1, %v8257_v49  ;;  %v8285_v6 = vcvt.f32.s32 %v6083_v36  ;;  %v1665_v16 = vmul.f32 0.63661975, %v8271_v38 }
 0x276   :  { %12094 = vst [vmem:[#allocation86_spill] sm:$0xff] %v8280_v50  ;;  %v2621_v13 = vsel %vm8266_vm13, %v8274_v39, %v8280_v50  ;;  %v2334_v32 = vmul.f32 2.4433157e-05, %v1982_v47  ;;  %v2814_v29 = vand.u32 2, %v2782_v54  ;;  %v1887_v48 = vsub.f32 %v1823_v33, %v1855_v5 }
 0x277   :  { %12095 = vst [vmem:[#allocation82_spill] sm:$0xff] %v8285_v6  ;;  %v2877_v10 = vsub.f32 0.0, %v2621_v13  ;;  %v2014_v60 = vmul.f32 %v1982_v47, %v1950_v26  ;;  %v2078_v8 = vadd.f32 0.008332161, %v2046_v7  ;;  %v2238_v63 = vmul.f32 0.5, %v1982_v47 }
 0x278   :  { %v2302_v51 = vmul.f32 %v1982_v47, %v1982_v47  ;;  %v2366_v21 = vadd.f32 -0.0013887316, %v2334_v32  ;;  %v1951_v31 = vsub.f32 %v1887_v48, %v1919_v59  ;;  %v1696_v55 = vadd.f32 0.5, %v1664_v1 }
 0x279   :  { %v2909_v41 = vsel %vm8276_vm2, %v2877_v10, %v2621_v13  ;;  %v2110_v11 = vmul.f32 %v2078_v8, %v1982_v47  ;;  %v2527_v36 = vand.u32 1, %v8285_v6  ;;  %v1697_v17 = vadd.f32 0.5, %v1665_v16 }
 0x27a   :  { %v2941_v49 = vmul.f32 %v2909_v41, %v12096_v52  ;;  %v2398_v2 = vmul.f32 %v2366_v21, %v1982_v47  ;;  %v1983_v54 = vmul.f32 %v1951_v31, %v1951_v31  ;;  %v1728_v5 = vfloor.f32 %v1696_v55 }
 0x27b   :  { %v2142_v33 = vadd.f32 -0.16666655, %v2110_v11  ;;  %v2270_v50 = vsub.f32 1.0, %v2238_v63  ;;  %vm8296_vm13 = vcmp.ne.s32.totalorder %v2526_v37, 0  ;;  %v12097_v7 = vmov 0 }
 0x27c   :  { %v12098_v7 = vsel %vm8296_vm13, 4294967295, %v12097_v7  ;;  %vm8300_vm1 = vcmp.ne.s32.totalorder %v2814_v29, 0  ;;  %2974 = vst [vmem:[#allocation8 + $0x190] sm:$0xff] %v2941_v49  ;;  %v2430_v20 = vadd.f32 0.041666646, %v2398_v2  ;;  %v2783_v16 = vadd.s32 1, %v8285_v6 }
 0x27d   :  { %12099 = vst [vmem:[#allocation91_spill] sm:$0xff] %v12098_v7  ;;  %v2047_v1 = vmul.f32 -0.00019515296, %v1983_v54  ;;  %v1729_v13 = vfloor.f32 %v1697_v17  ;;  %v2174_v32 = vmul.f32 %v2142_v33, %v2014_v60  ;;  %v2015_v47 = vmul.f32 %v1983_v54, %v1951_v31 }
 0x27e   :  { %v2335_v48 = vmul.f32 2.4433157e-05, %v1983_v54  ;;  %v6085_v10 = vtrunc.f32 %v1728_v5  ;;  %v2462_v8 = vmul.f32 %v2430_v20, %v2302_v51  ;;  %v2239_v37 = vmul.f32 0.5, %v1983_v54 }
 0x27f   :  { %v2079_v63 = vadd.f32 0.008332161, %v2047_v1  ;;  %vm8305_vm2 = vcmp.ne.s32.totalorder %v2527_v36, 0  ;;  %v12102_v21 = vmov 0  ;;  %v1792_v29 = vmul.f32 1.5703125, %v1728_v5 }
 0x280   :  { %v12103_v21 = vsel %vm8305_vm2, 4294967295, %v12102_v21  ;;  %v8309_v55 = vadd.f32 %v2174_v32, %v1950_v26  ;;  %v2367_v49 = vadd.f32 -0.0013887316, %v2335_v48  ;;  %v8311_v2 = vcvt.f32.s32 %v6085_v10 }
 0x281   :  { %12104 = vst [vmem:[#allocation94_spill] sm:$0xff] %v12103_v21  ;;  %v1856_v41 = vmul.f32 0.0004837513, %v1728_v5  ;;  %v8313_v11 = vadd.f32 %v2462_v8, %v2270_v50  ;;  %v2111_v60 = vmul.f32 %v2079_v63, %v1983_v54  ;;  %v1824_v17 = vsub.f32 %v8264_v0, %v1792_v29 }
 0x282   :  { %12105 = vst [vmem:[#allocation93_spill] sm:$0xff] %v8309_v55  ;;  %12106 = vst [vmem:[#allocation87_spill] sm:$0xff] %v8311_v2  ;;  %v1920_v33 = vmul.f32 7.54979e-08, %v1728_v5  ;;  %v2303_v51 = vmul.f32 %v1983_v54, %v1983_v54  ;;  %v2399_v20 = vmul.f32 %v2367_v49, %v1983_v54  ;;  %v2815_v1 = vand.u32 2, %v2783_v16 }
 0x283   :  { %12107 = vst [vmem:[#allocation99_spill] sm:$0xff] %v8313_v11  ;;  %v6087_v36 = vtrunc.f32 %v1729_v13  ;;  %v2622_v26 = vsel %vm8296_vm13, %v8309_v55, %v8313_v11  ;;  %v2143_v32 = vadd.f32 -0.16666655, %v2111_v60  ;;  %v1888_v48 = vsub.f32 %v1824_v17, %v1856_v41  ;;  %v12109_v41 = vld [vmem:[#allocation92_spill] sm:$0xff] }
 0x284   :  { %v1793_v10 = vmul.f32 1.5703125, %v1729_v13  ;;  %v2878_v52 = vsub.f32 0.0, %v2622_v26  ;;  %v2271_v6 = vsub.f32 1.0, %v2239_v37  ;;  %v2431_v50 = vadd.f32 0.041666646, %v2399_v20 }
 0x285   :  { %v2528_v8 = vand.u32 1, %v8311_v2  ;;  %v2175_v63 = vmul.f32 %v2143_v32, %v2015_v47  ;;  %v1952_v0 = vsub.f32 %v1888_v48, %v1920_v33  ;;  %v2784_v5 = vadd.s32 1, %v8311_v2  ;;  %v6328_v33 = vld [vmem:[#allocation5 + $0xb8] sm:$0xff] }
 0x286   :  { %v1825_v54 = vsub.f32 %v8271_v38, %v1793_v10  ;;  %v2910_v16 = vsel %vm8300_vm1, %v2878_v52, %v2622_v26  ;;  %v2463_v29 = vmul.f32 %v2431_v50, %v2303_v51  ;;  %v8325_v49 = vcvt.f32.s32 %v6087_v36 }
 0x287   :  { %v1857_v60 = vmul.f32 0.0004837513, %v1729_v13  ;;  %v2942_v17 = vmul.f32 %v2910_v16, %v12109_v41  ;;  %v8328_v7 = vadd.f32 %v2175_v63, %v1951_v31  ;;  %v1984_v37 = vmul.f32 %v1952_v0, %v1952_v0 }
 0x288   :  { %12108 = vst [vmem:[#allocation98_spill] sm:$0xff] %v8325_v49  ;;  %v1921_v20 = vmul.f32 7.54979e-08, %v1729_v13  ;;  %v8330_v11 = vadd.f32 %v2463_v29, %v2271_v6  ;;  %v8333_v32 = vmul.f32 %v6328_v33, %v7739_v28  ;;  %vm8335_vm13 = vcmp.ne.s32.totalorder %v2815_v1, 0 }
 0x289   :  { %12110 = vst [vmem:[#allocation90_spill] sm:$0xff] %v8328_v7  ;;  %v1889_v47 = vsub.f32 %v1825_v54, %v1857_v60  ;;  %2975 = vst [vmem:[#allocation8 + $0x198] sm:$0xff] %v2942_v17  ;;  %v2048_v38 = vmul.f32 -0.00019515296, %v1984_v37  ;;  %v2816_v59 = vand.u32 2, %v2784_v5  ;;  %v2240_v13 = vmul.f32 0.5, %v1984_v37 }
 0x28a   :  { %12111 = vst [vmem:[#allocation102_spill] sm:$0xff] %v8330_v11  ;;  %v2623_v31 = vsel %vm8305_vm2, %v8328_v7, %v8330_v11  ;;  %v2336_v6 = vmul.f32 2.4433157e-05, %v1984_v37  ;;  %vm8343_vm1 = vcmp.ne.s32.totalorder %v2528_v8, 0  ;;  %v12114_v48 = vmov 0  ;;  %v6329_v17 = vld [vmem:[#allocation5 + $0xc0] sm:$0xff] }
 0x28b   :  { %v1953_v51 = vsub.f32 %v1889_v47, %v1921_v20  ;;  %v2879_v36 = vsub.f32 0.0, %v2623_v31  ;;  %v2080_v26 = vadd.f32 0.008332161, %v2048_v38  ;;  %v12115_v48 = vsel %vm8343_vm1, 4294967295, %v12114_v48  ;;  %v12117_v20 = vld [vmem:[#allocation95_spill] sm:$0xff] }
 0x28c   :  { %12116 = vst [vmem:[#allocation104_spill] sm:$0xff] %v12115_v48  ;;  %v2529_v1 = vand.u32 1, %v8325_v49  ;;  %v8349_v10 = vadd.s32 1, %v8325_v49  ;;  %v2016_v50 = vmul.f32 %v1984_v37, %v1952_v0  ;;  %v2368_v63 = vadd.f32 -0.0013887316, %v2336_v6 }
 0x28d   :  { %v1985_v5 = vmul.f32 %v1953_v51, %v1953_v51  ;;  %v1666_v54 = vmul.f32 0.63661975, %v8333_v32  ;;  %v2911_v16 = vsel %vm8335_vm13, %v2879_v36, %v2623_v31  ;;  %v2112_v29 = vmul.f32 %v2080_v26, %v1984_v37 }
 0x28e   :  { %v2304_v60 = vmul.f32 %v1984_v37, %v1984_v37  ;;  %v8355_v8 = vmul.f32 %v6329_v17, %v7739_v28  ;;  %v2943_v47 = vmul.f32 %v2911_v16, %v12117_v20  ;;  %v2272_v33 = vsub.f32 1.0, %v2240_v13  ;;  %v6330_v17 = vld [vmem:[#allocation5 + $0xc8] sm:$0xff] }
 0x28f   :  { %v2400_v38 = vmul.f32 %v2368_v63, %v1984_v37  ;;  %vm8358_vm2 = vcmp.ne.s32.totalorder %v2816_v59, 0  ;;  %v2049_v6 = vmul.f32 -0.00019515296, %v1985_v5  ;;  %v2144_v41 = vadd.f32 -0.16666655, %v2112_v29 }
 0x290   :  { %v2241_v2 = vmul.f32 0.5, %v1985_v5  ;;  %v2337_v21 = vmul.f32 2.4433157e-05, %v1985_v5  ;;  %v2817_v52 = vand.u32 2, %v8349_v10  ;;  %2976 = vst [vmem:[#allocation8 + $0x1a0] sm:$0xff] %v2943_v47  ;;  %v1698_v26 = vadd.f32 0.5, %v1666_v54 }
 0x291   :  { %v2432_v31 = vadd.f32 0.041666646, %v2400_v38  ;;  %v2081_v36 = vadd.f32 0.008332161, %v2049_v6  ;;  %v8364_v11 = vmul.f32 %v6330_v17, %v7739_v28  ;;  %v2176_v13 = vmul.f32 %v2144_v41, %v2016_v50 }
 0x292   :  { %v2017_v37 = vmul.f32 %v1985_v5, %v1953_v51  ;;  %v2369_v59 = vadd.f32 -0.0013887316, %v2337_v21  ;;  %v1667_v63 = vmul.f32 0.63661975, %v8355_v8  ;;  %v2305_v29 = vmul.f32 %v1985_v5, %v1985_v5 }
 0x293   :  { %v2464_v16 = vmul.f32 %v2432_v31, %v2304_v60  ;;  %v2113_v20 = vmul.f32 %v2081_v36, %v1985_v5  ;;  %v1730_v7 = vfloor.f32 %v1698_v26  ;;  %v8367_v55 = vadd.f32 %v2176_v13, %v1952_v0 }
 0x294   :  { %v2273_v10 = vsub.f32 1.0, %v2241_v2  ;;  %v2401_v47 = vmul.f32 %v2369_v59, %v1985_v5  ;;  %v1699_v38 = vadd.f32 0.5, %v1667_v63  ;;  %vm8380_vm13 = vcmp.ne.s32.totalorder %v2529_v1, 0  ;;  %v6331_v59 = vld [vmem:[#allocation5 + $0xd0] sm:$0xff] }
 0x295   :  { %12120 = vst [vmem:[#allocation101_spill] sm:$0xff] %v8367_v55  ;;  %v8369_v6 = vadd.f32 %v2464_v16, %v2272_v33  ;;  %v2145_v54 = vadd.f32 -0.16666655, %v2113_v20  ;;  %v6089_v39 = vtrunc.f32 %v1730_v7  ;;  %v1794_v17 = vmul.f32 1.5703125, %v1730_v7 }
 0x296   :  { %v2433_v43 = vadd.f32 0.041666646, %v2401_v47  ;;  %v1858_v41 = vmul.f32 0.0004837513, %v1730_v7  ;;  %v1922_v50 = vmul.f32 7.54979e-08, %v1730_v7  ;;  %v1731_v21 = vfloor.f32 %v1699_v38 }
 0x297   :  { %12121 = vst [vmem:[#allocation97_spill] sm:$0xff] %v8369_v6  ;;  %v2624_v60 = vsel %vm8343_vm1, %v8367_v55, %v8369_v6  ;;  %v2177_v31 = vmul.f32 %v2145_v54, %v2017_v37  ;;  %v8375_v0 = vcvt.f32.s32 %v6089_v39  ;;  %v1826_v2 = vsub.f32 %v8333_v32, %v1794_v17 }
 0x298   :  { %v2880_v5 = vsub.f32 0.0, %v2624_v60  ;;  %v2465_v33 = vmul.f32 %v2433_v43, %v2305_v29  ;;  %v6091_v36 = vtrunc.f32 %v1731_v21  ;;  %v1795_v20 = vmul.f32 1.5703125, %v1731_v21 }
 0x299   :  { %12122 = vst [vmem:[#allocation108_spill] sm:$0xff] %v8375_v0  ;;  %v8378_v26 = vadd.f32 %v2177_v31, %v1953_v51  ;;  %v12124_v13 = vmov 0  ;;  %v1890_v7 = vsub.f32 %v1826_v2, %v1858_v41  ;;  %v8385_v63 = vmul.f32 %v6331_v59, %v7739_v28  ;;  %v12128_v51 = vld [vmem:[#allocation96_spill] sm:$0xff] }
 0x29a   :  { %v12125_v13 = vsel %vm8380_vm13, 4294967295, %v12124_v13  ;;  %v2912_v39 = vsel %vm8358_vm2, %v2880_v5, %v2624_v60  ;;  %v8389_v37 = vadd.f32 %v2465_v33, %v2273_v10  ;;  %v1827_v43 = vsub.f32 %v8355_v8, %v1795_v20 }
 0x29b   :  { %12123 = vst [vmem:[#allocation109_spill] sm:$0xff] %v8378_v26  ;;  %12126 = vst [vmem:[#allocation106_spill] sm:$0xff] %v12125_v13  ;;  %v1668_v32 = vmul.f32 0.63661975, %v8364_v11  ;;  %v2944_v16 = vmul.f32 %v2912_v39, %v12128_v51  ;;  %v1954_v1 = vsub.f32 %v1890_v7, %v1922_v50  ;;  %v2786_v29 = vadd.s32 1, %v8375_v0 }
 0x29c   :  { %12127 = vst [vmem:[#allocation100_spill] sm:$0xff] %v8389_v37  ;;  %v8395_v47 = vcvt.f32.s32 %v6091_v36  ;;  %v2625_v38 = vsel %vm8380_vm13, %v8378_v26, %v8389_v37  ;;  %vm2849_vm1 = vcmp.ne.s32.totalorder %v2817_v52, 0  ;;  %v1859_v49 = vmul.f32 0.0004837513, %v1731_v21  ;;  %v12130_v36 = vld [vmem:[#allocation103_spill] sm:$0xff] }
 0x29d   :  { %v1923_v10 = vmul.f32 7.54979e-08, %v1731_v21  ;;  %2977 = vst [vmem:[#allocation8 + $0x1a8] sm:$0xff] %v2944_v16  ;;  %v2881_v54 = vsub.f32 0.0, %v2625_v38  ;;  %v1986_v8 = vmul.f32 %v1954_v1, %v1954_v1  ;;  %v2530_v17 = vand.u32 1, %v8375_v0 }
 0x29e   :  { %12129 = vst [vmem:[#allocation111_spill] sm:$0xff] %v8395_v47  ;;  %v1669_v41 = vmul.f32 0.63661975, %v8385_v63  ;;  %v1891_v50 = vsub.f32 %v1827_v43, %v1859_v49  ;;  %v1700_v60 = vadd.f32 0.5, %v1668_v32  ;;  %v2818_v5 = vand.u32 2, %v2786_v29 }
 0x29f   :  { %v2913_v31 = vsel %vm2849_vm1, %v2881_v54, %v2625_v38  ;;  %v2050_v2 = vmul.f32 -0.00019515296, %v1986_v8  ;;  %v8404_v33 = vadd.s32 1, %v8395_v47  ;;  %v2242_v52 = vmul.f32 0.5, %v1986_v8 }
 0x2a0   :  { %v2945_v20 = vmul.f32 %v2913_v31, %v12130_v36  ;;  %v2338_v7 = vmul.f32 2.4433157e-05, %v1986_v8  ;;  %v1955_v21 = vsub.f32 %v1891_v50, %v1923_v10  ;;  %vm8407_vm2 = vcmp.ne.s32.totalorder %v2530_v17, 0 }
 0x2a1   :  { %v2082_v59 = vadd.f32 0.008332161, %v2050_v2  ;;  %v12131_v39 = vmov 0  ;;  %v1732_v16 = vfloor.f32 %v1700_v60  ;;  %v1701_v51 = vadd.f32 0.5, %v1669_v41 }
 0x2a2   :  { %v12132_v39 = vsel %vm8407_vm2, 4294967295, %v12131_v39  ;;  %2978 = vst [vmem:[#allocation8 + $0x1b0] sm:$0xff] %v2945_v20  ;;  %v2018_v43 = vmul.f32 %v1986_v8, %v1954_v1  ;;  %v2370_v32 = vadd.f32 -0.0013887316, %v2338_v7  ;;  %v1987_v38 = vmul.f32 %v1955_v21, %v1955_v21 }
 0x2a3   :  { %12133 = vst [vmem:[#allocation113_spill] sm:$0xff] %v12132_v39  ;;  %v2531_v29 = vand.u32 1, %v8395_v47  ;;  %v2114_v49 = vmul.f32 %v2082_v59, %v1986_v8  ;;  %v2306_v54 = vmul.f32 %v1986_v8, %v1986_v8  ;;  %v6093_v0 = vtrunc.f32 %v1732_v16 }
 0x2a4   :  { %v1796_v31 = vmul.f32 1.5703125, %v1732_v16  ;;  %v2274_v36 = vsub.f32 1.0, %v2242_v52  ;;  %v2402_v13 = vmul.f32 %v2370_v32, %v1986_v8  ;;  %vm8412_vm1 = vcmp.ne.s32.totalorder %v2818_v5, 0 }
 0x2a5   :  { %v2051_v17 = vmul.f32 -0.00019515296, %v1987_v38  ;;  %v2819_v50 = vand.u32 2, %v8404_v33  ;;  %v2146_v41 = vadd.f32 -0.16666655, %v2114_v49  ;;  %v2243_v60 = vmul.f32 0.5, %v1987_v38 }
 0x2a6   :  { %v2339_v2 = vmul.f32 2.4433157e-05, %v1987_v38  ;;  %v1733_v20 = vfloor.f32 %v1701_v51  ;;  %v2434_v7 = vadd.f32 0.041666646, %v2402_v13  ;;  %v8417_v47 = vcvt.f32.s32 %v6093_v0 }
 0x2a7   :  { %v2083_v37 = vadd.f32 0.008332161, %v2051_v17  ;;  %v1828_v59 = vsub.f32 %v8364_v11, %v1796_v31  ;;  %v2178_v26 = vmul.f32 %v2146_v41, %v2018_v43  ;;  %v1860_v8 = vmul.f32 0.0004837513, %v1732_v16 }
 0x2a8   :  { %12136 = vst [vmem:[#allocation107_spill] sm:$0xff] %v8417_v47  ;;  %v2371_v52 = vadd.f32 -0.0013887316, %v2339_v2  ;;  %v1924_v5 = vmul.f32 7.54979e-08, %v1732_v16  ;;  %v2466_v32 = vmul.f32 %v2434_v7, %v2306_v54  ;;  %v2019_v48 = vmul.f32 %v1987_v38, %v1955_v21  ;;  %v6332_v7 = vld [vmem:[#allocation5 + $0xd8] sm:$0xff] }
 0x2a9   :  { %v2115_v6 = vmul.f32 %v2083_v37, %v1987_v38  ;;  %v2307_v55 = vmul.f32 %v1987_v38, %v1987_v38  ;;  %v8420_v30 = vadd.f32 %v2178_v26, %v1954_v1  ;;  %v1892_v49 = vsub.f32 %v1828_v59, %v1860_v8  ;;  %v12145_v8 = vld [vmem:[#allocation112_spill] sm:$0xff] }
 0x2aa   :  { %v2403_v33 = vmul.f32 %v2371_v52, %v1987_v38  ;;  %v6095_v23 = vtrunc.f32 %v1733_v20  ;;  %v8422_v51 = vadd.f32 %v2466_v32, %v2274_v36  ;;  %v2275_v0 = vsub.f32 1.0, %v2243_v60 }
 0x2ab   :  { %12137 = vst [vmem:[#allocation105_spill] sm:$0xff] %v8420_v30  ;;  %v2147_v13 = vadd.f32 -0.16666655, %v2115_v6  ;;  %v2532_v17 = vand.u32 1, %v8417_v47  ;;  %v1956_v43 = vsub.f32 %v1892_v49, %v1924_v5  ;;  %v2788_v31 = vadd.s32 1, %v8417_v47 }
 0x2ac   :  { %12138 = vst [vmem:[#allocation117_spill] sm:$0xff] %v8422_v51  ;;  %v2435_v11 = vadd.f32 0.041666646, %v2403_v33  ;;  %v1797_v16 = vmul.f32 1.5703125, %v1733_v20  ;;  %v2626_v26 = vsel %vm8407_vm2, %v8420_v30, %v8422_v51  ;;  %v8430_v1 = vcvt.f32.s32 %v6095_v23 }
 0x2ad   :  { %v2179_v37 = vmul.f32 %v2147_v13, %v2019_v48  ;;  %v1861_v38 = vmul.f32 0.0004837513, %v1733_v20  ;;  %v2882_v36 = vsub.f32 0.0, %v2626_v26  ;;  %v1988_v6 = vmul.f32 %v1956_v43, %v1956_v43 }
 0x2ae   :  { %12139 = vst [vmem:[#allocation119_spill] sm:$0xff] %v8430_v1  ;;  %v2467_v54 = vmul.f32 %v2435_v11, %v2307_v55  ;;  %v1829_v41 = vsub.f32 %v8385_v63, %v1797_v16  ;;  %vm8435_vm13 = vcmp.ne.s32.totalorder %v2531_v29, 0  ;;  %v12141_v2 = vmov 0 }
 0x2af   :  { %v8433_v60 = vadd.f32 %v2179_v37, %v1955_v21  ;;  %v12142_v2 = vsel %vm8435_vm13, 4294967295, %v12141_v2  ;;  %v8440_v59 = vmul.f32 %v6332_v7, %v7739_v28  ;;  %v2914_v23 = vsel %vm8412_vm1, %v2882_v36, %v2626_v26  ;;  %v6333_v37 = vld [vmem:[#allocation5 + $0xe0] sm:$0xff] }
 0x2b0   :  { %12143 = vst [vmem:[#allocation110_spill] sm:$0xff] %v12142_v2  ;;  %v8444_v48 = vadd.f32 %v2467_v54, %v2275_v0  ;;  %v2052_v52 = vmul.f32 -0.00019515296, %v1988_v6  ;;  %v1925_v55 = vmul.f32 7.54979e-08, %v1733_v20  ;;  %v2946_v5 = vmul.f32 %v2914_v23, %v12145_v8  ;;  %v12153_v23 = vld [vmem:[#allocation115_spill] sm:$0xff] }
 0x2b1   :  { %12140 = vst [vmem:[#allocation116_spill] sm:$0xff] %v8433_v60  ;;  %vm8447_vm2 = vcmp.ne.s32.totalorder %v2819_v50, 0  ;;  %v2340_v21 = vmul.f32 2.4433157e-05, %v1988_v6  ;;  %v2820_v29 = vand.u32 2, %v2788_v31  ;;  %vm8455_vm7 = vcmp.ne.s32.totalorder %v2532_v17, 0 }
 0x2b2   :  { %12144 = vst [vmem:[#allocation123_spill] sm:$0xff] %v8444_v48  ;;  %v2627_v32 = vsel %vm8435_vm13, %v8433_v60, %v8444_v48  ;;  %v2084_v33 = vadd.f32 0.008332161, %v2052_v52  ;;  %v12148_v10 = vmov 0  ;;  %v1893_v49 = vsub.f32 %v1829_v41, %v1861_v38  ;;  %2979 = vst [vmem:[#allocation8 + $0x1b8] sm:$0xff] %v2946_v5 }
 0x2b3   :  { %v12149_v10 = vsel %vm8455_vm7, 4294967295, %v12148_v10  ;;  %v8460_v20 = vadd.s32 1, %v8430_v1  ;;  %v2883_v50 = vsub.f32 0.0, %v2627_v32  ;;  %v2020_v13 = vmul.f32 %v1988_v6, %v1956_v43 }
 0x2b4   :  { %12150 = vst [vmem:[#allocation124_spill] sm:$0xff] %v12149_v10  ;;  %v2244_v0 = vmul.f32 0.5, %v1988_v6  ;;  %v2372_v11 = vadd.f32 -0.0013887316, %v2340_v21  ;;  %v2116_v31 = vmul.f32 %v2084_v33, %v1988_v6  ;;  %v1957_v16 = vsub.f32 %v1893_v49, %v1925_v55 }
 0x2b5   :  { %v1670_v26 = vmul.f32 0.63661975, %v8440_v59  ;;  %v8464_v36 = vmul.f32 %v6333_v37, %v7739_v28  ;;  %v2915_v17 = vsel %vm8447_vm2, %v2883_v50, %v2627_v32  ;;  %v2308_v38 = vmul.f32 %v1988_v6, %v1988_v6  ;;  %v6334_v50 = vld [vmem:[#allocation5 + $0xe8] sm:$0xff] }
 0x2b6   :  { %v2404_v54 = vmul.f32 %v2372_v11, %v1988_v6  ;;  %vm8468_vm1 = vcmp.ne.s32.totalorder %v2820_v29, 0  ;;  %v2533_v7 = vand.u32 1, %v8430_v1  ;;  %v2947_v52 = vmul.f32 %v2915_v17, %v12153_v23 }
 0x2b7   :  { %v2148_v55 = vadd.f32 -0.16666655, %v2116_v31  ;;  %v1989_v5 = vmul.f32 %v1957_v16, %v1957_v16  ;;  %v1702_v21 = vadd.f32 0.5, %v1670_v26  ;;  %v2276_v33 = vsub.f32 1.0, %v2244_v0 }
 0x2b8   :  { %v2436_v49 = vadd.f32 0.041666646, %v2404_v54  ;;  %v2821_v37 = vand.u32 2, %v8460_v20  ;;  %v1671_v63 = vmul.f32 0.63661975, %v8464_v36  ;;  %2980 = vst [vmem:[#allocation8 + $0x1c0] sm:$0xff] %v2947_v52  ;;  %v8477_v11 = vmul.f32 %v6334_v50, %v7739_v28 }
 0x2b9   :  { %v2180_v32 = vmul.f32 %v2148_v55, %v2020_v13  ;;  %v2021_v6 = vmul.f32 %v1989_v5, %v1957_v16  ;;  %v2053_v29 = vmul.f32 -0.00019515296, %v1989_v5  ;;  %v2245_v8 = vmul.f32 0.5, %v1989_v5 }
 0x2ba   :  { %v2468_v1 = vmul.f32 %v2436_v49, %v2308_v38  ;;  %v2341_v17 = vmul.f32 2.4433157e-05, %v1989_v5  ;;  %v1734_v31 = vfloor.f32 %v1702_v21  ;;  %v2309_v26 = vmul.f32 %v1989_v5, %v1989_v5 }
 0x2bb   :  { %v8479_v23 = vadd.f32 %v2180_v32, %v1956_v43  ;;  %v2085_v0 = vadd.f32 0.008332161, %v2053_v29  ;;  %v1703_v54 = vadd.f32 0.5, %v1671_v63  ;;  %v1672_v32 = vmul.f32 0.63661975, %v8477_v11 }
 0x2bc   :  { %v8481_v20 = vadd.f32 %v2468_v1, %v2276_v33  ;;  %v2373_v47 = vadd.f32 -0.0013887316, %v2341_v17  ;;  %v6097_v52 = vtrunc.f32 %v1734_v31  ;;  %v1798_v13 = vmul.f32 1.5703125, %v1734_v31 }
 0x2bd   :  { %12154 = vst [vmem:[#allocation120_spill] sm:$0xff] %v8479_v23  ;;  %v2117_v55 = vmul.f32 %v2085_v0, %v1989_v5  ;;  %v1862_v2 = vmul.f32 0.0004837513, %v1734_v31  ;;  %v1926_v48 = vmul.f32 7.54979e-08, %v1734_v31  ;;  %v1735_v60 = vfloor.f32 %v1703_v54 }
 0x2be   :  { %12155 = vst [vmem:[#allocation114_spill] sm:$0xff] %v8481_v20  ;;  %v2628_v38 = vsel %vm8455_vm7, %v8479_v23, %v8481_v20  ;;  %v2405_v21 = vmul.f32 %v2373_v47, %v1989_v5  ;;  %v8487_v43 = vcvt.f32.s32 %v6097_v52  ;;  %v1830_v49 = vsub.f32 %v8440_v59, %v1798_v13  ;;  %v6335_v47 = vld [vmem:[#allocation5 + $0xf0] sm:$0xff]  ;;  %v12157_v59 = vld [vmem:[#allocation118_spill] sm:$0xff] }
 0x2bf   :  { %v2884_v63 = vsub.f32 0.0, %v2628_v38  ;;  %v2149_v1 = vadd.f32 -0.16666655, %v2117_v55  ;;  %v1799_v33 = vmul.f32 1.5703125, %v1735_v60  ;;  %v2277_v29 = vsub.f32 1.0, %v2245_v8 }
 0x2c0   :  { %12156 = vst [vmem:[#allocation127_spill] sm:$0xff] %v8487_v43  ;;  %v2437_v50 = vadd.f32 0.041666646, %v2405_v21  ;;  %v1894_v17 = vsub.f32 %v1830_v49, %v1862_v2  ;;  %v6099_v31 = vtrunc.f32 %v1735_v60  ;;  %v8495_v5 = vmul.f32 %v6335_v47, %v7739_v28 }
 0x2c1   :  { %v2916_v0 = vsel %vm8468_vm1, %v2884_v63, %v2628_v38  ;;  %v2181_v54 = vmul.f32 %v2149_v1, %v2021_v6  ;;  %v1831_v10 = vsub.f32 %v8464_v36, %v1799_v33  ;;  %v2790_v20 = vadd.s32 1, %v8487_v43 }
 0x2c2   :  { %v2948_v52 = vmul.f32 %v2916_v0, %v12157_v59  ;;  %v2469_v13 = vmul.f32 %v2437_v50, %v2309_v26  ;;  %v1958_v55 = vsub.f32 %v1894_v17, %v1926_v48  ;;  %vm8501_vm2 = vcmp.ne.s32.totalorder %v2533_v7, 0 }
 0x2c3   :  { %v8499_v8 = vadd.f32 %v2181_v54, %v1957_v16  ;;  %v12159_v2 = vmov 0  ;;  %v1863_v41 = vmul.f32 0.0004837513, %v1735_v60  ;;  %v1927_v6 = vmul.f32 7.54979e-08, %v1735_v60 }
 0x2c4   :  { %v12160_v2 = vsel %vm8501_vm2, 4294967295, %v12159_v2  ;;  %2981 = vst [vmem:[#allocation8 + $0x1c8] sm:$0xff] %v2948_v52  ;;  %v8505_v36 = vadd.f32 %v2469_v13, %v2277_v29  ;;  %v1990_v38 = vmul.f32 %v1958_v55, %v1958_v55  ;;  %v2534_v21 = vand.u32 1, %v8487_v43 }
 0x2c5   :  { %12158 = vst [vmem:[#allocation128_spill] sm:$0xff] %v8499_v8  ;;  %12161 = vst [vmem:[#allocation126_spill] sm:$0xff] %v12160_v2  ;;  %v8508_v49 = vcvt.f32.s32 %v6099_v31  ;;  %vm2853_vm1 = vcmp.ne.s32.totalorder %v2821_v37, 0  ;;  %v1895_v48 = vsub.f32 %v1831_v10, %v1863_v41  ;;  %v1704_v26 = vadd.f32 0.5, %v1672_v32 }
 0x2c6   :  { %12162 = vst [vmem:[#allocation121_spill] sm:$0xff] %v8505_v36  ;;  %v2629_v16 = vsel %vm8501_vm2, %v8499_v8, %v8505_v36  ;;  %v2054_v7 = vmul.f32 -0.00019515296, %v1990_v38  ;;  %v2822_v63 = vand.u32 2, %v2790_v20  ;;  %v1673_v60 = vmul.f32 0.63661975, %v8495_v5 }
 0x2c7   :  { %12163 = vst [vmem:[#allocation125_spill] sm:$0xff] %v8508_v49  ;;  %v2885_v1 = vsub.f32 0.0, %v2629_v16  ;;  %v2246_v33 = vmul.f32 0.5, %v1990_v38  ;;  %v2342_v29 = vmul.f32 2.4433157e-05, %v1990_v38  ;;  %v1959_v50 = vsub.f32 %v1895_v48, %v1927_v6  ;;  %v12166_v20 = vld [vmem:[#allocation122_spill] sm:$0xff] }
 0x2c8   :  { %v2086_v17 = vadd.f32 0.008332161, %v2054_v7  ;;  %vm8515_vm7 = vcmp.ne.s32.totalorder %v2534_v21, 0  ;;  %v12164_v31 = vmov 0  ;;  %v2535_v10 = vand.u32 1, %v8508_v49 }
 0x2c9   :  { %v12165_v31 = vsel %vm8515_vm7, 4294967295, %v12164_v31  ;;  %v2791_v37 = vadd.s32 1, %v8508_v49  ;;  %v2917_v32 = vsel %vm2853_vm1, %v2885_v1, %v2629_v16  ;;  %v2374_v0 = vadd.f32 -0.0013887316, %v2342_v29 }
 0x2ca   :  { %v1991_v54 = vmul.f32 %v1959_v50, %v1959_v50  ;;  %v1736_v47 = vfloor.f32 %v1704_v26  ;;  %v2949_v52 = vmul.f32 %v2917_v32, %v12166_v20  ;;  %v2022_v13 = vmul.f32 %v1990_v38, %v1958_v55 }
 0x2cb   :  { %v2118_v41 = vmul.f32 %v2086_v17, %v1990_v38  ;;  %v2310_v59 = vmul.f32 %v1990_v38, %v1990_v38  ;;  %v2278_v43 = vsub.f32 1.0, %v2246_v33  ;;  %v2406_v6 = vmul.f32 %v2374_v0, %v1990_v38 }
 0x2cc   :  { %vm8522_vm2 = vcmp.ne.s32.totalorder %v2822_v63, 0  ;;  %v2055_v48 = vmul.f32 -0.00019515296, %v1991_v54  ;;  %v1705_v7 = vadd.f32 0.5, %v1673_v60  ;;  %2982 = vst [vmem:[#allocation8 + $0x1d0] sm:$0xff] %v2949_v52  ;;  %v2023_v49 = vmul.f32 %v1991_v54, %v1959_v50 }
 0x2cd   :  { %v2150_v2 = vadd.f32 -0.16666655, %v2118_v41  ;;  %v2343_v16 = vmul.f32 2.4433157e-05, %v1991_v54  ;;  %v6101_v1 = vtrunc.f32 %v1736_v47  ;;  %v2438_v29 = vadd.f32 0.041666646, %v2406_v6 }
 0x2ce   :  { %v2087_v26 = vadd.f32 0.008332161, %v2055_v48  ;;  %v2247_v36 = vmul.f32 0.5, %v1991_v54  ;;  %vm8526_vm1 = vcmp.ne.s32.totalorder %v2535_v10, 0  ;;  %v12169_v32 = vmov 0 }
 0x2cf   :  { %v12170_v32 = vsel %vm8526_vm1, 4294967295, %v12169_v32  ;;  %v1800_v33 = vmul.f32 1.5703125, %v1736_v47  ;;  %v2182_v38 = vmul.f32 %v2150_v2, %v2022_v13  ;;  %v2375_v63 = vadd.f32 -0.0013887316, %v2343_v16 }
 0x2d0   :  { %v8530_v17 = vcvt.f32.s32 %v6101_v1  ;;  %v1864_v0 = vmul.f32 0.0004837513, %v1736_v47  ;;  %v2470_v20 = vmul.f32 %v2438_v29, %v2310_v59  ;;  %v2119_v60 = vmul.f32 %v2087_v26, %v1991_v54  ;;  %v6336_v1 = vld [vmem:[#allocation5 + $0xf8] sm:$0xff] }
 0x2d1   :  { %v1832_v52 = vsub.f32 %v8477_v11, %v1800_v33  ;;  %v1928_v41 = vmul.f32 7.54979e-08, %v1736_v47  ;;  %v8533_v8 = vadd.f32 %v2182_v38, %v1958_v55  ;;  %v2311_v6 = vmul.f32 %v1991_v54, %v1991_v54 }
 0x2d2   :  { %v2407_v48 = vmul.f32 %v2375_v63, %v1991_v54  ;;  %v2823_v23 = vand.u32 2, %v2791_v37  ;;  %v8535_v10 = vadd.f32 %v2470_v20, %v2278_v43  ;;  %v2151_v39 = vadd.f32 -0.16666655, %v2119_v60 }
 0x2d3   :  { %v1896_v51 = vsub.f32 %v1832_v52, %v1864_v0  ;;  %v1737_v30 = vfloor.f32 %v1705_v7  ;;  %v2279_v2 = vsub.f32 1.0, %v2247_v36  ;;  %v2536_v16 = vand.u32 1, %v8530_v17 }
 0x2d4   :  { %v2439_v13 = vadd.f32 0.041666646, %v2407_v48  ;;  %v2792_v59 = vadd.s32 1, %v8530_v17  ;;  %v2630_v11 = vsel %vm8515_vm7, %v8533_v8, %v8535_v10  ;;  %v2183_v55 = vmul.f32 %v2151_v39, %v2023_v49  ;;  %v12171_v49 = vld [vmem:[#allocation130_spill] sm:$0xff] }
 0x2d5   :  { %v1960_v47 = vsub.f32 %v1896_v51, %v1928_v41  ;;  %v6103_v54 = vtrunc.f32 %v1737_v30  ;;  %v2886_v37 = vsub.f32 0.0, %v2630_v11  ;;  %v1801_v20 = vmul.f32 1.5703125, %v1737_v30 }
 0x2d6   :  { %v2471_v43 = vmul.f32 %v2439_v13, %v2311_v6  ;;  %v8544_v7 = vmul.f32 %v6336_v1, %v7739_v28  ;;  %v8546_v36 = vadd.f32 %v2183_v55, %v1959_v50  ;;  %v1865_v33 = vmul.f32 0.0004837513, %v1737_v30 }
 0x2d7   :  { %v1992_v29 = vmul.f32 %v1960_v47, %v1960_v47  ;;  %v8548_v26 = vcvt.f32.s32 %v6103_v54  ;;  %v2918_v38 = vsel %vm8522_vm2, %v2886_v37, %v2630_v11  ;;  %v1833_v39 = vsub.f32 %v8495_v5, %v1801_v20 }
 0x2d8   :  { %v8552_v63 = vadd.f32 %v2471_v43, %v2279_v2  ;;  %v1929_v51 = vmul.f32 7.54979e-08, %v1737_v30  ;;  %v2950_v0 = vmul.f32 %v2918_v38, %v12171_v49  ;;  %vm8556_vm7 = vcmp.ne.s32.totalorder %v2823_v23, 0  ;;  %v12321_v23 = vld [vmem:[#allocation131_spill] sm:$0xff] }
 0x2d9   :  { %v2056_v28 = vmul.f32 -0.00019515296, %v1992_v29  ;;  %v2248_v50 = vmul.f32 0.5, %v1992_v29  ;;  %v2344_v21 = vmul.f32 2.4433157e-05, %v1992_v29  ;;  %v2824_v41 = vand.u32 2, %v2792_v59 }
 0x2da   :  { %v2631_v52 = vsel %vm8526_vm1, %v8546_v36, %v8552_v63  ;;  %v1897_v6 = vsub.f32 %v1833_v39, %v1865_v33  ;;  %2983 = vst [vmem:[#allocation8 + $0x1d8] sm:$0xff] %v2950_v0  ;;  %v2024_v5 = vmul.f32 %v1992_v29, %v1960_v47  ;;  %v2312_v2 = vmul.f32 %v1992_v29, %v1992_v29 }
 0x2db   :  { %v2887_v48 = vsub.f32 0.0, %v2631_v52  ;;  %v2088_v30 = vadd.f32 0.008332161, %v2056_v28  ;;  %vm8564_vm2 = vcmp.ne.s32.totalorder %v2536_v16, 0  ;;  %v2376_v13 = vadd.f32 -0.0013887316, %v2344_v21 }
 0x2dc   :  { %v1961_v11 = vsub.f32 %v1897_v6, %v1929_v51  ;;  %v2793_v55 = vadd.s32 1, %v8548_v26  ;;  %v1674_v54 = vmul.f32 0.63661975, %v8544_v7  ;;  %v2280_v43 = vsub.f32 1.0, %v2248_v50  ;;  %v12176_v16 = vld [vmem:[#allocation131_spill] sm:$0xff] }
 0x2dd   :  { %v2919_v37 = vsel %vm8556_vm7, %v2887_v48, %v2631_v52  ;;  %v2120_v59 = vmul.f32 %v2088_v30, %v1992_v29  ;;  %v2571_v20 = vsel %vm7791_vm0, %v7812_v25, %v7810_v34  ;;  %v2408_v33 = vmul.f32 %v2376_v13, %v1992_v29  ;;  %v12179_v52 = vld [vmem:[#allocation17_spill] sm:$0xff] }
 0x2de   :  { %v2951_v1 = vmul.f32 %v2919_v37, %v12176_v16  ;;  %vm8577_vm1 = vcmp.ne.s32.totalorder %v2824_v41, 0  ;;  %v1993_v39 = vmul.f32 %v1961_v11, %v1961_v11  ;;  %v2537_v51 = vand.u32 1, %v8548_v26 }
 0x2df   :  { %v2152_v0 = vadd.f32 -0.16666655, %v2120_v59  ;;  %v2825_v60 = vand.u32 2, %v2793_v55  ;;  %v1706_v28 = vadd.f32 0.5, %v1674_v54  ;;  %v2635_v50 = vand.u32 2, %v12179_v52 }
 0x2e0   :  { %2984 = vst [vmem:[#allocation8 + $0x1e0] sm:$0xff] %v2951_v1  ;;  %v2440_v21 = vadd.f32 0.041666646, %v2408_v33  ;;  %v2057_v6 = vmul.f32 -0.00019515296, %v1993_v39  ;;  %v2249_v35 = vmul.f32 0.5, %v1993_v39  ;;  %v2025_v48 = vmul.f32 %v1993_v39, %v1961_v11 }
 0x2e1   :  { %v2699_v25 = vsub.f32 0.0, %v2571_v20  ;;  %v2184_v34 = vmul.f32 %v2152_v0, %v2024_v5  ;;  %v2313_v29 = vmul.f32 %v1993_v39, %v1993_v39  ;;  %v2345_v41 = vmul.f32 2.4433157e-05, %v1993_v39 }
 0x2e2   :  { %v2472_v30 = vmul.f32 %v2440_v21, %v2312_v2  ;;  %v2089_v13 = vadd.f32 0.008332161, %v2057_v6  ;;  %v2281_v37 = vsub.f32 1.0, %v2249_v35  ;;  %v1738_v16 = vfloor.f32 %v1706_v28  ;;  %v12180_v6 = vld [vmem:[#allocation22_spill] sm:$0xff] }
 0x2e3   :  { %v8583_v49 = vadd.f32 %v2184_v34, %v1960_v47  ;;  %v2377_v59 = vadd.f32 -0.0013887316, %v2345_v41  ;;  %vm2667_vm0 = vcmp.ne.s32.totalorder %v2635_v50, 0  ;;  %v2572_v55 = vsel %vm7795_vm12, %v7816_v46, %v7814_v42 }
 0x2e4   :  { %v8589_v54 = vadd.f32 %v2472_v30, %v2280_v43  ;;  %v2121_v1 = vmul.f32 %v2089_v13, %v1993_v39  ;;  %v6105_v5 = vtrunc.f32 %v1738_v16  ;;  %v1802_v33 = vmul.f32 1.5703125, %v1738_v16  ;;  %v12183_v30 = vld [vmem:[#allocation132_spill] sm:$0xff] }
 0x2e5   :  { %v2409_v0 = vmul.f32 %v2377_v59, %v1993_v39  ;;  %v1866_v52 = vmul.f32 0.0004837513, %v1738_v16  ;;  %v1930_v2 = vmul.f32 7.54979e-08, %v1738_v16  ;;  %v2731_v21 = vsel %vm2667_vm0, %v2699_v25, %v2571_v20 }
 0x2e6   :  { %v2632_v47 = vsel %vm8564_vm2, %v8583_v49, %v8589_v54  ;;  %v2153_v28 = vadd.f32 -0.16666655, %v2121_v1  ;;  %v8595_v50 = vcvt.f32.s32 %v6105_v5  ;;  %v1834_v56 = vsub.f32 %v8544_v7, %v1802_v33 }
 0x2e7   :  { %v2888_v42 = vsub.f32 0.0, %v2632_v47  ;;  %v2441_v46 = vadd.f32 0.041666646, %v2409_v0  ;;  %v2988_v43 = vmul.f32 %v2731_v21, %v6578_v61  ;;  %v2636_v35 = vand.u32 2, %v12180_v6 }
 0x2e8   :  { %v2185_v39 = vmul.f32 %v2153_v28, %v2025_v48  ;;  %vm8600_vm12 = vcmp.ne.s32.totalorder %v2537_v51, 0  ;;  %v1898_v20 = vsub.f32 %v1834_v56, %v1866_v52  ;;  %v2794_v25 = vadd.s32 1, %v8595_v50  ;;  %v12194_v48 = vld [vmem:[#allocation23_spill] sm:$0xff] }
 0x2e9   :  { %v2920_v34 = vsel %vm8577_vm1, %v2888_v42, %v2632_v47  ;;  %v2473_v41 = vmul.f32 %v2441_v46, %v2313_v29  ;;  %3021 = vst [vmem:[#allocation9 + $0x100] sm:$0xff] %v2988_v43  ;;  %vm2668_vm7 = vcmp.ne.s32.totalorder %v2636_v35, 0  ;;  %v2700_v7 = vsub.f32 0.0, %v2572_v55  ;;  %v12192_v35 = vld [vmem:[#allocation134_spill] sm:$0xff] }
 0x2ea   :  { %v2952_v13 = vmul.f32 %v2920_v34, %v12183_v30  ;;  %v8608_v59 = vadd.f32 %v2185_v39, %v1961_v11  ;;  %vm8610_vm0 = vcmp.ne.s32.totalorder %v2825_v60, 0  ;;  %v1962_v51 = vsub.f32 %v1898_v20, %v1930_v2 }
 0x2eb   :  { %v8614_v1 = vadd.f32 %v2473_v41, %v2281_v37  ;;  %v2538_v5 = vand.u32 1, %v8595_v50  ;;  %v2732_v33 = vsel %vm2668_vm7, %v2700_v7, %v2572_v55  ;;  %v2573_v38 = vsel %vm7842_vm11, %v7848_v27, %v7830_v53 }
 0x2ec   :  { %2985 = vst [vmem:[#allocation8 + $0x1e8] sm:$0xff] %v2952_v13  ;;  %v1994_v29 = vmul.f32 %v1962_v51, %v1962_v51  ;;  %v2989_v11 = vmul.f32 %v2732_v33, %v6583_v4  ;;  %v2637_v60 = vand.u32 2, %v7770_v19  ;;  %v2701_v0 = vsub.f32 0.0, %v2573_v38 }
 0x2ed   :  { %v2633_v37 = vsel %vm8600_vm12, %v8608_v59, %v8614_v1  ;;  %v2826_v52 = vand.u32 2, %v2794_v25  ;;  %v2574_v2 = vsel %vm7871_vm9, %v7882_v15, %v7879_v44  ;;  %v2638_v53 = vand.u32 2, %v12187_v62  ;;  %v12193_v25 = vld [vmem:[#allocation16_spill] sm:$0xff] }
 0x2ee   :  { %v2889_v27 = vsub.f32 0.0, %v2633_v37  ;;  %v2026_v21 = vmul.f32 %v1994_v29, %v1962_v51  ;;  %v2058_v47 = vmul.f32 -0.00019515296, %v1994_v29  ;;  %v2250_v28 = vmul.f32 0.5, %v1994_v29  ;;  %3022 = vst [vmem:[#allocation9 + $0x108] sm:$0xff] %v2989_v11  ;;  %v12225_v11 = vld [vmem:[#allocation57_spill] sm:$0xff] }
 0x2ef   :  { %v2314_v19 = vmul.f32 %v1994_v29, %v1994_v29  ;;  %v2346_v56 = vmul.f32 2.4433157e-05, %v1994_v29  ;;  %vm2669_vm11 = vcmp.ne.s32.totalorder %v2637_v60, 0  ;;  %vm8632_vm1 = vcmp.ne.s32.totalorder %v2638_v53, 0  ;;  %v6338_v44 = vld [vmem:[#allocation5 + $0x8] sm:$0xff] }
 0x2f0   :  { %v2921_v46 = vsel %vm8610_vm0, %v2889_v27, %v2633_v37  ;;  %v2090_v43 = vadd.f32 0.008332161, %v2058_v47  ;;  %v2282_v6 = vsub.f32 1.0, %v2250_v28  ;;  %vm8638_vm9 = vcmp.ne.s32.totalorder %v2538_v5, 0  ;;  %v12201_v27 = vld [vmem:[#allocation20_spill] sm:$0xff] }
 0x2f1   :  { %v2733_v15 = vsel %vm2669_vm11, %v2701_v0, %v2573_v38  ;;  %v2953_v39 = vmul.f32 %v2921_v46, %v12192_v35  ;;  %v2378_v20 = vadd.f32 -0.0013887316, %v2346_v56  ;;  %v2702_v41 = vsub.f32 0.0, %v2574_v2  ;;  %v12202_v28 = vld [vmem:[#allocation32_spill] sm:$0xff]  ;;  %v12203_v46 = vld [vmem:[#allocation25_spill] sm:$0xff] }
 0x2f2   :  { %v2990_v34 = vmul.f32 %v2733_v15, %v12193_v25  ;;  %v2122_v7 = vmul.f32 %v2090_v43, %v1994_v29  ;;  %v2575_v13 = vsel %vm7884_vm3, %v7908_v18, %v7906_v24  ;;  %v2639_v33 = vand.u32 2, %v12194_v48 }
 0x2f3   :  { %v2576_v5 = vsel %vm7910_vm4, %v7926_v9, %v7921_v14  ;;  %2986 = vst [vmem:[#allocation8 + $0x1f0] sm:$0xff] %v2953_v39  ;;  %v2410_v38 = vmul.f32 %v2378_v20, %v1994_v29  ;;  %vm8653_vm7 = vcmp.ne.s32.totalorder %v2826_v52, 0  ;;  %v2734_v60 = vsel %vm8632_vm1, %v2702_v41, %v2574_v2  ;;  %v12198_v9 = vld [vmem:[#allocation34_spill] sm:$0xff]  ;;  %v12199_v29 = vld [vmem:[#allocation35_spill] sm:$0xff]  ;;  %v12205_v20 = vld [vmem:[#allocation40_spill] sm:$0xff] }
 0x2f4   :  { %3023 = vst [vmem:[#allocation9 + $0x110] sm:$0xff] %v2990_v34  ;;  %v2703_v0 = vsub.f32 0.0, %v2575_v13  ;;  %v2640_v18 = vand.u32 2, %v12197_v40  ;;  %v2154_v24 = vadd.f32 -0.16666655, %v2122_v7  ;;  %v2991_v37 = vmul.f32 %v2734_v60, %v11834_v45  ;;  %v12204_v39 = vld [vmem:[#allocation27_spill] sm:$0xff] }
 0x2f5   :  { %vm2671_vm3 = vcmp.ne.s32.totalorder %v2639_v33, 0  ;;  %v2704_v55 = vsub.f32 0.0, %v2576_v5  ;;  %v2442_v22 = vadd.f32 0.041666646, %v2410_v38  ;;  %v2577_v62 = vsel %vm7940_vm6, %v12199_v29, %v12198_v9  ;;  %v12208_v38 = vld [vmem:[#allocation33_spill] sm:$0xff]  ;;  %v12214_v52 = vld [vmem:[#allocation39_spill] sm:$0xff] }
 0x2f6   :  { %v2735_v14 = vsel %vm2671_vm3, %v2703_v0, %v2575_v13  ;;  %vm2672_vm4 = vcmp.ne.s32.totalorder %v2640_v18, 0  ;;  %v2186_v53 = vmul.f32 %v2154_v24, %v2026_v21  ;;  %3024 = vst [vmem:[#allocation9 + $0x118] sm:$0xff] %v2991_v37  ;;  %v2641_v56 = vand.u32 2, %v12202_v28  ;;  %v12207_v21 = vld [vmem:[#allocation21_spill] sm:$0xff]  ;;  %v12209_v0 = vld [vmem:[#allocation26_spill] sm:$0xff]  ;;  %v12210_v18 = vld [vmem:[#allocation36_spill] sm:$0xff] }
 0x2f7   :  { %v2992_v2 = vmul.f32 %v2735_v14, %v12201_v27  ;;  %v2736_v47 = vsel %vm2672_vm4, %v2704_v55, %v2576_v5  ;;  %v2474_v42 = vmul.f32 %v2442_v22, %v2314_v19  ;;  %v2705_v15 = vsub.f32 0.0, %v2577_v62  ;;  %v12213_v22 = vld [vmem:[#allocation30_spill] sm:$0xff]  ;;  %v12218_v28 = vld [vmem:[#allocation29_spill] sm:$0xff] }
 0x2f8   :  { %v2993_v43 = vmul.f32 %v2736_v47, %v12203_v46  ;;  %v2578_v41 = vsel %vm7977_vm10, %v12205_v20, %v12204_v39  ;;  %v8672_v7 = vadd.f32 %v2186_v53, %v1962_v51  ;;  %vm2673_vm6 = vcmp.ne.s32.totalorder %v2641_v56, 0  ;;  %v12215_v53 = vld [vmem:[#allocation48_spill] sm:$0xff]  ;;  %v12219_v39 = vld [vmem:[#allocation55_spill] sm:$0xff] }
 0x2f9   :  { %3025 = vst [vmem:[#allocation9 + $0x120] sm:$0xff] %v2992_v2  ;;  %v2642_v13 = vand.u32 2, %v12207_v21  ;;  %v2706_v48 = vsub.f32 0.0, %v2578_v41  ;;  %v8675_v33 = vadd.f32 %v2474_v42, %v2282_v6  ;;  %v2737_v5 = vsel %vm2673_vm6, %v2705_v15, %v2577_v62  ;;  %v12220_v20 = vld [vmem:[#allocation47_spill] sm:$0xff] }
 0x2fa   :  { %3026 = vst [vmem:[#allocation9 + $0x128] sm:$0xff] %v2993_v43  ;;  %v2579_v19 = vsel %vm7998_vm14, %v8017_v58, %v8014_v3  ;;  %v2643_v60 = vand.u32 2, %v12208_v38  ;;  %v2994_v40 = vmul.f32 %v2737_v5, %v12209_v0  ;;  %v2580_v37 = vsel %vm8021_vm5, %v12210_v18, %v8030_v12  ;;  %v12216_v12 = vld [vmem:[#allocation41_spill] sm:$0xff]  ;;  %v12222_v21 = vld [vmem:[#allocation135_spill] sm:$0xff]  ;;  %v12227_v18 = vld [vmem:[#allocation58_spill] sm:$0xff] }
 0x2fb   :  { %vm2674_vm10 = vcmp.ne.s32.totalorder %v2642_v13, 0  ;;  %v2707_v51 = vsub.f32 0.0, %v2579_v19  ;;  %v2634_v6 = vsel %vm8638_vm9, %v8672_v7, %v8675_v33  ;;  %v2644_v58 = vand.u32 2, %v12212_v57 }
 0x2fc   :  { %v2738_v55 = vsel %vm2674_vm10, %v2706_v48, %v2578_v41  ;;  %vm2675_vm0 = vcmp.ne.s32.totalorder %v2643_v60, 0  ;;  %v2890_v3 = vsub.f32 0.0, %v2634_v6  ;;  %3027 = vst [vmem:[#allocation9 + $0x130] sm:$0xff] %v2994_v40  ;;  %v2708_v29 = vsub.f32 0.0, %v2580_v37  ;;  %v12223_v48 = vld [vmem:[#allocation42_spill] sm:$0xff] }
 0x2fd   :  { %v2995_v14 = vmul.f32 %v2738_v55, %v12213_v22  ;;  %v2739_v9 = vsel %vm2675_vm0, %v2707_v51, %v2579_v19  ;;  %vm2676_vm14 = vcmp.ne.s32.totalorder %v2644_v58, 0  ;;  %v2581_v47 = vsel %vm8055_vm15, %v12216_v12, %v12215_v53  ;;  %v12224_v19 = vld [vmem:[#allocation43_spill] sm:$0xff]  ;;  %v12226_v51 = vld [vmem:[#allocation61_spill] sm:$0xff]  ;;  %v12230_v55 = vld [vmem:[#allocation44_spill] sm:$0xff] }
 0x2fe   :  { %v2996_v62 = vmul.f32 %v2739_v9, %v12214_v52  ;;  %v2645_v56 = vand.u32 2, %v12218_v28  ;;  %v2922_v42 = vsel %vm8653_vm7, %v2890_v3, %v2634_v6  ;;  %v2740_v43 = vsel %vm2676_vm14, %v2708_v29, %v2580_v37  ;;  %v12229_v37 = vld [vmem:[#allocation54_spill] sm:$0xff]  ;;  %v12233_v9 = vld [vmem:[#allocation59_spill] sm:$0xff]  ;;  %v12235_v53 = vld [vmem:[#allocation52_spill] sm:$0xff] }
 0x2ff   :  { %3028 = vst [vmem:[#allocation9 + $0x138] sm:$0xff] %v2995_v14  ;;  %v2709_v15 = vsub.f32 0.0, %v2581_v47  ;;  %v2582_v41 = vsel %vm8065_vm8, %v12220_v20, %v12219_v39  ;;  %v2954_v13 = vmul.f32 %v2922_v42, %v12222_v21  ;;  %v2997_v5 = vmul.f32 %v2740_v43, %v12223_v48  ;;  %v12231_v3 = vld [vmem:[#allocation62_spill] sm:$0xff]  ;;  %v12232_v14 = vld [vmem:[#allocation56_spill] sm:$0xff]  ;;  %v12238_v43 = vld [vmem:[#allocation67_spill] sm:$0xff] }
 0x300   :  { %3029 = vst [vmem:[#allocation9 + $0x140] sm:$0xff] %v2996_v62  ;;  %vm2677_vm5 = vcmp.ne.s32.totalorder %v2645_v56, 0  ;;  %v2646_v38 = vand.u32 2, %v12224_v19  ;;  %v2710_v40 = vsub.f32 0.0, %v2582_v41  ;;  %vm12228_vm15 = vnez %v12227_v18  ;;  %v12237_v42 = vld [vmem:[#allocation70_spill] sm:$0xff]  ;;  %v12241_v20 = vld [vmem:[#allocation51_spill] sm:$0xff] }
 0x301   :  { %v2741_v60 = vsel %vm2677_vm5, %v2709_v15, %v2581_v47  ;;  %v2583_v24 = vsel %vm12228_vm15, %v12226_v51, %v12225_v11  ;;  %v2647_v6 = vand.u32 2, %v12229_v37  ;;  %2987 = vst [vmem:[#allocation8 + $0x1f8] sm:$0xff] %v2954_v13  ;;  %3030 = vst [vmem:[#allocation9 + $0x148] sm:$0xff] %v2997_v5  ;;  %vm12234_vm11 = vnez %v12233_v9  ;;  %v12236_v47 = vld [vmem:[#allocation45_spill] sm:$0xff]  ;;  %v12247_v51 = vld [vmem:[#allocation64_spill] sm:$0xff] }
 0x302   :  { %v2998_v57 = vmul.f32 %v2741_v60, %v12230_v55  ;;  %vm2678_vm8 = vcmp.ne.s32.totalorder %v2646_v38, 0  ;;  %v2711_v58 = vsub.f32 0.0, %v2583_v24  ;;  %v2584_v29 = vsel %vm12234_vm11, %v12232_v14, %v12231_v3  ;;  %v12239_v15 = vld [vmem:[#allocation69_spill] sm:$0xff]  ;;  %v12244_v38 = vld [vmem:[#allocation72_spill] sm:$0xff]  ;;  %v12245_v60 = vld [vmem:[#allocation74_spill] sm:$0xff] }
 0x303   :  { %v2742_v62 = vsel %vm2678_vm8, %v2710_v40, %v2582_v41  ;;  %vm2679_vm1 = vcmp.ne.s32.totalorder %v2647_v6, 0  ;;  %v2648_v12 = vand.u32 2, %v12235_v53  ;;  %v2712_v2 = vsub.f32 0.0, %v2584_v29  ;;  %v12242_v13 = vld [vmem:[#allocation53_spill] sm:$0xff]  ;;  %v12248_v37 = vld [vmem:[#allocation63_spill] sm:$0xff] }
 0x304   :  { %3031 = vst [vmem:[#allocation9 + $0x150] sm:$0xff] %v2998_v57  ;;  %v2999_v28 = vmul.f32 %v2742_v62, %v12236_v47  ;;  %v2743_v56 = vsel %vm2679_vm1, %v2711_v58, %v2583_v24  ;;  %vm12240_vm7 = vnez %v12239_v15  ;;  %v2649_v34 = vand.u32 2, %v12241_v20  ;;  %v12243_v41 = vld [vmem:[#allocation73_spill] sm:$0xff]  ;;  %v12250_v3 = vld [vmem:[#allocation71_spill] sm:$0xff]  ;;  %v12253_v62 = vld [vmem:[#allocation60_spill] sm:$0xff] }
 0x305   :  { %v2585_v39 = vsel %vm12240_vm7, %v12238_v43, %v12237_v42  ;;  %v3000_v5 = vmul.f32 %v2743_v56, %v12242_v13  ;;  %vm2680_vm3 = vcmp.ne.s32.totalorder %v2648_v12, 0  ;;  %vm12246_vm4 = vnez %v12245_v60  ;;  %v12249_v58 = vld [vmem:[#allocation77_spill] sm:$0xff]  ;;  %v12251_v14 = vld [vmem:[#allocation79_spill] sm:$0xff]  ;;  %v12254_v12 = vld [vmem:[#allocation66_spill] sm:$0xff] }
 0x306   :  { %v2713_v19 = vsub.f32 0.0, %v2585_v39  ;;  %v2586_v40 = vsel %vm12246_vm4, %v12244_v38, %v12243_v41  ;;  %3032 = vst [vmem:[#allocation9 + $0x158] sm:$0xff] %v2999_v28  ;;  %v2744_v11 = vsel %vm2680_vm3, %v2712_v2, %v2584_v29  ;;  %vm2681_vm6 = vcmp.ne.s32.totalorder %v2649_v34, 0  ;;  %v12255_v29 = vld [vmem:[#allocation85_spill] sm:$0xff]  ;;  %v12257_v42 = vld [vmem:[#allocation84_spill] sm:$0xff]  ;;  %v12262_v60 = vld [vmem:[#allocation86_spill] sm:$0xff] }
 0x307   :  { %v2650_v18 = vand.u32 2, %v12247_v51  ;;  %v2714_v24 = vsub.f32 0.0, %v2586_v40  ;;  %3033 = vst [vmem:[#allocation9 + $0x160] sm:$0xff] %v3000_v5  ;;  %v3001_v6 = vmul.f32 %v2744_v11, %v12248_v37  ;;  %vm12252_vm10 = vnez %v12251_v14  ;;  %v12256_v2 = vld [vmem:[#allocation81_spill] sm:$0xff]  ;;  %v12260_v5 = vld [vmem:[#allocation68_spill] sm:$0xff]  ;;  %v12269_v14 = vld [vmem:[#allocation91_spill] sm:$0xff] }
 0x308   :  { %v2745_v57 = vsel %vm2681_vm6, %v2713_v19, %v2585_v39  ;;  %v2587_v9 = vsel %vm12252_vm10, %v12250_v3, %v12249_v58  ;;  %v2651_v53 = vand.u32 2, %v12253_v62  ;;  %vm12258_vm14 = vnez %v12257_v42  ;;  %v12259_v39 = vld [vmem:[#allocation65_spill] sm:$0xff]  ;;  %v12263_v11 = vld [vmem:[#allocation88_spill] sm:$0xff] }
 0x309   :  { %v3002_v56 = vmul.f32 %v2745_v57, %v12254_v12  ;;  %vm2682_vm0 = vcmp.ne.s32.totalorder %v2650_v18, 0  ;;  %v2715_v28 = vsub.f32 0.0, %v2587_v9  ;;  %v2588_v43 = vsel %vm12258_vm14, %v12256_v2, %v12255_v29  ;;  %3034 = vst [vmem:[#allocation9 + $0x168] sm:$0xff] %v3001_v6  ;;  %v12261_v38 = vld [vmem:[#allocation89_spill] sm:$0xff]  ;;  %v12265_v18 = vld [vmem:[#allocation80_spill] sm:$0xff]  ;;  %v12272_v29 = vld [vmem:[#allocation78_spill] sm:$0xff] }
 0x30a   :  { %v2746_v15 = vsel %vm2682_vm0, %v2714_v24, %v2586_v40  ;;  %vm2683_vm5 = vcmp.ne.s32.totalorder %v2651_v53, 0  ;;  %v2652_v20 = vand.u32 2, %v12259_v39  ;;  %v2716_v34 = vsub.f32 0.0, %v2588_v43  ;;  %v12266_v58 = vld [vmem:[#allocation76_spill] sm:$0xff]  ;;  %v12267_v40 = vld [vmem:[#allocation93_spill] sm:$0xff]  ;;  %v12268_v24 = vld [vmem:[#allocation99_spill] sm:$0xff] }
 0x30b   :  { %3035 = vst [vmem:[#allocation9 + $0x170] sm:$0xff] %v3002_v56  ;;  %v3003_v19 = vmul.f32 %v2746_v15, %v12260_v5  ;;  %v2747_v41 = vsel %vm2683_vm5, %v2715_v28, %v2587_v9  ;;  %vm12264_vm15 = vnez %v12263_v11  ;;  %v2653_v57 = vand.u32 2, %v12265_v18  ;;  %v12271_v9 = vld [vmem:[#allocation75_spill] sm:$0xff]  ;;  %v12273_v15 = vld [vmem:[#allocation90_spill] sm:$0xff] }
 0x30c   :  { %v2589_v51 = vsel %vm12264_vm15, %v12262_v60, %v12261_v38  ;;  %v3004_v3 = vmul.f32 %v2747_v41, %v12266_v58  ;;  %vm2684_vm8 = vcmp.ne.s32.totalorder %v2652_v20, 0  ;;  %vm12270_vm11 = vnez %v12269_v14  ;;  %v12274_v39 = vld [vmem:[#allocation102_spill] sm:$0xff]  ;;  %v12278_v11 = vld [vmem:[#allocation83_spill] sm:$0xff]  ;;  %v12284_v14 = vld [vmem:[#allocation92_spill] sm:$0xff] }
 0x30d   :  { %v2717_v6 = vsub.f32 0.0, %v2589_v51  ;;  %v2590_v62 = vsel %vm12270_vm11, %v12268_v24, %v12267_v40  ;;  %3036 = vst [vmem:[#allocation9 + $0x178] sm:$0xff] %v3003_v19  ;;  %v2748_v53 = vsel %vm2684_vm8, %v2716_v34, %v2588_v43  ;;  %vm2685_vm1 = vcmp.ne.s32.totalorder %v2653_v57, 0  ;;  %v12275_v41 = vld [vmem:[#allocation94_spill] sm:$0xff]  ;;  %v12279_v43 = vld [vmem:[#allocation101_spill] sm:$0xff]  ;;  %v12281_v57 = vld [vmem:[#allocation104_spill] sm:$0xff] }
 0x30e   :  { %v2654_v56 = vand.u32 2, %v12271_v9  ;;  %v2718_v28 = vsub.f32 0.0, %v2590_v62  ;;  %3037 = vst [vmem:[#allocation9 + $0x180] sm:$0xff] %v3004_v3  ;;  %v3005_v2 = vmul.f32 %v2748_v53, %v12272_v29  ;;  %vm12276_vm7 = vnez %v12275_v41  ;;  %v12277_v38 = vld [vmem:[#allocation82_spill] sm:$0xff]  ;;  %v12280_v34 = vld [vmem:[#allocation97_spill] sm:$0xff] }
 0x30f   :  { %v2749_v42 = vsel %vm2685_vm1, %v2717_v6, %v2589_v51  ;;  %v2591_v20 = vsel %vm12276_vm7, %v12274_v39, %v12273_v15  ;;  %v2655_v60 = vand.u32 2, %v12277_v38  ;;  %vm12282_vm4 = vnez %v12281_v57  ;;  %v12283_v51 = vld [vmem:[#allocation87_spill] sm:$0xff]  ;;  %v12285_v15 = vld [vmem:[#allocation109_spill] sm:$0xff]  ;;  %v12286_v39 = vld [vmem:[#allocation100_spill] sm:$0xff] }
 0x310   :  { %v3006_v18 = vmul.f32 %v2749_v42, %v12278_v11  ;;  %vm2686_vm3 = vcmp.ne.s32.totalorder %v2654_v56, 0  ;;  %v2719_v19 = vsub.f32 0.0, %v2591_v20  ;;  %v2592_v40 = vsel %vm12282_vm4, %v12280_v34, %v12279_v43  ;;  %3038 = vst [vmem:[#allocation9 + $0x188] sm:$0xff] %v3005_v2  ;;  %v12287_v42 = vld [vmem:[#allocation106_spill] sm:$0xff]  ;;  %v12290_v11 = vld [vmem:[#allocation95_spill] sm:$0xff] }
 0x311   :  { %v2750_v3 = vsel %vm2686_vm3, %v2718_v28, %v2590_v62  ;;  %vm2687_vm6 = vcmp.ne.s32.totalorder %v2655_v60, 0  ;;  %v2656_v6 = vand.u32 2, %v12283_v51  ;;  %v2720_v24 = vsub.f32 0.0, %v2592_v40  ;;  %v12289_v41 = vld [vmem:[#allocation98_spill] sm:$0xff]  ;;  %v12291_v62 = vld [vmem:[#allocation105_spill] sm:$0xff] }
 0x312   :  { %3039 = vst [vmem:[#allocation9 + $0x190] sm:$0xff] %v3006_v18  ;;  %v3007_v53 = vmul.f32 %v2750_v3, %v12284_v14  ;;  %v2751_v9 = vsel %vm2687_vm6, %v2719_v19, %v2591_v20  ;;  %vm12288_vm10 = vnez %v12287_v42  ;;  %v2657_v38 = vand.u32 2, %v12289_v41  ;;  %v12292_v28 = vld [vmem:[#allocation117_spill] sm:$0xff]  ;;  %v12295_v20 = vld [vmem:[#allocation108_spill] sm:$0xff]  ;;  %v12298_v42 = vld [vmem:[#allocation123_spill] sm:$0xff] }
 0x313   :  { %v2593_v56 = vsel %vm12288_vm10, %v12286_v39, %v12285_v15  ;;  %v3008_v57 = vmul.f32 %v2751_v9, %v12290_v11  ;;  %vm2688_vm0 = vcmp.ne.s32.totalorder %v2656_v6, 0  ;;  %v12293_v60 = vld [vmem:[#allocation113_spill] sm:$0xff]  ;;  %v2658_v19 = vand.u32 2, %v12295_v20  ;;  %v12296_v3 = vld [vmem:[#allocation96_spill] sm:$0xff]  ;;  %v12300_v41 = vld [vmem:[#allocation111_spill] sm:$0xff] }
 0x314   :  { %v2721_v2 = vsub.f32 0.0, %v2593_v56  ;;  %vm12294_vm14 = vnez %v12293_v60  ;;  %3040 = vst [vmem:[#allocation9 + $0x198] sm:$0xff] %v3007_v53  ;;  %v2752_v18 = vsel %vm2688_vm0, %v2720_v24, %v2592_v40  ;;  %vm2689_vm5 = vcmp.ne.s32.totalorder %v2657_v38, 0  ;;  %v12297_v39 = vld [vmem:[#allocation116_spill] sm:$0xff]  ;;  %v12301_v14 = vld [vmem:[#allocation103_spill] sm:$0xff]  ;;  %v12303_v24 = vld [vmem:[#allocation114_spill] sm:$0xff] }
 0x315   :  { %v2594_v43 = vsel %vm12294_vm14, %v12292_v28, %v12291_v62  ;;  %3041 = vst [vmem:[#allocation9 + $0x1a0] sm:$0xff] %v3008_v57  ;;  %v3009_v51 = vmul.f32 %v2752_v18, %v12296_v3  ;;  %v2595_v6 = vsel %vm8435_vm13, %v12298_v42, %v12297_v39  ;;  %v2659_v11 = vand.u32 2, %v12300_v41  ;;  %v12302_v40 = vld [vmem:[#allocation120_spill] sm:$0xff]  ;;  %v12309_v9 = vld [vmem:[#allocation121_spill] sm:$0xff]  ;;  %v12312_v41 = vld [vmem:[#allocation119_spill] sm:$0xff] }
 0x316   :  { %v2722_v34 = vsub.f32 0.0, %v2594_v43  ;;  %v2753_v15 = vsel %vm2689_vm5, %v2721_v2, %v2593_v56  ;;  %vm2690_vm15 = vcmp.ne.s32.totalorder %v2658_v19, 0  ;;  %v2723_v53 = vsub.f32 0.0, %v2595_v6  ;;  %v12304_v38 = vld [vmem:[#allocation124_spill] sm:$0xff]  ;;  %v12306_v56 = vld [vmem:[#allocation107_spill] sm:$0xff] }
 0x317   :  { %v3010_v60 = vmul.f32 %v2753_v15, %v12301_v14  ;;  %vm12305_vm8 = vnez %v12304_v38  ;;  %3042 = vst [vmem:[#allocation9 + $0x1a8] sm:$0xff] %v3009_v51  ;;  %vm2691_vm11 = vcmp.ne.s32.totalorder %v2659_v11, 0  ;;  %v2660_v2 = vand.u32 2, %v12306_v56  ;;  %v12307_v18 = vld [vmem:[#allocation112_spill] sm:$0xff]  ;;  %v12310_v15 = vld [vmem:[#allocation126_spill] sm:$0xff]  ;;  %v12313_v3 = vld [vmem:[#allocation115_spill] sm:$0xff] }
 0x318   :  { %v2596_v62 = vsel %vm12305_vm8, %v12303_v24, %v12302_v40  ;;  %v2754_v57 = vsel %vm2690_vm15, %v2722_v34, %v2594_v43  ;;  %v2755_v39 = vsel %vm2691_vm11, %v2723_v53, %v2595_v6  ;;  %v12308_v42 = vld [vmem:[#allocation128_spill] sm:$0xff]  ;;  %vm12311_vm13 = vnez %v12310_v15  ;;  %v12315_v34 = vld [vmem:[#allocation127_spill] sm:$0xff]  ;;  %v12316_v53 = vld [vmem:[#allocation118_spill] sm:$0xff] }
 0x319   :  { %v2724_v28 = vsub.f32 0.0, %v2596_v62  ;;  %3043 = vst [vmem:[#allocation9 + $0x1b0] sm:$0xff] %v3010_v60  ;;  %v3011_v20 = vmul.f32 %v2754_v57, %v12307_v18  ;;  %v2597_v19 = vsel %vm12311_vm13, %v12309_v9, %v12308_v42  ;;  %v2661_v14 = vand.u32 2, %v12312_v41  ;;  %v12318_v56 = vld [vmem:[#allocation125_spill] sm:$0xff]  ;;  %v6337_v41 = vld [vmem:[#allocation5] sm:$0xff] }
 0x31a   :  { %v3012_v38 = vmul.f32 %v2755_v39, %v12313_v3  ;;  %vm2692_vm1 = vcmp.ne.s32.totalorder %v2660_v2, 0  ;;  %v2725_v51 = vsub.f32 0.0, %v2597_v19  ;;  %vm12314_vm7 = vnez %v12165_v31 }
 0x31b   :  { %v2598_v11 = vsel %vm12314_vm7, %v8535_v10, %v8533_v8  ;;  %3044 = vst [vmem:[#allocation9 + $0x1b8] sm:$0xff] %v3011_v20  ;;  %v2756_v43 = vsel %vm2692_vm1, %v2724_v28, %v2596_v62  ;;  %vm2693_vm3 = vcmp.ne.s32.totalorder %v2661_v14, 0  ;;  %v2662_v6 = vand.u32 2, %v12315_v34  ;;  %v12319_v8 = vld [vmem:[#allocation122_spill] sm:$0xff] }
 0x31c   :  { %v2726_v60 = vsub.f32 0.0, %v2598_v11  ;;  %3045 = vst [vmem:[#allocation9 + $0x1c0] sm:$0xff] %v3012_v38  ;;  %v3013_v40 = vmul.f32 %v2756_v43, %v12316_v53  ;;  %v2757_v24 = vsel %vm2693_vm3, %v2725_v51, %v2597_v19  ;;  %vm12317_vm4 = vnez %v12170_v32  ;;  %v12320_v32 = vld [vmem:[#allocation130_spill] sm:$0xff]  ;;  %v6339_v51 = vld [vmem:[#allocation5 + $0x10] sm:$0xff] }
 0x31d   :  { %v2599_v57 = vsel %vm12317_vm4, %v8552_v63, %v8546_v36  ;;  %v2663_v31 = vand.u32 2, %v12318_v56  ;;  %v3014_v10 = vmul.f32 %v2757_v24, %v12319_v8  ;;  %vm2694_vm6 = vcmp.ne.s32.totalorder %v2662_v6, 0  ;;  %v6341_v24 = vld [vmem:[#allocation5 + $0x20] sm:$0xff] }
 0x31e   :  { %v2727_v2 = vsub.f32 0.0, %v2599_v57  ;;  %v2600_v14 = vsel %vm8564_vm2, %v8589_v54, %v8583_v49  ;;  %3046 = vst [vmem:[#allocation9 + $0x1c8] sm:$0xff] %v3013_v40  ;;  %v2758_v62 = vsel %vm2694_vm6, %v2726_v60, %v2598_v11  ;;  %v2664_v28 = vand.u32 2, %v8530_v17  ;;  %v6340_v60 = vld [vmem:[#allocation5 + $0x18] sm:$0xff] }
 0x31f   :  { %vm2695_vm10 = vcmp.ne.s32.totalorder %v2663_v31, 0  ;;  %v2728_v20 = vsub.f32 0.0, %v2600_v14  ;;  %3047 = vst [vmem:[#allocation9 + $0x1d0] sm:$0xff] %v3014_v10  ;;  %v3015_v36 = vmul.f32 %v2758_v62, %v12320_v32  ;;  %v2601_v39 = vsel %vm8600_vm12, %v8614_v1, %v8608_v59 }
 0x320   :  { %v2759_v63 = vsel %vm2695_vm10, %v2727_v2, %v2599_v57  ;;  %v2665_v42 = vand.u32 2, %v8548_v26  ;;  %vm2696_vm2 = vcmp.ne.s32.totalorder %v2664_v28, 0  ;;  %v2729_v54 = vsub.f32 0.0, %v2601_v39 }
 0x321   :  { %v3016_v49 = vmul.f32 %v2759_v63, %v12321_v23  ;;  %v2602_v17 = vsel %vm8638_vm9, %v8675_v33, %v8672_v7  ;;  %3048 = vst [vmem:[#allocation9 + $0x1d8] sm:$0xff] %v3015_v36  ;;  %v2760_v9 = vsel %vm2696_vm2, %v2728_v20, %v2600_v14  ;;  %v2666_v15 = vand.u32 2, %v8595_v50  ;;  %v6342_v36 = vld [vmem:[#allocation5 + $0x28] sm:$0xff] }
 0x322   :  { %vm2697_vm0 = vcmp.ne.s32.totalorder %v2665_v42, 0  ;;  %v2730_v19 = vsub.f32 0.0, %v2602_v17  ;;  %v3017_v16 = vmul.f32 %v2760_v9, %v12183_v30  ;;  %v8831_v26 = vstv %s8802_s9 }
 0x323   :  { %3049 = vst [vmem:[#allocation9 + $0x1e0] sm:$0xff] %v3016_v49  ;;  %v2761_v59 = vsel %vm2697_vm0, %v2729_v54, %v2601_v39  ;;  %vm2698_vm12 = vcmp.ne.s32.totalorder %v2666_v15, 0  ;;  %v3056_v38 = vmul.f32 %v6337_v41, %v8831_v26  ;;  %v3057_v7 = vmul.f32 %v6338_v44, %v8831_v26  ;;  %v6343_v54 = vld [vmem:[#allocation5 + $0x30] sm:$0xff] }
 0x324   :  { %v3018_v1 = vmul.f32 %v2761_v59, %v12192_v35  ;;  %3050 = vst [vmem:[#allocation9 + $0x1e8] sm:$0xff] %v3017_v16  ;;  %v2762_v33 = vsel %vm2698_vm12, %v2730_v19, %v2602_v17  ;;  %v3058_v50 = vmul.f32 %v6339_v51, %v8831_v26  ;;  %v8839_v40 = vmul.f32 %v6340_v60, %v8831_v26 }
 0x325   :  { %v3019_v11 = vmul.f32 %v2762_v33, %v12222_v21  ;;  %v3088_v43 = vmul.f32 0.63661975, %v3056_v38  ;;  %v3089_v34 = vmul.f32 0.63661975, %v3057_v7  ;;  %v8842_v57 = vmul.f32 %v6341_v24, %v8831_v26 }
 0x326   :  { %3051 = vst [vmem:[#allocation9 + $0x1f0] sm:$0xff] %v3018_v1  ;;  %v3090_v6 = vmul.f32 0.63661975, %v3058_v50  ;;  %v3091_v28 = vmul.f32 0.63661975, %v8839_v40  ;;  %v8847_v63 = vmul.f32 %v6342_v36, %v8831_v26  ;;  %v8850_v17 = vmul.f32 %v6343_v54, %v8831_v26 }
 0x327   :  { %3052 = vst [vmem:[#allocation9 + $0x1f8] sm:$0xff] %v3019_v11  ;;  %v3120_v56 = vadd.f32 0.5, %v3088_v43  ;;  %v3121_v31 = vadd.f32 0.5, %v3089_v34  ;;  %v3092_v20 = vmul.f32 0.63661975, %v8842_v57 }
 0x328   :  { %v3122_v10 = vadd.f32 0.5, %v3090_v6  ;;  %v3123_v6 = vadd.f32 0.5, %v3091_v28  ;;  %v6344_v28 = vld [vmem:[#allocation5 + $0x38] sm:$0xff] }
 0x329   :  { %v3152_v2 = vfloor.f32 %v3120_v56  ;;  %v3153_v14 = vfloor.f32 %v3121_v31  ;;  %v3124_v60 = vadd.f32 0.5, %v3092_v20  ;;  %v8869_v20 = vmul.f32 %v6344_v28, %v8831_v26 }
 0x32a   :  { %v3154_v62 = vfloor.f32 %v3122_v10 }
 0x32b   :  { %v6107_v39 = vtrunc.f32 %v3152_v2  ;;  %v3216_v42 = vmul.f32 1.5703125, %v3152_v2  ;;  %v3280_v49 = vmul.f32 0.0004837513, %v3152_v2  ;;  %v3344_v9 = vmul.f32 7.54979e-08, %v3152_v2 }
 0x32c   :  { %v6109_v15 = vtrunc.f32 %v3153_v14  ;;  %v3217_v19 = vmul.f32 1.5703125, %v3153_v14  ;;  %v3281_v16 = vmul.f32 0.0004837513, %v3153_v14  ;;  %v6111_v41 = vtrunc.f32 %v3154_v62 }
 0x32d   :  { %v8852_v59 = vcvt.f32.s32 %v6107_v39  ;;  %v3248_v1 = vsub.f32 %v3056_v38, %v3216_v42  ;;  %v3218_v44 = vmul.f32 1.5703125, %v3154_v62  ;;  %v3345_v11 = vmul.f32 7.54979e-08, %v3153_v14 }
 0x32e   :  { %v8854_v33 = vcvt.f32.s32 %v6109_v15  ;;  %v3249_v51 = vsub.f32 %v3057_v7, %v3217_v19  ;;  %v3282_v43 = vmul.f32 0.0004837513, %v3154_v62  ;;  %v3346_v10 = vmul.f32 7.54979e-08, %v3154_v62 }
 0x32f   :  { %12322 = vst [vmem:[#allocation129_spill] sm:$0xff] %v8852_v59  ;;  %v3312_v34 = vsub.f32 %v3248_v1, %v3280_v49  ;;  %v4208_v24 = vadd.s32 1, %v8852_v59  ;;  %v3250_v31 = vsub.f32 %v3058_v50, %v3218_v44  ;;  %v8858_v39 = vcvt.f32.s32 %v6111_v41 }
 0x330   :  { %12323 = vst [vmem:[#allocation133_spill] sm:$0xff] %v8854_v33  ;;  %v3313_v56 = vsub.f32 %v3249_v51, %v3281_v16  ;;  %v4209_v36 = vadd.s32 1, %v8854_v33  ;;  %v8861_v38 = vmul.f32 0.63661975, %v8847_v63  ;;  %v8866_v14 = vmul.f32 0.63661975, %v8850_v17 }
 0x331   :  { %v3376_v2 = vsub.f32 %v3312_v34, %v3344_v9  ;;  %12324 = vst [vmem:[#allocation17_spill] sm:$0xff] %v8858_v39  ;;  %v3314_v7 = vsub.f32 %v3250_v31, %v3282_v43  ;;  %v3952_v62 = vand.u32 1, %v8852_v59  ;;  %v3155_v49 = vfloor.f32 %v3123_v6 }
 0x332   :  { %v8863_v42 = vsub.f32 %v3313_v56, %v3345_v11  ;;  %v8872_v54 = vfloor.f32 %v3124_v60  ;;  %v4240_v9 = vand.u32 2, %v4208_v24  ;;  %v3953_v19 = vand.u32 1, %v8854_v33 }
 0x333   :  { %v3408_v50 = vmul.f32 %v3376_v2, %v3376_v2  ;;  %v8877_v16 = vsub.f32 %v3314_v7, %v3346_v10  ;;  %v4241_v44 = vand.u32 2, %v4209_v36  ;;  %v3954_v51 = vand.u32 1, %v8858_v39 }
 0x334   :  { %v3409_v15 = vmul.f32 %v8863_v42, %v8863_v42  ;;  %v8881_v34 = vadd.s32 1, %v8858_v39  ;;  %v6113_v6 = vtrunc.f32 %v3155_v49  ;;  %vm8883_vm9 = vcmp.ne.s32.totalorder %v3952_v62, 0 }
 0x335   :  { %v3472_v1 = vmul.f32 -0.00019515296, %v3408_v50  ;;  %v3664_v41 = vmul.f32 0.5, %v3408_v50  ;;  %v3760_v11 = vmul.f32 2.4433157e-05, %v3408_v50  ;;  %v3440_v60 = vmul.f32 %v3408_v50, %v3376_v2 }
 0x336   :  { %v3473_v43 = vmul.f32 -0.00019515296, %v3409_v15  ;;  %v3665_v31 = vmul.f32 0.5, %v3409_v15  ;;  %v3761_v10 = vmul.f32 2.4433157e-05, %v3409_v15  ;;  %v3728_v7 = vmul.f32 %v3408_v50, %v3408_v50 }
 0x337   :  { %v3504_v24 = vadd.f32 0.008332161, %v3472_v1  ;;  %v3792_v28 = vadd.f32 -0.0013887316, %v3760_v11  ;;  %vm8887_vm14 = vcmp.ne.s32.totalorder %v3953_v19, 0  ;;  %v3410_v35 = vmul.f32 %v8877_v16, %v8877_v16 }
 0x338   :  { %v3505_v21 = vadd.f32 0.008332161, %v3473_v43  ;;  %v3696_v30 = vsub.f32 1.0, %v3664_v41  ;;  %v3441_v1 = vmul.f32 %v3409_v15, %v8863_v42  ;;  %v3793_v62 = vadd.f32 -0.0013887316, %v3761_v10 }
 0x339   :  { %v3536_v39 = vmul.f32 %v3504_v24, %v3408_v50  ;;  %v3824_v23 = vmul.f32 %v3792_v28, %v3408_v50  ;;  %vm8894_vm5 = vcmp.ne.s32.totalorder %v4240_v9, 0  ;;  %v3729_v11 = vmul.f32 %v3409_v15, %v3409_v15 }
 0x33a   :  { %v3537_v59 = vmul.f32 %v3505_v21, %v3409_v15  ;;  %v3474_v43 = vmul.f32 -0.00019515296, %v3410_v35  ;;  %v3697_v32 = vsub.f32 1.0, %v3665_v31  ;;  %v3825_v8 = vmul.f32 %v3793_v62, %v3409_v15 }
 0x33b   :  { %v3568_v19 = vadd.f32 -0.16666655, %v3536_v39  ;;  %vm8898_vm15 = vcmp.ne.s32.totalorder %v4241_v44, 0  ;;  %v8902_v24 = vcvt.f32.s32 %v6113_v6  ;;  %v3856_v41 = vadd.f32 0.041666646, %v3824_v23 }
 0x33c   :  { %v3569_v3 = vadd.f32 -0.16666655, %v3537_v59  ;;  %v3442_v50 = vmul.f32 %v3410_v35, %v8877_v16  ;;  %v3506_v9 = vadd.f32 0.008332161, %v3474_v43  ;;  %v3857_v28 = vadd.f32 0.041666646, %v3825_v8 }
 0x33d   :  { %12333 = vst [vmem:[#allocation22_spill] sm:$0xff] %v8902_v24  ;;  %v3600_v10 = vmul.f32 %v3568_v19, %v3440_v60  ;;  %v3666_v18 = vmul.f32 0.5, %v3410_v35  ;;  %v3762_v21 = vmul.f32 2.4433157e-05, %v3410_v35  ;;  %v3888_v29 = vmul.f32 %v3856_v41, %v3728_v7 }
 0x33e   :  { %v3601_v58 = vmul.f32 %v3569_v3, %v3441_v1  ;;  %v3538_v39 = vmul.f32 %v3506_v9, %v3410_v35  ;;  %v3730_v31 = vmul.f32 %v3410_v35, %v3410_v35  ;;  %vm8905_vm8 = vcmp.ne.s32.totalorder %v3954_v51, 0 }
 0x33f   :  { %v8909_v44 = vadd.f32 %v3600_v10, %v3376_v2  ;;  %v3889_v6 = vmul.f32 %v3857_v28, %v3729_v11  ;;  %v3794_v23 = vadd.f32 -0.0013887316, %v3762_v21  ;;  %v3219_v59 = vmul.f32 1.5703125, %v3155_v49 }
 0x340   :  { %v8911_v62 = vadd.f32 %v3888_v29, %v3696_v30  ;;  %v8914_v60 = vadd.f32 %v3601_v58, %v8863_v42  ;;  %v3570_v8 = vadd.f32 -0.16666655, %v3538_v39  ;;  %v3283_v43 = vmul.f32 0.0004837513, %v3155_v49 }
 0x341   :  { %v8916_v7 = vadd.f32 %v3889_v6, %v3697_v32  ;;  %v3826_v3 = vmul.f32 %v3794_v23, %v3410_v35  ;;  %v3251_v51 = vsub.f32 %v8839_v40, %v3219_v59  ;;  %v3347_v1 = vmul.f32 7.54979e-08, %v3155_v49 }
 0x342   :  { %v4048_v2 = vsel %vm8883_vm9, %v8909_v44, %v8911_v62  ;;  %v3602_v11 = vmul.f32 %v3570_v8, %v3442_v50  ;;  %v3698_v19 = vsub.f32 1.0, %v3666_v18  ;;  %v6115_v30 = vtrunc.f32 %v8872_v54 }
 0x343   :  { %v4304_v29 = vsub.f32 0.0, %v4048_v2  ;;  %v4049_v58 = vsel %vm8887_vm14, %v8914_v60, %v8916_v7  ;;  %v3858_v32 = vadd.f32 0.041666646, %v3826_v3  ;;  %v3315_v35 = vsub.f32 %v3251_v51, %v3283_v43 }
 0x344   :  { %v4305_v42 = vsub.f32 0.0, %v4049_v58  ;;  %v4242_v40 = vand.u32 2, %v8881_v34  ;;  %v3955_v49 = vand.u32 1, %v8902_v24  ;;  %v4211_v41 = vadd.s32 1, %v8902_v24 }
 0x345   :  { %v4336_v18 = vsel %vm8894_vm5, %v4304_v29, %v4048_v2  ;;  %v8934_v50 = vadd.f32 %v3602_v11, %v8877_v16  ;;  %v3890_v9 = vmul.f32 %v3858_v32, %v3730_v31  ;;  %v3379_v10 = vsub.f32 %v3315_v35, %v3347_v1 }
 0x346   :  { %v4368_v28 = vmul.f32 %v4336_v18, %v6578_v61  ;;  %v4337_v21 = vsel %vm8898_vm15, %v4305_v42, %v4049_v58  ;;  %v8939_v39 = vcvt.f32.s32 %v6115_v30  ;;  %v3220_v34 = vmul.f32 1.5703125, %v8872_v54 }
 0x347   :  { %v4369_v6 = vmul.f32 %v4337_v21, %v6583_v4  ;;  %v8943_v23 = vadd.f32 %v3890_v9, %v3698_v19  ;;  %v3411_v33 = vmul.f32 %v3379_v10, %v3379_v10  ;;  %v3284_v59 = vmul.f32 0.0004837513, %v8872_v54 }
 0x348   :  { %12336 = vst [vmem:[#allocation31_spill] sm:$0xff] %v8939_v39  ;;  %4401 = vst [vmem:[#allocation8 + $0x200] sm:$0xff] %v4368_v28  ;;  %v3252_v16 = vsub.f32 %v8842_v57, %v3220_v34  ;;  %v3348_v31 = vmul.f32 7.54979e-08, %v8872_v54  ;;  %v3125_v8 = vadd.f32 0.5, %v8861_v38  ;;  %vm4274_vm11 = vcmp.ne.s32.totalorder %v4242_v40, 0 }
 0x349   :  { %v8950_v53 = vmul.f32 0.63661975, %v8869_v20  ;;  %4402 = vst [vmem:[#allocation8 + $0x208] sm:$0xff] %v4369_v6  ;;  %v4050_v43 = vsel %vm8905_vm8, %v8934_v50, %v8943_v23  ;;  %v3475_v3 = vmul.f32 -0.00019515296, %v3411_v33  ;;  %v3126_v51 = vadd.f32 0.5, %v8866_v14 }
 0x34a   :  { %v4306_v1 = vsub.f32 0.0, %v4050_v43  ;;  %v3763_v2 = vmul.f32 2.4433157e-05, %v3411_v33  ;;  %v4243_v57 = vand.u32 2, %v4211_v41  ;;  %v3316_v11 = vsub.f32 %v3252_v16, %v3284_v59 }
 0x34b   :  { %v3507_v54 = vadd.f32 0.008332161, %v3475_v3  ;;  %v3667_v19 = vmul.f32 0.5, %v3411_v33  ;;  %vm8957_vm13 = vcmp.ne.s32.totalorder %v3955_v49, 0  ;;  %v4212_v30 = vadd.s32 1, %v8939_v39 }
 0x34c   :  { %v4338_v29 = vsel %vm4274_vm11, %v4306_v1, %v4050_v43  ;;  %v3795_v58 = vadd.f32 -0.0013887316, %v3763_v2  ;;  %v3380_v32 = vsub.f32 %v3316_v11, %v3348_v31  ;;  %v3157_v35 = vfloor.f32 %v3125_v8 }
 0x34d   :  { %v4370_v42 = vmul.f32 %v4338_v29, %v12193_v25  ;;  %v3443_v40 = vmul.f32 %v3411_v33, %v3379_v10  ;;  %v3539_v14 = vmul.f32 %v3507_v54, %v3411_v33  ;;  %v3731_v18 = vmul.f32 %v3411_v33, %v3411_v33 }
 0x34e   :  { %v3827_v9 = vmul.f32 %v3795_v58, %v3411_v33  ;;  %vm8963_vm1 = vcmp.ne.s32.totalorder %v4243_v57, 0  ;;  %v3412_v49 = vmul.f32 %v3380_v32, %v3380_v32  ;;  %v6117_v28 = vtrunc.f32 %v3157_v35 }
 0x34f   :  { %v3221_v21 = vmul.f32 1.5703125, %v3157_v35  ;;  %4403 = vst [vmem:[#allocation8 + $0x210] sm:$0xff] %v4370_v42  ;;  %v3571_v34 = vadd.f32 -0.16666655, %v3539_v14  ;;  %v3699_v6 = vsub.f32 1.0, %v3667_v19  ;;  %v3956_v59 = vand.u32 1, %v8939_v39 }
 0x350   :  { %v4244_v16 = vand.u32 2, %v4212_v30  ;;  %v3859_v31 = vadd.f32 0.041666646, %v3827_v9  ;;  %v3476_v8 = vmul.f32 -0.00019515296, %v3412_v49  ;;  %v3285_v43 = vmul.f32 0.0004837513, %v3157_v35 }
 0x351   :  { %v3158_v3 = vfloor.f32 %v3126_v51  ;;  %v3603_v1 = vmul.f32 %v3571_v34, %v3443_v40  ;;  %v3668_v2 = vmul.f32 0.5, %v3412_v49  ;;  %v3764_v33 = vmul.f32 2.4433157e-05, %v3412_v49 }
 0x352   :  { %v8968_v57 = vcvt.f32.s32 %v6117_v28  ;;  %v3891_v11 = vmul.f32 %v3859_v31, %v3731_v18  ;;  %v3508_v54 = vadd.f32 0.008332161, %v3476_v8  ;;  %v3253_v29 = vsub.f32 %v8847_v63, %v3221_v21 }
 0x353   :  { %v3349_v58 = vmul.f32 7.54979e-08, %v3157_v35  ;;  %v8971_v42 = vadd.f32 %v3603_v1, %v3379_v10  ;;  %v3444_v19 = vmul.f32 %v3412_v49, %v3380_v32  ;;  %v3796_v14 = vadd.f32 -0.0013887316, %v3764_v33 }
 0x354   :  { %12341 = vst [vmem:[#allocation24_spill] sm:$0xff] %v8968_v57  ;;  %v6119_v39 = vtrunc.f32 %v3158_v3  ;;  %v8973_v30 = vadd.f32 %v3891_v11, %v3699_v6  ;;  %v3540_v9 = vmul.f32 %v3508_v54, %v3412_v49  ;;  %v3732_v24 = vmul.f32 %v3412_v49, %v3412_v49 }
 0x355   :  { %v3317_v51 = vsub.f32 %v3253_v29, %v3285_v43  ;;  %v3700_v40 = vsub.f32 1.0, %v3668_v2  ;;  %v3828_v34 = vmul.f32 %v3796_v14, %v3412_v49  ;;  %v3957_v28 = vand.u32 1, %v8968_v57 }
 0x356   :  { %v3222_v25 = vmul.f32 1.5703125, %v3158_v3  ;;  %v4051_v63 = vsel %vm8957_vm13, %v8971_v42, %v8973_v30  ;;  %v3572_v10 = vadd.f32 -0.16666655, %v3540_v9  ;;  %v3286_v18 = vmul.f32 0.0004837513, %v3158_v3 }
 0x357   :  { %v3381_v35 = vsub.f32 %v3317_v51, %v3349_v58  ;;  %v4307_v21 = vsub.f32 0.0, %v4051_v63  ;;  %v3860_v31 = vadd.f32 0.041666646, %v3828_v34  ;;  %v4213_v6 = vadd.s32 1, %v8968_v57 }
 0x358   :  { %v3254_v8 = vsub.f32 %v8850_v17, %v3222_v25  ;;  %v3604_v43 = vmul.f32 %v3572_v10, %v3444_v19  ;;  %v8982_v49 = vcvt.f32.s32 %v6119_v39  ;;  %v3350_v2 = vmul.f32 7.54979e-08, %v3158_v3 }
 0x359   :  { %v3413_v1 = vmul.f32 %v3381_v35, %v3381_v35  ;;  %v4339_v33 = vsel %vm8963_vm1, %v4307_v21, %v4051_v63  ;;  %v3892_v11 = vmul.f32 %v3860_v31, %v3732_v24  ;;  %vm8986_vm7 = vcmp.ne.s32.totalorder %v3956_v59, 0 }
 0x35a   :  { %12342 = vst [vmem:[#allocation23_spill] sm:$0xff] %v8982_v49  ;;  %v3318_v29 = vsub.f32 %v3254_v8, %v3286_v18  ;;  %v4371_v58 = vmul.f32 %v4339_v33, %v11834_v45  ;;  %v8991_v14 = vadd.f32 %v3604_v43, %v3380_v32  ;;  %vm8993_vm3 = vcmp.ne.s32.totalorder %v4244_v16, 0 }
 0x35b   :  { %v3477_v17 = vmul.f32 -0.00019515296, %v3413_v1  ;;  %v8997_v39 = vadd.f32 %v3892_v11, %v3700_v40  ;;  %v3669_v3 = vmul.f32 0.5, %v3413_v1  ;;  %v3765_v41 = vmul.f32 2.4433157e-05, %v3413_v1 }
 0x35c   :  { %v4245_v19 = vand.u32 2, %v4213_v6  ;;  %4404 = vst [vmem:[#allocation8 + $0x218] sm:$0xff] %v4371_v58  ;;  %vm8999_vm4 = vcmp.ne.s32.totalorder %v3957_v28, 0  ;;  %v12347_v59 = vmov 0  ;;  %v3382_v9 = vsub.f32 %v3318_v29, %v3350_v2  ;;  %v6345_v29 = vld [vmem:[#allocation5 + $0x40] sm:$0xff] }
 0x35d   :  { %v3509_v24 = vadd.f32 0.008332161, %v3477_v17  ;;  %v12348_v59 = vsel %vm8999_vm4, 4294967295, %v12347_v59  ;;  %v3958_v32 = vand.u32 1, %v8982_v49  ;;  %v4052_v16 = vsel %vm8986_vm7, %v8991_v14, %v8997_v39 }
 0x35e   :  { %12349 = vst [vmem:[#allocation19_spill] sm:$0xff] %v12348_v59  ;;  %v3797_v51 = vadd.f32 -0.0013887316, %v3765_v41  ;;  %v4214_v40 = vadd.s32 1, %v8982_v49  ;;  %v3127_v34 = vadd.f32 0.5, %v8950_v53  ;;  %v4308_v63 = vsub.f32 0.0, %v4052_v16 }
 0x35f   :  { %v3445_v10 = vmul.f32 %v3413_v1, %v3381_v35  ;;  %v3541_v18 = vmul.f32 %v3509_v24, %v3413_v1  ;;  %v3414_v28 = vmul.f32 %v3382_v9, %v3382_v9  ;;  %v3701_v21 = vsub.f32 1.0, %v3669_v3  ;;  %v6346_v41 = vld [vmem:[#allocation5 + $0x48] sm:$0xff] }
 0x360   :  { %v3733_v31 = vmul.f32 %v3413_v1, %v3413_v1  ;;  %v3829_v6 = vmul.f32 %v3797_v51, %v3413_v1  ;;  %vm9010_vm6 = vcmp.ne.s32.totalorder %v4245_v19, 0  ;;  %v3159_v43 = vfloor.f32 %v3127_v34 }
 0x361   :  { %v4340_v2 = vsel %vm8993_vm3, %v4308_v63, %v4052_v16  ;;  %v3573_v33 = vadd.f32 -0.16666655, %v3541_v18  ;;  %v3478_v11 = vmul.f32 -0.00019515296, %v3414_v28  ;;  %v9017_v53 = vmul.f32 %v6345_v29, %v8831_v26 }
 0x362   :  { %v4372_v58 = vmul.f32 %v4340_v2, %v12201_v27  ;;  %v3861_v17 = vadd.f32 0.041666646, %v3829_v6  ;;  %v3446_v3 = vmul.f32 %v3414_v28, %v3382_v9  ;;  %v9021_v1 = vmul.f32 %v6346_v41, %v8831_v26 }
 0x363   :  { %v3605_v19 = vmul.f32 %v3573_v33, %v3445_v10  ;;  %v3510_v24 = vadd.f32 0.008332161, %v3478_v11  ;;  %v3766_v51 = vmul.f32 2.4433157e-05, %v3414_v28  ;;  %v6121_v34 = vtrunc.f32 %v3159_v43 }
 0x364   :  { %4405 = vst [vmem:[#allocation8 + $0x220] sm:$0xff] %v4372_v58  ;;  %v3893_v25 = vmul.f32 %v3861_v17, %v3733_v31  ;;  %v3670_v16 = vmul.f32 0.5, %v3414_v28  ;;  %v3223_v63 = vmul.f32 1.5703125, %v3159_v43  ;;  %v3287_v18 = vmul.f32 0.0004837513, %v3159_v43 }
 0x365   :  { %v9023_v49 = vadd.f32 %v3605_v19, %v3381_v35  ;;  %v3542_v29 = vmul.f32 %v3510_v24, %v3414_v28  ;;  %v3798_v57 = vadd.f32 -0.0013887316, %v3766_v51  ;;  %v9025_v2 = vcvt.f32.s32 %v6121_v34 }
 0x366   :  { %v9027_v6 = vadd.f32 %v3893_v25, %v3701_v21  ;;  %v3255_v41 = vsub.f32 %v8869_v20, %v3223_v63  ;;  %v3351_v27 = vmul.f32 7.54979e-08, %v3159_v43  ;;  %v3096_v10 = vmul.f32 0.63661975, %v9017_v53 }
 0x367   :  { %12352 = vst [vmem:[#allocation34_spill] sm:$0xff] %v9025_v2  ;;  %v3574_v33 = vadd.f32 -0.16666655, %v3542_v29  ;;  %v3734_v11 = vmul.f32 %v3414_v28, %v3414_v28  ;;  %v3830_v58 = vmul.f32 %v3798_v57, %v3414_v28  ;;  %v4246_v31 = vand.u32 2, %v4214_v40 }
 0x368   :  { %v4053_v35 = vsel %vm8999_vm4, %v9023_v49, %v9027_v6  ;;  %v3319_v17 = vsub.f32 %v3255_v41, %v3287_v18  ;;  %v3128_v19 = vadd.f32 0.5, %v3096_v10  ;;  %v3097_v24 = vmul.f32 0.63661975, %v9021_v1 }
 0x369   :  { %v4309_v21 = vsub.f32 0.0, %v4053_v35  ;;  %v3606_v51 = vmul.f32 %v3574_v33, %v3446_v3  ;;  %v3702_v34 = vsub.f32 1.0, %v3670_v16  ;;  %v3862_v20 = vadd.f32 0.041666646, %v3830_v58 }
 0x36a   :  { %v3383_v43 = vsub.f32 %v3319_v17, %v3351_v27  ;;  %v4215_v25 = vadd.s32 1, %v9025_v2  ;;  %v3160_v63 = vfloor.f32 %v3128_v19  ;;  %vm9041_vm10 = vcmp.ne.s32.totalorder %v3958_v32, 0 }
 0x36b   :  { %v4341_v57 = vsel %vm9010_vm6, %v4309_v21, %v4053_v35  ;;  %v9039_v40 = vadd.f32 %v3606_v51, %v3382_v9  ;;  %v3894_v28 = vmul.f32 %v3862_v20, %v3734_v11  ;;  %v12354_v29 = vmov 0 }
 0x36c   :  { %v12355_v29 = vsel %vm9041_vm10, 4294967295, %v12354_v29  ;;  %v4373_v18 = vmul.f32 %v4341_v57, %v12203_v46  ;;  %v3415_v41 = vmul.f32 %v3383_v43, %v3383_v43  ;;  %v6123_v3 = vtrunc.f32 %v3160_v63 }
 0x36d   :  { %12353 = vst [vmem:[#allocation35_spill] sm:$0xff] %v9039_v40  ;;  %12356 = vst [vmem:[#allocation28_spill] sm:$0xff] %v12355_v29  ;;  %v3129_v16 = vadd.f32 0.5, %v3097_v24  ;;  %v9046_v10 = vadd.f32 %v3894_v28, %v3702_v34  ;;  %vm9048_vm2 = vcmp.ne.s32.totalorder %v4246_v31, 0  ;;  %v3224_v8 = vmul.f32 1.5703125, %v3160_v63 }
 0x36e   :  { %v3288_v33 = vmul.f32 0.0004837513, %v3160_v63  ;;  %4406 = vst [vmem:[#allocation8 + $0x228] sm:$0xff] %v4373_v18  ;;  %v3479_v9 = vmul.f32 -0.00019515296, %v3415_v41  ;;  %v3959_v32 = vand.u32 1, %v9025_v2  ;;  %v4247_v11 = vand.u32 2, %v4215_v25 }
 0x36f   :  { %12357 = vst [vmem:[#allocation32_spill] sm:$0xff] %v9046_v10  ;;  %v3352_v58 = vmul.f32 7.54979e-08, %v3160_v63  ;;  %v4054_v35 = vsel %vm9041_vm10, %v9039_v40, %v9046_v10  ;;  %v3671_v17 = vmul.f32 0.5, %v3415_v41  ;;  %v3767_v19 = vmul.f32 2.4433157e-05, %v3415_v41 }
 0x370   :  { %v3256_v31 = vsub.f32 %v9017_v53, %v3224_v8  ;;  %v4310_v24 = vsub.f32 0.0, %v4054_v35  ;;  %v3511_v21 = vadd.f32 0.008332161, %v3479_v9  ;;  %v9058_v51 = vcvt.f32.s32 %v6123_v3 }
 0x371   :  { %v3161_v34 = vfloor.f32 %v3129_v16  ;;  %v3447_v20 = vmul.f32 %v3415_v41, %v3383_v43  ;;  %v3735_v57 = vmul.f32 %v3415_v41, %v3415_v41  ;;  %v3799_v28 = vadd.f32 -0.0013887316, %v3767_v19 }
 0x372   :  { %12360 = vst [vmem:[#allocation27_spill] sm:$0xff] %v9058_v51  ;;  %v3320_v18 = vsub.f32 %v3256_v31, %v3288_v33  ;;  %v4342_v25 = vsel %vm9048_vm2, %v4310_v24, %v4054_v35  ;;  %v3543_v63 = vmul.f32 %v3511_v21, %v3415_v41  ;;  %v3703_v10 = vsub.f32 1.0, %v3671_v17  ;;  %v6347_v21 = vld [vmem:[#allocation5 + $0x50] sm:$0xff] }
 0x373   :  { %v6125_v46 = vtrunc.f32 %v3161_v34  ;;  %v3225_v2 = vmul.f32 1.5703125, %v3161_v34  ;;  %v4374_v29 = vmul.f32 %v4342_v25, %v12209_v0  ;;  %v3831_v40 = vmul.f32 %v3799_v28, %v3415_v41 }
 0x374   :  { %v3384_v53 = vsub.f32 %v3320_v18, %v3352_v58  ;;  %v3575_v8 = vadd.f32 -0.16666655, %v3543_v63  ;;  %v3960_v3 = vand.u32 1, %v9058_v51  ;;  %v4216_v16 = vadd.s32 1, %v9058_v51 }
 0x375   :  { %v3257_v9 = vsub.f32 %v9021_v1, %v3225_v2  ;;  %4407 = vst [vmem:[#allocation8 + $0x230] sm:$0xff] %v4374_v29  ;;  %v3863_v33 = vadd.f32 0.041666646, %v3831_v40  ;;  %v9066_v27 = vcvt.f32.s32 %v6125_v46  ;;  %v3289_v35 = vmul.f32 0.0004837513, %v3161_v34 }
 0x376   :  { %v3416_v19 = vmul.f32 %v3384_v53, %v3384_v53  ;;  %v3607_v31 = vmul.f32 %v3575_v8, %v3447_v20  ;;  %v3353_v24 = vmul.f32 7.54979e-08, %v3161_v34  ;;  %v9069_v17 = vmul.f32 %v6347_v21, %v8831_v26 }
 0x377   :  { %12361 = vst [vmem:[#allocation40_spill] sm:$0xff] %v9066_v27  ;;  %v3895_v41 = vmul.f32 %v3863_v33, %v3735_v57  ;;  %vm9071_vm0 = vcmp.ne.s32.totalorder %v3959_v32, 0  ;;  %v12362_v58 = vmov 0  ;;  %vm9075_vm12 = vcmp.ne.s32.totalorder %v4247_v11, 0 }
 0x378   :  { %v12363_v58 = vsel %vm9071_vm0, 4294967295, %v12362_v58  ;;  %v3480_v1 = vmul.f32 -0.00019515296, %v3416_v19  ;;  %v9079_v2 = vadd.f32 %v3607_v31, %v3383_v43  ;;  %v3768_v46 = vmul.f32 2.4433157e-05, %v3416_v19 }
 0x379   :  { %12364 = vst [vmem:[#allocation37_spill] sm:$0xff] %v12363_v58  ;;  %v4248_v40 = vand.u32 2, %v4216_v16  ;;  %v3321_v29 = vsub.f32 %v3257_v9, %v3289_v35  ;;  %v9081_v34 = vadd.f32 %v3895_v41, %v3703_v10  ;;  %vm9083_vm5 = vcmp.ne.s32.totalorder %v3960_v3, 0  ;;  %v6348_v16 = vld [vmem:[#allocation5 + $0x58] sm:$0xff] }
 0x37a   :  { %12367 = vst [vmem:[#allocation21_spill] sm:$0xff] %v9079_v2  ;;  %v3512_v20 = vadd.f32 0.008332161, %v3480_v1  ;;  %v12369_v18 = vmov 0  ;;  %v3672_v57 = vmul.f32 0.5, %v3416_v19  ;;  %v3448_v8 = vmul.f32 %v3416_v19, %v3384_v53 }
 0x37b   :  { %12368 = vst [vmem:[#allocation33_spill] sm:$0xff] %v9081_v34  ;;  %v12370_v18 = vsel %vm9083_vm5, 4294967295, %v12369_v18  ;;  %v3800_v11 = vadd.f32 -0.0013887316, %v3768_v46  ;;  %v3385_v25 = vsub.f32 %v3321_v29, %v3353_v24  ;;  %v3098_v63 = vmul.f32 0.63661975, %v9069_v17 }
 0x37c   :  { %12371 = vst [vmem:[#allocation36_spill] sm:$0xff] %v12370_v18  ;;  %v4055_v43 = vsel %vm9071_vm0, %v9079_v2, %v9081_v34  ;;  %v3544_v10 = vmul.f32 %v3512_v20, %v3416_v19  ;;  %v9094_v3 = vmul.f32 %v6348_v16, %v8831_v26  ;;  %v3736_v33 = vmul.f32 %v3416_v19, %v3416_v19 }
 0x37d   :  { %v4311_v9 = vsub.f32 0.0, %v4055_v43  ;;  %v3832_v35 = vmul.f32 %v3800_v11, %v3416_v19  ;;  %vm9096_vm15 = vcmp.ne.s32.totalorder %v4248_v40, 0  ;;  %v3417_v24 = vmul.f32 %v3385_v25, %v3385_v25  ;;  %v6349_v11 = vld [vmem:[#allocation5 + $0x60] sm:$0xff] }
 0x37e   :  { %v3576_v21 = vadd.f32 -0.16666655, %v3544_v10  ;;  %v4217_v41 = vadd.s32 1, %v9066_v27  ;;  %v3130_v1 = vadd.f32 0.5, %v3098_v63  ;;  %v3099_v46 = vmul.f32 0.63661975, %v9094_v3 }
 0x37f   :  { %v4343_v29 = vsel %vm9075_vm12, %v4311_v9, %v4055_v43  ;;  %v3704_v20 = vsub.f32 1.0, %v3672_v57  ;;  %v3864_v16 = vadd.f32 0.041666646, %v3832_v35  ;;  %v3481_v32 = vmul.f32 -0.00019515296, %v3417_v24 }
 0x380   :  { %v4375_v51 = vmul.f32 %v4343_v29, %v12213_v22  ;;  %v3608_v19 = vmul.f32 %v3576_v21, %v3448_v8  ;;  %v3673_v40 = vmul.f32 0.5, %v3417_v24  ;;  %v9106_v0 = vmul.f32 %v6349_v11, %v8831_v26 }
 0x381   :  { %v3896_v10 = vmul.f32 %v3864_v16, %v3736_v33  ;;  %v3513_v58 = vadd.f32 0.008332161, %v3481_v32  ;;  %v3769_v34 = vmul.f32 2.4433157e-05, %v3417_v24  ;;  %v3162_v63 = vfloor.f32 %v3130_v1 }
 0x382   :  { %4408 = vst [vmem:[#allocation8 + $0x238] sm:$0xff] %v4375_v51  ;;  %v9108_v2 = vadd.f32 %v3608_v19, %v3384_v53  ;;  %v3449_v28 = vmul.f32 %v3417_v24, %v3385_v25  ;;  %v3737_v43 = vmul.f32 %v3417_v24, %v3417_v24  ;;  %v3131_v57 = vadd.f32 0.5, %v3099_v46 }
 0x383   :  { %v9110_v9 = vadd.f32 %v3896_v10, %v3704_v20  ;;  %v3545_v35 = vmul.f32 %v3513_v58, %v3417_v24  ;;  %v3801_v29 = vadd.f32 -0.0013887316, %v3769_v34  ;;  %v6127_v8 = vtrunc.f32 %v3162_v63 }
 0x384   :  { %12374 = vst [vmem:[#allocation46_spill] sm:$0xff] %v9108_v2  ;;  %v3705_v21 = vsub.f32 1.0, %v3673_v40  ;;  %v3226_v22 = vmul.f32 1.5703125, %v3162_v63  ;;  %v3290_v59 = vmul.f32 0.0004837513, %v3162_v63  ;;  %v3163_v11 = vfloor.f32 %v3131_v57 }
 0x385   :  { %12375 = vst [vmem:[#allocation38_spill] sm:$0xff] %v9110_v9  ;;  %v4056_v32 = vsel %vm9083_vm5, %v9108_v2, %v9110_v9  ;;  %v3577_v51 = vadd.f32 -0.16666655, %v3545_v35  ;;  %v3833_v53 = vmul.f32 %v3801_v29, %v3417_v24  ;;  %v3354_v33 = vmul.f32 7.54979e-08, %v3162_v63 }
 0x386   :  { %v4312_v1 = vsub.f32 0.0, %v4056_v32  ;;  %v9116_v16 = vcvt.f32.s32 %v6127_v8  ;;  %v3258_v46 = vsub.f32 %v9069_v17, %v3226_v22  ;;  %v3227_v58 = vmul.f32 1.5703125, %v3163_v11 }
 0x387   :  { %v3609_v34 = vmul.f32 %v3577_v51, %v3449_v28  ;;  %v3865_v20 = vadd.f32 0.041666646, %v3833_v53  ;;  %v6129_v19 = vtrunc.f32 %v3163_v11  ;;  %v3100_v40 = vmul.f32 0.63661975, %v9106_v0 }
 0x388   :  { %12376 = vst [vmem:[#allocation48_spill] sm:$0xff] %v9116_v16  ;;  %v4344_v10 = vsel %vm9096_vm15, %v4312_v1, %v4056_v32  ;;  %v3322_v57 = vsub.f32 %v3258_v46, %v3290_v59  ;;  %v3259_v18 = vsub.f32 %v9094_v3, %v3227_v58  ;;  %v4249_v29 = vand.u32 2, %v4217_v41 }
 0x389   :  { %v4376_v24 = vmul.f32 %v4344_v10, %v12214_v52  ;;  %v9124_v63 = vadd.f32 %v3609_v34, %v3385_v25  ;;  %v3897_v35 = vmul.f32 %v3865_v20, %v3737_v43  ;;  %v12378_v22 = vand.u32 1, %v9066_v27 }
 0x38a   :  { %v12379_v17 = vmov 0  ;;  %v3386_v28 = vsub.f32 %v3322_v57, %v3354_v33  ;;  %v4218_v8 = vadd.s32 1, %v9116_v16  ;;  %v3291_v31 = vmul.f32 0.0004837513, %v3163_v11 }
 0x38b   :  { %12377 = vst [vmem:[#allocation41_spill] sm:$0xff] %v9124_v63  ;;  %vm9128_vm11 = vcmp.ne.s32.totalorder %v12378_v22, 0  ;;  %4409 = vst [vmem:[#allocation8 + $0x240] sm:$0xff] %v4376_v24  ;;  %v9133_v59 = vadd.f32 %v3897_v35, %v3705_v21  ;;  %v9135_v3 = vcvt.f32.s32 %v6129_v19  ;;  %v3355_v32 = vmul.f32 7.54979e-08, %v3163_v11  ;;  %v6350_v21 = vld [vmem:[#allocation5 + $0x68] sm:$0xff] }
 0x38c   :  { %v12380_v17 = vsel %vm9128_vm11, 4294967295, %v12379_v17  ;;  %v3132_v25 = vadd.f32 0.5, %v3100_v40  ;;  %v3418_v51 = vmul.f32 %v3386_v28, %v3386_v28  ;;  %v3962_v41 = vand.u32 1, %v9116_v16 }
 0x38d   :  { %12381 = vst [vmem:[#allocation49_spill] sm:$0xff] %v12380_v17  ;;  %12382 = vst [vmem:[#allocation29_spill] sm:$0xff] %v9133_v59  ;;  %v3323_v43 = vsub.f32 %v3259_v18, %v3291_v31  ;;  %v4057_v53 = vsel %vm9128_vm11, %v9124_v63, %v9133_v59  ;;  %vm4281_vm1 = vcmp.ne.s32.totalorder %v4249_v29, 0  ;;  %v4250_v58 = vand.u32 2, %v4218_v8 }
 0x38e   :  { %12383 = vst [vmem:[#allocation55_spill] sm:$0xff] %v9135_v3  ;;  %v3164_v33 = vfloor.f32 %v3132_v25  ;;  %v4313_v1 = vsub.f32 0.0, %v4057_v53  ;;  %v3482_v46 = vmul.f32 -0.00019515296, %v3418_v51  ;;  %v9143_v34 = vmul.f32 %v6350_v21, %v8831_v26 }
 0x38f   :  { %v3770_v11 = vmul.f32 2.4433157e-05, %v3418_v51  ;;  %v3387_v20 = vsub.f32 %v3323_v43, %v3355_v32  ;;  %v3963_v19 = vand.u32 1, %v9135_v3  ;;  %v4219_v18 = vadd.s32 1, %v9135_v3  ;;  %v12575_v38 = vld [vmem:[#allocation48_spill] sm:$0xff] }
 0x390   :  { %v4345_v40 = vsel %vm4281_vm1, %v4313_v1, %v4057_v53  ;;  %v3514_v10 = vadd.f32 0.008332161, %v3482_v46  ;;  %v3674_v57 = vmul.f32 0.5, %v3418_v51  ;;  %vm9147_vm3 = vcmp.ne.s32.totalorder %v3962_v41, 0 }
 0x391   :  { %v6131_v35 = vtrunc.f32 %v3164_v33  ;;  %v4377_v29 = vmul.f32 %v4345_v40, %v12223_v48  ;;  %v3802_v22 = vadd.f32 -0.0013887316, %v3770_v11  ;;  %v3419_v8 = vmul.f32 %v3387_v20, %v3387_v20 }
 0x392   :  { %v3228_v31 = vmul.f32 1.5703125, %v3164_v33  ;;  %v3450_v25 = vmul.f32 %v3418_v51, %v3386_v28  ;;  %v3546_v21 = vmul.f32 %v3514_v10, %v3418_v51  ;;  %v3292_v32 = vmul.f32 0.0004837513, %v3164_v33 }
 0x393   :  { %v3101_v43 = vmul.f32 0.63661975, %v9143_v34  ;;  %4410 = vst [vmem:[#allocation8 + $0x248] sm:$0xff] %v4377_v29  ;;  %v3738_v3 = vmul.f32 %v3418_v51, %v3418_v51  ;;  %v3834_v53 = vmul.f32 %v3802_v22, %v3418_v51  ;;  %vm9153_vm6 = vcmp.ne.s32.totalorder %v4250_v58, 0 }
 0x394   :  { %v3483_v41 = vmul.f32 -0.00019515296, %v3419_v8  ;;  %v4251_v46 = vand.u32 2, %v4219_v18  ;;  %v3578_v52 = vadd.f32 -0.16666655, %v3546_v21  ;;  %v3260_v11 = vsub.f32 %v9106_v0, %v3228_v31 }
 0x395   :  { %v3771_v16 = vmul.f32 2.4433157e-05, %v3419_v8  ;;  %v3356_v40 = vmul.f32 7.54979e-08, %v3164_v33  ;;  %v3706_v48 = vsub.f32 1.0, %v3674_v57  ;;  %vm9158_vm2 = vcmp.ne.s32.totalorder %v3963_v19, 0 }
 0x396   :  { %v3866_v27 = vadd.f32 0.041666646, %v3834_v53  ;;  %v3515_v10 = vadd.f32 0.008332161, %v3483_v41  ;;  %v12388_v17 = vmov 0  ;;  %v9162_v29 = vcvt.f32.s32 %v6131_v35 }
 0x397   :  { %v12389_v17 = vsel %vm9158_vm2, 4294967295, %v12388_v17  ;;  %v3610_v51 = vmul.f32 %v3578_v52, %v3450_v25  ;;  %v3675_v58 = vmul.f32 0.5, %v3419_v8  ;;  %v3803_v22 = vadd.f32 -0.0013887316, %v3771_v16 }
 0x398   :  { %12390 = vst [vmem:[#allocation47_spill] sm:$0xff] %v12389_v17  ;;  %12391 = vst [vmem:[#allocation50_spill] sm:$0xff] %v9162_v29  ;;  %v3324_v59 = vsub.f32 %v3260_v11, %v3292_v32  ;;  %v3898_v63 = vmul.f32 %v3866_v27, %v3738_v3  ;;  %v3451_v18 = vmul.f32 %v3419_v8, %v3387_v20  ;;  %v3133_v9 = vadd.f32 0.5, %v3101_v43  ;;  %v6351_v43 = vld [vmem:[#allocation5 + $0x70] sm:$0xff] }
 0x399   :  { %v3547_v21 = vmul.f32 %v3515_v10, %v3419_v8  ;;  %v9164_v2 = vadd.f32 %v3610_v51, %v3386_v28  ;;  %v3739_v0 = vmul.f32 %v3419_v8, %v3419_v8  ;;  %v3835_v33 = vmul.f32 %v3803_v22, %v3419_v8 }
 0x39a   :  { %v3388_v57 = vsub.f32 %v3324_v59, %v3356_v40  ;;  %v9166_v31 = vadd.f32 %v3898_v63, %v3706_v48  ;;  %vm9168_vm12 = vcmp.ne.s32.totalorder %v4251_v46, 0  ;;  %v3165_v52 = vfloor.f32 %v3133_v9  ;;  %v6352_v40 = vld [vmem:[#allocation5 + $0x78] sm:$0xff] }
 0x39b   :  { %v3579_v19 = vadd.f32 -0.16666655, %v3547_v21  ;;  %v3707_v35 = vsub.f32 1.0, %v3675_v58  ;;  %v3867_v16 = vadd.f32 0.041666646, %v3835_v33  ;;  %v3964_v27 = vand.u32 1, %v9162_v29 }
 0x39c   :  { %v3420_v25 = vmul.f32 %v3388_v57, %v3388_v57  ;;  %v4058_v28 = vsel %vm9147_vm3, %v9164_v2, %v9166_v31  ;;  %v4220_v48 = vadd.s32 1, %v9162_v29  ;;  %v3229_v63 = vmul.f32 1.5703125, %v3165_v52 }
 0x39d   :  { %v3611_v3 = vmul.f32 %v3579_v19, %v3451_v18  ;;  %v4314_v59 = vsub.f32 0.0, %v4058_v28  ;;  %v3899_v8 = vmul.f32 %v3867_v16, %v3739_v0  ;;  %v9179_v9 = vmul.f32 %v6351_v43, %v8831_v26 }
 0x39e   :  { %v3484_v32 = vmul.f32 -0.00019515296, %v3420_v25  ;;  %v3772_v46 = vmul.f32 2.4433157e-05, %v3420_v25  ;;  %v6133_v11 = vtrunc.f32 %v3165_v52  ;;  %v9184_v10 = vmul.f32 %v6352_v40, %v8831_v26 }
 0x39f   :  { %v9181_v41 = vadd.f32 %v3611_v3, %v3387_v20  ;;  %v4346_v51 = vsel %vm9153_vm6, %v4314_v59, %v4058_v28  ;;  %v9188_v58 = vadd.f32 %v3899_v8, %v3707_v35  ;;  %v3452_v22 = vmul.f32 %v3420_v25, %v3388_v57 }
 0x3a0   :  { %v3516_v18 = vadd.f32 0.008332161, %v3484_v32  ;;  %v4378_v21 = vmul.f32 %v4346_v51, %v12230_v55  ;;  %v3676_v0 = vmul.f32 0.5, %v3420_v25  ;;  %v3804_v33 = vadd.f32 -0.0013887316, %v3772_v46 }
 0x3a1   :  { %12394 = vst [vmem:[#allocation43_spill] sm:$0xff] %v9181_v41  ;;  %12395 = vst [vmem:[#allocation57_spill] sm:$0xff] %v9188_v58  ;;  %v3261_v20 = vsub.f32 %v9143_v34, %v3229_v63  ;;  %v4059_v19 = vsel %vm9158_vm2, %v9181_v41, %v9188_v58  ;;  %v3293_v3 = vmul.f32 0.0004837513, %v3165_v52  ;;  %v3357_v43 = vmul.f32 7.54979e-08, %v3165_v52 }
 0x3a2   :  { %v3548_v16 = vmul.f32 %v3516_v18, %v3420_v25  ;;  %4411 = vst [vmem:[#allocation8 + $0x250] sm:$0xff] %v4378_v21  ;;  %v4315_v1 = vsub.f32 0.0, %v4059_v19  ;;  %v3740_v35 = vmul.f32 %v3420_v25, %v3420_v25  ;;  %v3836_v28 = vmul.f32 %v3804_v33, %v3420_v25 }
 0x3a3   :  { %v4252_v59 = vand.u32 2, %v4220_v48  ;;  %v3325_v32 = vsub.f32 %v3261_v20, %v3293_v3  ;;  %v3102_v40 = vmul.f32 0.63661975, %v9179_v9  ;;  %v3103_v46 = vmul.f32 0.63661975, %v9184_v10 }
 0x3a4   :  { %v3580_v8 = vadd.f32 -0.16666655, %v3548_v16  ;;  %v4347_v34 = vsel %vm9168_vm12, %v4315_v1, %v4059_v19  ;;  %v3708_v63 = vsub.f32 1.0, %v3676_v0  ;;  %v3868_v51 = vadd.f32 0.041666646, %v3836_v28  ;;  %v6353_v1 = vld [vmem:[#allocation5 + $0x80] sm:$0xff] }
 0x3a5   :  { %v9200_v55 = vcvt.f32.s32 %v6133_v11  ;;  %v4379_v52 = vmul.f32 %v4347_v34, %v12236_v47  ;;  %v3389_v21 = vsub.f32 %v3325_v32, %v3357_v43  ;;  %v3134_v29 = vadd.f32 0.5, %v3102_v40 }
 0x3a6   :  { %v3612_v18 = vmul.f32 %v3580_v8, %v3452_v22  ;;  %v3900_v25 = vmul.f32 %v3868_v51, %v3740_v35  ;;  %v3135_v48 = vadd.f32 0.5, %v3103_v46  ;;  %vm9205_vm15 = vcmp.ne.s32.totalorder %v3964_v27, 0 }
 0x3a7   :  { %12396 = vst [vmem:[#allocation61_spill] sm:$0xff] %v9200_v55  ;;  %4412 = vst [vmem:[#allocation8 + $0x258] sm:$0xff] %v4379_v52  ;;  %v12398_v20 = vmov 0  ;;  %v3421_v53 = vmul.f32 %v3389_v21, %v3389_v21  ;;  %v3166_v19 = vfloor.f32 %v3134_v29  ;;  %vm9211_vm1 = vcmp.ne.s32.totalorder %v4252_v59, 0 }
 0x3a8   :  { %v9203_v33 = vadd.f32 %v3612_v18, %v3388_v57  ;;  %v12399_v20 = vsel %vm9205_vm15, 4294967295, %v12398_v20  ;;  %v9209_v0 = vadd.f32 %v3900_v25, %v3708_v63  ;;  %v3965_v22 = vand.u32 1, %v9200_v55 }
 0x3a9   :  { %12400 = vst [vmem:[#allocation54_spill] sm:$0xff] %v12399_v20  ;;  %v4221_v16 = vadd.s32 1, %v9200_v55  ;;  %v3453_v3 = vmul.f32 %v3421_v53, %v3389_v21  ;;  %v3485_v43 = vmul.f32 -0.00019515296, %v3421_v53  ;;  %v3167_v57 = vfloor.f32 %v3135_v48 }
 0x3aa   :  { %12397 = vst [vmem:[#allocation58_spill] sm:$0xff] %v9203_v33  ;;  %12401 = vst [vmem:[#allocation62_spill] sm:$0xff] %v9209_v0  ;;  %v9218_v27 = vmul.f32 %v6353_v1, %v8831_v26  ;;  %v4060_v29 = vsel %vm9205_vm15, %v9203_v33, %v9209_v0  ;;  %v3773_v35 = vmul.f32 2.4433157e-05, %v3421_v53  ;;  %v6135_v28 = vtrunc.f32 %v3166_v19 }
 0x3ab   :  { %v3230_v59 = vmul.f32 1.5703125, %v3166_v19  ;;  %v4316_v8 = vsub.f32 0.0, %v4060_v29  ;;  %v3517_v32 = vadd.f32 0.008332161, %v3485_v43  ;;  %v3677_v40 = vmul.f32 0.5, %v3421_v53 }
 0x3ac   :  { %v3294_v46 = vmul.f32 0.0004837513, %v3166_v19  ;;  %v3805_v34 = vadd.f32 -0.0013887316, %v3773_v35  ;;  %v9224_v63 = vcvt.f32.s32 %v6135_v28  ;;  %v3358_v52 = vmul.f32 7.54979e-08, %v3166_v19 }
 0x3ad   :  { %v3262_v51 = vsub.f32 %v9179_v9, %v3230_v59  ;;  %v4348_v18 = vsel %vm9211_vm1, %v4316_v8, %v4060_v29  ;;  %v3549_v25 = vmul.f32 %v3517_v32, %v3421_v53  ;;  %v6137_v48 = vtrunc.f32 %v3167_v57 }
 0x3ae   :  { %12404 = vst [vmem:[#allocation56_spill] sm:$0xff] %v9224_v63  ;;  %v3231_v1 = vmul.f32 1.5703125, %v3167_v57  ;;  %v4380_v47 = vmul.f32 %v4348_v18, %v12242_v13  ;;  %v3741_v55 = vmul.f32 %v3421_v53, %v3421_v53  ;;  %v3837_v20 = vmul.f32 %v3805_v34, %v3421_v53 }
 0x3af   :  { %v3326_v0 = vsub.f32 %v3262_v51, %v3294_v46  ;;  %v3581_v43 = vadd.f32 -0.16666655, %v3549_v25  ;;  %v4253_v33 = vand.u32 2, %v4221_v16  ;;  %v3104_v28 = vmul.f32 0.63661975, %v9218_v27  ;;  %v6355_v51 = vld [vmem:[#allocation5 + $0x90] sm:$0xff] }
 0x3b0   :  { %v3263_v35 = vsub.f32 %v9184_v10, %v3231_v1  ;;  %4413 = vst [vmem:[#allocation8 + $0x260] sm:$0xff] %v4380_v47  ;;  %v3709_v9 = vsub.f32 1.0, %v3677_v40  ;;  %v3869_v19 = vadd.f32 0.041666646, %v3837_v20  ;;  %v3295_v11 = vmul.f32 0.0004837513, %v3167_v57 }
 0x3b1   :  { %v3390_v59 = vsub.f32 %v3326_v0, %v3358_v52  ;;  %v3613_v29 = vmul.f32 %v3581_v43, %v3453_v3  ;;  %v9233_v8 = vadd.s32 1, %v9224_v63  ;;  %v9235_v32 = vcvt.f32.s32 %v6137_v48 }
 0x3b2   :  { %v3359_v18 = vmul.f32 7.54979e-08, %v3167_v57  ;;  %v3901_v53 = vmul.f32 %v3869_v19, %v3741_v55  ;;  %v3966_v16 = vand.u32 1, %v9224_v63  ;;  %v3327_v34 = vsub.f32 %v3263_v35, %v3295_v11  ;;  %v6354_v57 = vld [vmem:[#allocation5 + $0x88] sm:$0xff] }
 0x3b3   :  { %12405 = vst [vmem:[#allocation59_spill] sm:$0xff] %v9235_v32  ;;  %v3422_v46 = vmul.f32 %v3390_v59, %v3390_v59  ;;  %v9238_v10 = vadd.f32 %v3613_v29, %v3389_v21  ;;  %vm9240_vm6 = vcmp.ne.s32.totalorder %v3965_v22, 0  ;;  %v12407_v47 = vmov 0 }
 0x3b4   :  { %v12408_v47 = vsel %vm9240_vm6, 4294967295, %v12407_v47  ;;  %vm9244_vm12 = vcmp.ne.s32.totalorder %v4253_v33, 0  ;;  %v3136_v0 = vadd.f32 0.5, %v3104_v28  ;;  %v9248_v3 = vadd.f32 %v3901_v53, %v3709_v9 }
 0x3b5   :  { %12406 = vst [vmem:[#allocation52_spill] sm:$0xff] %v9238_v10  ;;  %12409 = vst [vmem:[#allocation70_spill] sm:$0xff] %v12408_v47  ;;  %v3486_v40 = vmul.f32 -0.00019515296, %v3422_v46  ;;  %v9251_v55 = vmul.f32 %v6354_v57, %v8831_v26  ;;  %v9254_v21 = vmul.f32 %v6355_v51, %v8831_v26  ;;  %v3774_v22 = vmul.f32 2.4433157e-05, %v3422_v46 }
 0x3b6   :  { %12412 = vst [vmem:[#allocation67_spill] sm:$0xff] %v9248_v3  ;;  %v4254_v52 = vand.u32 2, %v9233_v8  ;;  %v3391_v25 = vsub.f32 %v3327_v34, %v3359_v18  ;;  %v4223_v33 = vadd.s32 1, %v9235_v32  ;;  %v4061_v48 = vsel %vm9240_vm6, %v9238_v10, %v9248_v3 }
 0x3b7   :  { %v3518_v1 = vadd.f32 0.008332161, %v3486_v40  ;;  %v3678_v43 = vmul.f32 0.5, %v3422_v46  ;;  %vm9262_vm1 = vcmp.ne.s32.totalorder %v3966_v16, 0  ;;  %v12413_v35 = vmov 0 }
 0x3b8   :  { %v12414_v35 = vsel %vm9262_vm1, 4294967295, %v12413_v35  ;;  %v3168_v28 = vfloor.f32 %v3136_v0  ;;  %v4317_v9 = vsub.f32 0.0, %v4061_v48  ;;  %v3806_v19 = vadd.f32 -0.0013887316, %v3774_v22 }
 0x3b9   :  { %12415 = vst [vmem:[#allocation69_spill] sm:$0xff] %v12414_v35  ;;  %v3423_v11 = vmul.f32 %v3391_v25, %v3391_v25  ;;  %v3967_v29 = vand.u32 1, %v9235_v32  ;;  %v3454_v8 = vmul.f32 %v3422_v46, %v3390_v59  ;;  %v3550_v18 = vmul.f32 %v3518_v1, %v3422_v46 }
 0x3ba   :  { %v3742_v53 = vmul.f32 %v3422_v46, %v3422_v46  ;;  %v3232_v34 = vmul.f32 1.5703125, %v3168_v28  ;;  %v4349_v57 = vsel %vm9244_vm12, %v4317_v9, %v4061_v48  ;;  %v3838_v51 = vmul.f32 %v3806_v19, %v3422_v46 }
 0x3bb   :  { %v3487_v40 = vmul.f32 -0.00019515296, %v3423_v11  ;;  %v4255_v13 = vand.u32 2, %v4223_v33  ;;  %v4381_v16 = vmul.f32 %v4349_v57, %v12248_v37  ;;  %v3582_v63 = vadd.f32 -0.16666655, %v3550_v18 }
 0x3bc   :  { %v3710_v47 = vsub.f32 1.0, %v3678_v43  ;;  %v3296_v0 = vmul.f32 0.0004837513, %v3168_v28  ;;  %v3870_v3 = vadd.f32 0.041666646, %v3838_v51  ;;  %v3775_v10 = vmul.f32 2.4433157e-05, %v3423_v11 }
 0x3bd   :  { %v3519_v22 = vadd.f32 0.008332161, %v3487_v40  ;;  %v6139_v17 = vtrunc.f32 %v3168_v28  ;;  %4414 = vst [vmem:[#allocation8 + $0x268] sm:$0xff] %v4381_v16  ;;  %v3614_v32 = vmul.f32 %v3582_v63, %v3454_v8  ;;  %v3679_v1 = vmul.f32 0.5, %v3423_v11 }
 0x3be   :  { %v3264_v58 = vsub.f32 %v9218_v27, %v3232_v34  ;;  %v3360_v41 = vmul.f32 7.54979e-08, %v3168_v28  ;;  %v3902_v20 = vmul.f32 %v3870_v3, %v3742_v53  ;;  %v3455_v48 = vmul.f32 %v3423_v11, %v3391_v25 }
 0x3bf   :  { %v3551_v46 = vmul.f32 %v3519_v22, %v3423_v11  ;;  %v3807_v9 = vadd.f32 -0.0013887316, %v3775_v10  ;;  %v9271_v33 = vadd.f32 %v3614_v32, %v3390_v59  ;;  %v3743_v19 = vmul.f32 %v3423_v11, %v3423_v11 }
 0x3c0   :  { %v3328_v18 = vsub.f32 %v3264_v58, %v3296_v0  ;;  %v3105_v43 = vmul.f32 0.63661975, %v9251_v55  ;;  %v9274_v57 = vadd.f32 %v3902_v20, %v3710_v47  ;;  %v9276_v16 = vcvt.f32.s32 %v6139_v17 }
 0x3c1   :  { %v3583_v51 = vadd.f32 -0.16666655, %v3551_v46  ;;  %v3839_v40 = vmul.f32 %v3807_v9, %v3423_v11  ;;  %vm9278_vm12 = vcmp.ne.s32.totalorder %v4254_v52, 0  ;;  %v3711_v27 = vsub.f32 1.0, %v3679_v1  ;;  %v6356_v1 = vld [vmem:[#allocation5 + $0x98] sm:$0xff] }
 0x3c2   :  { %12416 = vst [vmem:[#allocation51_spill] sm:$0xff] %v9274_v57  ;;  %12417 = vst [vmem:[#allocation73_spill] sm:$0xff] %v9276_v16  ;;  %v3392_v3 = vsub.f32 %v3328_v18, %v3360_v41  ;;  %v3137_v28 = vadd.f32 0.5, %v3105_v43  ;;  %v4062_v58 = vsel %vm9262_vm1, %v9271_v33, %v9274_v57  ;;  %v3106_v10 = vmul.f32 0.63661975, %v9254_v21 }
 0x3c3   :  { %v3615_v59 = vmul.f32 %v3583_v51, %v3455_v48  ;;  %v3871_v32 = vadd.f32 0.041666646, %v3839_v40  ;;  %v4318_v47 = vsub.f32 0.0, %v4062_v58  ;;  %vm9287_vm6 = vcmp.ne.s32.totalorder %v3967_v29, 0 }
 0x3c4   :  { %v12420_v17 = vmov 0  ;;  %v3424_v52 = vmul.f32 %v3392_v3, %v3392_v3  ;;  %v3169_v11 = vfloor.f32 %v3137_v28  ;;  %vm9293_vm15 = vcmp.ne.s32.totalorder %v4255_v13, 0 }
 0x3c5   :  { %v12421_v17 = vsel %vm9287_vm6, 4294967295, %v12420_v17  ;;  %v9291_v8 = vadd.f32 %v3615_v59, %v3391_v25  ;;  %v3903_v41 = vmul.f32 %v3871_v32, %v3743_v19  ;;  %v3968_v34 = vand.u32 1, %v9276_v16 }
 0x3c6   :  { %12422 = vst [vmem:[#allocation72_spill] sm:$0xff] %v12421_v17  ;;  %v4350_v0 = vsel %vm9278_vm12, %v4318_v47, %v4062_v58  ;;  %v3488_v22 = vmul.f32 -0.00019515296, %v3424_v52  ;;  %v4224_v29 = vadd.s32 1, %v9276_v16  ;;  %v9302_v20 = vmul.f32 %v6356_v1, %v8831_v26 }
 0x3c7   :  { %12423 = vst [vmem:[#allocation74_spill] sm:$0xff] %v9291_v8  ;;  %v4382_v25 = vmul.f32 %v4350_v0, %v12254_v12  ;;  %v9305_v48 = vadd.f32 %v3903_v41, %v3711_v27  ;;  %v3776_v13 = vmul.f32 2.4433157e-05, %v3424_v52  ;;  %v3138_v46 = vadd.f32 0.5, %v3106_v10 }
 0x3c8   :  { %v3456_v9 = vmul.f32 %v3424_v52, %v3392_v3  ;;  %v3520_v19 = vadd.f32 0.008332161, %v3488_v22  ;;  %v6141_v18 = vtrunc.f32 %v3169_v11  ;;  %v3233_v43 = vmul.f32 1.5703125, %v3169_v11 }
 0x3c9   :  { %12426 = vst [vmem:[#allocation64_spill] sm:$0xff] %v9305_v48  ;;  %4415 = vst [vmem:[#allocation8 + $0x270] sm:$0xff] %v4382_v25  ;;  %v4063_v51 = vsel %vm9287_vm6, %v9291_v8, %v9305_v48  ;;  %v3680_v40 = vmul.f32 0.5, %v3424_v52  ;;  %v3808_v63 = vadd.f32 -0.0013887316, %v3776_v13  ;;  %v3297_v28 = vmul.f32 0.0004837513, %v3169_v11 }
 0x3ca   :  { %v4319_v58 = vsub.f32 0.0, %v4063_v51  ;;  %v3552_v59 = vmul.f32 %v3520_v19, %v3424_v52  ;;  %v3265_v27 = vsub.f32 %v9251_v55, %v3233_v43  ;;  %v3361_v32 = vmul.f32 7.54979e-08, %v3169_v11 }
 0x3cb   :  { %v3744_v47 = vmul.f32 %v3424_v52, %v3424_v52  ;;  %v3840_v10 = vmul.f32 %v3808_v63, %v3424_v52  ;;  %v9312_v41 = vcvt.f32.s32 %v6141_v18  ;;  %v3170_v0 = vfloor.f32 %v3138_v46 }
 0x3cc   :  { %v4351_v22 = vsel %vm9293_vm15, %v4319_v58, %v4063_v51  ;;  %v3584_v1 = vadd.f32 -0.16666655, %v3552_v59  ;;  %v3329_v25 = vsub.f32 %v3265_v27, %v3297_v28  ;;  %v3107_v12 = vmul.f32 0.63661975, %v9302_v20  ;;  %v6357_v27 = vld [vmem:[#allocation5 + $0xa0] sm:$0xff] }
 0x3cd   :  { %12427 = vst [vmem:[#allocation77_spill] sm:$0xff] %v9312_v41  ;;  %v4383_v13 = vmul.f32 %v4351_v22, %v12260_v5  ;;  %v3712_v16 = vsub.f32 1.0, %v3680_v40  ;;  %v3872_v37 = vadd.f32 0.041666646, %v3840_v10  ;;  %v6143_v19 = vtrunc.f32 %v3170_v0 }
 0x3ce   :  { %v3616_v17 = vmul.f32 %v3584_v1, %v3456_v9  ;;  %v4256_v55 = vand.u32 2, %v4224_v29  ;;  %v3393_v11 = vsub.f32 %v3329_v25, %v3361_v32  ;;  %v3234_v43 = vmul.f32 1.5703125, %v3170_v0 }
 0x3cf   :  { %4416 = vst [vmem:[#allocation8 + $0x278] sm:$0xff] %v4383_v13  ;;  %v3904_v52 = vmul.f32 %v3872_v37, %v3744_v47  ;;  %vm9318_vm12 = vcmp.ne.s32.totalorder %v3968_v34, 0  ;;  %v12428_v46 = vmov 0  ;;  %v4225_v53 = vadd.s32 1, %v9312_v41 }
 0x3d0   :  { %v12429_v46 = vsel %vm9318_vm12, 4294967295, %v12428_v46  ;;  %v3298_v18 = vmul.f32 0.0004837513, %v3170_v0  ;;  %v9323_v51 = vadd.f32 %v3616_v17, %v3392_v3  ;;  %v3425_v63 = vmul.f32 %v3393_v11, %v3393_v11 }
 0x3d1   :  { %12430 = vst [vmem:[#allocation71_spill] sm:$0xff] %v12429_v46  ;;  %v3969_v40 = vand.u32 1, %v9312_v41  ;;  %v3266_v28 = vsub.f32 %v9254_v21, %v3234_v43  ;;  %v9327_v9 = vadd.f32 %v3904_v52, %v3712_v16  ;;  %v9329_v29 = vcvt.f32.s32 %v6143_v19 }
 0x3d2   :  { %12431 = vst [vmem:[#allocation79_spill] sm:$0xff] %v9323_v51  ;;  %v3362_v58 = vmul.f32 7.54979e-08, %v3170_v0  ;;  %v3139_v37 = vadd.f32 0.5, %v3107_v12  ;;  %vm9331_vm15 = vcmp.ne.s32.totalorder %v4256_v55, 0  ;;  %v9336_v3 = vmul.f32 %v6357_v27, %v8831_v26 }
 0x3d3   :  { %12432 = vst [vmem:[#allocation60_spill] sm:$0xff] %v9327_v9  ;;  %12433 = vst [vmem:[#allocation85_spill] sm:$0xff] %v9329_v29  ;;  %v3489_v59 = vmul.f32 -0.00019515296, %v3425_v63  ;;  %v4064_v21 = vsel %vm9318_vm12, %v9323_v51, %v9327_v9  ;;  %v3777_v16 = vmul.f32 2.4433157e-05, %v3425_v63  ;;  %v3330_v32 = vsub.f32 %v3266_v28, %v3298_v18 }
 0x3d4   :  { %v4257_v17 = vand.u32 2, %v4225_v53  ;;  %v4320_v47 = vsub.f32 0.0, %v4064_v21  ;;  %v3681_v12 = vmul.f32 0.5, %v3425_v63  ;;  %vm9342_vm6 = vcmp.ne.s32.totalorder %v3969_v40, 0  ;;  %v12439_v53 = vld [vmem:[#allocation76_spill] sm:$0xff] }
 0x3d5   :  { %v3521_v10 = vadd.f32 0.008332161, %v3489_v59  ;;  %v12436_v0 = vmov 0  ;;  %v3809_v22 = vadd.f32 -0.0013887316, %v3777_v16  ;;  %v3394_v1 = vsub.f32 %v3330_v32, %v3362_v58 }
 0x3d6   :  { %v12437_v0 = vsel %vm9342_vm6, 4294967295, %v12436_v0  ;;  %v4226_v25 = vadd.s32 1, %v9329_v29  ;;  %v3171_v13 = vfloor.f32 %v3139_v37  ;;  %v4352_v19 = vsel %vm9331_vm15, %v4320_v47, %v4064_v21 }
 0x3d7   :  { %12438 = vst [vmem:[#allocation81_spill] sm:$0xff] %v12437_v0  ;;  %v3457_v55 = vmul.f32 %v3425_v63, %v3393_v11  ;;  %v3553_v43 = vmul.f32 %v3521_v10, %v3425_v63  ;;  %v3970_v52 = vand.u32 1, %v9329_v29  ;;  %v4384_v18 = vmul.f32 %v4352_v19, %v12439_v53  ;;  %v6358_v53 = vld [vmem:[#allocation5 + $0xa8] sm:$0xff]  ;;  %v12450_v0 = vld [vmem:[#allocation78_spill] sm:$0xff] }
 0x3d8   :  { %v3745_v28 = vmul.f32 %v3425_v63, %v3425_v63  ;;  %v3841_v59 = vmul.f32 %v3809_v22, %v3425_v63  ;;  %vm9351_vm12 = vcmp.ne.s32.totalorder %v4257_v17, 0  ;;  %v3426_v27 = vmul.f32 %v3394_v1, %v3394_v1 }
 0x3d9   :  { %v3585_v58 = vadd.f32 -0.16666655, %v3553_v43  ;;  %v3713_v16 = vsub.f32 1.0, %v3681_v12  ;;  %v3235_v32 = vmul.f32 1.5703125, %v3171_v13  ;;  %v3108_v37 = vmul.f32 0.63661975, %v9336_v3 }
 0x3da   :  { %4417 = vst [vmem:[#allocation8 + $0x280] sm:$0xff] %v4384_v18  ;;  %v3873_v34 = vadd.f32 0.041666646, %v3841_v59  ;;  %v3490_v21 = vmul.f32 -0.00019515296, %v3426_v27  ;;  %v4258_v47 = vand.u32 2, %v4226_v25  ;;  %v6145_v19 = vtrunc.f32 %v3171_v13 }
 0x3db   :  { %v3299_v10 = vmul.f32 0.0004837513, %v3171_v13  ;;  %v3617_v29 = vmul.f32 %v3585_v58, %v3457_v55  ;;  %v3778_v5 = vmul.f32 2.4433157e-05, %v3426_v27  ;;  %v9357_v63 = vmul.f32 %v6358_v53, %v8831_v26 }
 0x3dc   :  { %v3905_v17 = vmul.f32 %v3873_v34, %v3745_v28  ;;  %v3522_v22 = vadd.f32 0.008332161, %v3490_v21  ;;  %vm9359_vm15 = vcmp.ne.s32.totalorder %v3970_v52, 0  ;;  %v12442_v43 = vmov 0 }
 0x3dd   :  { %v12443_v43 = vsel %vm9359_vm15, 4294967295, %v12442_v43  ;;  %v3267_v12 = vsub.f32 %v9302_v20, %v3235_v32  ;;  %v3363_v18 = vmul.f32 7.54979e-08, %v3171_v13  ;;  %v9364_v59 = vadd.f32 %v3617_v29, %v3393_v11 }
 0x3de   :  { %12444 = vst [vmem:[#allocation84_spill] sm:$0xff] %v12443_v43  ;;  %v3458_v25 = vmul.f32 %v3426_v27, %v3394_v1  ;;  %v3682_v41 = vmul.f32 0.5, %v3426_v27  ;;  %v3810_v55 = vadd.f32 -0.0013887316, %v3778_v5  ;;  %v9366_v58 = vadd.f32 %v3905_v17, %v3713_v16  ;;  %v12454_v43 = vld [vmem:[#allocation83_spill] sm:$0xff] }
 0x3df   :  { %12445 = vst [vmem:[#allocation65_spill] sm:$0xff] %v9364_v59  ;;  %v3554_v46 = vmul.f32 %v3522_v22, %v3426_v27  ;;  %v3331_v9 = vsub.f32 %v3267_v12, %v3299_v10  ;;  %v3140_v53 = vadd.f32 0.5, %v3108_v37  ;;  %v3746_v51 = vmul.f32 %v3426_v27, %v3426_v27 }
 0x3e0   :  { %12446 = vst [vmem:[#allocation89_spill] sm:$0xff] %v9366_v58  ;;  %v3842_v28 = vmul.f32 %v3810_v55, %v3426_v27  ;;  %vm9368_vm1 = vcmp.ne.s32.totalorder %v4258_v47, 0  ;;  %v9372_v34 = vcvt.f32.s32 %v6145_v19  ;;  %v3109_v20 = vmul.f32 0.63661975, %v9357_v63 }
 0x3e1   :  { %v4065_v5 = vsel %vm9342_vm6, %v9364_v59, %v9366_v58  ;;  %v3586_v11 = vadd.f32 -0.16666655, %v3554_v46  ;;  %v3395_v29 = vsub.f32 %v3331_v9, %v3363_v18  ;;  %v3172_v13 = vfloor.f32 %v3140_v53 }
 0x3e2   :  { %12449 = vst [vmem:[#allocation86_spill] sm:$0xff] %v9372_v34  ;;  %v4321_v16 = vsub.f32 0.0, %v4065_v5  ;;  %v3714_v32 = vsub.f32 1.0, %v3682_v41  ;;  %v3874_v37 = vadd.f32 0.041666646, %v3842_v28  ;;  %v3141_v27 = vadd.f32 0.5, %v3109_v20 }
 0x3e3   :  { %v3618_v21 = vmul.f32 %v3586_v11, %v3458_v25  ;;  %v3427_v47 = vmul.f32 %v3395_v29, %v3395_v29  ;;  %v6147_v10 = vtrunc.f32 %v3172_v13  ;;  %v3236_v17 = vmul.f32 1.5703125, %v3172_v13 }
 0x3e4   :  { %v4353_v19 = vsel %vm9351_vm12, %v4321_v16, %v4065_v5  ;;  %v3906_v22 = vmul.f32 %v3874_v37, %v3746_v51  ;;  %v3971_v12 = vand.u32 1, %v9372_v34  ;;  %v4227_v55 = vadd.s32 1, %v9372_v34 }
 0x3e5   :  { %v4385_v46 = vmul.f32 %v4353_v19, %v12450_v0  ;;  %v9384_v9 = vadd.f32 %v3618_v21, %v3394_v1  ;;  %v3491_v18 = vmul.f32 -0.00019515296, %v3427_v47  ;;  %v3300_v41 = vmul.f32 0.0004837513, %v3172_v13 }
 0x3e6   :  { %v9386_v53 = vadd.f32 %v3906_v22, %v3714_v32  ;;  %v3683_v25 = vmul.f32 0.5, %v3427_v47  ;;  %v3779_v28 = vmul.f32 2.4433157e-05, %v3427_v47  ;;  %v3364_v20 = vmul.f32 7.54979e-08, %v3172_v13 }
 0x3e7   :  { %12451 = vst [vmem:[#allocation88_spill] sm:$0xff] %v9384_v9  ;;  %4418 = vst [vmem:[#allocation8 + $0x288] sm:$0xff] %v4385_v46  ;;  %v3523_v11 = vadd.f32 0.008332161, %v3491_v18  ;;  %v9388_v40 = vcvt.f32.s32 %v6147_v10  ;;  %v3268_v51 = vsub.f32 %v9336_v3, %v3236_v17  ;;  %v3173_v5 = vfloor.f32 %v3141_v27 }
 0x3e8   :  { %12452 = vst [vmem:[#allocation80_spill] sm:$0xff] %v9386_v53  ;;  %v4066_v1 = vsel %vm9359_vm15, %v9384_v9, %v9386_v53  ;;  %v3459_v16 = vmul.f32 %v3427_v47, %v3395_v29  ;;  %v3811_v37 = vadd.f32 -0.0013887316, %v3779_v28  ;;  %v4259_v21 = vand.u32 2, %v4227_v55 }
 0x3e9   :  { %12453 = vst [vmem:[#allocation93_spill] sm:$0xff] %v9388_v40  ;;  %v4322_v32 = vsub.f32 0.0, %v4066_v1  ;;  %v3555_v19 = vmul.f32 %v3523_v11, %v3427_v47  ;;  %v3747_v22 = vmul.f32 %v3427_v47, %v3427_v47  ;;  %v3332_v0 = vsub.f32 %v3268_v51, %v3300_v41 }
 0x3ea   :  { %v3715_v13 = vsub.f32 1.0, %v3683_v25  ;;  %v3843_v46 = vmul.f32 %v3811_v37, %v3427_v47  ;;  %v6149_v18 = vtrunc.f32 %v3173_v5  ;;  %v3237_v10 = vmul.f32 1.5703125, %v3173_v5 }
 0x3eb   :  { %v4354_v3 = vsel %vm9368_vm1, %v4322_v32, %v4066_v1  ;;  %v3587_v27 = vadd.f32 -0.16666655, %v3555_v19  ;;  %v3396_v17 = vsub.f32 %v3332_v0, %v3364_v20  ;;  %v3972_v34 = vand.u32 1, %v9388_v40  ;;  %v6359_v1 = vld [vmem:[#allocation5 + $0xb0] sm:$0xff] }
 0x3ec   :  { %v4386_v53 = vmul.f32 %v4354_v3, %v12454_v43  ;;  %v3875_v9 = vadd.f32 0.041666646, %v3843_v46  ;;  %v4228_v55 = vadd.s32 1, %v9388_v40  ;;  %v9400_v28 = vcvt.f32.s32 %v6149_v18 }
 0x3ed   :  { %v3619_v11 = vmul.f32 %v3587_v27, %v3459_v16  ;;  %v3428_v41 = vmul.f32 %v3396_v17, %v3396_v17  ;;  %v3269_v47 = vsub.f32 %v9357_v63, %v3237_v10  ;;  %v3301_v25 = vmul.f32 0.0004837513, %v3173_v5 }
 0x3ee   :  { %12455 = vst [vmem:[#allocation99_spill] sm:$0xff] %v9400_v28  ;;  %4419 = vst [vmem:[#allocation8 + $0x290] sm:$0xff] %v4386_v53  ;;  %v3907_v51 = vmul.f32 %v3875_v9, %v3747_v22  ;;  %v3365_v52 = vmul.f32 7.54979e-08, %v3173_v5  ;;  %v9404_v0 = vmul.f32 %v6359_v1, %v8831_v26  ;;  %vm9408_vm1 = vcmp.ne.s32.totalorder %v3971_v12, 0 }
 0x3ef   :  { %v9406_v20 = vadd.f32 %v3619_v11, %v3395_v29  ;;  %v12457_v37 = vmov 0  ;;  %vm9412_vm12 = vcmp.ne.s32.totalorder %v4259_v21, 0  ;;  %v3492_v16 = vmul.f32 -0.00019515296, %v3428_v41 }
 0x3f0   :  { %v12458_v37 = vsel %vm9408_vm1, 4294967295, %v12457_v37  ;;  %v9416_v63 = vadd.f32 %v3907_v51, %v3715_v13  ;;  %v3780_v53 = vmul.f32 2.4433157e-05, %v3428_v41  ;;  %v4260_v9 = vand.u32 2, %v4228_v55  ;;  %v6360_v55 = vld [vmem:[#allocation5 + $0xb8] sm:$0xff] }
 0x3f1   :  { %12456 = vst [vmem:[#allocation91_spill] sm:$0xff] %v9406_v20  ;;  %12459 = vst [vmem:[#allocation75_spill] sm:$0xff] %v12458_v37  ;;  %v3333_v5 = vsub.f32 %v3269_v47, %v3301_v25  ;;  %v3524_v19 = vadd.f32 0.008332161, %v3492_v16  ;;  %v3684_v22 = vmul.f32 0.5, %v3428_v41  ;;  %vm9418_vm15 = vcmp.ne.s32.totalorder %v3972_v34, 0 }
 0x3f2   :  { %12462 = vst [vmem:[#allocation90_spill] sm:$0xff] %v9416_v63  ;;  %v12463_v46 = vmov 0  ;;  %v3973_v29 = vand.u32 1, %v9400_v28  ;;  %v4067_v12 = vsel %vm9408_vm1, %v9406_v20, %v9416_v63  ;;  %v3812_v21 = vadd.f32 -0.0013887316, %v3780_v53  ;;  %v6361_v63 = vld [vmem:[#allocation5 + $0xc0] sm:$0xff] }
 0x3f3   :  { %v12464_v46 = vsel %vm9418_vm15, 4294967295, %v12463_v46  ;;  %v3397_v18 = vsub.f32 %v3333_v5, %v3365_v52  ;;  %v3110_v13 = vmul.f32 0.63661975, %v9404_v0  ;;  %v4323_v10 = vsub.f32 0.0, %v4067_v12 }
 0x3f4   :  { %12465 = vst [vmem:[#allocation102_spill] sm:$0xff] %v12464_v46  ;;  %v3460_v3 = vmul.f32 %v3428_v41, %v3396_v17  ;;  %v3556_v27 = vmul.f32 %v3524_v19, %v3428_v41  ;;  %v9429_v34 = vmul.f32 %v6360_v55, %v8831_v26  ;;  %v3748_v11 = vmul.f32 %v3428_v41, %v3428_v41  ;;  %v12468_v19 = vld [vmem:[#allocation92_spill] sm:$0xff] }
 0x3f5   :  { %v3844_v47 = vmul.f32 %v3812_v21, %v3428_v41  ;;  %vm9431_vm6 = vcmp.ne.s32.totalorder %v4260_v9, 0  ;;  %v3429_v51 = vmul.f32 %v3397_v18, %v3397_v18  ;;  %v3142_v1 = vadd.f32 0.5, %v3110_v13 }
 0x3f6   :  { %v4355_v52 = vsel %vm9412_vm12, %v4323_v10, %v4067_v12  ;;  %v3588_v16 = vadd.f32 -0.16666655, %v3556_v27  ;;  %v3716_v53 = vsub.f32 1.0, %v3684_v22  ;;  %v3111_v5 = vmul.f32 0.63661975, %v9429_v34 }
 0x3f7   :  { %v4387_v43 = vmul.f32 %v4355_v52, %v12468_v19  ;;  %v3876_v40 = vadd.f32 0.041666646, %v3844_v47  ;;  %v3493_v55 = vmul.f32 -0.00019515296, %v3429_v51  ;;  %v4229_v37 = vadd.s32 1, %v9400_v28 }
 0x3f8   :  { %v3620_v41 = vmul.f32 %v3588_v16, %v3460_v3  ;;  %v3461_v9 = vmul.f32 %v3429_v51, %v3397_v18  ;;  %v3781_v21 = vmul.f32 2.4433157e-05, %v3429_v51  ;;  %v9441_v20 = vmul.f32 %v6361_v63, %v8831_v26 }
 0x3f9   :  { %4420 = vst [vmem:[#allocation8 + $0x298] sm:$0xff] %v4387_v43  ;;  %v3908_v32 = vmul.f32 %v3876_v40, %v3748_v11  ;;  %v3525_v12 = vadd.f32 0.008332161, %v3493_v55  ;;  %vm9443_vm12 = vcmp.ne.s32.totalorder %v3973_v29, 0  ;;  %v12469_v22 = vmov 0 }
 0x3fa   :  { %v12470_v22 = vsel %vm9443_vm12, 4294967295, %v12469_v22  ;;  %v3174_v13 = vfloor.f32 %v3142_v1  ;;  %v3143_v10 = vadd.f32 0.5, %v3111_v5  ;;  %v9447_v27 = vadd.f32 %v3620_v41, %v3396_v17 }
 0x3fb   :  { %12471 = vst [vmem:[#allocation94_spill] sm:$0xff] %v12470_v22  ;;  %v3685_v47 = vmul.f32 0.5, %v3429_v51  ;;  %v3749_v52 = vmul.f32 %v3429_v51, %v3429_v51  ;;  %v3813_v3 = vadd.f32 -0.0013887316, %v3781_v21  ;;  %v9449_v16 = vadd.f32 %v3908_v32, %v3716_v53 }
 0x3fc   :  { %12472 = vst [vmem:[#allocation82_spill] sm:$0xff] %v9447_v27  ;;  %v3557_v19 = vmul.f32 %v3525_v12, %v3429_v51  ;;  %v6151_v28 = vtrunc.f32 %v3174_v13  ;;  %v3238_v63 = vmul.f32 1.5703125, %v3174_v13  ;;  %v3302_v43 = vmul.f32 0.0004837513, %v3174_v13 }
 0x3fd   :  { %12473 = vst [vmem:[#allocation101_spill] sm:$0xff] %v9449_v16  ;;  %v3845_v58 = vmul.f32 %v3813_v3, %v3429_v51  ;;  %v3366_v40 = vmul.f32 7.54979e-08, %v3174_v13  ;;  %v3175_v11 = vfloor.f32 %v3143_v10  ;;  %v4068_v29 = vsel %vm9418_vm15, %v9447_v27, %v9449_v16 }
 0x3fe   :  { %v3589_v1 = vadd.f32 -0.16666655, %v3557_v19  ;;  %v9455_v17 = vcvt.f32.s32 %v6151_v28  ;;  %v3270_v5 = vsub.f32 %v9404_v0, %v3238_v63  ;;  %v4324_v55 = vsub.f32 0.0, %v4068_v29  ;;  %v12475_v28 = vld [vmem:[#allocation95_spill] sm:$0xff] }
 0x3ff   :  { %v3717_v53 = vsub.f32 1.0, %v3685_v47  ;;  %v3877_v41 = vadd.f32 0.041666646, %v3845_v58  ;;  %v3239_v21 = vmul.f32 1.5703125, %v3175_v11  ;;  %v4261_v12 = vand.u32 2, %v4229_v37 }
 0x400   :  { %12474 = vst [vmem:[#allocation97_spill] sm:$0xff] %v9455_v17  ;;  %v3621_v32 = vmul.f32 %v3589_v1, %v3461_v9  ;;  %v3334_v51 = vsub.f32 %v3270_v5, %v3302_v43  ;;  %v6153_v3 = vtrunc.f32 %v3175_v11  ;;  %v4356_v13 = vsel %vm9431_vm6, %v4324_v55, %v4068_v29 }
 0x401   :  { %v3909_v10 = vmul.f32 %v3877_v41, %v3749_v52  ;;  %v3271_v46 = vsub.f32 %v9429_v34, %v3239_v21  ;;  %v3112_v19 = vmul.f32 0.63661975, %v9441_v20  ;;  %v4388_v16 = vmul.f32 %v4356_v13, %v12475_v28 }
 0x402   :  { %v9463_v27 = vadd.f32 %v3621_v32, %v3397_v18  ;;  %v3398_v0 = vsub.f32 %v3334_v51, %v3366_v40  ;;  %v4230_v58 = vadd.s32 1, %v9455_v17  ;;  %v3303_v37 = vmul.f32 0.0004837513, %v3175_v11 }
 0x403   :  { %v9466_v47 = vadd.f32 %v3909_v10, %v3717_v53  ;;  %v3367_v9 = vmul.f32 7.54979e-08, %v3175_v11  ;;  %4421 = vst [vmem:[#allocation8 + $0x2a0] sm:$0xff] %v4388_v16  ;;  %v3974_v25 = vand.u32 1, %v9455_v17  ;;  %v9469_v52 = vcvt.f32.s32 %v6153_v3  ;;  %v6362_v16 = vld [vmem:[#allocation5 + $0xc8] sm:$0xff] }
 0x404   :  { %12476 = vst [vmem:[#allocation104_spill] sm:$0xff] %v9463_v27  ;;  %v3430_v63 = vmul.f32 %v3398_v0, %v3398_v0  ;;  %vm4293_vm6 = vcmp.ne.s32.totalorder %v4261_v12, 0  ;;  %v3335_v18 = vsub.f32 %v3271_v46, %v3303_v37  ;;  %v3144_v43 = vadd.f32 0.5, %v3112_v19  ;;  %v12481_v46 = vld [vmem:[#allocation96_spill] sm:$0xff] }
 0x405   :  { %12477 = vst [vmem:[#allocation87_spill] sm:$0xff] %v9466_v47  ;;  %12478 = vst [vmem:[#allocation109_spill] sm:$0xff] %v9469_v52  ;;  %v4069_v34 = vsel %vm9443_vm12, %v9463_v27, %v9466_v47  ;;  %v4262_v1 = vand.u32 2, %v4230_v58  ;;  %v9476_v53 = vmul.f32 %v6362_v16, %v8831_v26  ;;  %vm9478_vm15 = vcmp.ne.s32.totalorder %v3974_v25, 0 }
 0x406   :  { %v4325_v40 = vsub.f32 0.0, %v4069_v34  ;;  %v3494_v29 = vmul.f32 -0.00019515296, %v3430_v63  ;;  %v3686_v5 = vmul.f32 0.5, %v3430_v63  ;;  %v3782_v55 = vmul.f32 2.4433157e-05, %v3430_v63 }
 0x407   :  { %v3399_v11 = vsub.f32 %v3335_v18, %v3367_v9  ;;  %v12479_v32 = vmov 0  ;;  %v3975_v12 = vand.u32 1, %v9469_v52  ;;  %v3176_v10 = vfloor.f32 %v3144_v43 }
 0x408   :  { %v4357_v41 = vsel %vm4293_vm6, %v4325_v40, %v4069_v34  ;;  %v3526_v21 = vadd.f32 0.008332161, %v3494_v29  ;;  %v12480_v32 = vsel %vm9478_vm15, 4294967295, %v12479_v32  ;;  %v3814_v3 = vadd.f32 -0.0013887316, %v3782_v55 }
 0x409   :  { %v4389_v51 = vmul.f32 %v4357_v41, %v12481_v46  ;;  %v3431_v13 = vmul.f32 %v3399_v11, %v3399_v11  ;;  %v3462_v19 = vmul.f32 %v3430_v63, %v3398_v0  ;;  %v3750_v37 = vmul.f32 %v3430_v63, %v3430_v63  ;;  %v6363_v46 = vld [vmem:[#allocation5 + $0xd0] sm:$0xff] }
 0x40a   :  { %v3558_v58 = vmul.f32 %v3526_v21, %v3430_v63  ;;  %v4231_v9 = vadd.s32 1, %v9469_v52  ;;  %v3718_v18 = vsub.f32 1.0, %v3686_v5  ;;  %v3846_v34 = vmul.f32 %v3814_v3, %v3430_v63 }
 0x40b   :  { %4422 = vst [vmem:[#allocation8 + $0x2a8] sm:$0xff] %v4389_v51  ;;  %vm9485_vm6 = vcmp.ne.s32.totalorder %v4262_v1, 0  ;;  %v3495_v40 = vmul.f32 -0.00019515296, %v3431_v13  ;;  %v3113_v29 = vmul.f32 0.63661975, %v9476_v53  ;;  %v3463_v41 = vmul.f32 %v3431_v13, %v3399_v11 }
 0x40c   :  { %v3590_v16 = vadd.f32 -0.16666655, %v3558_v58  ;;  %v3783_v55 = vmul.f32 2.4433157e-05, %v3431_v13  ;;  %v9491_v43 = vmul.f32 %v6363_v46, %v8831_v26  ;;  %v3878_v21 = vadd.f32 0.041666646, %v3846_v34 }
 0x40d   :  { %v3527_v28 = vadd.f32 0.008332161, %v3495_v40  ;;  %v3687_v52 = vmul.f32 0.5, %v3431_v13  ;;  %v3240_v51 = vmul.f32 1.5703125, %v3176_v10  ;;  %v6155_v1 = vtrunc.f32 %v3176_v10 }
 0x40e   :  { %v3622_v5 = vmul.f32 %v3590_v16, %v3462_v19  ;;  %v3815_v63 = vadd.f32 -0.0013887316, %v3783_v55  ;;  %v3304_v3 = vmul.f32 0.0004837513, %v3176_v10  ;;  %v3910_v17 = vmul.f32 %v3878_v21, %v3750_v37 }
 0x40f   :  { %v3559_v22 = vmul.f32 %v3527_v28, %v3431_v13  ;;  %v3272_v47 = vsub.f32 %v9441_v20, %v3240_v51  ;;  %v3368_v27 = vmul.f32 7.54979e-08, %v3176_v10  ;;  %v3751_v59 = vmul.f32 %v3431_v13, %v3431_v13 }
 0x410   :  { %v9494_v58 = vadd.f32 %v3622_v5, %v3398_v0  ;;  %v3847_v48 = vmul.f32 %v3815_v63, %v3431_v13  ;;  %v4263_v8 = vand.u32 2, %v4231_v9  ;;  %v9496_v46 = vadd.f32 %v3910_v17, %v3718_v18 }
 0x411   :  { %v3591_v34 = vadd.f32 -0.16666655, %v3559_v22  ;;  %v3336_v40 = vsub.f32 %v3272_v47, %v3304_v3  ;;  %v3145_v35 = vadd.f32 0.5, %v3113_v29  ;;  %v3719_v57 = vsub.f32 1.0, %v3687_v52 }
 0x412   :  { %v3879_v19 = vadd.f32 0.041666646, %v3847_v48  ;;  %v9498_v16 = vcvt.f32.s32 %v6155_v1  ;;  %v3114_v37 = vmul.f32 0.63661975, %v9491_v43  ;;  %v4070_v20 = vsel %vm9478_vm15, %v9494_v58, %v9496_v46 }
 0x413   :  { %v3623_v28 = vmul.f32 %v3591_v34, %v3463_v41  ;;  %v3400_v0 = vsub.f32 %v3336_v40, %v3368_v27  ;;  %v3177_v13 = vfloor.f32 %v3145_v35  ;;  %v4326_v10 = vsub.f32 0.0, %v4070_v20  ;;  %v12490_v35 = vld [vmem:[#allocation103_spill] sm:$0xff] }
 0x414   :  { %12484 = vst [vmem:[#allocation100_spill] sm:$0xff] %v9498_v16  ;;  %v3911_v17 = vmul.f32 %v3879_v19, %v3751_v59  ;;  %vm9505_vm12 = vcmp.ne.s32.totalorder %v3975_v12, 0  ;;  %v12485_v22 = vmov 0  ;;  %v4232_v41 = vadd.s32 1, %v9498_v16 }
 0x415   :  { %v12486_v22 = vsel %vm9505_vm12, 4294967295, %v12485_v22  ;;  %v9509_v47 = vadd.f32 %v3623_v28, %v3399_v11  ;;  %v3432_v48 = vmul.f32 %v3400_v0, %v3400_v0  ;;  %v6157_v52 = vtrunc.f32 %v3177_v13 }
 0x416   :  { %12487 = vst [vmem:[#allocation106_spill] sm:$0xff] %v12486_v22  ;;  %v3241_v9 = vmul.f32 1.5703125, %v3177_v13  ;;  %v4358_v18 = vsel %vm9485_vm6, %v4326_v10, %v4070_v20  ;;  %v9513_v29 = vadd.f32 %v3911_v17, %v3719_v57  ;;  %v3146_v27 = vadd.f32 0.5, %v3114_v37  ;;  %v12494_v17 = vld [vmem:[#allocation112_spill] sm:$0xff] }
 0x417   :  { %12488 = vst [vmem:[#allocation98_spill] sm:$0xff] %v9509_v47  ;;  %v4390_v55 = vmul.f32 %v4358_v18, %v12490_v35  ;;  %vm9517_vm15 = vcmp.ne.s32.totalorder %v4263_v8, 0  ;;  %v3496_v12 = vmul.f32 -0.00019515296, %v3432_v48  ;;  %v3305_v11 = vmul.f32 0.0004837513, %v3177_v13  ;;  %v6364_v35 = vld [vmem:[#allocation5 + $0xd8] sm:$0xff] }
 0x418   :  { %12489 = vst [vmem:[#allocation105_spill] sm:$0xff] %v9513_v29  ;;  %v4071_v21 = vsel %vm9505_vm12, %v9509_v47, %v9513_v29  ;;  %v3784_v25 = vmul.f32 2.4433157e-05, %v3432_v48  ;;  %v3976_v57 = vand.u32 1, %v9498_v16  ;;  %v3369_v51 = vmul.f32 7.54979e-08, %v3177_v13 }
 0x419   :  { %4423 = vst [vmem:[#allocation8 + $0x2b0] sm:$0xff] %v4390_v55  ;;  %v4327_v5 = vsub.f32 0.0, %v4071_v21  ;;  %v3528_v63 = vadd.f32 0.008332161, %v3496_v12  ;;  %v9526_v1 = vcvt.f32.s32 %v6157_v52  ;;  %v3273_v8 = vsub.f32 %v9476_v53, %v3241_v9 }
 0x41a   :  { %v3688_v3 = vmul.f32 0.5, %v3432_v48  ;;  %v3816_v34 = vadd.f32 -0.0013887316, %v3784_v25  ;;  %v4264_v40 = vand.u32 2, %v4232_v41  ;;  %v3178_v19 = vfloor.f32 %v3146_v27 }
 0x41b   :  { %12493 = vst [vmem:[#allocation117_spill] sm:$0xff] %v9526_v1  ;;  %v4359_v37 = vsel %vm9517_vm15, %v4327_v5, %v4071_v21  ;;  %v3464_v20 = vmul.f32 %v3432_v48, %v3400_v0  ;;  %v3560_v28 = vmul.f32 %v3528_v63, %v3432_v48  ;;  %v3337_v10 = vsub.f32 %v3273_v8, %v3305_v11 }
 0x41c   :  { %v4391_v18 = vmul.f32 %v4359_v37, %v12494_v17  ;;  %v3752_v13 = vmul.f32 %v3432_v48, %v3432_v48  ;;  %v3848_v55 = vmul.f32 %v3816_v34, %v3432_v48  ;;  %v9533_v52 = vmul.f32 %v6364_v35, %v8831_v26 }
 0x41d   :  { %v3592_v12 = vadd.f32 -0.16666655, %v3560_v28  ;;  %v3401_v53 = vsub.f32 %v3337_v10, %v3369_v51  ;;  %v4233_v9 = vadd.s32 1, %v9526_v1  ;;  %v3242_v41 = vmul.f32 1.5703125, %v3178_v19 }
 0x41e   :  { %4424 = vst [vmem:[#allocation8 + $0x2b8] sm:$0xff] %v4391_v18  ;;  %v3720_v27 = vsub.f32 1.0, %v3688_v3  ;;  %v3880_v59 = vadd.f32 0.041666646, %v3848_v55  ;;  %v3977_v21 = vand.u32 1, %v9526_v1  ;;  %v3306_v25 = vmul.f32 0.0004837513, %v3178_v19 }
 0x41f   :  { %v3624_v11 = vmul.f32 %v3592_v12, %v3464_v20  ;;  %v3433_v5 = vmul.f32 %v3401_v53, %v3401_v53  ;;  %v6159_v63 = vtrunc.f32 %v3178_v19  ;;  %v3274_v48 = vsub.f32 %v9491_v43, %v3242_v41  ;;  %v6366_v12 = vld [vmem:[#allocation5 + $0xe8] sm:$0xff] }
 0x420   :  { %v3912_v8 = vmul.f32 %v3880_v59, %v3752_v13  ;;  %vm9538_vm15 = vcmp.ne.s32.totalorder %v3976_v57, 0  ;;  %v12495_v35 = vmov 0  ;;  %v3370_v51 = vmul.f32 7.54979e-08, %v3178_v19 }
 0x421   :  { %v12496_v35 = vsel %vm9538_vm15, 4294967295, %v12495_v35  ;;  %v3115_v34 = vmul.f32 0.63661975, %v9533_v52  ;;  %v9543_v37 = vadd.f32 %v3624_v11, %v3400_v0  ;;  %vm9545_vm6 = vcmp.ne.s32.totalorder %v4264_v40, 0  ;;  %v6365_v0 = vld [vmem:[#allocation5 + $0xe0] sm:$0xff] }
 0x422   :  { %12497 = vst [vmem:[#allocation113_spill] sm:$0xff] %v12496_v35  ;;  %v3497_v28 = vmul.f32 -0.00019515296, %v3433_v5  ;;  %v4265_v20 = vand.u32 2, %v4233_v9  ;;  %v9549_v10 = vadd.f32 %v3912_v8, %v3720_v27  ;;  %v3689_v18 = vmul.f32 0.5, %v3433_v5 }
 0x423   :  { %12498 = vst [vmem:[#allocation108_spill] sm:$0xff] %v9543_v37  ;;  %v3785_v43 = vmul.f32 2.4433157e-05, %v3433_v5  ;;  %v3338_v13 = vsub.f32 %v3274_v48, %v3306_v25  ;;  %vm9551_vm12 = vcmp.ne.s32.totalorder %v3977_v21, 0  ;;  %v12502_v55 = vmov 0 }
 0x424   :  { %12501 = vst [vmem:[#allocation116_spill] sm:$0xff] %v9549_v10  ;;  %v3529_v57 = vadd.f32 0.008332161, %v3497_v28  ;;  %v12503_v55 = vsel %vm9551_vm12, 4294967295, %v12502_v55  ;;  %v9555_v19 = vcvt.f32.s32 %v6159_v63  ;;  %v9558_v40 = vmul.f32 %v6365_v0, %v8831_v26 }
 0x425   :  { %12504 = vst [vmem:[#allocation123_spill] sm:$0xff] %v12503_v55  ;;  %v9561_v41 = vmul.f32 %v6366_v12, %v8831_v26  ;;  %v4072_v9 = vsel %vm9538_vm15, %v9543_v37, %v9549_v10  ;;  %v3817_v27 = vadd.f32 -0.0013887316, %v3785_v43  ;;  %v3402_v59 = vsub.f32 %v3338_v13, %v3370_v51 }
 0x426   :  { %12505 = vst [vmem:[#allocation110_spill] sm:$0xff] %v9555_v19  ;;  %v3147_v21 = vadd.f32 0.5, %v3115_v34  ;;  %v4328_v25 = vsub.f32 0.0, %v4072_v9  ;;  %v3465_v11 = vmul.f32 %v3433_v5, %v3401_v53  ;;  %v3561_v63 = vmul.f32 %v3529_v57, %v3433_v5  ;;  %v12508_v34 = vld [vmem:[#allocation115_spill] sm:$0xff] }
 0x427   :  { %v3753_v48 = vmul.f32 %v3433_v5, %v3433_v5  ;;  %v3721_v8 = vsub.f32 1.0, %v3689_v18  ;;  %v3849_v28 = vmul.f32 %v3817_v27, %v3433_v5  ;;  %vm9567_vm1 = vcmp.ne.s32.totalorder %v4265_v20, 0 }
 0x428   :  { %v3434_v12 = vmul.f32 %v3402_v59, %v3402_v59  ;;  %v3179_v17 = vfloor.f32 %v3147_v21  ;;  %v4360_v1 = vsel %vm9545_vm6, %v4328_v25, %v4072_v9  ;;  %v3593_v16 = vadd.f32 -0.16666655, %v3561_v63 }
 0x429   :  { %v3978_v43 = vand.u32 1, %v9555_v19  ;;  %v4234_v51 = vadd.s32 1, %v9555_v19  ;;  %v4392_v13 = vmul.f32 %v4360_v1, %v12508_v34  ;;  %v3881_v57 = vadd.f32 0.041666646, %v3849_v28 }
 0x42a   :  { %v3498_v35 = vmul.f32 -0.00019515296, %v3434_v12  ;;  %v3116_v5 = vmul.f32 0.63661975, %v9558_v40  ;;  %v3625_v20 = vmul.f32 %v3593_v16, %v3465_v11  ;;  %v3466_v18 = vmul.f32 %v3434_v12, %v3402_v59 }
 0x42b   :  { %v3786_v27 = vmul.f32 2.4433157e-05, %v3434_v12  ;;  %v3117_v10 = vmul.f32 0.63661975, %v9561_v41  ;;  %4425 = vst [vmem:[#allocation8 + $0x2c0] sm:$0xff] %v4392_v13  ;;  %v3913_v21 = vmul.f32 %v3881_v57, %v3753_v48  ;;  %v6161_v9 = vtrunc.f32 %v3179_v17 }
 0x42c   :  { %v3530_v3 = vadd.f32 0.008332161, %v3498_v35  ;;  %v3243_v25 = vmul.f32 1.5703125, %v3179_v17  ;;  %v9578_v63 = vadd.f32 %v3625_v20, %v3401_v53  ;;  %v3690_v37 = vmul.f32 0.5, %v3434_v12 }
 0x42d   :  { %v3818_v19 = vadd.f32 -0.0013887316, %v3786_v27  ;;  %v3307_v22 = vmul.f32 0.0004837513, %v3179_v17  ;;  %v9580_v1 = vadd.f32 %v3913_v21, %v3721_v8  ;;  %v3754_v34 = vmul.f32 %v3434_v12, %v3434_v12 }
 0x42e   :  { %v3562_v28 = vmul.f32 %v3530_v3, %v3434_v12  ;;  %v3275_v16 = vsub.f32 %v9533_v52, %v3243_v25  ;;  %v9583_v29 = vcvt.f32.s32 %v6161_v9  ;;  %v3371_v47 = vmul.f32 7.54979e-08, %v3179_v17 }
 0x42f   :  { %v3850_v11 = vmul.f32 %v3818_v19, %v3434_v12  ;;  %v3148_v13 = vadd.f32 0.5, %v3116_v5  ;;  %v4073_v53 = vsel %vm9551_vm12, %v9578_v63, %v9580_v1  ;;  %v4266_v48 = vand.u32 2, %v4234_v51  ;;  %v12513_v51 = vld [vmem:[#allocation118_spill] sm:$0xff] }
 0x430   :  { %12509 = vst [vmem:[#allocation111_spill] sm:$0xff] %v9583_v29  ;;  %v3594_v35 = vadd.f32 -0.16666655, %v3562_v28  ;;  %v3339_v57 = vsub.f32 %v3275_v16, %v3307_v22  ;;  %v4329_v20 = vsub.f32 0.0, %v4073_v53  ;;  %v3722_v8 = vsub.f32 1.0, %v3690_v37 }
 0x431   :  { %v3882_v27 = vadd.f32 0.041666646, %v3850_v11  ;;  %v3180_v21 = vfloor.f32 %v3148_v13  ;;  %vm9589_vm6 = vcmp.ne.s32.totalorder %v3978_v43, 0  ;;  %v12510_v52 = vmov 0 }
 0x432   :  { %v3626_v3 = vmul.f32 %v3594_v35, %v3466_v18  ;;  %v12511_v52 = vsel %vm9589_vm6, 4294967295, %v12510_v52  ;;  %v3403_v19 = vsub.f32 %v3339_v57, %v3371_v47  ;;  %v3149_v17 = vadd.f32 0.5, %v3117_v10 }
 0x433   :  { %12512 = vst [vmem:[#allocation120_spill] sm:$0xff] %v12511_v52  ;;  %v4361_v12 = vsel %vm9567_vm1, %v4329_v20, %v4073_v53  ;;  %v3914_v5 = vmul.f32 %v3882_v27, %v3754_v34  ;;  %v4235_v9 = vadd.s32 1, %v9583_v29  ;;  %v6163_v25 = vtrunc.f32 %v3180_v21  ;;  %v12519_v52 = vld [vmem:[#allocation122_spill] sm:$0xff] }
 0x434   :  { %v4393_v22 = vmul.f32 %v4361_v12, %v12513_v51  ;;  %v9597_v28 = vadd.f32 %v3626_v3, %v3402_v59  ;;  %v3435_v37 = vmul.f32 %v3403_v19, %v3403_v19  ;;  %v3244_v16 = vmul.f32 1.5703125, %v3180_v21 }
 0x435   :  { %v9599_v18 = vadd.f32 %v3914_v5, %v3722_v8  ;;  %vm9601_vm12 = vcmp.ne.s32.totalorder %v4266_v48, 0  ;;  %v3979_v47 = vand.u32 1, %v9583_v29  ;;  %v3308_v10 = vmul.f32 0.0004837513, %v3180_v21 }
 0x436   :  { %12514 = vst [vmem:[#allocation114_spill] sm:$0xff] %v9597_v28  ;;  %4426 = vst [vmem:[#allocation8 + $0x2c8] sm:$0xff] %v4393_v22  ;;  %v3499_v0 = vmul.f32 -0.00019515296, %v3435_v37  ;;  %v3691_v34 = vmul.f32 0.5, %v3435_v37  ;;  %v9606_v11 = vcvt.f32.s32 %v6163_v25  ;;  %v3181_v13 = vfloor.f32 %v3149_v17 }
 0x437   :  { %12515 = vst [vmem:[#allocation124_spill] sm:$0xff] %v9599_v18  ;;  %v4074_v59 = vsel %vm9589_vm6, %v9597_v28, %v9599_v18  ;;  %v3787_v53 = vmul.f32 2.4433157e-05, %v3435_v37  ;;  %v3276_v35 = vsub.f32 %v9558_v40, %v3244_v16  ;;  %v3372_v48 = vmul.f32 7.54979e-08, %v3180_v21 }
 0x438   :  { %12518 = vst [vmem:[#allocation107_spill] sm:$0xff] %v9606_v11  ;;  %v4330_v57 = vsub.f32 0.0, %v4074_v59  ;;  %v3467_v20 = vmul.f32 %v3435_v37, %v3403_v19  ;;  %v3531_v8 = vadd.f32 0.008332161, %v3499_v0  ;;  %v4267_v27 = vand.u32 2, %v4235_v9 }
 0x439   :  { %v3755_v3 = vmul.f32 %v3435_v37, %v3435_v37  ;;  %v3819_v12 = vadd.f32 -0.0013887316, %v3787_v53  ;;  %v3340_v5 = vsub.f32 %v3276_v35, %v3308_v10  ;;  %v6165_v22 = vtrunc.f32 %v3181_v13 }
 0x43a   :  { %v4362_v17 = vsel %vm9601_vm12, %v4330_v57, %v4074_v59  ;;  %v3563_v25 = vmul.f32 %v3531_v8, %v3435_v37  ;;  %v3723_v51 = vsub.f32 1.0, %v3691_v34  ;;  %v3245_v29 = vmul.f32 1.5703125, %v3181_v13 }
 0x43b   :  { %v4394_v18 = vmul.f32 %v4362_v17, %v12519_v52  ;;  %v3851_v28 = vmul.f32 %v3819_v12, %v3435_v37  ;;  %v3404_v55 = vsub.f32 %v3340_v5, %v3372_v48  ;;  %v3980_v40 = vand.u32 1, %v9606_v11 }
 0x43c   :  { %v3595_v21 = vadd.f32 -0.16666655, %v3563_v25  ;;  %v4236_v16 = vadd.s32 1, %v9606_v11  ;;  %v3277_v9 = vsub.f32 %v9561_v41, %v3245_v29  ;;  %v3309_v0 = vmul.f32 0.0004837513, %v3181_v13 }
 0x43d   :  { %4427 = vst [vmem:[#allocation8 + $0x2d0] sm:$0xff] %v4394_v18  ;;  %v3883_v10 = vadd.f32 0.041666646, %v3851_v28  ;;  %v3436_v53 = vmul.f32 %v3404_v55, %v3404_v55  ;;  %v9619_v43 = vcvt.f32.s32 %v6165_v22  ;;  %v3373_v59 = vmul.f32 7.54979e-08, %v3181_v13 }
 0x43e   :  { %v3627_v34 = vmul.f32 %v3595_v21, %v3467_v20  ;;  %vm9621_vm1 = vcmp.ne.s32.totalorder %v3979_v47, 0  ;;  %v12521_v35 = vmov 0  ;;  %v3341_v37 = vsub.f32 %v3277_v9, %v3309_v0 }
 0x43f   :  { %12520 = vst [vmem:[#allocation128_spill] sm:$0xff] %v9619_v43  ;;  %v12522_v35 = vsel %vm9621_vm1, 4294967295, %v12521_v35  ;;  %v3915_v48 = vmul.f32 %v3883_v10, %v3755_v3  ;;  %vm9625_vm12 = vcmp.ne.s32.totalorder %v4267_v27, 0  ;;  %v3500_v8 = vmul.f32 -0.00019515296, %v3436_v53 }
 0x440   :  { %12523 = vst [vmem:[#allocation121_spill] sm:$0xff] %v12522_v35  ;;  %v3692_v29 = vmul.f32 0.5, %v3436_v53  ;;  %v9629_v41 = vadd.f32 %v3627_v34, %v3403_v19  ;;  %v3788_v28 = vmul.f32 2.4433157e-05, %v3436_v53  ;;  %v4268_v18 = vand.u32 2, %v4236_v16  ;;  %v6368_v34 = vld [vmem:[#allocation5 + $0xf8] sm:$0xff] }
 0x441   :  { %v3405_v12 = vsub.f32 %v3341_v37, %v3373_v59  ;;  %v9631_v5 = vadd.f32 %v3915_v48, %v3723_v51  ;;  %v3532_v13 = vadd.f32 0.008332161, %v3500_v8  ;;  %vm9633_vm6 = vcmp.ne.s32.totalorder %v3980_v40, 0  ;;  %v6367_v40 = vld [vmem:[#allocation5 + $0xf0] sm:$0xff] }
 0x442   :  { %v3981_v20 = vand.u32 1, %v9619_v43  ;;  %v9639_v27 = vadd.s32 1, %v9619_v43  ;;  %v3468_v3 = vmul.f32 %v3436_v53, %v3404_v55  ;;  %v3756_v22 = vmul.f32 %v3436_v53, %v3436_v53 }
 0x443   :  { %v3820_v17 = vadd.f32 -0.0013887316, %v3788_v28  ;;  %v3437_v19 = vmul.f32 %v3405_v12, %v3405_v12  ;;  %v4075_v51 = vsel %vm9621_vm1, %v9629_v41, %v9631_v5  ;;  %v3564_v25 = vmul.f32 %v3532_v13, %v3436_v53 }
 0x444   :  { %v3724_v21 = vsub.f32 1.0, %v3692_v29  ;;  %v9646_v16 = vmul.f32 %v6367_v40, %v8831_v26  ;;  %v4331_v9 = vsub.f32 0.0, %v4075_v51  ;;  %vm9648_vm15 = vcmp.ne.s32.totalorder %v4268_v18, 0 }
 0x445   :  { %v3852_v0 = vmul.f32 %v3820_v17, %v3436_v53  ;;  %v3501_v59 = vmul.f32 -0.00019515296, %v3437_v19  ;;  %v9653_v37 = vmul.f32 %v6368_v34, %v8831_v26  ;;  %v3596_v48 = vadd.f32 -0.16666655, %v3564_v25  ;;  %v12532_v26 = vld [vmem:[#allocation130_spill] sm:$0xff] }
 0x446   :  { %v3469_v8 = vmul.f32 %v3437_v19, %v3405_v12  ;;  %v3789_v28 = vmul.f32 2.4433157e-05, %v3437_v19  ;;  %v4016_v29 = vsel %vm8883_vm9, %v8911_v62, %v8909_v44  ;;  %v4363_v53 = vsel %vm9625_vm12, %v4331_v9, %v4075_v51  ;;  %v12533_v51 = vld [vmem:[#allocation129_spill] sm:$0xff] }
 0x447   :  { %v3884_v18 = vadd.f32 0.041666646, %v3852_v0  ;;  %v3533_v13 = vadd.f32 0.008332161, %v3501_v59  ;;  %v3693_v17 = vmul.f32 0.5, %v3437_v19  ;;  %vm9661_vm1 = vcmp.ne.s32.totalorder %v3981_v20, 0 }
 0x448   :  { %v4395_v34 = vmul.f32 %v4363_v53, %v12532_v26  ;;  %v3628_v25 = vmul.f32 %v3596_v48, %v3468_v3  ;;  %v3757_v43 = vmul.f32 %v3437_v19, %v3437_v19  ;;  %v3821_v52 = vadd.f32 -0.0013887316, %v3789_v28 }
 0x449   :  { %v3916_v11 = vmul.f32 %v3884_v18, %v3756_v22  ;;  %v3565_v35 = vmul.f32 %v3533_v13, %v3437_v19  ;;  %v3118_v56 = vmul.f32 0.63661975, %v9646_v16  ;;  %v3119_v44 = vmul.f32 0.63661975, %v9653_v37 }
 0x44a   :  { %4428 = vst [vmem:[#allocation8 + $0x2d8] sm:$0xff] %v4395_v34  ;;  %v9668_v62 = vadd.f32 %v3628_v25, %v3404_v55  ;;  %v3853_v57 = vmul.f32 %v3821_v52, %v3437_v19  ;;  %v4080_v20 = vand.u32 2, %v12533_v51  ;;  %v4144_v9 = vsub.f32 0.0, %v4016_v29 }
 0x44b   :  { %v9671_v0 = vadd.f32 %v3916_v11, %v3724_v21  ;;  %v3597_v59 = vadd.f32 -0.16666655, %v3565_v35  ;;  %v3150_v53 = vadd.f32 0.5, %v3118_v56  ;;  %v3151_v3 = vadd.f32 0.5, %v3119_v44  ;;  %v12534_v21 = vld [vmem:[#allocation133_spill] sm:$0xff] }
 0x44c   :  { %v3725_v48 = vsub.f32 1.0, %v3693_v17  ;;  %v3885_v28 = vadd.f32 0.041666646, %v3853_v57  ;;  %v4269_v22 = vand.u32 2, %v9639_v27  ;;  %vm4112_vm9 = vcmp.ne.s32.totalorder %v4080_v20, 0 }
 0x44d   :  { %v4076_v55 = vsel %vm9633_vm6, %v9668_v62, %v9671_v0  ;;  %v3629_v18 = vmul.f32 %v3597_v59, %v3469_v8  ;;  %v3182_v52 = vfloor.f32 %v3150_v53  ;;  %v3183_v19 = vfloor.f32 %v3151_v3  ;;  %v12535_v8 = vld [vmem:[#allocation131_spill] sm:$0xff] }
 0x44e   :  { %v4332_v13 = vsub.f32 0.0, %v4076_v55  ;;  %v3917_v34 = vmul.f32 %v3885_v28, %v3757_v43  ;;  %v4176_v11 = vsel %vm4112_vm9, %v4144_v9, %v4016_v29  ;;  %v4081_v35 = vand.u32 2, %v12534_v21 }
 0x44f   :  { %v9679_v25 = vadd.f32 %v3629_v18, %v3405_v12  ;;  %v6167_v17 = vtrunc.f32 %v3182_v52  ;;  %v3246_v56 = vmul.f32 1.5703125, %v3182_v52  ;;  %v3310_v44 = vmul.f32 0.0004837513, %v3182_v52 }
 0x450   :  { %v4364_v27 = vsel %vm9648_vm15, %v4332_v13, %v4076_v55  ;;  %v9683_v57 = vadd.f32 %v3917_v34, %v3725_v48  ;;  %v3374_v51 = vmul.f32 7.54979e-08, %v3182_v52  ;;  %v6169_v20 = vtrunc.f32 %v3183_v19 }
 0x451   :  { %v4396_v59 = vmul.f32 %v4364_v27, %v12535_v8  ;;  %v9686_v53 = vcvt.f32.s32 %v6167_v17  ;;  %v3278_v43 = vsub.f32 %v9646_v16, %v3246_v56  ;;  %v3247_v29 = vmul.f32 1.5703125, %v3183_v19  ;;  %v12538_v17 = vld [vmem:[#allocation132_spill] sm:$0xff] }
 0x452   :  { %v4077_v12 = vsel %vm9661_vm1, %v9679_v25, %v9683_v57  ;;  %vm4301_vm12 = vcmp.ne.s32.totalorder %v4269_v22, 0  ;;  %v9693_v9 = vcvt.f32.s32 %v6169_v20  ;;  %v3311_v10 = vmul.f32 0.0004837513, %v3183_v19 }
 0x453   :  { %4429 = vst [vmem:[#allocation8 + $0x2e0] sm:$0xff] %v4396_v59  ;;  %v4333_v3 = vsub.f32 0.0, %v4077_v12  ;;  %v3342_v48 = vsub.f32 %v3278_v43, %v3310_v44  ;;  %v4238_v28 = vadd.s32 1, %v9686_v53  ;;  %v4017_v16 = vsel %vm8887_vm14, %v8916_v7, %v8914_v60 }
 0x454   :  { %v3279_v55 = vsub.f32 %v9653_v37, %v3247_v29  ;;  %v3375_v18 = vmul.f32 7.54979e-08, %v3183_v19  ;;  %v4239_v52 = vadd.s32 1, %v9693_v9  ;;  %v4433_v22 = vmul.f32 %v4176_v11, %v6578_v61 }
 0x455   :  { %v4365_v13 = vsel %vm4301_vm12, %v4333_v3, %v4077_v12  ;;  %v3406_v34 = vsub.f32 %v3342_v48, %v3374_v51  ;;  %vm9703_vm15 = vcmp.ne.s32.totalorder %v4081_v35, 0  ;;  %v3982_v44 = vand.u32 1, %v9686_v53  ;;  %v12539_v51 = vld [vmem:[#allocation17_spill] sm:$0xff] }
 0x456   :  { %v4397_v56 = vmul.f32 %v4365_v13, %v12538_v17  ;;  %v3343_v27 = vsub.f32 %v3279_v55, %v3311_v10  ;;  %v3983_v36 = vand.u32 1, %v9693_v9  ;;  %4466 = vst [vmem:[#allocation9 + $0x200] sm:$0xff] %v4433_v22  ;;  %v4270_v7 = vand.u32 2, %v4238_v28 }
 0x457   :  { %v3438_v60 = vmul.f32 %v3406_v34, %v3406_v34  ;;  %v4145_v37 = vsub.f32 0.0, %v4017_v16  ;;  %v4018_v19 = vsel %vm8905_vm8, %v8943_v23, %v8934_v50  ;;  %v4271_v35 = vand.u32 2, %v4239_v52 }
 0x458   :  { %4430 = vst [vmem:[#allocation8 + $0x2e8] sm:$0xff] %v4397_v56  ;;  %v9714_v11 = vsub.f32 %v3343_v27, %v3375_v18  ;;  %v4082_v20 = vand.u32 2, %v12539_v51  ;;  %v4146_v59 = vsub.f32 0.0, %v4018_v19  ;;  %vm9721_vm8 = vcmp.ne.s32.totalorder %v3982_v44, 0  ;;  %v12580_v44 = vld [vmem:[#allocation55_spill] sm:$0xff] }
 0x459   :  { %v3470_v43 = vmul.f32 %v3438_v60, %v3406_v34  ;;  %v3502_v29 = vmul.f32 -0.00019515296, %v3438_v60  ;;  %v3694_v12 = vmul.f32 0.5, %v3438_v60  ;;  %v3758_v10 = vmul.f32 %v3438_v60, %v3438_v60 }
 0x45a   :  { %v3790_v3 = vmul.f32 2.4433157e-05, %v3438_v60  ;;  %v3439_v48 = vmul.f32 %v9714_v11, %v9714_v11  ;;  %v4177_v28 = vsel %vm9703_vm15, %v4145_v37, %v4017_v16  ;;  %vm4114_vm14 = vcmp.ne.s32.totalorder %v4082_v20, 0  ;;  %v12542_v16 = vld [vmem:[#allocation16_spill] sm:$0xff] }
 0x45b   :  { %v3534_v15 = vadd.f32 0.008332161, %v3502_v29  ;;  %v3726_v50 = vsub.f32 1.0, %v3694_v12  ;;  %v4434_v55 = vmul.f32 %v4177_v28, %v6583_v4  ;;  %v4178_v18 = vsel %vm4114_vm14, %v4146_v59, %v4018_v19  ;;  %v12547_v28 = vld [vmem:[#allocation22_spill] sm:$0xff] }
 0x45c   :  { %v3822_v52 = vadd.f32 -0.0013887316, %v3790_v3  ;;  %v3471_v22 = vmul.f32 %v3439_v48, %v9714_v11  ;;  %v3503_v13 = vmul.f32 -0.00019515296, %v3439_v48  ;;  %v3695_v56 = vmul.f32 0.5, %v3439_v48 }
 0x45d   :  { %v3566_v27 = vmul.f32 %v3534_v15, %v3438_v60  ;;  %v3759_v51 = vmul.f32 %v3439_v48, %v3439_v48  ;;  %v3791_v61 = vmul.f32 2.4433157e-05, %v3439_v48  ;;  %4467 = vst [vmem:[#allocation9 + $0x208] sm:$0xff] %v4434_v55  ;;  %v4435_v21 = vmul.f32 %v4178_v18, %v12542_v16  ;;  %v12548_v18 = vld [vmem:[#allocation31_spill] sm:$0xff] }
 0x45e   :  { %v3854_v37 = vmul.f32 %v3822_v52, %v3438_v60  ;;  %vm9728_vm9 = vcmp.ne.s32.totalorder %v4270_v7, 0  ;;  %v3535_v20 = vadd.f32 0.008332161, %v3503_v13  ;;  %v3727_v29 = vsub.f32 1.0, %v3695_v56 }
 0x45f   :  { %vm9732_vm12 = vcmp.ne.s32.totalorder %v3983_v36, 0  ;;  %v4019_v59 = vsel %vm8957_vm13, %v8973_v30, %v8971_v42  ;;  %v3598_v12 = vadd.f32 -0.16666655, %v3566_v27  ;;  %v3823_v3 = vadd.f32 -0.0013887316, %v3791_v61  ;;  %4468 = vst [vmem:[#allocation9 + $0x210] sm:$0xff] %v4435_v21 }
 0x460   :  { %v4083_v60 = vand.u32 2, %v12547_v28  ;;  %v4147_v7 = vsub.f32 0.0, %v4019_v59  ;;  %v3886_v15 = vadd.f32 0.041666646, %v3854_v37  ;;  %v3567_v55 = vmul.f32 %v3535_v20, %v3439_v48  ;;  %v12554_v28 = vld [vmem:[#allocation35_spill] sm:$0xff] }
 0x461   :  { %v4020_v36 = vsel %vm8986_vm7, %v8997_v39, %v8991_v14  ;;  %v4084_v52 = vand.u32 2, %v12548_v18  ;;  %v3630_v13 = vmul.f32 %v3598_v12, %v3470_v43  ;;  %v3855_v56 = vmul.f32 %v3823_v3, %v3439_v48  ;;  %v12551_v48 = vld [vmem:[#allocation20_spill] sm:$0xff]  ;;  %v12558_v18 = vld [vmem:[#allocation21_spill] sm:$0xff] }
 0x462   :  { %vm9746_vm15 = vcmp.ne.s32.totalorder %v4271_v35, 0  ;;  %vm4115_vm13 = vcmp.ne.s32.totalorder %v4083_v60, 0  ;;  %v4148_v61 = vsub.f32 0.0, %v4020_v36  ;;  %v3918_v42 = vmul.f32 %v3886_v15, %v3758_v10  ;;  %v12555_v60 = vld [vmem:[#allocation32_spill] sm:$0xff] }
 0x463   :  { %v3599_v30 = vadd.f32 -0.16666655, %v3567_v55  ;;  %v4179_v27 = vsel %vm4115_vm13, %v4147_v7, %v4019_v59  ;;  %vm4116_vm14 = vcmp.ne.s32.totalorder %v4084_v52, 0  ;;  %v9750_v21 = vadd.f32 %v3630_v13, %v3406_v34  ;;  %v12553_v59 = vld [vmem:[#allocation24_spill] sm:$0xff]  ;;  %v12559_v52 = vld [vmem:[#allocation33_spill] sm:$0xff] }
 0x464   :  { %v3887_v37 = vadd.f32 0.041666646, %v3855_v56  ;;  %v4436_v54 = vmul.f32 %v4179_v27, %v11834_v45  ;;  %v4180_v14 = vsel %vm4116_vm14, %v4148_v61, %v4020_v36  ;;  %v9753_v39 = vadd.f32 %v3918_v42, %v3726_v50  ;;  %v12561_v42 = vld [vmem:[#allocation34_spill] sm:$0xff]  ;;  %v12573_v13 = vld [vmem:[#allocation40_spill] sm:$0xff] }
 0x465   :  { %v3631_v43 = vmul.f32 %v3599_v30, %v3471_v22  ;;  %v4437_v35 = vmul.f32 %v4180_v14, %v12551_v48  ;;  %v4021_v12 = vsel %vm8999_vm4, %v9027_v6, %v9023_v49  ;;  %v4085_v3 = vand.u32 2, %v12553_v59  ;;  %v12557_v49 = vld [vmem:[#allocation23_spill] sm:$0xff] }
 0x466   :  { %v3919_v10 = vmul.f32 %v3887_v37, %v3759_v51  ;;  %4469 = vst [vmem:[#allocation9 + $0x218] sm:$0xff] %v4436_v54  ;;  %v4149_v34 = vsub.f32 0.0, %v4021_v12  ;;  %v4022_v15 = vsel %vm9041_vm10, %v12555_v60, %v12554_v28  ;;  %v4078_v50 = vsel %vm9721_vm8, %v9750_v21, %v9753_v39  ;;  %v12562_v37 = vld [vmem:[#allocation25_spill] sm:$0xff]  ;;  %v12568_v60 = vld [vmem:[#allocation27_spill] sm:$0xff] }
 0x467   :  { %v9770_v22 = vadd.f32 %v3631_v43, %v9714_v11  ;;  %4470 = vst [vmem:[#allocation9 + $0x220] sm:$0xff] %v4437_v35  ;;  %v4086_v6 = vand.u32 2, %v12557_v49  ;;  %v4150_v51 = vsub.f32 0.0, %v4022_v15  ;;  %v4334_v55 = vsub.f32 0.0, %v4078_v50  ;;  %v12563_v43 = vld [vmem:[#allocation134_spill] sm:$0xff]  ;;  %v12570_v49 = vld [vmem:[#allocation29_spill] sm:$0xff] }
 0x468   :  { %v9773_v36 = vadd.f32 %v3919_v10, %v3727_v29  ;;  %vm4117_vm7 = vcmp.ne.s32.totalorder %v4085_v3, 0  ;;  %v4023_v56 = vsel %vm9071_vm0, %v12559_v52, %v12558_v18  ;;  %v4087_v30 = vand.u32 2, %v12561_v42  ;;  %v12564_v10 = vld [vmem:[#allocation26_spill] sm:$0xff] }
 0x469   :  { %v4181_v61 = vsel %vm4117_vm7, %v4149_v34, %v4021_v12  ;;  %vm4118_vm4 = vcmp.ne.s32.totalorder %v4086_v6, 0  ;;  %v4151_v27 = vsub.f32 0.0, %v4023_v56  ;;  %v4366_v11 = vsel %vm9728_vm9, %v4334_v55, %v4078_v50  ;;  %v12565_v3 = vld [vmem:[#allocation46_spill] sm:$0xff]  ;;  %v12569_v50 = vld [vmem:[#allocation41_spill] sm:$0xff] }
 0x46a   :  { %v4079_v29 = vsel %vm9732_vm12, %v9770_v22, %v9773_v36  ;;  %v4438_v54 = vmul.f32 %v4181_v61, %v12562_v37  ;;  %v4182_v14 = vsel %vm4118_vm4, %v4150_v51, %v4022_v15  ;;  %v4398_v35 = vmul.f32 %v4366_v11, %v12563_v43  ;;  %v12566_v34 = vld [vmem:[#allocation38_spill] sm:$0xff]  ;;  %v12574_v61 = vld [vmem:[#allocation135_spill] sm:$0xff] }
 0x46b   :  { %v4335_v20 = vsub.f32 0.0, %v4079_v29  ;;  %v4439_v12 = vmul.f32 %v4182_v14, %v12564_v10  ;;  %vm4119_vm10 = vcmp.ne.s32.totalorder %v4087_v30, 0  ;;  %v4024_v28 = vsel %vm9083_vm5, %v12566_v34, %v12565_v3  ;;  %v12572_v55 = vld [vmem:[#allocation30_spill] sm:$0xff]  ;;  %v12576_v14 = vld [vmem:[#allocation39_spill] sm:$0xff] }
 0x46c   :  { %4471 = vst [vmem:[#allocation9 + $0x228] sm:$0xff] %v4438_v54  ;;  %v4183_v59 = vsel %vm4119_vm10, %v4151_v27, %v4023_v56  ;;  %v4088_v7 = vand.u32 2, %v12568_v60  ;;  %v4025_v15 = vsel %vm9128_vm11, %v12570_v49, %v12569_v50  ;;  %4431 = vst [vmem:[#allocation8 + $0x2f0] sm:$0xff] %v4398_v35  ;;  %v4152_v52 = vsub.f32 0.0, %v4024_v28  ;;  %v12584_v50 = vld [vmem:[#allocation54_spill] sm:$0xff] }
 0x46d   :  { %v4367_v51 = vsel %vm9746_vm15, %v4335_v20, %v4079_v29  ;;  %4472 = vst [vmem:[#allocation9 + $0x230] sm:$0xff] %v4439_v12  ;;  %v4440_v18 = vmul.f32 %v4183_v59, %v12572_v55  ;;  %v4089_v56 = vand.u32 2, %v12573_v13  ;;  %v4153_v30 = vsub.f32 0.0, %v4025_v15  ;;  %v12577_v12 = vld [vmem:[#allocation43_spill] sm:$0xff]  ;;  %v12578_v59 = vld [vmem:[#allocation57_spill] sm:$0xff] }
 0x46e   :  { %v4399_v42 = vmul.f32 %v4367_v51, %v12574_v61  ;;  %vm4120_vm0 = vcmp.ne.s32.totalorder %v4088_v7, 0  ;;  %v4026_v27 = vsel %vm9147_vm3, %v9166_v31, %v9164_v2  ;;  %v4090_v29 = vand.u32 2, %v12575_v38  ;;  %v12581_v7 = vld [vmem:[#allocation42_spill] sm:$0xff] }
 0x46f   :  { %4473 = vst [vmem:[#allocation9 + $0x238] sm:$0xff] %v4440_v18  ;;  %v4184_v11 = vsel %vm4120_vm0, %v4152_v52, %v4024_v28  ;;  %vm4121_vm5 = vcmp.ne.s32.totalorder %v4089_v56, 0  ;;  %v4154_v54 = vsub.f32 0.0, %v4026_v27  ;;  %v4027_v34 = vsel %vm9158_vm2, %v12578_v59, %v12577_v12  ;;  %v12582_v31 = vld [vmem:[#allocation58_spill] sm:$0xff]  ;;  %v12587_v52 = vld [vmem:[#allocation44_spill] sm:$0xff]  ;;  %v12593_v12 = vld [vmem:[#allocation45_spill] sm:$0xff] }
 0x470   :  { %4432 = vst [vmem:[#allocation8 + $0x2f8] sm:$0xff] %v4399_v42  ;;  %v4441_v35 = vmul.f32 %v4184_v11, %v12576_v14  ;;  %v4185_v20 = vsel %vm4121_vm5, %v4153_v30, %v4025_v15  ;;  %v4091_v60 = vand.u32 2, %v12580_v44  ;;  %vm4122_vm11 = vcmp.ne.s32.totalorder %v4090_v29, 0  ;;  %v12583_v28 = vld [vmem:[#allocation62_spill] sm:$0xff]  ;;  %v12588_v42 = vld [vmem:[#allocation52_spill] sm:$0xff]  ;;  %v12589_v30 = vld [vmem:[#allocation67_spill] sm:$0xff] }
 0x471   :  { %v4442_v24 = vmul.f32 %v4185_v20, %v12581_v7  ;;  %v4155_v2 = vsub.f32 0.0, %v4027_v34  ;;  %vm12585_vm3 = vnez %v12584_v50  ;;  %v4186_v6 = vsel %vm4122_vm11, %v4154_v54, %v4026_v27  ;;  %v12586_v15 = vld [vmem:[#allocation50_spill] sm:$0xff]  ;;  %v12592_v29 = vld [vmem:[#allocation61_spill] sm:$0xff]  ;;  %v12594_v27 = vld [vmem:[#allocation51_spill] sm:$0xff] }
 0x472   :  { %v4028_v49 = vsel %vm12585_vm3, %v12583_v28, %v12582_v31  ;;  %4474 = vst [vmem:[#allocation9 + $0x240] sm:$0xff] %v4441_v35  ;;  %vm4123_vm9 = vcmp.ne.s32.totalorder %v4091_v60, 0  ;;  %v4092_v51 = vand.u32 2, %v12586_v15  ;;  %v4443_v13 = vmul.f32 %v4186_v6, %v12587_v52  ;;  %v12590_v11 = vld [vmem:[#allocation70_spill] sm:$0xff]  ;;  %v12595_v54 = vld [vmem:[#allocation69_spill] sm:$0xff]  ;;  %v12600_v6 = vld [vmem:[#allocation64_spill] sm:$0xff] }
 0x473   :  { %v4156_v18 = vsub.f32 0.0, %v4028_v49  ;;  %4475 = vst [vmem:[#allocation9 + $0x248] sm:$0xff] %v4442_v24  ;;  %v4187_v56 = vsel %vm4123_vm9, %v4155_v2, %v4027_v34  ;;  %vm12591_vm2 = vnez %v12590_v11  ;;  %v4093_v20 = vand.u32 2, %v12592_v29  ;;  %v12597_v34 = vld [vmem:[#allocation56_spill] sm:$0xff]  ;;  %v12598_v2 = vld [vmem:[#allocation53_spill] sm:$0xff]  ;;  %v12599_v50 = vld [vmem:[#allocation74_spill] sm:$0xff] }
 0x474   :  { %v4029_v38 = vsel %vm12591_vm2, %v12589_v30, %v12588_v42  ;;  %v4444_v59 = vmul.f32 %v4187_v56, %v12593_v12  ;;  %vm4124_vm15 = vcmp.ne.s32.totalorder %v4092_v51, 0  ;;  %vm12596_vm13 = vnez %v12595_v54  ;;  %4476 = vst [vmem:[#allocation9 + $0x250] sm:$0xff] %v4443_v13  ;;  %v12601_v15 = vld [vmem:[#allocation72_spill] sm:$0xff]  ;;  %v12603_v56 = vld [vmem:[#allocation59_spill] sm:$0xff] }
 0x475   :  { %v4157_v35 = vsub.f32 0.0, %v4029_v38  ;;  %v4030_v3 = vsel %vm12596_vm13, %v12594_v27, %v9271_v33  ;;  %v4188_v44 = vsel %vm4124_vm15, %v4156_v18, %v4028_v49  ;;  %vm4125_vm14 = vcmp.ne.s32.totalorder %v4093_v20, 0  ;;  %v12604_v30 = vld [vmem:[#allocation63_spill] sm:$0xff]  ;;  %v12606_v18 = vld [vmem:[#allocation60_spill] sm:$0xff]  ;;  %v12610_v27 = vld [vmem:[#allocation66_spill] sm:$0xff] }
 0x476   :  { %v4094_v60 = vand.u32 2, %v12597_v34  ;;  %v4158_v24 = vsub.f32 0.0, %v4030_v3  ;;  %4477 = vst [vmem:[#allocation9 + $0x258] sm:$0xff] %v4444_v59  ;;  %v4445_v31 = vmul.f32 %v4188_v44, %v12598_v2  ;;  %vm12602_vm7 = vnez %v12601_v15  ;;  %v12605_v49 = vld [vmem:[#allocation79_spill] sm:$0xff]  ;;  %v12611_v34 = vld [vmem:[#allocation65_spill] sm:$0xff] }
 0x477   :  { %v4189_v28 = vsel %vm4125_vm14, %v4157_v35, %v4029_v38  ;;  %v4031_v51 = vsel %vm12602_vm7, %v12600_v6, %v12599_v50  ;;  %v4095_v42 = vand.u32 2, %v12603_v56  ;;  %v12607_v13 = vld [vmem:[#allocation71_spill] sm:$0xff]  ;;  %v12609_v38 = vld [vmem:[#allocation73_spill] sm:$0xff]  ;;  %v12616_v56 = vld [vmem:[#allocation68_spill] sm:$0xff] }
 0x478   :  { %v4446_v11 = vmul.f32 %v4189_v28, %v12604_v30  ;;  %vm4126_vm4 = vcmp.ne.s32.totalorder %v4094_v60, 0  ;;  %v4159_v33 = vsub.f32 0.0, %v4031_v51  ;;  %vm12608_vm10 = vnez %v12607_v13  ;;  %4478 = vst [vmem:[#allocation9 + $0x260] sm:$0xff] %v4445_v31  ;;  %v12612_v50 = vld [vmem:[#allocation89_spill] sm:$0xff] }
 0x479   :  { %v4032_v29 = vsel %vm12608_vm10, %v12606_v18, %v12605_v49  ;;  %v4190_v20 = vsel %vm4126_vm4, %v4158_v24, %v4030_v3  ;;  %vm4127_vm0 = vcmp.ne.s32.totalorder %v4095_v42, 0  ;;  %v4096_v59 = vand.u32 2, %v12609_v38  ;;  %v12613_v28 = vld [vmem:[#allocation81_spill] sm:$0xff]  ;;  %v12617_v3 = vld [vmem:[#allocation88_spill] sm:$0xff] }
 0x47a   :  { %v4160_v35 = vsub.f32 0.0, %v4032_v29  ;;  %4479 = vst [vmem:[#allocation9 + $0x268] sm:$0xff] %v4446_v11  ;;  %v4447_v54 = vmul.f32 %v4190_v20, %v12610_v27  ;;  %v4191_v44 = vsel %vm4127_vm0, %v4159_v33, %v4031_v51  ;;  %vm12614_vm5 = vnez %v12613_v28  ;;  %v12615_v6 = vld [vmem:[#allocation77_spill] sm:$0xff]  ;;  %v12618_v24 = vld [vmem:[#allocation80_spill] sm:$0xff]  ;;  %v12624_v28 = vld [vmem:[#allocation90_spill] sm:$0xff] }
 0x47b   :  { %v4033_v60 = vsel %vm12614_vm5, %v12612_v50, %v12611_v34  ;;  %v4097_v15 = vand.u32 2, %v12615_v6  ;;  %v4448_v13 = vmul.f32 %v4191_v44, %v12616_v56  ;;  %vm4128_vm11 = vcmp.ne.s32.totalorder %v4096_v59, 0  ;;  %v12619_v42 = vld [vmem:[#allocation84_spill] sm:$0xff]  ;;  %v12621_v51 = vld [vmem:[#allocation85_spill] sm:$0xff]  ;;  %v12623_v50 = vld [vmem:[#allocation91_spill] sm:$0xff] }
 0x47c   :  { %v4161_v31 = vsub.f32 0.0, %v4033_v60  ;;  %vm12620_vm3 = vnez %v12619_v42  ;;  %4480 = vst [vmem:[#allocation9 + $0x270] sm:$0xff] %v4447_v54  ;;  %v4192_v11 = vsel %vm4128_vm11, %v4160_v35, %v4032_v29  ;;  %v4098_v33 = vand.u32 2, %v12621_v51  ;;  %v12622_v20 = vld [vmem:[#allocation76_spill] sm:$0xff]  ;;  %v12625_v44 = vld [vmem:[#allocation75_spill] sm:$0xff]  ;;  %v12627_v6 = vld [vmem:[#allocation86_spill] sm:$0xff] }
 0x47d   :  { %v4034_v49 = vsel %vm12620_vm3, %v12618_v24, %v12617_v3  ;;  %vm4129_vm9 = vcmp.ne.s32.totalorder %v4097_v15, 0  ;;  %4481 = vst [vmem:[#allocation9 + $0x278] sm:$0xff] %v4448_v13  ;;  %v4449_v38 = vmul.f32 %v4192_v11, %v12622_v20  ;;  %vm12626_vm2 = vnez %v12625_v44  ;;  %v12628_v27 = vld [vmem:[#allocation78_spill] sm:$0xff]  ;;  %v12630_v35 = vld [vmem:[#allocation101_spill] sm:$0xff]  ;;  %v12634_v11 = vld [vmem:[#allocation83_spill] sm:$0xff] }
 0x47e   :  { %v4162_v18 = vsub.f32 0.0, %v4034_v49  ;;  %v4193_v34 = vsel %vm4129_vm9, %v4161_v31, %v4033_v60  ;;  %v4035_v59 = vsel %vm12626_vm2, %v12624_v28, %v12623_v50  ;;  %v4099_v56 = vand.u32 2, %v12627_v6  ;;  %v12629_v29 = vld [vmem:[#allocation82_spill] sm:$0xff]  ;;  %v12633_v60 = vld [vmem:[#allocation93_spill] sm:$0xff]  ;;  %v12635_v28 = vld [vmem:[#allocation104_spill] sm:$0xff] }
 0x47f   :  { %v4450_v42 = vmul.f32 %v4193_v34, %v12628_v27  ;;  %vm4130_vm15 = vcmp.ne.s32.totalorder %v4098_v33, 0  ;;  %v4163_v54 = vsub.f32 0.0, %v4035_v59  ;;  %v12631_v15 = vld [vmem:[#allocation102_spill] sm:$0xff]  ;;  %4482 = vst [vmem:[#allocation9 + $0x280] sm:$0xff] %v4449_v38  ;;  %v4100_v31 = vand.u32 2, %v12633_v60  ;;  %v12636_v44 = vld [vmem:[#allocation87_spill] sm:$0xff] }
 0x480   :  { %vm12632_vm13 = vnez %v12631_v15  ;;  %v4194_v13 = vsel %vm4130_vm15, %v4162_v18, %v4034_v49  ;;  %vm4131_vm14 = vcmp.ne.s32.totalorder %v4099_v56, 0  ;;  %v12637_v34 = vld [vmem:[#allocation94_spill] sm:$0xff]  ;;  %v12639_v6 = vld [vmem:[#allocation99_spill] sm:$0xff]  ;;  %v12640_v20 = vld [vmem:[#allocation92_spill] sm:$0xff]  ;;  %vm12641_vm10 = vnez %v12480_v32 }
 0x481   :  { %v4036_v3 = vsel %vm12632_vm13, %v12630_v35, %v12629_v29  ;;  %4483 = vst [vmem:[#allocation9 + $0x288] sm:$0xff] %v4450_v42  ;;  %v4451_v51 = vmul.f32 %v4194_v13, %v12634_v11  ;;  %v4195_v50 = vsel %vm4131_vm14, %v4163_v54, %v4035_v59  ;;  %vm12638_vm7 = vnez %v12637_v34  ;;  %v12642_v18 = vld [vmem:[#allocation97_spill] sm:$0xff]  ;;  %v12643_v54 = vld [vmem:[#allocation95_spill] sm:$0xff]  ;;  %v12644_v13 = vld [vmem:[#allocation98_spill] sm:$0xff] }
 0x482   :  { %v4164_v24 = vsub.f32 0.0, %v4036_v3  ;;  %v4037_v33 = vsel %vm12638_vm7, %v12636_v44, %v12635_v28  ;;  %v4101_v27 = vand.u32 2, %v12639_v6  ;;  %v4452_v15 = vmul.f32 %v4195_v50, %v12640_v20  ;;  %v12645_v60 = vld [vmem:[#allocation105_spill] sm:$0xff]  ;;  %v12646_v50 = vld [vmem:[#allocation106_spill] sm:$0xff]  ;;  %v12649_v34 = vld [vmem:[#allocation96_spill] sm:$0xff] }
 0x483   :  { %vm4132_vm4 = vcmp.ne.s32.totalorder %v4100_v31, 0  ;;  %v4165_v38 = vsub.f32 0.0, %v4037_v33  ;;  %v4038_v56 = vsel %vm12641_vm10, %v9496_v46, %v9494_v58  ;;  %4484 = vst [vmem:[#allocation9 + $0x290] sm:$0xff] %v4451_v51  ;;  %v4102_v59 = vand.u32 2, %v12642_v18  ;;  %v12648_v28 = vld [vmem:[#allocation109_spill] sm:$0xff]  ;;  %v12650_v46 = vld [vmem:[#allocation108_spill] sm:$0xff] }
 0x484   :  { %v4196_v49 = vsel %vm4132_vm4, %v4164_v24, %v4036_v3  ;;  %vm4133_vm0 = vcmp.ne.s32.totalorder %v4101_v27, 0  ;;  %v4166_v42 = vsub.f32 0.0, %v4038_v56  ;;  %4485 = vst [vmem:[#allocation9 + $0x298] sm:$0xff] %v4452_v15  ;;  %vm12647_vm5 = vnez %v12646_v50  ;;  %v12651_v27 = vld [vmem:[#allocation116_spill] sm:$0xff]  ;;  %v12652_v3 = vld [vmem:[#allocation113_spill] sm:$0xff] }
 0x485   :  { %v4453_v29 = vmul.f32 %v4196_v49, %v12643_v54  ;;  %v4197_v35 = vsel %vm4133_vm0, %v4165_v38, %v4037_v33  ;;  %v4039_v31 = vsel %vm12647_vm5, %v12645_v60, %v12644_v13  ;;  %v4103_v44 = vand.u32 2, %v12648_v28  ;;  %v12654_v33 = vld [vmem:[#allocation100_spill] sm:$0xff]  ;;  %v12655_v38 = vld [vmem:[#allocation103_spill] sm:$0xff]  ;;  %v12658_v13 = vld [vmem:[#allocation117_spill] sm:$0xff] }
 0x486   :  { %v4454_v32 = vmul.f32 %v4197_v35, %v12649_v34  ;;  %vm4134_vm11 = vcmp.ne.s32.totalorder %v4102_v59, 0  ;;  %v4167_v58 = vsub.f32 0.0, %v4039_v31  ;;  %vm12653_vm3 = vnez %v12652_v3  ;;  %v12656_v35 = vld [vmem:[#allocation123_spill] sm:$0xff]  ;;  %v12659_v50 = vld [vmem:[#allocation112_spill] sm:$0xff] }
 0x487   :  { %v4040_v24 = vsel %vm12653_vm3, %v12651_v27, %v12650_v46  ;;  %4486 = vst [vmem:[#allocation9 + $0x2a0] sm:$0xff] %v4453_v29  ;;  %v4198_v51 = vsel %vm4134_vm11, %v4166_v42, %v4038_v56  ;;  %vm4135_vm9 = vcmp.ne.s32.totalorder %v4103_v44, 0  ;;  %v4104_v6 = vand.u32 2, %v12654_v33  ;;  %v12660_v56 = vld [vmem:[#allocation114_spill] sm:$0xff]  ;;  %v12661_v42 = vld [vmem:[#allocation124_spill] sm:$0xff] }
 0x488   :  { %v4168_v15 = vsub.f32 0.0, %v4040_v24  ;;  %4487 = vst [vmem:[#allocation9 + $0x2a8] sm:$0xff] %v4454_v32  ;;  %v4455_v49 = vmul.f32 %v4198_v51, %v12655_v38  ;;  %v4199_v18 = vsel %vm4135_vm9, %v4167_v58, %v4039_v31  ;;  %vm12657_vm2 = vnez %v12656_v35  ;;  %v12662_v44 = vld [vmem:[#allocation120_spill] sm:$0xff]  ;;  %v12664_v31 = vld [vmem:[#allocation110_spill] sm:$0xff]  ;;  %v12666_v51 = vld [vmem:[#allocation121_spill] sm:$0xff] }
 0x489   :  { %v4041_v59 = vsel %vm12657_vm2, %v9580_v1, %v9578_v63  ;;  %v4105_v60 = vand.u32 2, %v12658_v13  ;;  %v4456_v28 = vmul.f32 %v4199_v18, %v12659_v50  ;;  %vm4136_vm15 = vcmp.ne.s32.totalorder %v4104_v6, 0  ;;  %v12665_v63 = vld [vmem:[#allocation115_spill] sm:$0xff]  ;;  %v12669_v35 = vld [vmem:[#allocation118_spill] sm:$0xff] }
 0x48a   :  { %v4169_v29 = vsub.f32 0.0, %v4041_v59  ;;  %vm12663_vm13 = vnez %v12662_v44  ;;  %4488 = vst [vmem:[#allocation9 + $0x2b0] sm:$0xff] %v4455_v49  ;;  %v4200_v32 = vsel %vm4136_vm15, %v4168_v15, %v4040_v24  ;;  %v4106_v58 = vand.u32 2, %v12664_v31  ;;  %v12668_v6 = vld [vmem:[#allocation111_spill] sm:$0xff] }
 0x48b   :  { %v4042_v46 = vsel %vm12663_vm13, %v12661_v42, %v12660_v56  ;;  %vm4137_vm14 = vcmp.ne.s32.totalorder %v4105_v60, 0  ;;  %4489 = vst [vmem:[#allocation9 + $0x2b8] sm:$0xff] %v4456_v28  ;;  %v4457_v1 = vmul.f32 %v4200_v32, %v12665_v63  ;;  %vm12667_vm7 = vnez %v12666_v51  ;;  %v12672_v42 = vld [vmem:[#allocation128_spill] sm:$0xff] }
 0x48c   :  { %v4170_v27 = vsub.f32 0.0, %v4042_v46  ;;  %v4201_v3 = vsel %vm4137_vm14, %v4169_v29, %v4041_v59  ;;  %v4043_v33 = vsel %vm12667_vm7, %v9631_v5, %v9629_v41  ;;  %v4107_v18 = vand.u32 2, %v12668_v6  ;;  %v12670_v59 = vld [vmem:[#allocation107_spill] sm:$0xff]  ;;  %v12671_v29 = vld [vmem:[#allocation122_spill] sm:$0xff] }
 0x48d   :  { %v4458_v49 = vmul.f32 %v4201_v3, %v12669_v35  ;;  %vm4138_vm4 = vcmp.ne.s32.totalorder %v4106_v58, 0  ;;  %v4171_v24 = vsub.f32 0.0, %v4043_v33  ;;  %v4044_v15 = vsel %vm9633_vm6, %v9671_v0, %v9668_v62  ;;  %4490 = vst [vmem:[#allocation9 + $0x2c0] sm:$0xff] %v4457_v1  ;;  %v6370_v3 = vld [vmem:[#allocation5 + $0x8] sm:$0xff] }
 0x48e   :  { %v4202_v13 = vsel %vm4138_vm4, %v4170_v27, %v4042_v46  ;;  %vm4139_vm10 = vcmp.ne.s32.totalorder %v4107_v18, 0  ;;  %v4108_v60 = vand.u32 2, %v12670_v59  ;;  %v4172_v28 = vsub.f32 0.0, %v4044_v15  ;;  %v6369_v27 = vld [vmem:[#allocation5] sm:$0xff] }
 0x48f   :  { %4491 = vst [vmem:[#allocation9 + $0x2c8] sm:$0xff] %v4458_v49  ;;  %v4459_v41 = vmul.f32 %v4202_v13, %v12671_v29  ;;  %v4203_v5 = vsel %vm4139_vm10, %v4171_v24, %v4043_v33  ;;  %v4045_v56 = vsel %vm9661_vm1, %v9683_v57, %v9679_v25  ;;  %v4109_v44 = vand.u32 2, %v12672_v42  ;;  %v6372_v49 = vld [vmem:[#allocation5 + $0x18] sm:$0xff]  ;;  %v6373_v13 = vld [vmem:[#allocation5 + $0x20] sm:$0xff] }
 0x490   :  { %v4460_v47 = vmul.f32 %v4203_v5, %v12532_v26  ;;  %vm4140_vm6 = vcmp.ne.s32.totalorder %v4108_v60, 0  ;;  %v4173_v62 = vsub.f32 0.0, %v4045_v56  ;;  %v4046_v0 = vsel %vm9721_vm8, %v9753_v39, %v9750_v21 }
 0x491   :  { %4492 = vst [vmem:[#allocation9 + $0x2d0] sm:$0xff] %v4459_v41  ;;  %v4204_v46 = vsel %vm4140_vm6, %v4172_v28, %v4044_v15  ;;  %vm4141_vm0 = vcmp.ne.s32.totalorder %v4109_v44, 0  ;;  %v4110_v32 = vand.u32 2, %v9686_v53  ;;  %v4174_v31 = vsub.f32 0.0, %v4046_v0 }
 0x492   :  { %4493 = vst [vmem:[#allocation9 + $0x2d8] sm:$0xff] %v4460_v47  ;;  %v4461_v40 = vmul.f32 %v4204_v46, %v12535_v8  ;;  %v4205_v25 = vsel %vm4141_vm0, %v4173_v62, %v4045_v56  ;;  %v4047_v57 = vsel %vm9732_vm12, %v9773_v36, %v9770_v22  ;;  %v4111_v58 = vand.u32 2, %v9693_v9  ;;  %v6371_v9 = vld [vmem:[#allocation5 + $0x10] sm:$0xff]  ;;  %v6374_v62 = vld [vmem:[#allocation5 + $0x28] sm:$0xff] }
 0x493   :  { %v4462_v23 = vmul.f32 %v4205_v25, %v12538_v17  ;;  %vm4142_vm1 = vcmp.ne.s32.totalorder %v4110_v32, 0  ;;  %v4175_v21 = vsub.f32 0.0, %v4047_v57  ;;  %v9938_v39 = vstv %s9904_s10  ;;  %v6375_v46 = vld [vmem:[#allocation5 + $0x30] sm:$0xff] }
 0x494   :  { %4494 = vst [vmem:[#allocation9 + $0x2e0] sm:$0xff] %v4461_v40  ;;  %v4206_v53 = vsel %vm4142_vm1, %v4174_v31, %v4046_v0  ;;  %vm4143_vm8 = vcmp.ne.s32.totalorder %v4111_v58, 0  ;;  %v4501_v1 = vmul.f32 %v6369_v27, %v9938_v39  ;;  %v4502_v51 = vmul.f32 %v6370_v3, %v9938_v39 }
 0x495   :  { %4495 = vst [vmem:[#allocation9 + $0x2e8] sm:$0xff] %v4462_v23  ;;  %v4463_v19 = vmul.f32 %v4206_v53, %v12563_v43  ;;  %v4207_v22 = vsel %vm4143_vm8, %v4175_v21, %v4047_v57  ;;  %v4503_v36 = vmul.f32 %v6371_v9, %v9938_v39  ;;  %v9946_v24 = vmul.f32 %v6372_v49, %v9938_v39  ;;  %v6376_v57 = vld [vmem:[#allocation5 + $0x38] sm:$0xff] }
 0x496   :  { %v4464_v33 = vmul.f32 %v4207_v22, %v12574_v61  ;;  %v4533_v6 = vmul.f32 0.63661975, %v4501_v1  ;;  %v4534_v18 = vmul.f32 0.63661975, %v4502_v51  ;;  %v9949_v59 = vmul.f32 %v6373_v13, %v9938_v39 }
 0x497   :  { %4496 = vst [vmem:[#allocation9 + $0x2f0] sm:$0xff] %v4463_v19  ;;  %v4535_v15 = vmul.f32 0.63661975, %v4503_v36  ;;  %v4536_v42 = vmul.f32 0.63661975, %v9946_v24  ;;  %v9954_v0 = vmul.f32 %v6374_v62, %v9938_v39  ;;  %v9957_v32 = vmul.f32 %v6375_v46, %v9938_v39 }
 0x498   :  { %4497 = vst [vmem:[#allocation9 + $0x2f8] sm:$0xff] %v4464_v33  ;;  %v4565_v60 = vadd.f32 0.5, %v4533_v6  ;;  %v4566_v28 = vadd.f32 0.5, %v4534_v18  ;;  %v4537_v47 = vmul.f32 0.63661975, %v9949_v59  ;;  %v9960_v58 = vmul.f32 %v6376_v57, %v9938_v39 }
 0x499   :  { %v4567_v41 = vadd.f32 0.5, %v4535_v15  ;;  %v4568_v13 = vadd.f32 0.5, %v4536_v42 }
 0x49a   :  { %v4597_v5 = vfloor.f32 %v4565_v60  ;;  %v4598_v56 = vfloor.f32 %v4566_v28  ;;  %v4538_v60 = vmul.f32 0.63661975, %v9954_v0  ;;  %v9974_v57 = vadd.f32 0.5, %v4537_v47 }
 0x49b   :  { %v4599_v44 = vfloor.f32 %v4567_v41  ;;  %v9977_v42 = vmul.f32 0.63661975, %v9960_v58 }
 0x49c   :  { %v6171_v31 = vtrunc.f32 %v4597_v5  ;;  %v4661_v40 = vmul.f32 1.5703125, %v4597_v5  ;;  %v4725_v25 = vmul.f32 0.0004837513, %v4597_v5  ;;  %v4789_v23 = vmul.f32 7.54979e-08, %v4597_v5 }
 0x49d   :  { %v6173_v21 = vtrunc.f32 %v4598_v56  ;;  %v4662_v53 = vmul.f32 1.5703125, %v4598_v56  ;;  %v4726_v27 = vmul.f32 0.0004837513, %v4598_v56  ;;  %v6175_v22 = vtrunc.f32 %v4599_v44 }
 0x49e   :  { %v9962_v3 = vcvt.f32.s32 %v6171_v31  ;;  %v4693_v19 = vsub.f32 %v4501_v1, %v4661_v40  ;;  %v4663_v9 = vmul.f32 1.5703125, %v4599_v44  ;;  %v4790_v18 = vmul.f32 7.54979e-08, %v4598_v56 }
 0x49f   :  { %v9964_v33 = vcvt.f32.s32 %v6173_v21  ;;  %v4694_v6 = vsub.f32 %v4502_v51, %v4662_v53  ;;  %v4727_v49 = vmul.f32 0.0004837513, %v4599_v44  ;;  %v4791_v62 = vmul.f32 7.54979e-08, %v4599_v44 }
 0x4a0   :  { %12673 = vst [vmem:[#allocation126_spill] sm:$0xff] %v9962_v3  ;;  %v4757_v15 = vsub.f32 %v4693_v19, %v4725_v25  ;;  %v5653_v28 = vadd.s32 1, %v9962_v3  ;;  %v4695_v5 = vsub.f32 %v4503_v36, %v4663_v9  ;;  %v9969_v1 = vcvt.f32.s32 %v6175_v22 }
 0x4a1   :  { %12674 = vst [vmem:[#allocation119_spill] sm:$0xff] %v9964_v33  ;;  %v4758_v41 = vsub.f32 %v4694_v6, %v4726_v27  ;;  %v5654_v31 = vadd.s32 1, %v9964_v33  ;;  %v9972_v40 = vmul.f32 0.63661975, %v9957_v32  ;;  %v5397_v21 = vand.u32 1, %v9962_v3 }
 0x4a2   :  { %v4821_v46 = vsub.f32 %v4757_v15, %v4789_v23  ;;  %v4759_v56 = vsub.f32 %v4695_v5, %v4727_v49  ;;  %v4600_v36 = vfloor.f32 %v4568_v13  ;;  %v9980_v44 = vadd.f32 0.5, %v4538_v60 }
 0x4a3   :  { %v4822_v51 = vsub.f32 %v4758_v41, %v4790_v18  ;;  %v5685_v23 = vand.u32 2, %v5653_v28  ;;  %v5398_v27 = vand.u32 1, %v9964_v33  ;;  %v5686_v6 = vand.u32 2, %v5654_v31 }
 0x4a4   :  { %v4853_v25 = vmul.f32 %v4821_v46, %v4821_v46  ;;  %v9983_v19 = vsub.f32 %v4759_v56, %v4791_v62  ;;  %v9987_v15 = vadd.s32 1, %v9969_v1  ;;  %v6177_v41 = vtrunc.f32 %v4600_v36 }
 0x4a5   :  { %v4854_v53 = vmul.f32 %v4822_v51, %v4822_v51  ;;  %vm9989_vm12 = vcmp.ne.s32.totalorder %v5397_v21, 0  ;;  %vm9993_vm5 = vcmp.ne.s32.totalorder %v5398_v27, 0  ;;  %vm9999_vm11 = vcmp.ne.s32.totalorder %v5685_v23, 0 }
 0x4a6   :  { %v4917_v22 = vmul.f32 -0.00019515296, %v4853_v25  ;;  %v5109_v9 = vmul.f32 0.5, %v4853_v25  ;;  %v5205_v18 = vmul.f32 2.4433157e-05, %v4853_v25  ;;  %v4885_v13 = vmul.f32 %v4853_v25, %v4821_v46 }
 0x4a7   :  { %v4918_v49 = vmul.f32 -0.00019515296, %v4854_v53  ;;  %v5110_v5 = vmul.f32 0.5, %v4854_v53  ;;  %v5206_v62 = vmul.f32 2.4433157e-05, %v4854_v53  ;;  %v5173_v56 = vmul.f32 %v4853_v25, %v4853_v25 }
 0x4a8   :  { %v4949_v60 = vadd.f32 0.008332161, %v4917_v22  ;;  %v5237_v61 = vadd.f32 -0.0013887316, %v5205_v18  ;;  %v4855_v47 = vmul.f32 %v9983_v19, %v9983_v19  ;;  %v5141_v17 = vsub.f32 1.0, %v5109_v9 }
 0x4a9   :  { %v4950_v43 = vadd.f32 0.008332161, %v4918_v49  ;;  %v4886_v8 = vmul.f32 %v4854_v53, %v4822_v51  ;;  %v5238_v22 = vadd.f32 -0.0013887316, %v5206_v62  ;;  %v5174_v29 = vmul.f32 %v4854_v53, %v4854_v53 }
 0x4aa   :  { %v4981_v33 = vmul.f32 %v4949_v60, %v4853_v25  ;;  %v5269_v21 = vmul.f32 %v5237_v61, %v4853_v25  ;;  %v4919_v18 = vmul.f32 -0.00019515296, %v4855_v47  ;;  %v5142_v27 = vsub.f32 1.0, %v5110_v5 }
 0x4ab   :  { %v4982_v26 = vmul.f32 %v4950_v43, %v4854_v53  ;;  %v5270_v35 = vmul.f32 %v5238_v22, %v4854_v53  ;;  %vm10003_vm3 = vcmp.ne.s32.totalorder %v5686_v6, 0  ;;  %v10007_v50 = vcvt.f32.s32 %v6177_v41 }
 0x4ac   :  { %v5013_v49 = vadd.f32 -0.16666655, %v4981_v33  ;;  %v5301_v9 = vadd.f32 0.041666646, %v5269_v21  ;;  %v4887_v61 = vmul.f32 %v4855_v47, %v9983_v19  ;;  %v4951_v25 = vadd.f32 0.008332161, %v4919_v18 }
 0x4ad   :  { %v5014_v60 = vadd.f32 -0.16666655, %v4982_v26  ;;  %v5302_v62 = vadd.f32 0.041666646, %v5270_v35  ;;  %v5111_v38 = vmul.f32 0.5, %v4855_v47  ;;  %v5175_v5 = vmul.f32 %v4855_v47, %v4855_v47 }
 0x4ae   :  { %v5045_v23 = vmul.f32 %v5013_v49, %v4885_v13  ;;  %v5207_v43 = vmul.f32 2.4433157e-05, %v4855_v47  ;;  %v5333_v34 = vmul.f32 %v5301_v9, %v5173_v56  ;;  %v4983_v33 = vmul.f32 %v4951_v25, %v4855_v47 }
 0x4af   :  { %v5046_v54 = vmul.f32 %v5014_v60, %v4886_v8  ;;  %v5334_v6 = vmul.f32 %v5302_v62, %v5174_v29  ;;  %v4664_v20 = vmul.f32 1.5703125, %v4600_v36  ;;  %v4728_v11 = vmul.f32 0.0004837513, %v4600_v36  ;;  %v12683_v60 = vld [vmem:[#allocation15_spill] sm:$0xff] }
 0x4b0   :  { %v10010_v53 = vadd.f32 %v5045_v23, %v4821_v46  ;;  %v5239_v22 = vadd.f32 -0.0013887316, %v5207_v43  ;;  %v10012_v41 = vadd.f32 %v5333_v34, %v5141_v17  ;;  %v5015_v26 = vadd.f32 -0.16666655, %v4983_v33 }
 0x4b1   :  { %v10014_v21 = vadd.f32 %v5046_v54, %v4822_v51  ;;  %v10016_v18 = vadd.f32 %v5334_v6, %v5142_v27  ;;  %v4696_v13 = vsub.f32 %v9946_v24, %v4664_v20  ;;  %v4792_v56 = vmul.f32 7.54979e-08, %v4600_v36 }
 0x4b2   :  { %v5271_v35 = vmul.f32 %v5239_v22, %v4855_v47  ;;  %v5493_v8 = vsel %vm9989_vm12, %v10010_v53, %v10012_v41  ;;  %v5047_v29 = vmul.f32 %v5015_v26, %v4887_v61  ;;  %v5143_v46 = vsub.f32 1.0, %v5111_v38 }
 0x4b3   :  { %v4601_v17 = vfloor.f32 %v9974_v57  ;;  %v5749_v34 = vsub.f32 0.0, %v5493_v8  ;;  %v5494_v54 = vsel %vm9993_vm5, %v10014_v21, %v10016_v18  ;;  %v4760_v47 = vsub.f32 %v4696_v13, %v4728_v11 }
 0x4b4   :  { %v5303_v51 = vadd.f32 0.041666646, %v5271_v35  ;;  %v5750_v49 = vsub.f32 0.0, %v5494_v54  ;;  %v10029_v20 = vadd.f32 %v5047_v29, %v9983_v19  ;;  %v5687_v24 = vand.u32 2, %v9987_v15 }
 0x4b5   :  { %v10033_v36 = vadd.f32 0.5, %v9972_v40  ;;  %v5781_v38 = vsel %vm9999_vm11, %v5749_v34, %v5493_v8  ;;  %v4824_v27 = vsub.f32 %v4760_v47, %v4792_v56  ;;  %v6179_v9 = vtrunc.f32 %v4601_v17 }
 0x4b6   :  { %v5335_v57 = vmul.f32 %v5303_v51, %v5175_v5  ;;  %v5813_v61 = vmul.f32 %v5781_v38, %v12683_v60  ;;  %v5782_v11 = vsel %vm10003_vm3, %v5750_v49, %v5494_v54  ;;  %v12684_v25 = vand.u32 1, %v9969_v1 }
 0x4b7   :  { %v4665_v15 = vmul.f32 1.5703125, %v4601_v17  ;;  %v5814_v40 = vmul.f32 %v5782_v11, %v6583_v4  ;;  %v4856_v3 = vmul.f32 %v4824_v27, %v4824_v27  ;;  %v5656_v62 = vadd.s32 1, %v10007_v50 }
 0x4b8   :  { %vm10042_vm9 = vcmp.ne.s32.totalorder %v12684_v25, 0  ;;  %v10047_v23 = vadd.f32 %v5335_v57, %v5143_v46  ;;  %5846 = vst [vmem:[#allocation8 + $0x300] sm:$0xff] %v5813_v61  ;;  %v10050_v43 = vcvt.f32.s32 %v6179_v9  ;;  %v4729_v33 = vmul.f32 0.0004837513, %v4601_v17 }
 0x4b9   :  { %v4697_v63 = vsub.f32 %v9949_v59, %v4665_v15  ;;  %v4793_v5 = vmul.f32 7.54979e-08, %v4601_v17  ;;  %5847 = vst [vmem:[#allocation8 + $0x308] sm:$0xff] %v5814_v40  ;;  %vm5719_vm2 = vcmp.ne.s32.totalorder %v5687_v24, 0  ;;  %v4920_v22 = vmul.f32 -0.00019515296, %v4856_v3 }
 0x4ba   :  { %12687 = vst [vmem:[#allocation127_spill] sm:$0xff] %v10050_v43  ;;  %v5495_v6 = vsel %vm10042_vm9, %v10029_v20, %v10047_v23  ;;  %v5400_v26 = vand.u32 1, %v10007_v50  ;;  %v5208_v13 = vmul.f32 2.4433157e-05, %v4856_v3  ;;  %v4602_v8 = vfloor.f32 %v9980_v44 }
 0x4bb   :  { %v5751_v35 = vsub.f32 0.0, %v5495_v6  ;;  %v4761_v56 = vsub.f32 %v4697_v63, %v4729_v33  ;;  %v4888_v29 = vmul.f32 %v4856_v3, %v4824_v27  ;;  %v4952_v46 = vadd.f32 0.008332161, %v4920_v22 }
 0x4bc   :  { %v5112_v59 = vmul.f32 0.5, %v4856_v3  ;;  %v5688_v34 = vand.u32 2, %v5656_v62  ;;  %v5240_v54 = vadd.f32 -0.0013887316, %v5208_v13  ;;  %v5657_v47 = vadd.s32 1, %v10050_v43 }
 0x4bd   :  { %v5783_v17 = vsel %vm5719_vm2, %v5751_v35, %v5495_v6  ;;  %v4825_v51 = vsub.f32 %v4761_v56, %v4793_v5  ;;  %v4984_v24 = vmul.f32 %v4952_v46, %v4856_v3  ;;  %v5176_v38 = vmul.f32 %v4856_v3, %v4856_v3 }
 0x4be   :  { %v5815_v49 = vmul.f32 %v5783_v17, %v12542_v16  ;;  %v5401_v57 = vand.u32 1, %v10050_v43  ;;  %v5272_v9 = vmul.f32 %v5240_v54, %v4856_v3  ;;  %v6181_v11 = vtrunc.f32 %v4602_v8 }
 0x4bf   :  { %v4857_v61 = vmul.f32 %v4825_v51, %v4825_v51  ;;  %v4666_v25 = vmul.f32 1.5703125, %v4602_v8  ;;  %v5016_v44 = vadd.f32 -0.16666655, %v4984_v24  ;;  %vm10062_vm15 = vcmp.ne.s32.totalorder %v5400_v26, 0 }
 0x4c0   :  { %5848 = vst [vmem:[#allocation8 + $0x310] sm:$0xff] %v5815_v49  ;;  %vm10066_vm13 = vcmp.ne.s32.totalorder %v5688_v34, 0  ;;  %v4730_v62 = vmul.f32 0.0004837513, %v4602_v8  ;;  %v5144_v63 = vsub.f32 1.0, %v5112_v59  ;;  %v5304_v33 = vadd.f32 0.041666646, %v5272_v9 }
 0x4c1   :  { %v4921_v5 = vmul.f32 -0.00019515296, %v4857_v61  ;;  %v5689_v6 = vand.u32 2, %v5657_v47  ;;  %v5048_v22 = vmul.f32 %v5016_v44, %v4888_v29  ;;  %v5209_v3 = vmul.f32 2.4433157e-05, %v4857_v61 }
 0x4c2   :  { %v4698_v35 = vsub.f32 %v9954_v0, %v4666_v25  ;;  %v4794_v13 = vmul.f32 7.54979e-08, %v4602_v8  ;;  %v5336_v56 = vmul.f32 %v5304_v33, %v5176_v38  ;;  %vm10071_vm14 = vcmp.ne.s32.totalorder %v5401_v57, 0 }
 0x4c3   :  { %v4953_v46 = vadd.f32 0.008332161, %v4921_v5  ;;  %v12692_v26 = vmov 0  ;;  %v10075_v34 = vcvt.f32.s32 %v6181_v11  ;;  %v10077_v17 = vadd.f32 %v5048_v22, %v4824_v27 }
 0x4c4   :  { %v12693_v26 = vsel %vm10071_vm14, 4294967295, %v12692_v26  ;;  %v5113_v54 = vmul.f32 0.5, %v4857_v61  ;;  %v5241_v59 = vadd.f32 -0.0013887316, %v5209_v3  ;;  %v4762_v49 = vsub.f32 %v4698_v35, %v4730_v62 }
 0x4c5   :  { %12694 = vst [vmem:[#allocation125_spill] sm:$0xff] %v12693_v26  ;;  %12695 = vst [vmem:[#allocation129_spill] sm:$0xff] %v10075_v34  ;;  %v10079_v24 = vadd.f32 %v5336_v56, %v5144_v63  ;;  %v4889_v29 = vmul.f32 %v4857_v61, %v4825_v51  ;;  %v4985_v47 = vmul.f32 %v4953_v46, %v4857_v61  ;;  %v4603_v0 = vfloor.f32 %v10033_v36 }
 0x4c6   :  { %v5177_v8 = vmul.f32 %v4857_v61, %v4857_v61  ;;  %v5273_v38 = vmul.f32 %v5241_v59, %v4857_v61  ;;  %vm10082_vm7 = vcmp.ne.s32.totalorder %v5689_v6, 0  ;;  %v4826_v9 = vsub.f32 %v4762_v49, %v4794_v13 }
 0x4c7   :  { %v5496_v27 = vsel %vm10062_vm15, %v10077_v17, %v10079_v24  ;;  %v5017_v11 = vadd.f32 -0.16666655, %v4985_v47  ;;  %v6183_v25 = vtrunc.f32 %v4603_v0  ;;  %v4667_v44 = vmul.f32 1.5703125, %v4603_v0 }
 0x4c8   :  { %v5752_v62 = vsub.f32 0.0, %v5496_v27  ;;  %v5145_v63 = vsub.f32 1.0, %v5113_v54  ;;  %v5305_v33 = vadd.f32 0.041666646, %v5273_v38  ;;  %v4858_v5 = vmul.f32 %v4826_v9, %v4826_v9 }
 0x4c9   :  { %v5049_v36 = vmul.f32 %v5017_v11, %v4889_v29  ;;  %v5658_v61 = vadd.s32 1, %v10075_v34  ;;  %v4699_v6 = vsub.f32 %v9957_v32, %v4667_v44  ;;  %v4731_v22 = vmul.f32 0.0004837513, %v4603_v0 }
 0x4ca   :  { %v5784_v3 = vsel %vm10066_vm13, %v5752_v62, %v5496_v27  ;;  %v5337_v35 = vmul.f32 %v5305_v33, %v5177_v8  ;;  %v4922_v13 = vmul.f32 -0.00019515296, %v4858_v5  ;;  %v4572_v56 = vadd.f32 0.5, %v9977_v42 }
 0x4cb   :  { %v5816_v46 = vmul.f32 %v5784_v3, %v11834_v45  ;;  %v10096_v59 = vadd.f32 %v5049_v36, %v4825_v51  ;;  %v5114_v54 = vmul.f32 0.5, %v4858_v5  ;;  %v10098_v49 = vcvt.f32.s32 %v6183_v25 }
 0x4cc   :  { %v10100_v29 = vadd.f32 %v5337_v35, %v5145_v63  ;;  %v4954_v47 = vadd.f32 0.008332161, %v4922_v13  ;;  %v5210_v38 = vmul.f32 2.4433157e-05, %v4858_v5  ;;  %v4763_v32 = vsub.f32 %v4699_v6, %v4731_v22 }
 0x4cd   :  { %12698 = vst [vmem:[#allocation133_spill] sm:$0xff] %v10098_v49  ;;  %5849 = vst [vmem:[#allocation8 + $0x318] sm:$0xff] %v5816_v46  ;;  %v4890_v11 = vmul.f32 %v4858_v5, %v4826_v9  ;;  %v5402_v40 = vand.u32 1, %v10075_v34  ;;  %v5690_v8 = vand.u32 2, %v5658_v61  ;;  %v4795_v27 = vmul.f32 7.54979e-08, %v4603_v0 }
 0x4ce   :  { %v5497_v42 = vsel %vm10071_vm14, %v10096_v59, %v10100_v29  ;;  %v4986_v51 = vmul.f32 %v4954_v47, %v4858_v5  ;;  %v5242_v44 = vadd.f32 -0.0013887316, %v5210_v38  ;;  %v4604_v25 = vfloor.f32 %v4572_v56 }
 0x4cf   :  { %v5753_v62 = vsub.f32 0.0, %v5497_v42  ;;  %v5146_v63 = vsub.f32 1.0, %v5114_v54  ;;  %v5178_v33 = vmul.f32 %v4858_v5, %v4858_v5  ;;  %v4827_v36 = vsub.f32 %v4763_v32, %v4795_v27 }
 0x4d0   :  { %v5018_v3 = vadd.f32 -0.16666655, %v4986_v51  ;;  %v5274_v6 = vmul.f32 %v5242_v44, %v4858_v5  ;;  %v5403_v22 = vand.u32 1, %v10098_v49  ;;  %v4668_v35 = vmul.f32 1.5703125, %v4604_v25 }
 0x4d1   :  { %v5785_v0 = vsel %vm10082_vm7, %v5753_v62, %v5497_v42  ;;  %v4859_v61 = vmul.f32 %v4827_v36, %v4827_v36  ;;  %v5659_v13 = vadd.s32 1, %v10098_v49  ;;  %v6185_v46 = vtrunc.f32 %v4604_v25 }
 0x4d2   :  { %v5817_v47 = vmul.f32 %v5785_v0, %v12551_v48  ;;  %v5050_v38 = vmul.f32 %v5018_v3, %v4890_v11  ;;  %v5306_v56 = vadd.f32 0.041666646, %v5274_v6  ;;  %v4732_v34 = vmul.f32 0.0004837513, %v4604_v25 }
 0x4d3   :  { %vm10112_vm4 = vcmp.ne.s32.totalorder %v5402_v40, 0  ;;  %v12699_v54 = vmov 0  ;;  %vm10116_vm10 = vcmp.ne.s32.totalorder %v5690_v8, 0  ;;  %v4923_v32 = vmul.f32 -0.00019515296, %v4859_v61 }
 0x4d4   :  { %v12700_v54 = vsel %vm10112_vm4, 4294967295, %v12699_v54  ;;  %5850 = vst [vmem:[#allocation8 + $0x320] sm:$0xff] %v5817_v47  ;;  %v10120_v57 = vadd.f32 %v5050_v38, %v4826_v9  ;;  %v5338_v27 = vmul.f32 %v5306_v56, %v5178_v33  ;;  %v5211_v42 = vmul.f32 2.4433157e-05, %v4859_v61  ;;  %v6377_v33 = vld [vmem:[#allocation5 + $0x40] sm:$0xff] }
 0x4d5   :  { %12701 = vst [vmem:[#allocation17_spill] sm:$0xff] %v12700_v54  ;;  %v4700_v51 = vsub.f32 %v9960_v58, %v4668_v35  ;;  %v4955_v44 = vadd.f32 0.008332161, %v4923_v32  ;;  %vm10123_vm6 = vcmp.ne.s32.totalorder %v5403_v22, 0  ;;  %v12705_v11 = vmov 0  ;;  %v6378_v58 = vld [vmem:[#allocation5 + $0x48] sm:$0xff] }
 0x4d6   :  { %12704 = vst [vmem:[#allocation16_spill] sm:$0xff] %v10120_v57  ;;  %v12706_v11 = vsel %vm10123_vm6, 4294967295, %v12705_v11  ;;  %v5691_v40 = vand.u32 2, %v5659_v13  ;;  %v10127_v62 = vcvt.f32.s32 %v6185_v46  ;;  %v4796_v8 = vmul.f32 7.54979e-08, %v4604_v25 }
 0x4d7   :  { %12707 = vst [vmem:[#allocation22_spill] sm:$0xff] %v12706_v11  ;;  %v10129_v3 = vadd.f32 %v5338_v27, %v5146_v63  ;;  %v5115_v6 = vmul.f32 0.5, %v4859_v61  ;;  %v5243_v0 = vadd.f32 -0.0013887316, %v5211_v42  ;;  %v4764_v47 = vsub.f32 %v4700_v51, %v4732_v34  ;;  %v6379_v27 = vld [vmem:[#allocation5 + $0x50] sm:$0xff] }
 0x4d8   :  { %12708 = vst [vmem:[#allocation31_spill] sm:$0xff] %v10127_v62  ;;  %v4891_v9 = vmul.f32 %v4859_v61, %v4827_v36  ;;  %v4987_v38 = vmul.f32 %v4955_v44, %v4859_v61  ;;  %v4509_v56 = vmul.f32 %v6377_v33, %v9938_v39  ;;  %v10133_v22 = vmul.f32 %v6378_v58, %v9938_v39 }
 0x4d9   :  { %12709 = vst [vmem:[#allocation19_spill] sm:$0xff] %v10129_v3  ;;  %v5498_v35 = vsel %vm10112_vm4, %v10120_v57, %v10129_v3  ;;  %v5179_v25 = vmul.f32 %v4859_v61, %v4859_v61  ;;  %v5275_v63 = vmul.f32 %v5243_v0, %v4859_v61  ;;  %v4828_v13 = vsub.f32 %v4764_v47, %v4796_v8 }
 0x4da   :  { %v5754_v46 = vsub.f32 0.0, %v5498_v35  ;;  %v5019_v32 = vadd.f32 -0.16666655, %v4987_v38  ;;  %v4541_v34 = vmul.f32 0.63661975, %v4509_v56  ;;  %v10140_v42 = vmul.f32 %v6379_v27, %v9938_v39 }
 0x4db   :  { %v5147_v51 = vsub.f32 1.0, %v5115_v6  ;;  %v5307_v44 = vadd.f32 0.041666646, %v5275_v63  ;;  %v4860_v33 = vmul.f32 %v4828_v13, %v4828_v13  ;;  %v4542_v58 = vmul.f32 0.63661975, %v10133_v22 }
 0x4dc   :  { %v5786_v48 = vsel %vm10116_vm10, %v5754_v46, %v5498_v35  ;;  %v5051_v49 = vmul.f32 %v5019_v32, %v4891_v9  ;;  %vm10145_vm0 = vcmp.ne.s32.totalorder %v5691_v40, 0  ;;  %v4573_v61 = vadd.f32 0.5, %v4541_v34 }
 0x4dd   :  { %v5818_v8 = vmul.f32 %v5786_v48, %v12562_v37  ;;  %v5339_v0 = vmul.f32 %v5307_v44, %v5179_v25  ;;  %v4924_v47 = vmul.f32 -0.00019515296, %v4860_v33  ;;  %v5404_v38 = vand.u32 1, %v10127_v62 }
 0x4de   :  { %v10151_v6 = vadd.f32 %v5051_v49, %v4827_v36  ;;  %v5212_v63 = vmul.f32 2.4433157e-05, %v4860_v33  ;;  %v5660_v27 = vadd.s32 1, %v10127_v62  ;;  %v4543_v5 = vmul.f32 0.63661975, %v10140_v42 }
 0x4df   :  { %5851 = vst [vmem:[#allocation8 + $0x328] sm:$0xff] %v5818_v8  ;;  %v10155_v9 = vadd.f32 %v5339_v0, %v5147_v51  ;;  %v4956_v40 = vadd.f32 0.008332161, %v4924_v47  ;;  %v4605_v35 = vfloor.f32 %v4573_v61  ;;  %v4574_v46 = vadd.f32 0.5, %v4542_v58 }
 0x4e0   :  { %12712 = vst [vmem:[#allocation24_spill] sm:$0xff] %v10151_v6  ;;  %v4892_v32 = vmul.f32 %v4860_v33, %v4828_v13  ;;  %v5116_v34 = vmul.f32 0.5, %v4860_v33  ;;  %v5180_v48 = vmul.f32 %v4860_v33, %v4860_v33  ;;  %v5244_v25 = vadd.f32 -0.0013887316, %v5212_v63 }
 0x4e1   :  { %12713 = vst [vmem:[#allocation35_spill] sm:$0xff] %v10155_v9  ;;  %v5499_v49 = vsel %vm10123_vm6, %v10151_v6, %v10155_v9  ;;  %v4988_v36 = vmul.f32 %v4956_v40, %v4860_v33  ;;  %v6187_v44 = vtrunc.f32 %v4605_v35  ;;  %v4669_v37 = vmul.f32 1.5703125, %v4605_v35 }
 0x4e2   :  { %v5755_v62 = vsub.f32 0.0, %v5499_v49  ;;  %v5276_v3 = vmul.f32 %v5244_v25, %v4860_v33  ;;  %v4733_v8 = vmul.f32 0.0004837513, %v4605_v35  ;;  %v4575_v51 = vadd.f32 0.5, %v4543_v5 }
 0x4e3   :  { %v5020_v0 = vadd.f32 -0.16666655, %v4988_v36  ;;  %v4701_v47 = vsub.f32 %v4509_v56, %v4669_v37  ;;  %v4797_v61 = vmul.f32 7.54979e-08, %v4605_v35  ;;  %v4606_v58 = vfloor.f32 %v4574_v46 }
 0x4e4   :  { %v5787_v57 = vsel %vm10145_vm0, %v5755_v62, %v5499_v49  ;;  %v5148_v63 = vsub.f32 1.0, %v5116_v34  ;;  %v5308_v45 = vadd.f32 0.041666646, %v5276_v3  ;;  %v10163_v43 = vcvt.f32.s32 %v6187_v44 }
 0x4e5   :  { %v5819_v11 = vmul.f32 %v5787_v57, %v12564_v10  ;;  %v5052_v40 = vmul.f32 %v5020_v0, %v4892_v32  ;;  %vm10166_vm1 = vcmp.ne.s32.totalorder %v5404_v38, 0  ;;  %v12715_v9 = vmov 0  ;;  %v6380_v32 = vld [vmem:[#allocation5 + $0x58] sm:$0xff] }
 0x4e6   :  { %12714 = vst [vmem:[#allocation32_spill] sm:$0xff] %v10163_v43  ;;  %v12716_v9 = vsel %vm10166_vm1, 4294967295, %v12715_v9  ;;  %v4765_v33 = vsub.f32 %v4701_v47, %v4733_v8  ;;  %v5340_v5 = vmul.f32 %v5308_v45, %v5180_v48  ;;  %v5692_v25 = vand.u32 2, %v5660_v27 }
 0x4e7   :  { %12717 = vst [vmem:[#allocation28_spill] sm:$0xff] %v12716_v9  ;;  %v6189_v37 = vtrunc.f32 %v4606_v58  ;;  %v4670_v56 = vmul.f32 1.5703125, %v4606_v58  ;;  %5852 = vst [vmem:[#allocation8 + $0x330] sm:$0xff] %v5819_v11  ;;  %v10170_v35 = vadd.f32 %v5052_v40, %v4828_v13  ;;  %v4734_v62 = vmul.f32 0.0004837513, %v4606_v58 }
 0x4e8   :  { %v4829_v54 = vsub.f32 %v4765_v33, %v4797_v61  ;;  %v4607_v3 = vfloor.f32 %v4575_v51  ;;  %v10172_v46 = vadd.f32 %v5340_v5, %v5148_v63  ;;  %v5661_v57 = vadd.s32 1, %v10163_v43 }
 0x4e9   :  { %12718 = vst [vmem:[#allocation23_spill] sm:$0xff] %v10170_v35  ;;  %v4702_v38 = vsub.f32 %v10133_v22, %v4670_v56  ;;  %v10177_v34 = vmul.f32 %v6380_v32, %v9938_v39  ;;  %v5405_v27 = vand.u32 1, %v10163_v43  ;;  %v4798_v48 = vmul.f32 7.54979e-08, %v4606_v58 }
 0x4ea   :  { %12719 = vst [vmem:[#allocation21_spill] sm:$0xff] %v10172_v46  ;;  %v4861_v45 = vmul.f32 %v4829_v54, %v4829_v54  ;;  %v5500_v11 = vsel %vm10166_vm1, %v10170_v35, %v10172_v46  ;;  %vm5724_vm8 = vcmp.ne.s32.totalorder %v5692_v25, 0  ;;  %v10184_v13 = vcvt.f32.s32 %v6189_v37 }
 0x4eb   :  { %v4766_v49 = vsub.f32 %v4702_v38, %v4734_v62  ;;  %v5756_v36 = vsub.f32 0.0, %v5500_v11  ;;  %v4671_v22 = vmul.f32 1.5703125, %v4607_v3  ;;  %v5693_v51 = vand.u32 2, %v5661_v57 }
 0x4ec   :  { %12720 = vst [vmem:[#allocation33_spill] sm:$0xff] %v10184_v13  ;;  %v4925_v44 = vmul.f32 -0.00019515296, %v4861_v45  ;;  %v5213_v8 = vmul.f32 2.4433157e-05, %v4861_v45  ;;  %v5117_v58 = vmul.f32 0.5, %v4861_v45  ;;  %v6191_v33 = vtrunc.f32 %v4607_v3 }
 0x4ed   :  { %v4830_v0 = vsub.f32 %v4766_v49, %v4798_v48  ;;  %v4544_v47 = vmul.f32 0.63661975, %v10177_v34  ;;  %v5788_v61 = vsel %vm5724_vm8, %v5756_v36, %v5500_v11  ;;  %vm10187_vm11 = vcmp.ne.s32.totalorder %v5405_v27, 0 }
 0x4ee   :  { %v4957_v63 = vadd.f32 0.008332161, %v4925_v44  ;;  %v5820_v5 = vmul.f32 %v5788_v61, %v12572_v55  ;;  %v5245_v25 = vadd.f32 -0.0013887316, %v5213_v8  ;;  %v5662_v56 = vadd.s32 1, %v10184_v13 }
 0x4ef   :  { %v4862_v37 = vmul.f32 %v4830_v0, %v4830_v0  ;;  %v4893_v62 = vmul.f32 %v4861_v45, %v4829_v54  ;;  %v4703_v57 = vsub.f32 %v10140_v42, %v4671_v22  ;;  %v4735_v32 = vmul.f32 0.0004837513, %v4607_v3 }
 0x4f0   :  { %v4989_v38 = vmul.f32 %v4957_v63, %v4861_v45  ;;  %5853 = vst [vmem:[#allocation8 + $0x338] sm:$0xff] %v5820_v5  ;;  %v5181_v48 = vmul.f32 %v4861_v45, %v4861_v45  ;;  %v5277_v11 = vmul.f32 %v5245_v25, %v4861_v45  ;;  %v5406_v27 = vand.u32 1, %v10184_v13 }
 0x4f1   :  { %v4926_v49 = vmul.f32 -0.00019515296, %v4862_v37  ;;  %v5149_v44 = vsub.f32 1.0, %v5117_v58  ;;  %v5214_v43 = vmul.f32 2.4433157e-05, %v4862_v37  ;;  %v10195_v10 = vcvt.f32.s32 %v6191_v33 }
 0x4f2   :  { %v5021_v36 = vadd.f32 -0.16666655, %v4989_v38  ;;  %v5309_v8 = vadd.f32 0.041666646, %v5277_v11  ;;  %v5694_v55 = vand.u32 2, %v5662_v56  ;;  %v4767_v9 = vsub.f32 %v4703_v57, %v4735_v32  ;;  %v6381_v32 = vld [vmem:[#allocation5 + $0x60] sm:$0xff] }
 0x4f3   :  { %12723 = vst [vmem:[#allocation37_spill] sm:$0xff] %v10195_v10  ;;  %v4958_v61 = vadd.f32 0.008332161, %v4926_v49  ;;  %v5118_v63 = vmul.f32 0.5, %v4862_v37  ;;  %v5246_v35 = vadd.f32 -0.0013887316, %v5214_v43  ;;  %v4894_v5 = vmul.f32 %v4862_v37, %v4830_v0 }
 0x4f4   :  { %v5053_v46 = vmul.f32 %v5021_v36, %v4893_v62  ;;  %v4799_v42 = vmul.f32 7.54979e-08, %v4607_v3  ;;  %v5341_v22 = vmul.f32 %v5309_v8, %v5181_v48  ;;  %v4576_v45 = vadd.f32 0.5, %v4544_v47 }
 0x4f5   :  { %v4990_v6 = vmul.f32 %v4958_v61, %v4862_v37  ;;  %v5182_v13 = vmul.f32 %v4862_v37, %v4862_v37  ;;  %v5278_v38 = vmul.f32 %v5246_v35, %v4862_v37  ;;  %vm10201_vm3 = vcmp.ne.s32.totalorder %v5693_v51, 0 }
 0x4f6   :  { %v10197_v25 = vadd.f32 %v5053_v46, %v4829_v54  ;;  %v4831_v58 = vsub.f32 %v4767_v9, %v4799_v42  ;;  %v10199_v26 = vadd.f32 %v5341_v22, %v5149_v44  ;;  %vm10205_vm2 = vcmp.ne.s32.totalorder %v5406_v27, 0  ;;  %v6382_v27 = vld [vmem:[#allocation5 + $0x68] sm:$0xff] }
 0x4f7   :  { %v5022_v56 = vadd.f32 -0.16666655, %v4990_v6  ;;  %v12726_v62 = vmov 0  ;;  %v5150_v43 = vsub.f32 1.0, %v5118_v63  ;;  %v5310_v3 = vadd.f32 0.041666646, %v5278_v38 }
 0x4f8   :  { %v12727_v62 = vsel %vm10205_vm2, 4294967295, %v12726_v62  ;;  %vm10209_vm13 = vcmp.ne.s32.totalorder %v5694_v55, 0  ;;  %v4863_v54 = vmul.f32 %v4831_v58, %v4831_v58  ;;  %v5501_v9 = vsel %vm10187_vm11, %v10197_v25, %v10199_v26 }
 0x4f9   :  { %12728 = vst [vmem:[#allocation34_spill] sm:$0xff] %v12727_v62  ;;  %v5054_v35 = vmul.f32 %v5022_v56, %v4894_v5  ;;  %v5663_v46 = vadd.s32 1, %v10195_v10  ;;  %v4608_v6 = vfloor.f32 %v4576_v45  ;;  %v5757_v51 = vsub.f32 0.0, %v5501_v9 }
 0x4fa   :  { %v5342_v37 = vmul.f32 %v5310_v3, %v5182_v13  ;;  %v4927_v57 = vmul.f32 -0.00019515296, %v4863_v54  ;;  %v10219_v48 = vmul.f32 %v6381_v32, %v9938_v39  ;;  %v5215_v11 = vmul.f32 2.4433157e-05, %v4863_v54 }
 0x4fb   :  { %v10221_v55 = vadd.f32 %v5054_v35, %v4830_v0  ;;  %v6193_v49 = vtrunc.f32 %v4608_v6  ;;  %v10224_v36 = vmul.f32 %v6382_v27, %v9938_v39  ;;  %v5789_v44 = vsel %vm10201_vm3, %v5757_v51, %v5501_v9 }
 0x4fc   :  { %v10228_v8 = vadd.f32 %v5342_v37, %v5150_v43  ;;  %v4895_v61 = vmul.f32 %v4863_v54, %v4831_v58  ;;  %v4959_v13 = vadd.f32 0.008332161, %v4927_v57  ;;  %v5821_v63 = vmul.f32 %v5789_v44, %v12576_v14 }
 0x4fd   :  { %v5119_v42 = vmul.f32 0.5, %v4863_v54  ;;  %v5247_v22 = vadd.f32 -0.0013887316, %v5215_v11  ;;  %v4672_v5 = vmul.f32 1.5703125, %v4608_v6  ;;  %v5183_v38 = vmul.f32 %v4863_v54, %v4863_v54 }
 0x4fe   :  { %12731 = vst [vmem:[#allocation46_spill] sm:$0xff] %v10228_v8  ;;  %v5502_v0 = vsel %vm10205_vm2, %v10221_v55, %v10228_v8  ;;  %v4991_v45 = vmul.f32 %v4959_v13, %v4863_v54  ;;  %v4736_v56 = vmul.f32 0.0004837513, %v4608_v6  ;;  %5854 = vst [vmem:[#allocation8 + $0x340] sm:$0xff] %v5821_v63  ;;  %v4800_v9 = vmul.f32 7.54979e-08, %v4608_v6 }
 0x4ff   :  { %v5758_v33 = vsub.f32 0.0, %v5502_v0  ;;  %v5279_v3 = vmul.f32 %v5247_v22, %v4863_v54  ;;  %v4704_v43 = vsub.f32 %v10177_v34, %v4672_v5  ;;  %v5407_v51 = vand.u32 1, %v10195_v10 }
 0x500   :  { %v5023_v35 = vadd.f32 -0.16666655, %v4991_v45  ;;  %v10237_v37 = vcvt.f32.s32 %v6193_v49  ;;  %v4545_v57 = vmul.f32 0.63661975, %v10219_v48  ;;  %v5151_v11 = vsub.f32 1.0, %v5119_v42  ;;  %v6383_v45 = vld [vmem:[#allocation5 + $0x70] sm:$0xff] }
 0x501   :  { %v5790_v32 = vsel %vm10209_vm13, %v5758_v33, %v5502_v0  ;;  %v5311_v27 = vadd.f32 0.041666646, %v5279_v3  ;;  %v4768_v44 = vsub.f32 %v4704_v43, %v4736_v56  ;;  %v5695_v54 = vand.u32 2, %v5663_v46 }
 0x502   :  { %12732 = vst [vmem:[#allocation38_spill] sm:$0xff] %v10237_v37  ;;  %v5822_v13 = vmul.f32 %v5790_v32, %v12581_v7  ;;  %v5055_v63 = vmul.f32 %v5023_v35, %v4895_v61  ;;  %v4577_v22 = vadd.f32 0.5, %v4545_v57  ;;  %v4546_v5 = vmul.f32 0.63661975, %v10224_v36 }
 0x503   :  { %v5343_v34 = vmul.f32 %v5311_v27, %v5183_v38  ;;  %v4832_v6 = vsub.f32 %v4768_v44, %v4800_v9  ;;  %v10245_v49 = vmul.f32 %v6383_v45, %v9938_v39  ;;  %vm10249_vm7 = vcmp.ne.s32.totalorder %v5407_v51, 0 }
 0x504   :  { %5855 = vst [vmem:[#allocation8 + $0x348] sm:$0xff] %v5822_v13  ;;  %v10247_v14 = vadd.f32 %v5055_v63, %v4831_v58  ;;  %v12734_v47 = vmov 0  ;;  %v5664_v42 = vadd.s32 1, %v10237_v37  ;;  %v4609_v61 = vfloor.f32 %v4577_v22 }
 0x505   :  { %v12735_v47 = vsel %vm10249_vm7, 4294967295, %v12734_v47  ;;  %v10254_v46 = vadd.f32 %v5343_v34, %v5151_v11  ;;  %v4864_v0 = vmul.f32 %v4832_v6, %v4832_v6  ;;  %v5408_v38 = vand.u32 1, %v10237_v37 }
 0x506   :  { %12733 = vst [vmem:[#allocation36_spill] sm:$0xff] %v10247_v14  ;;  %12736 = vst [vmem:[#allocation27_spill] sm:$0xff] %v12735_v47  ;;  %v4578_v56 = vadd.f32 0.5, %v4546_v5  ;;  %vm10257_vm10 = vcmp.ne.s32.totalorder %v5695_v54, 0  ;;  %v6195_v3 = vtrunc.f32 %v4609_v61  ;;  %v4673_v58 = vmul.f32 1.5703125, %v4609_v61 }
 0x507   :  { %12737 = vst [vmem:[#allocation41_spill] sm:$0xff] %v10254_v46  ;;  %v5503_v43 = vsel %vm10249_vm7, %v10247_v14, %v10254_v46  ;;  %v4928_v9 = vmul.f32 -0.00019515296, %v4864_v0  ;;  %v4737_v35 = vmul.f32 0.0004837513, %v4609_v61  ;;  %v4547_v51 = vmul.f32 0.63661975, %v10245_v49 }
 0x508   :  { %v5759_v57 = vsub.f32 0.0, %v5503_v43  ;;  %v5216_v32 = vmul.f32 2.4433157e-05, %v4864_v0  ;;  %v5696_v11 = vand.u32 2, %v5664_v42  ;;  %v4801_v27 = vmul.f32 7.54979e-08, %v4609_v61 }
 0x509   :  { %v4960_v44 = vadd.f32 0.008332161, %v4928_v9  ;;  %vm10266_vm0 = vcmp.ne.s32.totalorder %v5408_v38, 0  ;;  %v12740_v13 = vmov 0  ;;  %v10270_v63 = vcvt.f32.s32 %v6195_v3 }
 0x50a   :  { %v12741_v13 = vsel %vm10266_vm0, 4294967295, %v12740_v13  ;;  %v4705_v54 = vsub.f32 %v10219_v48, %v4673_v58  ;;  %v4610_v22 = vfloor.f32 %v4578_v56  ;;  %v5791_v34 = vsel %vm10257_vm10, %v5759_v57, %v5503_v43 }
 0x50b   :  { %12742 = vst [vmem:[#allocation29_spill] sm:$0xff] %v12741_v13  ;;  %12743 = vst [vmem:[#allocation49_spill] sm:$0xff] %v10270_v63  ;;  %v4896_v5 = vmul.f32 %v4864_v0, %v4832_v6  ;;  %v5120_v45 = vmul.f32 0.5, %v4864_v0  ;;  %v5248_v7 = vadd.f32 -0.0013887316, %v5216_v32  ;;  %v5823_v37 = vmul.f32 %v5791_v34, %v12587_v52 }
 0x50c   :  { %v4992_v42 = vmul.f32 %v4960_v44, %v4864_v0  ;;  %v4769_v61 = vsub.f32 %v4705_v54, %v4737_v35  ;;  %v6197_v9 = vtrunc.f32 %v4610_v22  ;;  %v5184_v38 = vmul.f32 %v4864_v0, %v4864_v0 }
 0x50d   :  { %v5280_v10 = vmul.f32 %v5248_v7, %v4864_v0  ;;  %v4674_v47 = vmul.f32 1.5703125, %v4610_v22  ;;  %v4579_v46 = vadd.f32 0.5, %v4547_v51  ;;  %5856 = vst [vmem:[#allocation8 + $0x350] sm:$0xff] %v5823_v37  ;;  %v5665_v48 = vadd.s32 1, %v10270_v63  ;;  %v6384_v51 = vld [vmem:[#allocation5 + $0x78] sm:$0xff] }
 0x50e   :  { %v5024_v3 = vadd.f32 -0.16666655, %v4992_v42  ;;  %v4833_v14 = vsub.f32 %v4769_v61, %v4801_v27  ;;  %v4738_v56 = vmul.f32 0.0004837513, %v4610_v22  ;;  %v5152_v33 = vsub.f32 1.0, %v5120_v45 }
 0x50f   :  { %v5312_v58 = vadd.f32 0.041666646, %v5280_v10  ;;  %v4706_v43 = vsub.f32 %v10224_v36, %v4674_v47  ;;  %v4802_v57 = vmul.f32 7.54979e-08, %v4610_v22  ;;  %v5409_v35 = vand.u32 1, %v10270_v63 }
 0x510   :  { %v5056_v32 = vmul.f32 %v5024_v3, %v4896_v5  ;;  %v4865_v34 = vmul.f32 %v4833_v14, %v4833_v14  ;;  %v10279_v44 = vcvt.f32.s32 %v6197_v9  ;;  %vm10281_vm8 = vcmp.ne.s32.totalorder %v5696_v11, 0 }
 0x511   :  { %v5344_v7 = vmul.f32 %v5312_v58, %v5184_v38  ;;  %v4770_v37 = vsub.f32 %v4706_v43, %v4738_v56  ;;  %v10286_v27 = vmul.f32 %v6384_v51, %v9938_v39  ;;  %v5697_v47 = vand.u32 2, %v5665_v48 }
 0x512   :  { %12744 = vst [vmem:[#allocation40_spill] sm:$0xff] %v10279_v44  ;;  %v10288_v10 = vadd.f32 %v5056_v32, %v4832_v6  ;;  %v4929_v36 = vmul.f32 -0.00019515296, %v4865_v34  ;;  %v4611_v54 = vfloor.f32 %v4579_v46  ;;  %v5121_v5 = vmul.f32 0.5, %v4865_v34 }
 0x513   :  { %v10290_v22 = vadd.f32 %v5344_v7, %v5152_v33  ;;  %v5217_v45 = vmul.f32 2.4433157e-05, %v4865_v34  ;;  %v4834_v42 = vsub.f32 %v4770_v37, %v4802_v57  ;;  %vm10292_vm3 = vcmp.ne.s32.totalorder %v5409_v35, 0 }
 0x514   :  { %12747 = vst [vmem:[#allocation48_spill] sm:$0xff] %v10288_v10  ;;  %v4961_v61 = vadd.f32 0.008332161, %v4929_v36  ;;  %v12749_v11 = vmov 0  ;;  %v5410_v9 = vand.u32 1, %v10279_v44  ;;  %v5666_v38 = vadd.s32 1, %v10279_v44 }
 0x515   :  { %12748 = vst [vmem:[#allocation43_spill] sm:$0xff] %v10290_v22  ;;  %v12750_v11 = vsel %vm10292_vm3, 4294967295, %v12749_v11  ;;  %v5504_v6 = vsel %vm10266_vm0, %v10288_v10, %v10290_v22  ;;  %v5249_v46 = vadd.f32 -0.0013887316, %v5217_v45  ;;  %v4866_v3 = vmul.f32 %v4834_v42, %v4834_v42 }
 0x516   :  { %v4548_v48 = vmul.f32 0.63661975, %v10286_v27  ;;  %v5760_v56 = vsub.f32 0.0, %v5504_v6  ;;  %v4897_v33 = vmul.f32 %v4865_v34, %v4833_v14  ;;  %v4993_v58 = vmul.f32 %v4961_v61, %v4865_v34 }
 0x517   :  { %v4675_v43 = vmul.f32 1.5703125, %v4611_v54  ;;  %v5153_v57 = vsub.f32 1.0, %v5121_v5  ;;  %v5185_v32 = vmul.f32 %v4865_v34, %v4865_v34  ;;  %v5281_v35 = vmul.f32 %v5249_v46, %v4865_v34 }
 0x518   :  { %vm10303_vm13 = vcmp.ne.s32.totalorder %v5697_v47, 0  ;;  %v4930_v37 = vmul.f32 -0.00019515296, %v4866_v3  ;;  %v5792_v51 = vsel %vm10281_vm8, %v5760_v56, %v5504_v6  ;;  %v5025_v36 = vadd.f32 -0.16666655, %v4993_v58 }
 0x519   :  { %v5218_v45 = vmul.f32 2.4433157e-05, %v4866_v3  ;;  %v6199_v44 = vtrunc.f32 %v4611_v54  ;;  %v5824_v52 = vmul.f32 %v5792_v51, %v12593_v12  ;;  %v5313_v63 = vadd.f32 0.041666646, %v5281_v35 }
 0x51a   :  { %v4898_v13 = vmul.f32 %v4866_v3, %v4834_v42  ;;  %v4962_v61 = vadd.f32 0.008332161, %v4930_v37  ;;  %v5057_v22 = vmul.f32 %v5025_v36, %v4897_v33  ;;  %v5122_v5 = vmul.f32 0.5, %v4866_v3 }
 0x51b   :  { %v5250_v10 = vadd.f32 -0.0013887316, %v5218_v45  ;;  %v4707_v34 = vsub.f32 %v10245_v49, %v4675_v43  ;;  %5857 = vst [vmem:[#allocation8 + $0x358] sm:$0xff] %v5824_v52  ;;  %v5345_v47 = vmul.f32 %v5313_v63, %v5185_v32  ;;  %v4739_v62 = vmul.f32 0.0004837513, %v4611_v54  ;;  %v6385_v49 = vld [vmem:[#allocation5 + $0x80] sm:$0xff] }
 0x51c   :  { %v4994_v46 = vmul.f32 %v4962_v61, %v4866_v3  ;;  %v4803_v8 = vmul.f32 7.54979e-08, %v4611_v54  ;;  %v10311_v0 = vadd.f32 %v5057_v22, %v4833_v14  ;;  %v5186_v6 = vmul.f32 %v4866_v3, %v4866_v3 }
 0x51d   :  { %v5282_v56 = vmul.f32 %v5250_v10, %v4866_v3  ;;  %v10313_v58 = vcvt.f32.s32 %v6199_v44  ;;  %v10315_v51 = vadd.f32 %v5345_v47, %v5153_v57  ;;  %v4771_v37 = vsub.f32 %v4707_v34, %v4739_v62 }
 0x51e   :  { %v5026_v35 = vadd.f32 -0.16666655, %v4994_v46  ;;  %v4580_v33 = vadd.f32 0.5, %v4548_v48  ;;  %v5154_v36 = vsub.f32 1.0, %v5122_v5  ;;  %v5698_v12 = vand.u32 2, %v5666_v38 }
 0x51f   :  { %12753 = vst [vmem:[#allocation57_spill] sm:$0xff] %v10313_v58  ;;  %v5314_v45 = vadd.f32 0.041666646, %v5282_v56  ;;  %v10318_v52 = vmul.f32 %v6385_v49, %v9938_v39  ;;  %v5505_v14 = vsel %vm10292_vm3, %v10311_v0, %v10315_v51  ;;  %v4835_v44 = vsub.f32 %v4771_v37, %v4803_v8 }
 0x520   :  { %v5058_v63 = vmul.f32 %v5026_v35, %v4898_v13  ;;  %v4612_v10 = vfloor.f32 %v4580_v33  ;;  %v5761_v54 = vsub.f32 0.0, %v5505_v14  ;;  %vm10324_vm10 = vcmp.ne.s32.totalorder %v5410_v9, 0 }
 0x521   :  { %v5346_v22 = vmul.f32 %v5314_v45, %v5186_v6  ;;  %v12754_v62 = vmov 0  ;;  %v5667_v38 = vadd.s32 1, %v10313_v58  ;;  %v4867_v48 = vmul.f32 %v4835_v44, %v4835_v44 }
 0x522   :  { %v12755_v62 = vsel %vm10324_vm10, 4294967295, %v12754_v62  ;;  %v10329_v3 = vadd.f32 %v5058_v63, %v4834_v42  ;;  %v6201_v43 = vtrunc.f32 %v4612_v10  ;;  %v4676_v57 = vmul.f32 1.5703125, %v4612_v10 }
 0x523   :  { %12756 = vst [vmem:[#allocation47_spill] sm:$0xff] %v12755_v62  ;;  %v5793_v32 = vsel %vm10303_vm13, %v5761_v54, %v5505_v14  ;;  %v10333_v61 = vadd.f32 %v5346_v22, %v5154_v36  ;;  %vm10335_vm8 = vcmp.ne.s32.totalorder %v5698_v12, 0  ;;  %v4549_v13 = vmul.f32 0.63661975, %v10318_v52  ;;  %v6386_v22 = vld [vmem:[#allocation5 + $0x88] sm:$0xff] }
 0x524   :  { %v5825_v9 = vmul.f32 %v5793_v32, %v12598_v2  ;;  %v4931_v5 = vmul.f32 -0.00019515296, %v4867_v48  ;;  %v5411_v42 = vand.u32 1, %v10313_v58  ;;  %v4740_v34 = vmul.f32 0.0004837513, %v4612_v10 }
 0x525   :  { %12757 = vst [vmem:[#allocation55_spill] sm:$0xff] %v10333_v61  ;;  %v5506_v7 = vsel %vm10324_vm10, %v10329_v3, %v10333_v61  ;;  %v5219_v47 = vmul.f32 2.4433157e-05, %v4867_v48  ;;  %v5699_v46 = vand.u32 2, %v5667_v38  ;;  %v10346_v6 = vcvt.f32.s32 %v6201_v43 }
 0x526   :  { %5858 = vst [vmem:[#allocation8 + $0x360] sm:$0xff] %v5825_v9  ;;  %v5762_v12 = vsub.f32 0.0, %v5506_v7  ;;  %v4963_v56 = vadd.f32 0.008332161, %v4931_v5  ;;  %v4708_v35 = vsub.f32 %v10286_v27, %v4676_v57  ;;  %v4804_v37 = vmul.f32 7.54979e-08, %v4612_v10 }
 0x527   :  { %12760 = vst [vmem:[#allocation58_spill] sm:$0xff] %v10346_v6  ;;  %v4899_v33 = vmul.f32 %v4867_v48, %v4835_v44  ;;  %v5123_v36 = vmul.f32 0.5, %v4867_v48  ;;  %v5251_v45 = vadd.f32 -0.0013887316, %v5219_v47  ;;  %v4581_v49 = vadd.f32 0.5, %v4549_v13 }
 0x528   :  { %v5794_v14 = vsel %vm10335_vm8, %v5762_v12, %v5506_v7  ;;  %v4995_v63 = vmul.f32 %v4963_v56, %v4867_v48  ;;  %v4772_v54 = vsub.f32 %v4708_v35, %v4740_v34  ;;  %v10352_v38 = vmul.f32 %v6386_v22, %v9938_v39 }
 0x529   :  { %v5826_v43 = vmul.f32 %v5794_v14, %v12604_v30  ;;  %v5187_v32 = vmul.f32 %v4867_v48, %v4867_v48  ;;  %v5283_v9 = vmul.f32 %v5251_v45, %v4867_v48  ;;  %v5668_v27 = vadd.s32 1, %v10346_v6 }
 0x52a   :  { %v5027_v10 = vadd.f32 -0.16666655, %v4995_v63  ;;  %v4836_v57 = vsub.f32 %v4772_v54, %v4804_v37  ;;  %v4613_v5 = vfloor.f32 %v4581_v49  ;;  %v4550_v13 = vmul.f32 0.63661975, %v10352_v38 }
 0x52b   :  { %5859 = vst [vmem:[#allocation8 + $0x368] sm:$0xff] %v5826_v43  ;;  %v5155_v8 = vsub.f32 1.0, %v5123_v36  ;;  %v5315_v7 = vadd.f32 0.041666646, %v5283_v9  ;;  %vm10357_vm13 = vcmp.ne.s32.totalorder %v5411_v42, 0  ;;  %v12761_v34 = vmov 0 }
 0x52c   :  { %v12762_v34 = vsel %vm10357_vm13, 4294967295, %v12761_v34  ;;  %v5059_v47 = vmul.f32 %v5027_v10, %v4899_v33  ;;  %v4868_v12 = vmul.f32 %v4836_v57, %v4836_v57  ;;  %v6203_v56 = vtrunc.f32 %v4613_v5 }
 0x52d   :  { %12763 = vst [vmem:[#allocation62_spill] sm:$0xff] %v12762_v34  ;;  %v4677_v35 = vmul.f32 1.5703125, %v4613_v5  ;;  %v5347_v14 = vmul.f32 %v5315_v7, %v5187_v32  ;;  %vm10361_vm8 = vcmp.ne.s32.totalorder %v5699_v46, 0  ;;  %v5412_v37 = vand.u32 1, %v10346_v6 }
 0x52e   :  { %v4582_v45 = vadd.f32 0.5, %v4550_v13  ;;  %v10366_v49 = vadd.f32 %v5059_v47, %v4835_v44  ;;  %v4932_v36 = vmul.f32 -0.00019515296, %v4868_v12  ;;  %v5700_v63 = vand.u32 2, %v5668_v27  ;;  %v6387_v27 = vld [vmem:[#allocation5 + $0x90] sm:$0xff] }
 0x52f   :  { %v4741_v42 = vmul.f32 0.0004837513, %v4613_v5  ;;  %v10368_v54 = vadd.f32 %v5347_v14, %v5155_v8  ;;  %v5124_v22 = vmul.f32 0.5, %v4868_v12  ;;  %v5220_v33 = vmul.f32 2.4433157e-05, %v4868_v12 }
 0x530   :  { %12766 = vst [vmem:[#allocation54_spill] sm:$0xff] %v10366_v49  ;;  %v4805_v43 = vmul.f32 7.54979e-08, %v4613_v5  ;;  %v4964_v9 = vadd.f32 0.008332161, %v4932_v36  ;;  %v10370_v10 = vcvt.f32.s32 %v6203_v56  ;;  %v4709_v46 = vsub.f32 %v10318_v52, %v4677_v35 }
 0x531   :  { %12767 = vst [vmem:[#allocation50_spill] sm:$0xff] %v10368_v54  ;;  %v4614_v32 = vfloor.f32 %v4582_v45  ;;  %v5507_v44 = vsel %vm10357_vm13, %v10366_v49, %v10368_v54  ;;  %v4900_v13 = vmul.f32 %v4868_v12, %v4836_v57  ;;  %v5252_v7 = vadd.f32 -0.0013887316, %v5220_v33  ;;  %v12769_v33 = vld [vmem:[#allocation66_spill] sm:$0xff] }
 0x532   :  { %12768 = vst [vmem:[#allocation52_spill] sm:$0xff] %v10370_v10  ;;  %v10378_v8 = vmul.f32 %v6387_v27, %v9938_v39  ;;  %v5763_v47 = vsub.f32 0.0, %v5507_v44  ;;  %v4996_v14 = vmul.f32 %v4964_v9, %v4868_v12  ;;  %v4773_v5 = vsub.f32 %v4709_v46, %v4741_v42 }
 0x533   :  { %v6205_v36 = vtrunc.f32 %v4614_v32  ;;  %v5156_v56 = vsub.f32 1.0, %v5124_v22  ;;  %v5188_v30 = vmul.f32 %v4868_v12, %v4868_v12  ;;  %v5284_v6 = vmul.f32 %v5252_v7, %v4868_v12 }
 0x534   :  { %v4678_v52 = vmul.f32 1.5703125, %v4614_v32  ;;  %v5795_v35 = vsel %vm10361_vm8, %v5763_v47, %v5507_v44  ;;  %v5028_v45 = vadd.f32 -0.16666655, %v4996_v14  ;;  %v4837_v2 = vsub.f32 %v4773_v5, %v4805_v43 }
 0x535   :  { %v5413_v58 = vand.u32 1, %v10370_v10  ;;  %v5827_v34 = vmul.f32 %v5795_v35, %v12769_v33  ;;  %v5316_v54 = vadd.f32 0.041666646, %v5284_v6  ;;  %v5669_v27 = vadd.s32 1, %v10370_v10 }
 0x536   :  { %v4710_v9 = vsub.f32 %v10352_v38, %v4678_v52  ;;  %v5060_v42 = vmul.f32 %v5028_v45, %v4900_v13  ;;  %v4869_v46 = vmul.f32 %v4837_v2, %v4837_v2  ;;  %v10386_v22 = vcvt.f32.s32 %v6205_v36  ;;  %v6388_v13 = vld [vmem:[#allocation5 + $0x98] sm:$0xff] }
 0x537   :  { %v4742_v12 = vmul.f32 0.0004837513, %v4614_v32  ;;  %5860 = vst [vmem:[#allocation8 + $0x370] sm:$0xff] %v5827_v34  ;;  %v5348_v7 = vmul.f32 %v5316_v54, %v5188_v30  ;;  %vm10388_vm13 = vcmp.ne.s32.totalorder %v5412_v37, 0  ;;  %v12771_v48 = vmov 0 }
 0x538   :  { %12770 = vst [vmem:[#allocation67_spill] sm:$0xff] %v10386_v22  ;;  %v12772_v48 = vsel %vm10388_vm13, 4294967295, %v12771_v48  ;;  %v4806_v43 = vmul.f32 7.54979e-08, %v4614_v32  ;;  %v4551_v44 = vmul.f32 0.63661975, %v10378_v8  ;;  %v10393_v47 = vadd.f32 %v5060_v42, %v4836_v57 }
 0x539   :  { %12773 = vst [vmem:[#allocation70_spill] sm:$0xff] %v12772_v48  ;;  %vm10395_vm8 = vcmp.ne.s32.totalorder %v5700_v63, 0  ;;  %v4933_v38 = vmul.f32 -0.00019515296, %v4869_v46  ;;  %v10400_v14 = vmul.f32 %v6388_v13, %v9938_v39  ;;  %v10402_v34 = vadd.f32 %v5348_v7, %v5156_v56 }
 0x53a   :  { %12774 = vst [vmem:[#allocation61_spill] sm:$0xff] %v10393_v47  ;;  %v5221_v30 = vmul.f32 2.4433157e-05, %v4869_v46  ;;  %v5701_v37 = vand.u32 2, %v5669_v27  ;;  %v4774_v54 = vsub.f32 %v4710_v9, %v4742_v12  ;;  %v5125_v32 = vmul.f32 0.5, %v4869_v46 }
 0x53b   :  { %12777 = vst [vmem:[#allocation51_spill] sm:$0xff] %v10402_v34  ;;  %v4965_v5 = vadd.f32 0.008332161, %v4933_v38  ;;  %vm10404_vm10 = vcmp.ne.s32.totalorder %v5413_v58, 0  ;;  %v12778_v36 = vmov 0  ;;  %v5670_v57 = vadd.s32 1, %v10386_v22 }
 0x53c   :  { %v12779_v36 = vsel %vm10404_vm10, 4294967295, %v12778_v36  ;;  %v5508_v63 = vsel %vm10388_vm13, %v10393_v47, %v10402_v34  ;;  %v5253_v52 = vadd.f32 -0.0013887316, %v5221_v30  ;;  %v4838_v35 = vsub.f32 %v4774_v54, %v4806_v43 }
 0x53d   :  { %12780 = vst [vmem:[#allocation69_spill] sm:$0xff] %v12779_v36  ;;  %v4583_v56 = vadd.f32 0.5, %v4551_v44  ;;  %v5764_v45 = vsub.f32 0.0, %v5508_v63  ;;  %v4901_v42 = vmul.f32 %v4869_v46, %v4837_v2  ;;  %v4997_v27 = vmul.f32 %v4965_v5, %v4869_v46  ;;  %v12783_v44 = vld [vmem:[#allocation68_spill] sm:$0xff] }
 0x53e   :  { %v4552_v9 = vmul.f32 0.63661975, %v10400_v14  ;;  %v5189_v12 = vmul.f32 %v4869_v46, %v4869_v46  ;;  %v5285_v58 = vmul.f32 %v5253_v52, %v4869_v46  ;;  %vm10414_vm3 = vcmp.ne.s32.totalorder %v5701_v37, 0 }
 0x53f   :  { %v4870_v38 = vmul.f32 %v4838_v35, %v4838_v35  ;;  %v4615_v13 = vfloor.f32 %v4583_v56  ;;  %v5796_v33 = vsel %vm10395_vm8, %v5764_v45, %v5508_v63  ;;  %v5029_v10 = vadd.f32 -0.16666655, %v4997_v27 }
 0x540   :  { %v5157_v30 = vsub.f32 1.0, %v5125_v32  ;;  %v5414_v43 = vand.u32 1, %v10386_v22  ;;  %v5828_v54 = vmul.f32 %v5796_v33, %v12783_v44  ;;  %v5317_v5 = vadd.f32 0.041666646, %v5285_v58  ;;  %v12796_v44 = vld [vmem:[#allocation78_spill] sm:$0xff] }
 0x541   :  { %v4934_v48 = vmul.f32 -0.00019515296, %v4870_v38  ;;  %v5702_v34 = vand.u32 2, %v5670_v57  ;;  %v5061_v47 = vmul.f32 %v5029_v10, %v4901_v42  ;;  %v4902_v46 = vmul.f32 %v4870_v38, %v4838_v35 }
 0x542   :  { %v5222_v37 = vmul.f32 2.4433157e-05, %v4870_v38  ;;  %v4584_v52 = vadd.f32 0.5, %v4552_v9  ;;  %5861 = vst [vmem:[#allocation8 + $0x378] sm:$0xff] %v5828_v54  ;;  %v5349_v49 = vmul.f32 %v5317_v5, %v5189_v12  ;;  %v6207_v56 = vtrunc.f32 %v4615_v13 }
 0x543   :  { %v4966_v62 = vadd.f32 0.008332161, %v4934_v48  ;;  %v4679_v61 = vmul.f32 1.5703125, %v4615_v13  ;;  %v10422_v6 = vadd.f32 %v5061_v47, %v4837_v2  ;;  %v5126_v63 = vmul.f32 0.5, %v4870_v38 }
 0x544   :  { %v5254_v32 = vadd.f32 -0.0013887316, %v5222_v37  ;;  %v4743_v45 = vmul.f32 0.0004837513, %v4615_v13  ;;  %v10424_v27 = vadd.f32 %v5349_v49, %v5157_v30  ;;  %v5190_v58 = vmul.f32 %v4870_v38, %v4870_v38 }
 0x545   :  { %12784 = vst [vmem:[#allocation56_spill] sm:$0xff] %v10422_v6  ;;  %v4998_v33 = vmul.f32 %v4966_v62, %v4870_v38  ;;  %v4711_v57 = vsub.f32 %v10378_v8, %v4679_v61  ;;  %v10427_v42 = vcvt.f32.s32 %v6207_v56  ;;  %v4807_v9 = vmul.f32 7.54979e-08, %v4615_v13  ;;  %v6389_v61 = vld [vmem:[#allocation5 + $0xa0] sm:$0xff] }
 0x546   :  { %12785 = vst [vmem:[#allocation74_spill] sm:$0xff] %v10424_v27  ;;  %v5286_v10 = vmul.f32 %v5254_v32, %v4870_v38  ;;  %v4616_v54 = vfloor.f32 %v4584_v52  ;;  %v5509_v2 = vsel %vm10404_vm10, %v10422_v6, %v10424_v27  ;;  %vm10433_vm8 = vcmp.ne.s32.totalorder %v5414_v43, 0 }
 0x547   :  { %12786 = vst [vmem:[#allocation64_spill] sm:$0xff] %v10427_v42  ;;  %v5030_v48 = vadd.f32 -0.16666655, %v4998_v33  ;;  %v12787_v47 = vmov 0  ;;  %v4775_v49 = vsub.f32 %v4711_v57, %v4743_v45  ;;  %v5765_v62 = vsub.f32 0.0, %v5509_v2 }
 0x548   :  { %v12788_v47 = vsel %vm10433_vm8, 4294967295, %v12787_v47  ;;  %v5158_v12 = vsub.f32 1.0, %v5126_v63  ;;  %v5318_v30 = vadd.f32 0.041666646, %v5286_v10  ;;  %v10438_v8 = vmul.f32 %v6389_v61, %v9938_v39  ;;  %v12792_v63 = vld [vmem:[#allocation76_spill] sm:$0xff] }
 0x549   :  { %12789 = vst [vmem:[#allocation72_spill] sm:$0xff] %v12788_v47  ;;  %v5062_v38 = vmul.f32 %v5030_v48, %v4902_v46  ;;  %v4839_v13 = vsub.f32 %v4775_v49, %v4807_v9  ;;  %v6209_v5 = vtrunc.f32 %v4616_v54  ;;  %v4680_v37 = vmul.f32 1.5703125, %v4616_v54  ;;  %v6390_v49 = vld [vmem:[#allocation5 + $0xa8] sm:$0xff] }
 0x54a   :  { %v5797_v52 = vsel %vm10414_vm3, %v5765_v62, %v5509_v2  ;;  %v5350_v56 = vmul.f32 %v5318_v30, %v5190_v58  ;;  %vm10442_vm10 = vcmp.ne.s32.totalorder %v5702_v34, 0  ;;  %v5671_v32 = vadd.s32 1, %v10427_v42 }
 0x54b   :  { %v5829_v45 = vmul.f32 %v5797_v52, %v12792_v63  ;;  %v10448_v33 = vadd.f32 %v5062_v38, %v4838_v35  ;;  %v4871_v57 = vmul.f32 %v4839_v13, %v4839_v13  ;;  %v4712_v46 = vsub.f32 %v10400_v14, %v4680_v37 }
 0x54c   :  { %v10451_v10 = vadd.f32 %v5350_v56, %v5158_v12  ;;  %v4744_v9 = vmul.f32 0.0004837513, %v4616_v54  ;;  %v4808_v48 = vmul.f32 7.54979e-08, %v4616_v54  ;;  %v4553_v7 = vmul.f32 0.63661975, %v10438_v8 }
 0x54d   :  { %12793 = vst [vmem:[#allocation59_spill] sm:$0xff] %v10448_v33  ;;  %5862 = vst [vmem:[#allocation8 + $0x380] sm:$0xff] %v5829_v45  ;;  %v4935_v34 = vmul.f32 -0.00019515296, %v4871_v57  ;;  %v5415_v58 = vand.u32 1, %v10427_v42  ;;  %v10455_v2 = vcvt.f32.s32 %v6209_v5  ;;  %v10458_v62 = vmul.f32 %v6390_v49, %v9938_v39 }
 0x54e   :  { %12794 = vst [vmem:[#allocation79_spill] sm:$0xff] %v10451_v10  ;;  %v5510_v14 = vsel %vm10433_vm8, %v10448_v33, %v10451_v10  ;;  %v5223_v35 = vmul.f32 2.4433157e-05, %v4871_v57  ;;  %v5703_v12 = vand.u32 2, %v5671_v32  ;;  %v4776_v54 = vsub.f32 %v4712_v46, %v4744_v9 }
 0x54f   :  { %12795 = vst [vmem:[#allocation60_spill] sm:$0xff] %v10455_v2  ;;  %v5766_v30 = vsub.f32 0.0, %v5510_v14  ;;  %v4903_v61 = vmul.f32 %v4871_v57, %v4839_v13  ;;  %v4967_v38 = vadd.f32 0.008332161, %v4935_v34  ;;  %v5127_v37 = vmul.f32 0.5, %v4871_v57 }
 0x550   :  { %v5191_v52 = vmul.f32 %v4871_v57, %v4871_v57  ;;  %v5255_v56 = vadd.f32 -0.0013887316, %v5223_v35  ;;  %v4840_v5 = vsub.f32 %v4776_v54, %v4808_v48  ;;  %v4585_v45 = vadd.f32 0.5, %v4553_v7 }
 0x551   :  { %v5798_v49 = vsel %vm10442_vm10, %v5766_v30, %v5510_v14  ;;  %v4999_v63 = vmul.f32 %v4967_v38, %v4871_v57  ;;  %v5416_v42 = vand.u32 1, %v10455_v2  ;;  %v4554_v22 = vmul.f32 0.63661975, %v10458_v62  ;;  %v6391_v38 = vld [vmem:[#allocation5 + $0xb0] sm:$0xff] }
 0x552   :  { %v5830_v47 = vmul.f32 %v5798_v49, %v12796_v44  ;;  %v5287_v32 = vmul.f32 %v5255_v56, %v4871_v57  ;;  %v4872_v46 = vmul.f32 %v4840_v5, %v4840_v5  ;;  %v4617_v9 = vfloor.f32 %v4585_v45 }
 0x553   :  { %v5031_v10 = vadd.f32 -0.16666655, %v4999_v63  ;;  %v5159_v34 = vsub.f32 1.0, %v5127_v37  ;;  %vm10469_vm3 = vcmp.ne.s32.totalorder %v5415_v58, 0  ;;  %v12797_v33 = vmov 0 }
 0x554   :  { %v12798_v33 = vsel %vm10469_vm3, 4294967295, %v12797_v33  ;;  %vm10473_vm8 = vcmp.ne.s32.totalorder %v5703_v12, 0  ;;  %5863 = vst [vmem:[#allocation8 + $0x388] sm:$0xff] %v5830_v47  ;;  %v5319_v43 = vadd.f32 0.041666646, %v5287_v32  ;;  %v5672_v14 = vadd.s32 1, %v10455_v2 }
 0x555   :  { %12799 = vst [vmem:[#allocation71_spill] sm:$0xff] %v12798_v33  ;;  %v4936_v7 = vmul.f32 -0.00019515296, %v4872_v46  ;;  %v4586_v35 = vadd.f32 0.5, %v4554_v22  ;;  %v5063_v54 = vmul.f32 %v5031_v10, %v4903_v61  ;;  %v5224_v57 = vmul.f32 2.4433157e-05, %v4872_v46 }
 0x556   :  { %v6211_v30 = vtrunc.f32 %v4617_v9  ;;  %v10479_v63 = vmul.f32 %v6391_v38, %v9938_v39  ;;  %v5351_v58 = vmul.f32 %v5319_v43, %v5191_v52  ;;  %v4904_v37 = vmul.f32 %v4872_v46, %v4840_v5 }
 0x557   :  { %v4968_v56 = vadd.f32 0.008332161, %v4936_v7  ;;  %vm10481_vm10 = vcmp.ne.s32.totalorder %v5416_v42, 0  ;;  %v12802_v12 = vmov 0  ;;  %v4681_v47 = vmul.f32 1.5703125, %v4617_v9 }
 0x558   :  { %v12803_v12 = vsel %vm10481_vm10, 4294967295, %v12802_v12  ;;  %v10485_v45 = vadd.f32 %v5063_v54, %v4839_v13  ;;  %v5128_v49 = vmul.f32 0.5, %v4872_v46  ;;  %v5256_v32 = vadd.f32 -0.0013887316, %v5224_v57 }
 0x559   :  { %12804 = vst [vmem:[#allocation73_spill] sm:$0xff] %v12803_v12  ;;  %v4745_v22 = vmul.f32 0.0004837513, %v4617_v9  ;;  %v10487_v10 = vadd.f32 %v5351_v58, %v5159_v34  ;;  %v5000_v61 = vmul.f32 %v4968_v56, %v4872_v46  ;;  %v4713_v44 = vsub.f32 %v10438_v8, %v4681_v47 }
 0x55a   :  { %12805 = vst [vmem:[#allocation65_spill] sm:$0xff] %v10485_v45  ;;  %v4809_v38 = vmul.f32 7.54979e-08, %v4617_v9  ;;  %v5192_v2 = vmul.f32 %v4872_v46, %v4872_v46  ;;  %v5288_v52 = vmul.f32 %v5256_v32, %v4872_v46  ;;  %v10490_v43 = vcvt.f32.s32 %v6211_v30 }
 0x55b   :  { %12806 = vst [vmem:[#allocation89_spill] sm:$0xff] %v10487_v10  ;;  %v4618_v42 = vfloor.f32 %v4586_v35  ;;  %v5511_v13 = vsel %vm10469_vm3, %v10485_v45, %v10487_v10  ;;  %v5032_v7 = vadd.f32 -0.16666655, %v5000_v61  ;;  %v5704_v54 = vand.u32 2, %v5672_v14  ;;  %v12808_v10 = vld [vmem:[#allocation83_spill] sm:$0xff] }
 0x55c   :  { %12807 = vst [vmem:[#allocation81_spill] sm:$0xff] %v10490_v43  ;;  %v4777_v57 = vsub.f32 %v4713_v44, %v4745_v22  ;;  %v5767_v36 = vsub.f32 0.0, %v5511_v13  ;;  %v5160_v34 = vsub.f32 1.0, %v5128_v49  ;;  %v5320_v58 = vadd.f32 0.041666646, %v5288_v52 }
 0x55d   :  { %v4555_v56 = vmul.f32 0.63661975, %v10479_v63  ;;  %v5064_v8 = vmul.f32 %v5032_v7, %v4904_v37  ;;  %v6213_v47 = vtrunc.f32 %v4618_v42  ;;  %v4682_v46 = vmul.f32 1.5703125, %v4618_v42 }
 0x55e   :  { %v4841_v9 = vsub.f32 %v4777_v57, %v4809_v38  ;;  %v5799_v35 = vsel %vm10473_vm8, %v5767_v36, %v5511_v13  ;;  %v5352_v30 = vmul.f32 %v5320_v58, %v5192_v2  ;;  %v5673_v32 = vadd.s32 1, %v10490_v43 }
 0x55f   :  { %v4746_v33 = vmul.f32 0.0004837513, %v4618_v42  ;;  %v5831_v61 = vmul.f32 %v5799_v35, %v12808_v10  ;;  %v10501_v14 = vadd.f32 %v5064_v8, %v4840_v5  ;;  %v10503_v49 = vcvt.f32.s32 %v6213_v47 }
 0x560   :  { %v4873_v44 = vmul.f32 %v4841_v9, %v4841_v9  ;;  %v10505_v22 = vadd.f32 %v5352_v30, %v5160_v34  ;;  %v4714_v37 = vsub.f32 %v10458_v62, %v4682_v46  ;;  %v4810_v38 = vmul.f32 7.54979e-08, %v4618_v42  ;;  %v12815_v30 = vld [vmem:[#allocation92_spill] sm:$0xff] }
 0x561   :  { %12809 = vst [vmem:[#allocation77_spill] sm:$0xff] %v10501_v14  ;;  %12810 = vst [vmem:[#allocation88_spill] sm:$0xff] %v10503_v49  ;;  %v4587_v52 = vadd.f32 0.5, %v4555_v56  ;;  %vm5736_vm3 = vcmp.ne.s32.totalorder %v5704_v54, 0  ;;  %v5417_v2 = vand.u32 1, %v10490_v43  ;;  %v5705_v13 = vand.u32 2, %v5673_v32 }
 0x562   :  { %12811 = vst [vmem:[#allocation80_spill] sm:$0xff] %v10505_v22  ;;  %5864 = vst [vmem:[#allocation8 + $0x390] sm:$0xff] %v5831_v61  ;;  %v4937_v36 = vmul.f32 -0.00019515296, %v4873_v44  ;;  %v5512_v5 = vsel %vm10481_vm10, %v10501_v14, %v10505_v22  ;;  %v5225_v48 = vmul.f32 2.4433157e-05, %v4873_v44  ;;  %v4778_v7 = vsub.f32 %v4714_v37, %v4746_v33 }
 0x563   :  { %v5768_v57 = vsub.f32 0.0, %v5512_v5  ;;  %v5129_v58 = vmul.f32 0.5, %v4873_v44  ;;  %v5674_v42 = vadd.s32 1, %v10503_v49  ;;  %v4619_v56 = vfloor.f32 %v4587_v52 }
 0x564   :  { %v4969_v34 = vadd.f32 0.008332161, %v4937_v36  ;;  %v5257_v8 = vadd.f32 -0.0013887316, %v5225_v48  ;;  %v4842_v62 = vsub.f32 %v4778_v7, %v4810_v38  ;;  %v4905_v47 = vmul.f32 %v4873_v44, %v4841_v9 }
 0x565   :  { %v5800_v54 = vsel %vm5736_vm3, %v5768_v57, %v5512_v5  ;;  %vm10514_vm8 = vcmp.ne.s32.totalorder %v5417_v2, 0  ;;  %v12812_v35 = vmov 0  ;;  %v5193_v10 = vmul.f32 %v4873_v44, %v4873_v44 }
 0x566   :  { %v5001_v46 = vmul.f32 %v4969_v34, %v4873_v44  ;;  %v12813_v35 = vsel %vm10514_vm8, 4294967295, %v12812_v35  ;;  %v5832_v61 = vmul.f32 %v5800_v54, %v12815_v30  ;;  %v5289_v32 = vmul.f32 %v5257_v8, %v4873_v44  ;;  %v6392_v30 = vld [vmem:[#allocation5 + $0xb8] sm:$0xff] }
 0x567   :  { %12814 = vst [vmem:[#allocation84_spill] sm:$0xff] %v12813_v35  ;;  %vm10519_vm10 = vcmp.ne.s32.totalorder %v5705_v13, 0  ;;  %v4874_v37 = vmul.f32 %v4842_v62, %v4842_v62  ;;  %v5161_v36 = vsub.f32 1.0, %v5129_v58  ;;  %v5418_v52 = vand.u32 1, %v10503_v49 }
 0x568   :  { %v5033_v38 = vadd.f32 -0.16666655, %v5001_v46  ;;  %v4683_v5 = vmul.f32 1.5703125, %v4619_v56  ;;  %5865 = vst [vmem:[#allocation8 + $0x398] sm:$0xff] %v5832_v61  ;;  %v5321_v48 = vadd.f32 0.041666646, %v5289_v32  ;;  %v6215_v54 = vtrunc.f32 %v4619_v56 }
 0x569   :  { %v4938_v2 = vmul.f32 -0.00019515296, %v4874_v37  ;;  %v5706_v7 = vand.u32 2, %v5674_v42  ;;  %v4747_v57 = vmul.f32 0.0004837513, %v4619_v56  ;;  %v5226_v43 = vmul.f32 2.4433157e-05, %v4874_v37 }
 0x56a   :  { %v5065_v34 = vmul.f32 %v5033_v38, %v4905_v47  ;;  %v4524_v44 = vmul.f32 %v6392_v30, %v9938_v39  ;;  %v5353_v13 = vmul.f32 %v5321_v48, %v5193_v10  ;;  %v5130_v12 = vmul.f32 0.5, %v4874_v37  ;;  %v6393_v30 = vld [vmem:[#allocation5 + $0xc0] sm:$0xff] }
 0x56b   :  { %v4970_v8 = vadd.f32 0.008332161, %v4938_v2  ;;  %v4715_v46 = vsub.f32 %v10479_v63, %v4683_v5  ;;  %v4906_v49 = vmul.f32 %v4874_v37, %v4842_v62  ;;  %v5258_v22 = vadd.f32 -0.0013887316, %v5226_v43 }
 0x56c   :  { %v10526_v58 = vadd.f32 %v5065_v34, %v4841_v9  ;;  %v4811_v61 = vmul.f32 7.54979e-08, %v4619_v56  ;;  %v10528_v32 = vadd.f32 %v5353_v13, %v5161_v36  ;;  %v5194_v14 = vmul.f32 %v4874_v37, %v4874_v37 }
 0x56d   :  { %v5002_v42 = vmul.f32 %v4970_v8, %v4874_v37  ;;  %v4779_v47 = vsub.f32 %v4715_v46, %v4747_v57  ;;  %v5290_v38 = vmul.f32 %v5258_v22, %v4874_v37  ;;  %v10530_v45 = vcvt.f32.s32 %v6215_v54 }
 0x56e   :  { %12818 = vst [vmem:[#allocation85_spill] sm:$0xff] %v10526_v58  ;;  %12819 = vst [vmem:[#allocation91_spill] sm:$0xff] %v10528_v32  ;;  %v4556_v27 = vmul.f32 0.63661975, %v4524_v44  ;;  %v10533_v10 = vmul.f32 %v6393_v30, %v9938_v39  ;;  %v5513_v63 = vsel %vm10514_vm8, %v10526_v58, %v10528_v32  ;;  %v5162_v9 = vsub.f32 1.0, %v5130_v12  ;;  %v6394_v32 = vld [vmem:[#allocation5 + $0xc8] sm:$0xff] }
 0x56f   :  { %12820 = vst [vmem:[#allocation90_spill] sm:$0xff] %v10530_v45  ;;  %v5034_v43 = vadd.f32 -0.16666655, %v5002_v42  ;;  %v4843_v56 = vsub.f32 %v4779_v47, %v4811_v61  ;;  %v5769_v36 = vsub.f32 0.0, %v5513_v63  ;;  %v5322_v5 = vadd.f32 0.041666646, %v5290_v38 }
 0x570   :  { %v4588_v48 = vadd.f32 0.5, %v4556_v27  ;;  %v4557_v22 = vmul.f32 0.63661975, %v10533_v10  ;;  %vm10540_vm3 = vcmp.ne.s32.totalorder %v5418_v52, 0  ;;  %v12821_v2 = vmov 0  ;;  %v12826_v27 = vld [vmem:[#allocation95_spill] sm:$0xff] }
 0x571   :  { %v5066_v37 = vmul.f32 %v5034_v43, %v4906_v49  ;;  %v12822_v2 = vsel %vm10540_vm3, 4294967295, %v12821_v2  ;;  %vm10544_vm13 = vcmp.ne.s32.totalorder %v5706_v7, 0  ;;  %v4875_v34 = vmul.f32 %v4843_v56, %v4843_v56 }
 0x572   :  { %12823 = vst [vmem:[#allocation75_spill] sm:$0xff] %v12822_v2  ;;  %v5801_v54 = vsel %vm10519_vm10, %v5769_v36, %v5513_v63  ;;  %v5354_v12 = vmul.f32 %v5322_v5, %v5194_v14  ;;  %v5419_v13 = vand.u32 1, %v10530_v45  ;;  %v4620_v8 = vfloor.f32 %v4588_v48 }
 0x573   :  { %v5833_v46 = vmul.f32 %v5801_v54, %v12826_v27  ;;  %v10552_v61 = vadd.f32 %v5066_v37, %v4842_v62  ;;  %v4939_v49 = vmul.f32 -0.00019515296, %v4875_v34  ;;  %v5675_v52 = vadd.s32 1, %v10530_v45 }
 0x574   :  { %v10555_v42 = vadd.f32 %v5354_v12, %v5162_v9  ;;  %v4907_v7 = vmul.f32 %v4875_v34, %v4843_v56  ;;  %v5227_v47 = vmul.f32 2.4433157e-05, %v4875_v34  ;;  %v4589_v38 = vadd.f32 0.5, %v4557_v22 }
 0x575   :  { %12827 = vst [vmem:[#allocation86_spill] sm:$0xff] %v10552_v61  ;;  %5866 = vst [vmem:[#allocation8 + $0x3a0] sm:$0xff] %v5833_v46  ;;  %v4971_v30 = vadd.f32 0.008332161, %v4939_v49  ;;  %v6217_v33 = vtrunc.f32 %v4620_v8  ;;  %v4684_v63 = vmul.f32 1.5703125, %v4620_v8  ;;  %v4748_v14 = vmul.f32 0.0004837513, %v4620_v8 }
 0x576   :  { %12828 = vst [vmem:[#allocation82_spill] sm:$0xff] %v10555_v42  ;;  %v5514_v43 = vsel %vm10540_vm3, %v10552_v61, %v10555_v42  ;;  %v5131_v62 = vmul.f32 0.5, %v4875_v34  ;;  %v5259_v36 = vadd.f32 -0.0013887316, %v5227_v47  ;;  %v4812_v5 = vmul.f32 7.54979e-08, %v4620_v8 }
 0x577   :  { %v5770_v48 = vsub.f32 0.0, %v5514_v43  ;;  %v5003_v37 = vmul.f32 %v4971_v30, %v4875_v34  ;;  %v10561_v9 = vcvt.f32.s32 %v6217_v33  ;;  %v4716_v54 = vsub.f32 %v4524_v44, %v4684_v63  ;;  %v12830_v47 = vld [vmem:[#allocation96_spill] sm:$0xff] }
 0x578   :  { %v5195_v12 = vmul.f32 %v4875_v34, %v4875_v34  ;;  %v5291_v22 = vmul.f32 %v5259_v36, %v4875_v34  ;;  %v5707_v46 = vand.u32 2, %v5675_v52  ;;  %v4621_v49 = vfloor.f32 %v4589_v38 }
 0x579   :  { %12829 = vst [vmem:[#allocation101_spill] sm:$0xff] %v10561_v9  ;;  %v5802_v27 = vsel %vm10544_vm13, %v5770_v48, %v5514_v43  ;;  %v5035_v45 = vadd.f32 -0.16666655, %v5003_v37  ;;  %v4780_v35 = vsub.f32 %v4716_v54, %v4748_v14  ;;  %v10566_v2 = vmul.f32 %v6394_v32, %v9938_v39 }
 0x57a   :  { %v5834_v8 = vmul.f32 %v5802_v27, %v12830_v47  ;;  %v5163_v42 = vsub.f32 1.0, %v5131_v62  ;;  %v5323_v30 = vadd.f32 0.041666646, %v5291_v22  ;;  %v6219_v33 = vtrunc.f32 %v4621_v49 }
 0x57b   :  { %v5067_v61 = vmul.f32 %v5035_v45, %v4907_v7  ;;  %v4844_v44 = vsub.f32 %v4780_v35, %v4812_v5  ;;  %v5676_v34 = vadd.s32 1, %v10561_v9  ;;  %v4685_v52 = vmul.f32 1.5703125, %v4621_v49  ;;  %v6395_v7 = vld [vmem:[#allocation5 + $0xd0] sm:$0xff] }
 0x57c   :  { %5867 = vst [vmem:[#allocation8 + $0x3a8] sm:$0xff] %v5834_v8  ;;  %v5355_v38 = vmul.f32 %v5323_v30, %v5195_v12  ;;  %v10570_v57 = vcvt.f32.s32 %v6219_v33  ;;  %v4749_v63 = vmul.f32 0.0004837513, %v4621_v49  ;;  %vm10574_vm13 = vcmp.ne.s32.totalorder %v5419_v13, 0 }
 0x57d   :  { %v10572_v14 = vadd.f32 %v5067_v61, %v4843_v56  ;;  %v12833_v32 = vmov 0  ;;  %v4876_v27 = vmul.f32 %v4844_v44, %v4844_v44  ;;  %v4717_v43 = vsub.f32 %v10533_v10, %v4685_v52 }
 0x57e   :  { %12831 = vst [vmem:[#allocation102_spill] sm:$0xff] %v10570_v57  ;;  %v12834_v32 = vsel %vm10574_vm13, 4294967295, %v12833_v32  ;;  %v10579_v62 = vadd.f32 %v5355_v38, %v5163_v42  ;;  %v4813_v45 = vmul.f32 7.54979e-08, %v4621_v49  ;;  %v4558_v35 = vmul.f32 0.63661975, %v10566_v2 }
 0x57f   :  { %12832 = vst [vmem:[#allocation93_spill] sm:$0xff] %v10572_v14  ;;  %12835 = vst [vmem:[#allocation104_spill] sm:$0xff] %v12834_v32  ;;  %v10583_v36 = vmul.f32 %v6395_v7, %v9938_v39  ;;  %vm10585_vm10 = vcmp.ne.s32.totalorder %v5707_v46, 0  ;;  %v4940_v56 = vmul.f32 -0.00019515296, %v4876_v27  ;;  %v5420_v13 = vand.u32 1, %v10561_v9 }
 0x580   :  { %12836 = vst [vmem:[#allocation87_spill] sm:$0xff] %v10579_v62  ;;  %v5708_v61 = vand.u32 2, %v5676_v34  ;;  %v5515_v10 = vsel %vm10574_vm13, %v10572_v14, %v10579_v62  ;;  %v5228_v42 = vmul.f32 2.4433157e-05, %v4876_v27  ;;  %v4781_v48 = vsub.f32 %v4717_v43, %v4749_v63  ;;  %v6396_v7 = vld [vmem:[#allocation5 + $0xd8] sm:$0xff]  ;;  %v12839_v63 = vld [vmem:[#allocation103_spill] sm:$0xff] }
 0x581   :  { %v5421_v37 = vand.u32 1, %v10570_v57  ;;  %v5771_v54 = vsub.f32 0.0, %v5515_v10  ;;  %v4908_v12 = vmul.f32 %v4876_v27, %v4844_v44  ;;  %v4972_v22 = vadd.f32 0.008332161, %v4940_v56 }
 0x582   :  { %v5132_v46 = vmul.f32 0.5, %v4876_v27  ;;  %v5260_v49 = vadd.f32 -0.0013887316, %v5228_v42  ;;  %v4845_v8 = vsub.f32 %v4781_v48, %v4813_v45  ;;  %v4590_v30 = vadd.f32 0.5, %v4558_v35 }
 0x583   :  { %v4559_v33 = vmul.f32 0.63661975, %v10583_v36  ;;  %v5803_v34 = vsel %vm10585_vm10, %v5771_v54, %v5515_v10  ;;  %v5004_v52 = vmul.f32 %v4972_v22, %v4876_v27  ;;  %v5196_v38 = vmul.f32 %v4876_v27, %v4876_v27 }
 0x584   :  { %v10599_v47 = vmul.f32 %v6396_v7, %v9938_v39  ;;  %v5835_v43 = vmul.f32 %v5803_v34, %v12839_v63  ;;  %v5292_v9 = vmul.f32 %v5260_v49, %v4876_v27  ;;  %v4877_v32 = vmul.f32 %v4845_v8, %v4845_v8 }
 0x585   :  { %v4622_v56 = vfloor.f32 %v4590_v30  ;;  %v5036_v62 = vadd.f32 -0.16666655, %v5004_v52  ;;  %vm10602_vm13 = vcmp.ne.s32.totalorder %v5420_v13, 0  ;;  %v12840_v45 = vmov 0 }
 0x586   :  { %v12841_v45 = vsel %vm10602_vm13, 4294967295, %v12840_v45  ;;  %vm10606_vm3 = vcmp.ne.s32.totalorder %v5708_v61, 0  ;;  %v5677_v5 = vadd.s32 1, %v10570_v57  ;;  %5868 = vst [vmem:[#allocation8 + $0x3b0] sm:$0xff] %v5835_v43  ;;  %v5164_v10 = vsub.f32 1.0, %v5132_v46 }
 0x587   :  { %12842 = vst [vmem:[#allocation94_spill] sm:$0xff] %v12841_v45  ;;  %v5324_v42 = vadd.f32 0.041666646, %v5292_v9  ;;  %v4941_v48 = vmul.f32 -0.00019515296, %v4877_v32  ;;  %v4591_v54 = vadd.f32 0.5, %v4559_v33  ;;  %v5068_v22 = vmul.f32 %v5036_v62, %v4908_v12 }
 0x588   :  { %v5229_v27 = vmul.f32 2.4433157e-05, %v4877_v32  ;;  %v6221_v49 = vtrunc.f32 %v4622_v56  ;;  %v4560_v30 = vmul.f32 0.63661975, %v10599_v47  ;;  %v4909_v34 = vmul.f32 %v4877_v32, %v4845_v8  ;;  %v12850_v45 = vld [vmem:[#allocation112_spill] sm:$0xff] }
 0x589   :  { %v5356_v13 = vmul.f32 %v5324_v42, %v5196_v38  ;;  %v4973_v52 = vadd.f32 0.008332161, %v4941_v48  ;;  %vm10612_vm10 = vcmp.ne.s32.totalorder %v5421_v37, 0  ;;  %v12845_v61 = vmov 0 }
 0x58a   :  { %v12846_v61 = vsel %vm10612_vm10, 4294967295, %v12845_v61  ;;  %v4686_v7 = vmul.f32 1.5703125, %v4622_v56  ;;  %v10616_v63 = vadd.f32 %v5068_v22, %v4844_v44  ;;  %v5133_v43 = vmul.f32 0.5, %v4877_v32 }
 0x58b   :  { %12847 = vst [vmem:[#allocation99_spill] sm:$0xff] %v12846_v61  ;;  %v5261_v46 = vadd.f32 -0.0013887316, %v5229_v27  ;;  %v4750_v9 = vmul.f32 0.0004837513, %v4622_v56  ;;  %v10618_v57 = vadd.f32 %v5356_v13, %v5164_v10  ;;  %v5005_v62 = vmul.f32 %v4973_v52, %v4877_v32 }
 0x58c   :  { %v4718_v12 = vsub.f32 %v10566_v2, %v4686_v7  ;;  %v4814_v33 = vmul.f32 7.54979e-08, %v4622_v56  ;;  %v5197_v14 = vmul.f32 %v4877_v32, %v4877_v32  ;;  %v10621_v42 = vcvt.f32.s32 %v6221_v49 }
 0x58d   :  { %12848 = vst [vmem:[#allocation97_spill] sm:$0xff] %v10618_v57  ;;  %v5293_v38 = vmul.f32 %v5261_v46, %v4877_v32  ;;  %v4623_v37 = vfloor.f32 %v4591_v54  ;;  %v5516_v44 = vsel %vm10602_vm13, %v10616_v63, %v10618_v57  ;;  %v5037_v48 = vadd.f32 -0.16666655, %v5005_v62 }
 0x58e   :  { %12849 = vst [vmem:[#allocation98_spill] sm:$0xff] %v10621_v42  ;;  %v5709_v22 = vand.u32 2, %v5677_v5  ;;  %v4782_v27 = vsub.f32 %v4718_v12, %v4750_v9  ;;  %v5772_v58 = vsub.f32 0.0, %v5516_v44  ;;  %v5165_v10 = vsub.f32 1.0, %v5133_v43 }
 0x58f   :  { %v5325_v13 = vadd.f32 0.041666646, %v5293_v38  ;;  %v4592_v52 = vadd.f32 0.5, %v4560_v30  ;;  %v5069_v6 = vmul.f32 %v5037_v48, %v4909_v34  ;;  %v6223_v56 = vtrunc.f32 %v4623_v37  ;;  %v6397_v38 = vld [vmem:[#allocation5 + $0xe0] sm:$0xff] }
 0x590   :  { %v4846_v2 = vsub.f32 %v4782_v27, %v4814_v33  ;;  %v4687_v7 = vmul.f32 1.5703125, %v4623_v37  ;;  %v5804_v32 = vsel %vm10606_vm3, %v5772_v58, %v5516_v44  ;;  %v5422_v49 = vand.u32 1, %v10621_v42 }
 0x591   :  { %v5357_v54 = vmul.f32 %v5325_v13, %v5197_v14  ;;  %v4751_v46 = vmul.f32 0.0004837513, %v4623_v37  ;;  %v5836_v57 = vmul.f32 %v5804_v32, %v12850_v45  ;;  %v10631_v62 = vadd.f32 %v5069_v6, %v4845_v8 }
 0x592   :  { %v4878_v5 = vmul.f32 %v4846_v2, %v4846_v2  ;;  %v5678_v43 = vadd.s32 1, %v10621_v42  ;;  %v4719_v30 = vsub.f32 %v10583_v36, %v4687_v7  ;;  %v4815_v34 = vmul.f32 7.54979e-08, %v4623_v37 }
 0x593   :  { %12851 = vst [vmem:[#allocation105_spill] sm:$0xff] %v10631_v62  ;;  %v10634_v9 = vadd.f32 %v5357_v54, %v5165_v10  ;;  %5869 = vst [vmem:[#allocation8 + $0x3b8] sm:$0xff] %v5836_v57  ;;  %vm10637_vm13 = vcmp.ne.s32.totalorder %v5709_v22, 0  ;;  %v10641_v14 = vcvt.f32.s32 %v6223_v56  ;;  %v4624_v12 = vfloor.f32 %v4592_v52 }
 0x594   :  { %v4942_v58 = vmul.f32 -0.00019515296, %v4878_v5  ;;  %v5230_v8 = vmul.f32 2.4433157e-05, %v4878_v5  ;;  %v4783_v33 = vsub.f32 %v4719_v30, %v4751_v46  ;;  %v10648_v36 = vmul.f32 %v6397_v38, %v9938_v39  ;;  %v12859_v46 = vld [vmem:[#allocation115_spill] sm:$0xff] }
 0x595   :  { %12852 = vst [vmem:[#allocation106_spill] sm:$0xff] %v10634_v9  ;;  %12855 = vst [vmem:[#allocation109_spill] sm:$0xff] %v10641_v14  ;;  %v5517_v6 = vsel %vm10612_vm10, %v10631_v62, %v10634_v9  ;;  %v4910_v37 = vmul.f32 %v4878_v5, %v4846_v2  ;;  %vm10650_vm3 = vcmp.ne.s32.totalorder %v5422_v49, 0  ;;  %v12856_v48 = vmov 0 }
 0x596   :  { %v5773_v57 = vsub.f32 0.0, %v5517_v6  ;;  %v4974_v44 = vadd.f32 0.008332161, %v4942_v58  ;;  %v12857_v48 = vsel %vm10650_vm3, 4294967295, %v12856_v48  ;;  %v5710_v22 = vand.u32 2, %v5678_v43 }
 0x597   :  { %12858 = vst [vmem:[#allocation108_spill] sm:$0xff] %v12857_v48  ;;  %v5134_v27 = vmul.f32 0.5, %v4878_v5  ;;  %v5198_v10 = vmul.f32 %v4878_v5, %v4878_v5  ;;  %v5262_v13 = vadd.f32 -0.0013887316, %v5230_v8  ;;  %v4847_v52 = vsub.f32 %v4783_v33, %v4815_v34 }
 0x598   :  { %v5805_v56 = vsel %vm10637_vm13, %v5773_v57, %v5517_v6  ;;  %v5006_v7 = vmul.f32 %v4974_v44, %v4878_v5  ;;  %v5679_v32 = vadd.s32 1, %v10641_v14  ;;  %v4688_v54 = vmul.f32 1.5703125, %v4624_v12 }
 0x599   :  { %v5837_v30 = vmul.f32 %v5805_v56, %v12859_v46  ;;  %v5294_v38 = vmul.f32 %v5262_v13, %v4878_v5  ;;  %v4879_v58 = vmul.f32 %v4847_v52, %v4847_v52  ;;  %v5423_v49 = vand.u32 1, %v10641_v14 }
 0x59a   :  { %v5038_v42 = vadd.f32 -0.16666655, %v5006_v7  ;;  %v6225_v45 = vtrunc.f32 %v4624_v12  ;;  %v4720_v43 = vsub.f32 %v10599_v47, %v4688_v54  ;;  %v4752_v61 = vmul.f32 0.0004837513, %v4624_v12 }
 0x59b   :  { %5870 = vst [vmem:[#allocation8 + $0x3c0] sm:$0xff] %v5837_v30  ;;  %v5166_v34 = vsub.f32 1.0, %v5134_v27  ;;  %v5326_v8 = vadd.f32 0.041666646, %v5294_v38  ;;  %vm10660_vm10 = vcmp.ne.s32.totalorder %v5710_v22, 0  ;;  %v5711_v44 = vand.u32 2, %v5679_v32 }
 0x59c   :  { %v4943_v6 = vmul.f32 -0.00019515296, %v4879_v58  ;;  %v5070_v33 = vmul.f32 %v5038_v42, %v4910_v37  ;;  %v5231_v57 = vmul.f32 2.4433157e-05, %v4879_v58  ;;  %v4784_v5 = vsub.f32 %v4720_v43, %v4752_v61  ;;  %v6398_v43 = vld [vmem:[#allocation5 + $0xe8] sm:$0xff] }
 0x59d   :  { %v5358_v13 = vmul.f32 %v5326_v8, %v5198_v10  ;;  %v5135_v46 = vmul.f32 0.5, %v4879_v58  ;;  %vm10664_vm13 = vcmp.ne.s32.totalorder %v5423_v49, 0  ;;  %v12862_v7 = vmov 0 }
 0x59e   :  { %v4975_v56 = vadd.f32 0.008332161, %v4943_v6  ;;  %v12863_v7 = vsel %vm10664_vm13, 4294967295, %v12862_v7  ;;  %v4816_v47 = vmul.f32 7.54979e-08, %v4624_v12  ;;  %v10668_v54 = vadd.f32 %v5070_v33, %v4846_v2 }
 0x59f   :  { %12864 = vst [vmem:[#allocation116_spill] sm:$0xff] %v12863_v7  ;;  %v4911_v27 = vmul.f32 %v4879_v58, %v4847_v52  ;;  %v5263_v22 = vadd.f32 -0.0013887316, %v5231_v57  ;;  %v10670_v30 = vcvt.f32.s32 %v6225_v45  ;;  %v10672_v38 = vadd.f32 %v5358_v13, %v5166_v34 }
 0x5a0   :  { %12865 = vst [vmem:[#allocation113_spill] sm:$0xff] %v10668_v54  ;;  %v5007_v42 = vmul.f32 %v4975_v56, %v4879_v58  ;;  %v4848_v37 = vsub.f32 %v4784_v5, %v4816_v47  ;;  %v4561_v61 = vmul.f32 0.63661975, %v10648_v36  ;;  %v5199_v10 = vmul.f32 %v4879_v58, %v4879_v58 }
 0x5a1   :  { %12866 = vst [vmem:[#allocation100_spill] sm:$0xff] %v10670_v30  ;;  %12867 = vst [vmem:[#allocation123_spill] sm:$0xff] %v10672_v38  ;;  %v5295_v32 = vmul.f32 %v5263_v22, %v4879_v58  ;;  %vm10675_vm8 = vcmp.ne.s32.totalorder %v5711_v44, 0  ;;  %v10680_v2 = vmul.f32 %v6398_v43, %v9938_v39  ;;  %v5518_v45 = vsel %vm10650_vm3, %v10668_v54, %v10672_v38 }
 0x5a2   :  { %v5039_v12 = vadd.f32 -0.16666655, %v5007_v42  ;;  %v5167_v34 = vsub.f32 1.0, %v5135_v46  ;;  %v4880_v8 = vmul.f32 %v4848_v37, %v4848_v37  ;;  %v5774_v6 = vsub.f32 0.0, %v5518_v45  ;;  %v12870_v42 = vld [vmem:[#allocation118_spill] sm:$0xff] }
 0x5a3   :  { %v5327_v33 = vadd.f32 0.041666646, %v5295_v32  ;;  %v4593_v57 = vadd.f32 0.5, %v4561_v61  ;;  %v4562_v58 = vmul.f32 0.63661975, %v10680_v2  ;;  %v5424_v56 = vand.u32 1, %v10670_v30 }
 0x5a4   :  { %v5071_v44 = vmul.f32 %v5039_v12, %v4911_v27  ;;  %v4944_v5 = vmul.f32 -0.00019515296, %v4880_v8  ;;  %v5136_v13 = vmul.f32 0.5, %v4880_v8  ;;  %v5806_v47 = vsel %vm10660_vm10, %v5774_v6, %v5518_v45  ;;  %v6399_v45 = vld [vmem:[#allocation5 + $0xf0] sm:$0xff] }
 0x5a5   :  { %v5359_v22 = vmul.f32 %v5327_v33, %v5199_v10  ;;  %v5232_v43 = vmul.f32 2.4433157e-05, %v4880_v8  ;;  %v5680_v14 = vadd.s32 1, %v10670_v30  ;;  %v5838_v46 = vmul.f32 %v5806_v47, %v12870_v42  ;;  %v6400_v42 = vld [vmem:[#allocation5 + $0xf8] sm:$0xff] }
 0x5a6   :  { %v10692_v48 = vadd.f32 %v5071_v44, %v4847_v52  ;;  %v4912_v32 = vmul.f32 %v4880_v8, %v4848_v37  ;;  %v4976_v61 = vadd.f32 0.008332161, %v4944_v5  ;;  %v4625_v12 = vfloor.f32 %v4593_v57 }
 0x5a7   :  { %v10694_v38 = vadd.f32 %v5359_v22, %v5167_v34  ;;  %v5264_v27 = vadd.f32 -0.0013887316, %v5232_v43  ;;  %v4594_v54 = vadd.f32 0.5, %v4562_v58  ;;  %5871 = vst [vmem:[#allocation8 + $0x3c8] sm:$0xff] %v5838_v46  ;;  %v5168_v62 = vsub.f32 1.0, %v5136_v13 }
 0x5a8   :  { %12871 = vst [vmem:[#allocation117_spill] sm:$0xff] %v10692_v48  ;;  %v5008_v9 = vmul.f32 %v4976_v61, %v4880_v8  ;;  %v5200_v35 = vmul.f32 %v4880_v8, %v4880_v8  ;;  %v10697_v10 = vmul.f32 %v6399_v45, %v9938_v39  ;;  %v6227_v33 = vtrunc.f32 %v4625_v12 }
 0x5a9   :  { %12872 = vst [vmem:[#allocation114_spill] sm:$0xff] %v10694_v38  ;;  %v5519_v52 = vsel %vm10664_vm13, %v10692_v48, %v10694_v38  ;;  %v5296_v6 = vmul.f32 %v5264_v27, %v4880_v8  ;;  %v4689_v34 = vmul.f32 1.5703125, %v4625_v12  ;;  %v4753_v57 = vmul.f32 0.0004837513, %v4625_v12  ;;  %v12874_v27 = vld [vmem:[#allocation122_spill] sm:$0xff] }
 0x5aa   :  { %v5775_v44 = vsub.f32 0.0, %v5519_v52  ;;  %v5040_v5 = vadd.f32 -0.16666655, %v5008_v9  ;;  %v4817_v58 = vmul.f32 7.54979e-08, %v4625_v12  ;;  %v10703_v22 = vcvt.f32.s32 %v6227_v33  ;;  %v12888_v38 = vld [vmem:[#allocation126_spill] sm:$0xff] }
 0x5ab   :  { %v5328_v47 = vadd.f32 0.041666646, %v5296_v6  ;;  %v4721_v13 = vsub.f32 %v10648_v36, %v4689_v34  ;;  %v4626_v43 = vfloor.f32 %v4594_v54  ;;  %v5712_v45 = vand.u32 2, %v5680_v14 }
 0x5ac   :  { %12873 = vst [vmem:[#allocation124_spill] sm:$0xff] %v10703_v22  ;;  %v5807_v46 = vsel %vm10675_vm8, %v5775_v44, %v5519_v52  ;;  %v5072_v61 = vmul.f32 %v5040_v5, %v4912_v32  ;;  %v10709_v8 = vmul.f32 %v6400_v42, %v9938_v39  ;;  %vm10712_vm10 = vcmp.ne.s32.totalorder %v5424_v56, 0 }
 0x5ad   :  { %v5839_v30 = vmul.f32 %v5807_v46, %v12874_v27  ;;  %v5360_v9 = vmul.f32 %v5328_v47, %v5200_v35  ;;  %v12875_v12 = vmov 0  ;;  %v4785_v6 = vsub.f32 %v4721_v13, %v4753_v57 }
 0x5ae   :  { %v12876_v12 = vsel %vm10712_vm10, 4294967295, %v12875_v12  ;;  %v10716_v33 = vadd.f32 %v5072_v61, %v4848_v37  ;;  %v6229_v36 = vtrunc.f32 %v4626_v43  ;;  %v4690_v54 = vmul.f32 1.5703125, %v4626_v43 }
 0x5af   :  { %12877 = vst [vmem:[#allocation120_spill] sm:$0xff] %v12876_v12  ;;  %v4563_v49 = vmul.f32 0.63661975, %v10697_v10  ;;  %5872 = vst [vmem:[#allocation8 + $0x3d0] sm:$0xff] %v5839_v30  ;;  %v10719_v14 = vadd.f32 %v5360_v9, %v5168_v62  ;;  %v4849_v32 = vsub.f32 %v4785_v6, %v4817_v58  ;;  %v5681_v39 = vadd.s32 1, %v10703_v22  ;;  %v12881_v9 = vld [vmem:[#allocation130_spill] sm:$0xff] }
 0x5b0   :  { %12878 = vst [vmem:[#allocation110_spill] sm:$0xff] %v10716_v33  ;;  %v4754_v42 = vmul.f32 0.0004837513, %v4626_v43  ;;  %vm5744_vm8 = vcmp.ne.s32.totalorder %v5712_v45, 0  ;;  %v4722_v56 = vsub.f32 %v10680_v2, %v4690_v54  ;;  %v4818_v35 = vmul.f32 7.54979e-08, %v4626_v43 }
 0x5b1   :  { %12879 = vst [vmem:[#allocation121_spill] sm:$0xff] %v10719_v14  ;;  %v4564_v52 = vmul.f32 0.63661975, %v10709_v8  ;;  %v5520_v37 = vsel %vm10712_vm10, %v10716_v33, %v10719_v14  ;;  %v4881_v34 = vmul.f32 %v4849_v32, %v4849_v32  ;;  %v5425_v30 = vand.u32 1, %v10703_v22 }
 0x5b2   :  { %v10729_v62 = vcvt.f32.s32 %v6229_v36  ;;  %v5776_v44 = vsub.f32 0.0, %v5520_v37  ;;  %v4786_v5 = vsub.f32 %v4722_v56, %v4754_v42  ;;  %v10735_v2 = vsel %vm9989_vm12, %v10012_v41, %v10010_v53 }
 0x5b3   :  { %v4945_v57 = vmul.f32 -0.00019515296, %v4881_v34  ;;  %v5137_v58 = vmul.f32 0.5, %v4881_v34  ;;  %v5713_v47 = vand.u32 2, %v5681_v39  ;;  %v4595_v13 = vadd.f32 0.5, %v4563_v49 }
 0x5b4   :  { %12880 = vst [vmem:[#allocation111_spill] sm:$0xff] %v10729_v62  ;;  %v5808_v43 = vsel %vm5744_vm8, %v5776_v44, %v5520_v37  ;;  %v5233_v46 = vmul.f32 2.4433157e-05, %v4881_v34  ;;  %v4850_v61 = vsub.f32 %v4786_v5, %v4818_v35  ;;  %v4596_v45 = vadd.f32 0.5, %v4564_v52 }
 0x5b5   :  { %v5840_v6 = vmul.f32 %v5808_v43, %v12881_v9  ;;  %v4977_v36 = vadd.f32 0.008332161, %v4945_v57  ;;  %vm10738_vm10 = vcmp.ne.s32.totalorder %v5425_v30, 0  ;;  %v12882_v54 = vmov 0 }
 0x5b6   :  { %v12883_v54 = vsel %vm10738_vm10, 4294967295, %v12882_v54  ;;  %v5682_v42 = vadd.s32 1, %v10729_v62  ;;  %v4913_v28 = vmul.f32 %v4881_v34, %v4849_v32  ;;  %v5265_v53 = vadd.f32 -0.0013887316, %v5233_v46 }
 0x5b7   :  { %v4882_v41 = vmul.f32 %v4850_v61, %v4850_v61  ;;  %v5426_v56 = vand.u32 1, %v10729_v62  ;;  %5873 = vst [vmem:[#allocation8 + $0x3d8] sm:$0xff] %v5840_v6  ;;  %v5009_v49 = vmul.f32 %v4977_v36, %v4881_v34  ;;  %v5169_v39 = vsub.f32 1.0, %v5137_v58 }
 0x5b8   :  { %v5201_v37 = vmul.f32 %v4881_v34, %v4881_v34  ;;  %v4627_v35 = vfloor.f32 %v4595_v13  ;;  %v5297_v52 = vmul.f32 %v5265_v53, %v4881_v34  ;;  %vm10744_vm12 = vcmp.ne.s32.totalorder %v5713_v47, 0 }
 0x5b9   :  { %v4946_v30 = vmul.f32 -0.00019515296, %v4882_v41  ;;  %v5714_v5 = vand.u32 2, %v5682_v42  ;;  %v4628_v57 = vfloor.f32 %v4596_v45  ;;  %v5041_v43 = vadd.f32 -0.16666655, %v5009_v49 }
 0x5ba   :  { %v4914_v9 = vmul.f32 %v4882_v41, %v4850_v61  ;;  %v5138_v27 = vmul.f32 0.5, %v4882_v41  ;;  %v5234_v46 = vmul.f32 2.4433157e-05, %v4882_v41  ;;  %v5329_v22 = vadd.f32 0.041666646, %v5297_v52 }
 0x5bb   :  { %v4978_v12 = vadd.f32 0.008332161, %v4946_v30  ;;  %v5202_v62 = vmul.f32 %v4882_v41, %v4882_v41  ;;  %vm10748_vm8 = vcmp.ne.s32.totalorder %v5426_v56, 0  ;;  %v12886_v6 = vmov 0 }
 0x5bc   :  { %v12887_v6 = vsel %vm10748_vm8, 4294967295, %v12886_v6  ;;  %v6231_v58 = vtrunc.f32 %v4627_v35  ;;  %v5073_v34 = vmul.f32 %v5041_v43, %v4913_v28  ;;  %v5266_v47 = vadd.f32 -0.0013887316, %v5234_v46 }
 0x5bd   :  { %v4691_v13 = vmul.f32 1.5703125, %v4627_v35  ;;  %v4755_v36 = vmul.f32 0.0004837513, %v4627_v35  ;;  %v5361_v53 = vmul.f32 %v5329_v22, %v5201_v37  ;;  %v5010_v14 = vmul.f32 %v4978_v12, %v4882_v41 }
 0x5be   :  { %v10752_v42 = vcvt.f32.s32 %v6231_v58  ;;  %v4819_v45 = vmul.f32 7.54979e-08, %v4627_v35  ;;  %v10754_v49 = vadd.f32 %v5073_v34, %v4849_v32  ;;  %v5298_v33 = vmul.f32 %v5266_v47, %v4882_v41 }
 0x5bf   :  { %v4723_v52 = vsub.f32 %v10697_v10, %v4691_v13  ;;  %v6233_v30 = vtrunc.f32 %v4628_v57  ;;  %v10757_v56 = vadd.f32 %v5361_v53, %v5169_v39  ;;  %v5042_v7 = vadd.f32 -0.16666655, %v5010_v14 }
 0x5c0   :  { %v5525_v48 = vand.u32 2, %v12888_v38  ;;  %v5589_v28 = vsub.f32 0.0, %v10735_v2  ;;  %v5170_v43 = vsub.f32 1.0, %v5138_v27  ;;  %v5330_v46 = vadd.f32 0.041666646, %v5298_v33 }
 0x5c1   :  { %v4787_v22 = vsub.f32 %v4723_v52, %v4755_v36  ;;  %v4692_v12 = vmul.f32 1.5703125, %v4628_v57  ;;  %v5521_v32 = vsel %vm10738_vm10, %v10754_v49, %v10757_v56  ;;  %v5074_v41 = vmul.f32 %v5042_v7, %v4914_v9 }
 0x5c2   :  { %v5683_v10 = vadd.s32 1, %v10752_v42  ;;  %v10766_v37 = vcvt.f32.s32 %v6233_v30  ;;  %v5777_v39 = vsub.f32 0.0, %v5521_v32  ;;  %v5362_v14 = vmul.f32 %v5330_v46, %v5202_v62  ;;  %v12892_v62 = vld [vmem:[#allocation131_spill] sm:$0xff] }
 0x5c3   :  { %v4851_v35 = vsub.f32 %v4787_v22, %v4819_v45  ;;  %v4724_v38 = vsub.f32 %v10709_v8, %v4692_v12  ;;  %v10769_v58 = vadd.f32 %v5074_v41, %v4850_v61  ;;  %vm10771_vm13 = vcmp.ne.s32.totalorder %v5714_v5, 0 }
 0x5c4   :  { %12889 = vst [vmem:[#allocation107_spill] sm:$0xff] %v10766_v37  ;;  %v4756_v33 = vmul.f32 0.0004837513, %v4628_v57  ;;  %v4820_v34 = vmul.f32 7.54979e-08, %v4628_v57  ;;  %v5809_v7 = vsel %vm10744_vm12, %v5777_v39, %v5521_v32  ;;  %v10777_v9 = vadd.f32 %v5362_v14, %v5170_v43 }
 0x5c5   :  { %v4883_v47 = vmul.f32 %v4851_v35, %v4851_v35  ;;  %v5427_v13 = vand.u32 1, %v10752_v42  ;;  %v5841_v36 = vmul.f32 %v5809_v7, %v12892_v62  ;;  %v5715_v53 = vand.u32 2, %v5683_v10 }
 0x5c6   :  { %v4788_v8 = vsub.f32 %v4724_v38, %v4756_v33  ;;  %v5684_v61 = vadd.s32 1, %v10766_v37  ;;  %v5522_v5 = vsel %vm10748_vm8, %v10769_v58, %v10777_v9  ;;  %vm5557_vm10 = vcmp.ne.s32.totalorder %v5525_v48, 0  ;;  %v12895_v38 = vld [vmem:[#allocation132_spill] sm:$0xff] }
 0x5c7   :  { %v4947_v57 = vmul.f32 -0.00019515296, %v4883_v47  ;;  %v5139_v45 = vmul.f32 0.5, %v4883_v47  ;;  %5874 = vst [vmem:[#allocation8 + $0x3e0] sm:$0xff] %v5841_v36  ;;  %v5778_v44 = vsub.f32 0.0, %v5522_v5  ;;  %v5428_v43 = vand.u32 1, %v10766_v37 }
 0x5c8   :  { %v5235_v52 = vmul.f32 2.4433157e-05, %v4883_v47  ;;  %v4852_v30 = vsub.f32 %v4788_v8, %v4820_v34  ;;  %v4915_v46 = vmul.f32 %v4883_v47, %v4851_v35  ;;  %v5203_v32 = vmul.f32 %v4883_v47, %v4883_v47 }
 0x5c9   :  { %v4979_v22 = vadd.f32 0.008332161, %v4947_v57  ;;  %v5171_v12 = vsub.f32 1.0, %v5139_v45  ;;  %vm10787_vm12 = vcmp.ne.s32.totalorder %v5427_v13, 0  ;;  %v5810_v10 = vsel %vm10771_vm13, %v5778_v44, %v5522_v5 }
 0x5ca   :  { %v5267_v39 = vadd.f32 -0.0013887316, %v5235_v52  ;;  %v4884_v14 = vmul.f32 %v4852_v30, %v4852_v30  ;;  %v5621_v48 = vsel %vm5557_vm10, %v5589_v28, %v10735_v2  ;;  %v5842_v33 = vmul.f32 %v5810_v10, %v12895_v38 }
 0x5cb   :  { %v5011_v34 = vmul.f32 %v4979_v22, %v4883_v47  ;;  %v5716_v7 = vand.u32 2, %v5684_v61  ;;  %v5878_v36 = vmul.f32 %v5621_v48, %v12683_v60  ;;  %vm10796_vm8 = vcmp.ne.s32.totalorder %v5715_v53, 0  ;;  %v12900_v61 = vld [vmem:[#allocation119_spill] sm:$0xff] }
 0x5cc   :  { %v5299_v8 = vmul.f32 %v5267_v39, %v4883_v47  ;;  %v4916_v13 = vmul.f32 %v4884_v14, %v4852_v30  ;;  %v4948_v45 = vmul.f32 -0.00019515296, %v4884_v14  ;;  %v5140_v37 = vmul.f32 0.5, %v4884_v14  ;;  %5875 = vst [vmem:[#allocation8 + $0x3e8] sm:$0xff] %v5842_v33 }
 0x5cd   :  { %v5043_v27 = vadd.f32 -0.16666655, %v5011_v34  ;;  %v5204_v5 = vmul.f32 %v4884_v14, %v4884_v14  ;;  %v5236_v44 = vmul.f32 2.4433157e-05, %v4884_v14  ;;  %5911 = vst [vmem:[#allocation9 + $0x300] sm:$0xff] %v5878_v36  ;;  %v5462_v2 = vsel %vm9993_vm5, %v10016_v18, %v10014_v21 }
 0x5ce   :  { %v5331_v28 = vadd.f32 0.041666646, %v5299_v8  ;;  %v4980_v60 = vadd.f32 0.008332161, %v4948_v45  ;;  %v5172_v47 = vsub.f32 1.0, %v5140_v37  ;;  %vm10804_vm13 = vcmp.ne.s32.totalorder %v5428_v43, 0 }
 0x5cf   :  { %v5526_v52 = vand.u32 2, %v12900_v61  ;;  %v5075_v22 = vmul.f32 %v5043_v27, %v4915_v46  ;;  %v5268_v10 = vadd.f32 -0.0013887316, %v5236_v44  ;;  %v5590_v39 = vsub.f32 0.0, %v5462_v2  ;;  %v12907_v61 = vld [vmem:[#allocation19_spill] sm:$0xff] }
 0x5d0   :  { %v5463_v48 = vsel %vm10042_vm9, %v10047_v23, %v10029_v20  ;;  %v5363_v33 = vmul.f32 %v5331_v28, %v5203_v32  ;;  %v5012_v31 = vmul.f32 %v4980_v60, %v4884_v14  ;;  %v5527_v21 = vand.u32 2, %v9969_v1  ;;  %v12905_v28 = vld [vmem:[#allocation18_spill] sm:$0xff]  ;;  %v12906_v60 = vld [vmem:[#allocation16_spill] sm:$0xff] }
 0x5d1   :  { %vm5558_vm5 = vcmp.ne.s32.totalorder %v5526_v52, 0  ;;  %v10814_v18 = vadd.f32 %v5075_v22, %v4851_v35  ;;  %v5300_v37 = vmul.f32 %v5268_v10, %v4884_v14  ;;  %vm10816_vm10 = vcmp.ne.s32.totalorder %v5716_v7, 0  ;;  %v12924_v52 = vld [vmem:[#allocation46_spill] sm:$0xff] }
 0x5d2   :  { %v5622_v46 = vsel %vm5558_vm5, %v5590_v39, %v5462_v2  ;;  %v5591_v34 = vsub.f32 0.0, %v5463_v48  ;;  %v10820_v36 = vadd.f32 %v5363_v33, %v5171_v12  ;;  %v5044_v8 = vadd.f32 -0.16666655, %v5012_v31  ;;  %v12912_v33 = vld [vmem:[#allocation35_spill] sm:$0xff]  ;;  %v12933_v31 = vld [vmem:[#allocation37_spill] sm:$0xff] }
 0x5d3   :  { %v5879_v19 = vmul.f32 %v5622_v46, %v6583_v4  ;;  %vm5559_vm9 = vcmp.ne.s32.totalorder %v5527_v21, 0  ;;  %v5332_v20 = vadd.f32 0.041666646, %v5300_v37  ;;  %v5464_v1 = vsel %vm10062_vm15, %v10079_v24, %v10077_v17  ;;  %v12904_v24 = vld [vmem:[#allocation127_spill] sm:$0xff]  ;;  %v12914_v37 = vld [vmem:[#allocation133_spill] sm:$0xff] }
 0x5d4   :  { %v5623_v23 = vsel %vm5559_vm9, %v5591_v34, %v5463_v48  ;;  %v5528_v35 = vand.u32 2, %v10007_v50  ;;  %v5523_v32 = vsel %vm10787_vm12, %v10814_v18, %v10820_v36  ;;  %v5076_v12 = vmul.f32 %v5044_v8, %v4916_v13  ;;  %v12911_v48 = vld [vmem:[#allocation24_spill] sm:$0xff] }
 0x5d5   :  { %5912 = vst [vmem:[#allocation9 + $0x308] sm:$0xff] %v5879_v19  ;;  %v5880_v14 = vmul.f32 %v5623_v23, %v12542_v16  ;;  %v5592_v4 = vsub.f32 0.0, %v5464_v1  ;;  %v5779_v7 = vsub.f32 0.0, %v5523_v32  ;;  %v5364_v45 = vmul.f32 %v5332_v20, %v5204_v5  ;;  %v12915_v8 = vld [vmem:[#allocation20_spill] sm:$0xff] }
 0x5d6   :  { %vm5560_vm5 = vcmp.ne.s32.totalorder %v5528_v35, 0  ;;  %v5465_v15 = vsel %vm10071_vm14, %v10100_v29, %v10096_v59  ;;  %v10837_v17 = vadd.f32 %v5076_v12, %v4852_v30  ;;  %v5529_v44 = vand.u32 2, %v12904_v24  ;;  %v12909_v59 = vld [vmem:[#allocation134_spill] sm:$0xff]  ;;  %v12910_v30 = vld [vmem:[#allocation129_spill] sm:$0xff]  ;;  %v12921_v24 = vld [vmem:[#allocation135_spill] sm:$0xff] }
 0x5d7   :  { %5913 = vst [vmem:[#allocation9 + $0x310] sm:$0xff] %v5880_v14  ;;  %v5624_v50 = vsel %vm5560_vm5, %v5592_v4, %v5464_v1  ;;  %v5593_v2 = vsub.f32 0.0, %v5465_v15  ;;  %v5811_v13 = vsel %vm10796_vm8, %v5779_v7, %v5523_v32  ;;  %v10842_v16 = vadd.f32 %v5364_v45, %v5172_v47  ;;  %v12916_v1 = vld [vmem:[#allocation23_spill] sm:$0xff]  ;;  %v12917_v35 = vld [vmem:[#allocation21_spill] sm:$0xff] }
 0x5d8   :  { %v5881_v5 = vmul.f32 %v5624_v50, %v12905_v28  ;;  %v5466_v22 = vsel %vm10112_vm4, %v12907_v61, %v12906_v60  ;;  %v5843_v29 = vmul.f32 %v5811_v13, %v12909_v59  ;;  %vm5561_vm15 = vcmp.ne.s32.totalorder %v5529_v44, 0  ;;  %v12919_v14 = vld [vmem:[#allocation31_spill] sm:$0xff]  ;;  %v12920_v45 = vld [vmem:[#allocation25_spill] sm:$0xff] }
 0x5d9   :  { %v5530_v10 = vand.u32 2, %v12910_v30  ;;  %v5594_v39 = vsub.f32 0.0, %v5466_v22  ;;  %v5524_v57 = vsel %vm10804_vm13, %v10837_v17, %v10842_v16  ;;  %v5625_v47 = vsel %vm5561_vm15, %v5593_v2, %v5465_v15  ;;  %v12922_v2 = vld [vmem:[#allocation26_spill] sm:$0xff] }
 0x5da   :  { %5914 = vst [vmem:[#allocation9 + $0x318] sm:$0xff] %v5881_v5  ;;  %v5467_v21 = vsel %vm10123_vm6, %v12912_v33, %v12911_v48  ;;  %v5531_v46 = vand.u32 2, %v12914_v37  ;;  %5876 = vst [vmem:[#allocation8 + $0x3f0] sm:$0xff] %v5843_v29  ;;  %v5780_v34 = vsub.f32 0.0, %v5524_v57  ;;  %v5882_v19 = vmul.f32 %v5625_v47, %v12915_v8  ;;  %v12923_v5 = vld [vmem:[#allocation32_spill] sm:$0xff]  ;;  %v12926_v30 = vld [vmem:[#allocation30_spill] sm:$0xff] }
 0x5db   :  { %vm5562_vm14 = vcmp.ne.s32.totalorder %v5530_v10, 0  ;;  %v5595_v20 = vsub.f32 0.0, %v5467_v21  ;;  %v5468_v12 = vsel %vm10166_vm1, %v12917_v35, %v12916_v1  ;;  %v5532_v4 = vand.u32 2, %v12919_v14 }
 0x5dc   :  { %v5626_v23 = vsel %vm5562_vm14, %v5594_v39, %v5466_v22  ;;  %vm5563_vm4 = vcmp.ne.s32.totalorder %v5531_v46, 0  ;;  %v5812_v7 = vsel %vm10816_vm10, %v5780_v34, %v5524_v57  ;;  %5915 = vst [vmem:[#allocation9 + $0x320] sm:$0xff] %v5882_v19  ;;  %v5596_v50 = vsub.f32 0.0, %v5468_v12  ;;  %v12928_v39 = vld [vmem:[#allocation36_spill] sm:$0xff]  ;;  %v12929_v57 = vld [vmem:[#allocation41_spill] sm:$0xff]  ;;  %v12935_v46 = vld [vmem:[#allocation43_spill] sm:$0xff] }
 0x5dd   :  { %v5883_v27 = vmul.f32 %v5626_v23, %v12920_v45  ;;  %v5627_v15 = vsel %vm5563_vm4, %v5595_v20, %v5467_v21  ;;  %v5844_v44 = vmul.f32 %v5812_v7, %v12921_v24  ;;  %vm5564_vm6 = vcmp.ne.s32.totalorder %v5532_v4, 0 }
 0x5de   :  { %v5884_v13 = vmul.f32 %v5627_v15, %v12922_v2  ;;  %v5469_v28 = vsel %vm10187_vm11, %v10199_v26, %v10197_v25  ;;  %v5628_v43 = vsel %vm5564_vm6, %v5596_v50, %v5468_v12  ;;  %v5533_v60 = vand.u32 2, %v12923_v5  ;;  %v12927_v26 = vld [vmem:[#allocation33_spill] sm:$0xff] }
 0x5df   :  { %5916 = vst [vmem:[#allocation9 + $0x328] sm:$0xff] %v5883_v27  ;;  %v5597_v61 = vsub.f32 0.0, %v5469_v28  ;;  %v5470_v29 = vsel %vm10205_vm2, %v12924_v52, %v10221_v55  ;;  %5877 = vst [vmem:[#allocation8 + $0x3f8] sm:$0xff] %v5844_v44  ;;  %v5885_v40 = vmul.f32 %v5628_v43, %v12926_v30  ;;  %v5534_v25 = vand.u32 2, %v12927_v26  ;;  %v12934_v55 = vld [vmem:[#allocation48_spill] sm:$0xff] }
 0x5e0   :  { %5917 = vst [vmem:[#allocation9 + $0x330] sm:$0xff] %v5884_v13  ;;  %v5598_v10 = vsub.f32 0.0, %v5470_v29  ;;  %v5471_v48 = vsel %vm10249_vm7, %v12929_v57, %v12928_v39  ;;  %vm10888_vm1 = vcmp.ne.s32.totalorder %v5533_v60, 0  ;;  %v5535_v21 = vand.u32 2, %v12933_v31 }
 0x5e1   :  { %v5599_v37 = vsub.f32 0.0, %v5471_v48  ;;  %v5472_v8 = vsel %vm10266_vm0, %v12935_v46, %v12934_v55 }
 0x5e2   :  { %6446 = shalt.err (!%p6443_p3)
}
 0x5e3   :  { %s6447_s16 = scalar_lea.hbm %s11062_s3, 16384 }
 0x5e4   :  { %p6448_p4 = scmp.ne.s32.totalorder %s11062_s3, %s6447_s16  ;;  %p6451_p5 = scmp.lt.u32.totalorder %s6447_s16, %s11062_s3 }
 0x5e6   :  { %p6453_p6 = pnand %p6451_p5, %p6448_p4 }
 0x5e8   :  { %6456 = shalt.err (!%p6453_p6)
}
 0x5e9   :  { %5954 = dma.vmem_to_hbm [thread:$0]  %s10875_s12, 16384, %s11062_s3, [#allocation7], %s6489_s29, %s6489_s29, %s6490_s30   ;;  %5918 = vst [vmem:[#allocation9 + $0x338] sm:$0xff] %v5885_v40  ;;  %v5629_v19 = vsel %vm10888_vm1, %v5597_v61, %v5469_v28  ;;  %vm5566_vm11 = vcmp.ne.s32.totalorder %v5534_v25, 0  ;;  %v12937_v20 = vld [vmem:[#allocation38_spill] sm:$0xff]  ;;  %v5600_v1 = vsub.f32 0.0, %v5472_v8  ;;  %vm12939_vm7 = vnez %v12750_v11 }
 0x5ea   :  { %v5536_v23 = vand.u32 2, %v12937_v20  ;;  %v12938_v35 = vld [vmem:[#allocation39_spill] sm:$0xff]  ;;  %v5630_v12 = vsel %vm5566_vm11, %v5598_v10, %v5470_v29  ;;  %vm5567_vm2 = vcmp.ne.s32.totalorder %v5535_v21, 0  ;;  %v5473_v14 = vsel %vm12939_vm7, %v10315_v51, %v10311_v0  ;;  %v12940_v4 = vld [vmem:[#allocation42_spill] sm:$0xff]  ;;  %v12941_v27 = vld [vmem:[#allocation49_spill] sm:$0xff]  ;;  %s6492_s3 = smov [#allocation9]  }
 0x5eb   :  { %v5886_v32 = vmul.f32 %v5629_v19, %v12938_v35  ;;  %v5887_v7 = vmul.f32 %v5630_v12, %v12940_v4  ;;  %v5631_v45 = vsel %vm5567_vm2, %v5599_v37, %v5471_v48  ;;  %v5537_v15 = vand.u32 2, %v12941_v27  ;;  %v12942_v50 = vld [vmem:[#allocation44_spill] sm:$0xff]  ;;  %v12943_v28 = vld [vmem:[#allocation55_spill] sm:$0xff]  ;;  %v12946_v60 = vld [vmem:[#allocation45_spill] sm:$0xff]  ;;  %s5960_s22 = sshll.u32 %s6492_s3, 4  ;;  %s5961_s22 = int_to_ptr.vmem [resolvable:$true] %s5960_s22 }
 0x5ec   :  { %vm5568_vm0 = vcmp.ne.s32.totalorder %v5536_v23, 0  ;;  %v5888_v44 = vmul.f32 %v5631_v45, %v12942_v50  ;;  %v5601_v13 = vsub.f32 0.0, %v5473_v14  ;;  %v12944_v43 = vld [vmem:[#allocation47_spill] sm:$0xff]  ;;  %v12947_v0 = vld [vmem:[#allocation40_spill] sm:$0xff]  ;;  %v12948_v22 = vld [vmem:[#allocation54_spill] sm:$0xff]  ;;  %s6457_s23 = scalar_lea.vmem %s5961_s22, 16384  ;;  %p6462_p8 = scmp.lt.s32.totalorder %s5961_s22, %s5961_s22 }
 0x5ed   :  { %5919 = vst [vmem:[#allocation9 + $0x340] sm:$0xff] %v5886_v32  ;;  %v5632_v2 = vsel %vm5568_vm0, %v5600_v1, %v5472_v8  ;;  %vm12945_vm8 = vnez %v12944_v43  ;;  %5920 = vst [vmem:[#allocation9 + $0x348] sm:$0xff] %v5887_v7  ;;  %vm5569_vm10 = vcmp.ne.s32.totalorder %v5537_v15, 0  ;;  %v5538_v51 = vand.u32 2, %v12947_v0  ;;  %v12949_v29 = vld [vmem:[#allocation50_spill] sm:$0xff]  ;;  %v12952_v26 = vld [vmem:[#allocation57_spill] sm:$0xff]  ;;  %p6458_p7 = scmp.ne.s32.totalorder %s5961_s22, %s6457_s23  ;;  %p6463_p9 = scmp.lt.s32.totalorder %s6457_s23, %s6457_s23 }
 0x5ee   :  { %v5474_v5 = vsel %vm12945_vm8, %v12943_v28, %v10329_v3  ;;  %v5889_v11 = vmul.f32 %v5632_v2, %v12946_v60  ;;  %5921 = vst [vmem:[#allocation9 + $0x350] sm:$0xff] %v5888_v44  ;;  %v5633_v52 = vsel %vm5569_vm10, %v5601_v13, %v5473_v14  ;;  %v12950_v30 = vld [vmem:[#allocation62_spill] sm:$0xff]  ;;  %v5539_v25 = vand.u32 2, %v12952_v26  ;;  %v12953_v10 = vld [vmem:[#allocation61_spill] sm:$0xff]  ;;  %v12954_v39 = vld [vmem:[#allocation51_spill] sm:$0xff] }
 0x5ef   :  { %v5602_v61 = vsub.f32 0.0, %v5474_v5  ;;  %vm12951_vm9 = vnez %v12950_v30  ;;  %v12955_v57 = vld [vmem:[#allocation70_spill] sm:$0xff]  ;;  %v12957_v47 = vld [vmem:[#allocation53_spill] sm:$0xff]  ;;  %vm5570_vm15 = vcmp.ne.s32.totalorder %v5538_v51, 0  ;;  %v12959_v46 = vld [vmem:[#allocation56_spill] sm:$0xff]  ;;  %p6464_p10 = por %p6463_p9, %p6462_p8 }
 0x5f0   :  { %v5475_v40 = vsel %vm12951_vm9, %v12949_v29, %v12948_v22  ;;  %vm12956_vm5 = vnez %v12955_v57  ;;  %5922 = vst [vmem:[#allocation9 + $0x358] sm:$0xff] %v5889_v11  ;;  %v5890_v48 = vmul.f32 %v5633_v52, %v12957_v47  ;;  %v12958_v31 = vld [vmem:[#allocation58_spill] sm:$0xff]  ;;  %vm5571_vm14 = vcmp.ne.s32.totalorder %v5539_v25, 0  ;;  %v12961_v8 = vld [vmem:[#allocation69_spill] sm:$0xff]  ;;  %v12963_v20 = vld [vmem:[#allocation63_spill] sm:$0xff] }
 0x5f1   :  { %v5476_v3 = vsel %vm12956_vm5, %v12954_v39, %v12953_v10  ;;  %v5603_v33 = vsub.f32 0.0, %v5475_v40  ;;  %v5540_v21 = vand.u32 2, %v12958_v31  ;;  %v5634_v37 = vsel %vm5570_vm15, %v5602_v61, %v5474_v5  ;;  %v12960_v34 = vld [vmem:[#allocation74_spill] sm:$0xff]  ;;  %v12964_v35 = vld [vmem:[#allocation52_spill] sm:$0xff]  ;;  %v12966_v45 = vld [vmem:[#allocation59_spill] sm:$0xff]  ;;  %p6465_p11 = pnand %p6464_p10, %p6458_p7 }
 0x5f2   :  { %v5604_v55 = vsub.f32 0.0, %v5476_v3  ;;  %vm12962_vm4 = vnez %v12961_v8  ;;  %5923 = vst [vmem:[#allocation9 + $0x360] sm:$0xff] %v5890_v48  ;;  %v5891_v23 = vmul.f32 %v5634_v37, %v12963_v20  ;;  %v5541_v32 = vand.u32 2, %v12964_v35  ;;  %v12965_v12 = vld [vmem:[#allocation66_spill] sm:$0xff]  ;;  %v12967_v27 = vld [vmem:[#allocation79_spill] sm:$0xff]  ;;  %v12968_v15 = vld [vmem:[#allocation72_spill] sm:$0xff] }
 0x5f3   :  { %v5477_v19 = vsel %vm12962_vm4, %v12960_v34, %v12959_v46  ;;  %v5635_v1 = vsel %vm5571_vm14, %v5603_v33, %v5475_v40  ;;  %vm5572_vm6 = vcmp.ne.s32.totalorder %v5540_v21, 0  ;;  %vm12969_vm1 = vnez %v12968_v15  ;;  %v12970_v44 = vld [vmem:[#allocation68_spill] sm:$0xff]  ;;  %v12971_v13 = vld [vmem:[#allocation67_spill] sm:$0xff]  ;;  %v12972_v60 = vld [vmem:[#allocation65_spill] sm:$0xff] }
 0x5f4   :  { %v5892_v14 = vmul.f32 %v5635_v1, %v12965_v12  ;;  %v5636_v4 = vsel %vm5572_vm6, %v5604_v55, %v5476_v3  ;;  %v5605_v7 = vsub.f32 0.0, %v5477_v19  ;;  %v5478_v50 = vsel %vm12969_vm1, %v12967_v27, %v12966_v45  ;;  %5924 = vst [vmem:[#allocation9 + $0x368] sm:$0xff] %v5891_v23  ;;  %v12973_v11 = vld [vmem:[#allocation89_spill] sm:$0xff]  ;;  %v12974_v0 = vld [vmem:[#allocation71_spill] sm:$0xff]  ;;  %v12976_v61 = vld [vmem:[#allocation64_spill] sm:$0xff] }
 0x5f5   :  { %v5893_v2 = vmul.f32 %v5636_v4, %v12970_v44  ;;  %vm5573_vm11 = vcmp.ne.s32.totalorder %v5541_v32, 0  ;;  %v5542_v28 = vand.u32 2, %v12971_v13  ;;  %v5606_v43 = vsub.f32 0.0, %v5478_v50  ;;  %v12977_v22 = vld [vmem:[#allocation77_spill] sm:$0xff]  ;;  %v12978_v29 = vld [vmem:[#allocation80_spill] sm:$0xff]  ;;  %v12984_v33 = vld [vmem:[#allocation91_spill] sm:$0xff] }
 0x5f6   :  { %5925 = vst [vmem:[#allocation9 + $0x370] sm:$0xff] %v5892_v14  ;;  %v5637_v5 = vsel %vm5573_vm11, %v5605_v7, %v5477_v19  ;;  %vm12975_vm2 = vnez %v12974_v0  ;;  %v5543_v52 = vand.u32 2, %v12976_v61  ;;  %v12979_v30 = vld [vmem:[#allocation73_spill] sm:$0xff]  ;;  %v12981_v26 = vld [vmem:[#allocation76_spill] sm:$0xff]  ;;  %v12987_v37 = vld [vmem:[#allocation78_spill] sm:$0xff] }
 0x5f7   :  { %v5479_v51 = vsel %vm12975_vm2, %v12973_v11, %v12972_v60  ;;  %vm12980_vm7 = vnez %v12979_v30  ;;  %5926 = vst [vmem:[#allocation9 + $0x378] sm:$0xff] %v5893_v2  ;;  %v5894_v25 = vmul.f32 %v5637_v5, %v12981_v26  ;;  %vm5574_vm0 = vcmp.ne.s32.totalorder %v5542_v28, 0  ;;  %v12982_v39 = vld [vmem:[#allocation60_spill] sm:$0xff]  ;;  %v12983_v48 = vld [vmem:[#allocation85_spill] sm:$0xff]  ;;  %v12989_v19 = vld [vmem:[#allocation83_spill] sm:$0xff] }
 0x5f8   :  { %v5480_v40 = vsel %vm12980_vm7, %v12978_v29, %v12977_v22  ;;  %v5607_v10 = vsub.f32 0.0, %v5479_v51  ;;  %v5544_v57 = vand.u32 2, %v12982_v39  ;;  %v5638_v3 = vsel %vm5574_vm0, %v5606_v43, %v5478_v50  ;;  %v12985_v31 = vld [vmem:[#allocation84_spill] sm:$0xff]  ;;  %v12988_v34 = vld [vmem:[#allocation81_spill] sm:$0xff]  ;;  %v12990_v35 = vld [vmem:[#allocation86_spill] sm:$0xff] }
 0x5f9   :  { %vm5575_vm8 = vcmp.ne.s32.totalorder %v5543_v52, 0  ;;  %v5608_v47 = vsub.f32 0.0, %v5480_v40  ;;  %vm12986_vm10 = vnez %v12985_v31  ;;  %5927 = vst [vmem:[#allocation9 + $0x380] sm:$0xff] %v5894_v25  ;;  %v5895_v55 = vmul.f32 %v5638_v3, %v12987_v37  ;;  %v12991_v32 = vld [vmem:[#allocation82_spill] sm:$0xff]  ;;  %v12992_v12 = vld [vmem:[#allocation75_spill] sm:$0xff]  ;;  %v12994_v4 = vld [vmem:[#allocation92_spill] sm:$0xff] }
 0x5fa   :  { %v5481_v21 = vsel %vm12986_vm10, %v12984_v33, %v12983_v48  ;;  %v5639_v46 = vsel %vm5575_vm8, %v5607_v10, %v5479_v51  ;;  %vm5576_vm9 = vcmp.ne.s32.totalorder %v5544_v57, 0  ;;  %v5545_v8 = vand.u32 2, %v12988_v34  ;;  %v12995_v45 = vld [vmem:[#allocation88_spill] sm:$0xff]  ;;  %v12996_v44 = vld [vmem:[#allocation93_spill] sm:$0xff]  ;;  %v12997_v2 = vld [vmem:[#allocation87_spill] sm:$0xff] }
 0x5fb   :  { %v5896_v20 = vmul.f32 %v5639_v46, %v12989_v19  ;;  %v5640_v23 = vsel %vm5576_vm9, %v5608_v47, %v5480_v40  ;;  %v5609_v1 = vsub.f32 0.0, %v5481_v21  ;;  %vm12993_vm5 = vnez %v12992_v12  ;;  %5928 = vst [vmem:[#allocation9 + $0x388] sm:$0xff] %v5895_v55  ;;  %v12998_v13 = vld [vmem:[#allocation104_spill] sm:$0xff]  ;;  %v13000_v43 = vld [vmem:[#allocation90_spill] sm:$0xff]  ;;  %v13001_v60 = vld [vmem:[#allocation97_spill] sm:$0xff] }
 0x5fc   :  { %v5482_v14 = vsel %vm12993_vm5, %v12991_v32, %v12990_v35  ;;  %v5897_v7 = vmul.f32 %v5640_v23, %v12994_v4  ;;  %vm5577_vm15 = vcmp.ne.s32.totalorder %v5545_v8, 0  ;;  %v5546_v27 = vand.u32 2, %v12995_v45  ;;  %v13002_v11 = vld [vmem:[#allocation94_spill] sm:$0xff]  ;;  %v13004_v51 = vld [vmem:[#allocation95_spill] sm:$0xff]  ;;  %v13005_v22 = vld [vmem:[#allocation101_spill] sm:$0xff] }
 0x5fd   :  { %v5610_v15 = vsub.f32 0.0, %v5482_v14  ;;  %5929 = vst [vmem:[#allocation9 + $0x390] sm:$0xff] %v5896_v20  ;;  %v5641_v50 = vsel %vm5577_vm15, %v5609_v1, %v5481_v21  ;;  %vm12999_vm14 = vnez %v12998_v13  ;;  %v5547_v5 = vand.u32 2, %v13000_v43  ;;  %v13006_v26 = vld [vmem:[#allocation105_spill] sm:$0xff]  ;;  %v13007_v25 = vld [vmem:[#allocation106_spill] sm:$0xff]  ;;  %v13008_v10 = vld [vmem:[#allocation99_spill] sm:$0xff] }
 0x5fe   :  { %v5483_v28 = vsel %vm12999_vm14, %v12997_v2, %v12996_v44  ;;  %vm13003_vm4 = vnez %v13002_v11  ;;  %5930 = vst [vmem:[#allocation9 + $0x398] sm:$0xff] %v5897_v7  ;;  %v5898_v61 = vmul.f32 %v5641_v50, %v13004_v51  ;;  %vm5578_vm6 = vcmp.ne.s32.totalorder %v5546_v27, 0  ;;  %v13010_v57 = vld [vmem:[#allocation96_spill] sm:$0xff]  ;;  %v13012_v33 = vld [vmem:[#allocation103_spill] sm:$0xff]  ;;  %v13013_v55 = vld [vmem:[#allocation113_spill] sm:$0xff] }
 0x5ff   :  { %v5484_v0 = vsel %vm13003_vm4, %v13001_v60, %v10616_v63  ;;  %v5611_v52 = vsub.f32 0.0, %v5483_v28  ;;  %v5548_v29 = vand.u32 2, %v13005_v22  ;;  %v5642_v30 = vsel %vm5578_vm6, %v5610_v15, %v5482_v14  ;;  %v13011_v63 = vld [vmem:[#allocation102_spill] sm:$0xff]  ;;  %v13014_v46 = vld [vmem:[#allocation123_spill] sm:$0xff]  ;;  %v13016_v19 = vld [vmem:[#allocation112_spill] sm:$0xff] }
 0x600   :  { %vm5579_vm1 = vcmp.ne.s32.totalorder %v5547_v5, 0  ;;  %v5612_v40 = vsub.f32 0.0, %v5484_v0  ;;  %vm13009_vm11 = vnez %v13008_v10  ;;  %5931 = vst [vmem:[#allocation9 + $0x3a0] sm:$0xff] %v5898_v61  ;;  %v5899_v3 = vmul.f32 %v5642_v30, %v13010_v57  ;;  %v13017_v23 = vld [vmem:[#allocation98_spill] sm:$0xff]  ;;  %v13018_v12 = vld [vmem:[#allocation117_spill] sm:$0xff]  ;;  %v13020_v4 = vld [vmem:[#allocation116_spill] sm:$0xff] }
 0x601   :  { %v5485_v39 = vsel %vm13009_vm11, %v13007_v25, %v13006_v26  ;;  %v5643_v47 = vsel %vm5579_vm1, %v5611_v52, %v5483_v28  ;;  %vm5580_vm2 = vcmp.ne.s32.totalorder %v5548_v29, 0  ;;  %v5549_v48 = vand.u32 2, %v13011_v63  ;;  %v13019_v14 = vld [vmem:[#allocation114_spill] sm:$0xff]  ;;  %v13022_v45 = vld [vmem:[#allocation109_spill] sm:$0xff]  ;;  %v13025_v44 = vld [vmem:[#allocation120_spill] sm:$0xff] }
 0x602   :  { %v5900_v31 = vmul.f32 %v5643_v47, %v13012_v33  ;;  %v5644_v21 = vsel %vm5580_vm2, %v5612_v40, %v5484_v0  ;;  %v5613_v37 = vsub.f32 0.0, %v5485_v39  ;;  %v5486_v8 = vsel %vm10650_vm3, %v13014_v46, %v13013_v55  ;;  %5932 = vst [vmem:[#allocation9 + $0x3a8] sm:$0xff] %v5899_v3  ;;  %v13023_v15 = vld [vmem:[#allocation110_spill] sm:$0xff]  ;;  %v13024_v50 = vld [vmem:[#allocation121_spill] sm:$0xff]  ;;  %v13027_v13 = vld [vmem:[#allocation115_spill] sm:$0xff] }
 0x603   :  { %v5901_v20 = vmul.f32 %v5644_v21, %v13016_v19  ;;  %vm5581_vm7 = vcmp.ne.s32.totalorder %v5549_v48, 0  ;;  %v5550_v1 = vand.u32 2, %v13017_v23  ;;  %v5614_v35 = vsub.f32 0.0, %v5486_v8  ;;  %v13028_v5 = vld [vmem:[#allocation100_spill] sm:$0xff]  ;;  %v13030_v61 = vld [vmem:[#allocation118_spill] sm:$0xff]  ;;  %v13036_v33 = vld [vmem:[#allocation107_spill] sm:$0xff] }
 0x604   :  { %5933 = vst [vmem:[#allocation9 + $0x3b0] sm:$0xff] %v5900_v31  ;;  %v5645_v32 = vsel %vm5581_vm7, %v5613_v37, %v5485_v39  ;;  %vm13021_vm0 = vnez %v13020_v4  ;;  %v5551_v27 = vand.u32 2, %v13022_v45  ;;  %vm13026_vm3 = vnez %v13025_v44  ;;  %v13031_v29 = vld [vmem:[#allocation124_spill] sm:$0xff]  ;;  %v13032_v40 = vld [vmem:[#allocation122_spill] sm:$0xff] }
 0x605   :  { %v5487_v7 = vsel %vm13021_vm0, %v13019_v14, %v13018_v12  ;;  %v5488_v2 = vsel %vm13026_vm3, %v13024_v50, %v13023_v15  ;;  %5934 = vst [vmem:[#allocation9 + $0x3b8] sm:$0xff] %v5901_v20  ;;  %v5902_v28 = vmul.f32 %v5645_v32, %v13027_v13  ;;  %vm5582_vm8 = vcmp.ne.s32.totalorder %v5550_v1, 0  ;;  %v13034_v57 = vld [vmem:[#allocation130_spill] sm:$0xff] }
 0x606   :  { %v5615_v43 = vsub.f32 0.0, %v5487_v7  ;;  %v5552_v60 = vand.u32 2, %v13028_v5  ;;  %v5646_v11 = vsel %vm5582_vm8, %v5614_v35, %v5486_v8  ;;  %vm5583_vm10 = vcmp.ne.s32.totalorder %v5551_v27, 0 }
 0x607   :  { %v5616_v0 = vsub.f32 0.0, %v5488_v2  ;;  %vm13029_vm9 = vnez %v12883_v54  ;;  %5935 = vst [vmem:[#allocation9 + $0x3c0] sm:$0xff] %v5902_v28  ;;  %v5903_v52 = vmul.f32 %v5646_v11, %v13030_v61  ;;  %v5553_v30 = vand.u32 2, %v13031_v29 }
 0x608   :  { %v5489_v51 = vsel %vm13029_vm9, %v10757_v56, %v10754_v49  ;;  %v5647_v22 = vsel %vm5583_vm10, %v5615_v43, %v5487_v7  ;;  %vm5584_vm5 = vcmp.ne.s32.totalorder %v5552_v60, 0  ;;  %vm13033_vm15 = vnez %v12887_v6  ;;  %v13035_v49 = vld [vmem:[#allocation111_spill] sm:$0xff] }
 0x609   :  { %v5904_v26 = vmul.f32 %v5647_v22, %v13032_v40  ;;  %v5648_v25 = vsel %vm5584_vm5, %v5616_v0, %v5488_v2  ;;  %v5617_v10 = vsub.f32 0.0, %v5489_v51  ;;  %v5490_v39 = vsel %vm13033_vm15, %v10777_v9, %v10769_v58  ;;  %5936 = vst [vmem:[#allocation9 + $0x3c8] sm:$0xff] %v5903_v52 }
 0x60a   :  { %v5905_v54 = vmul.f32 %v5648_v25, %v13034_v57  ;;  %vm5585_vm14 = vcmp.ne.s32.totalorder %v5553_v30, 0  ;;  %v5554_v56 = vand.u32 2, %v13035_v49  ;;  %v5618_v3 = vsub.f32 0.0, %v5490_v39 }
 0x60b   :  { %5937 = vst [vmem:[#allocation9 + $0x3d0] sm:$0xff] %v5904_v26  ;;  %v5649_v47 = vsel %vm5585_vm14, %v5617_v10, %v5489_v51  ;;  %v5491_v63 = vsel %vm10787_vm12, %v10820_v36, %v10814_v18  ;;  %v5555_v48 = vand.u32 2, %v10752_v42  ;;  %v5492_v6 = vsel %vm10804_vm13, %v10842_v16, %v10837_v17 }
 0x60c   :  { %5938 = vst [vmem:[#allocation9 + $0x3d8] sm:$0xff] %v5905_v54  ;;  %v5906_v58 = vmul.f32 %v5649_v47, %v12892_v62  ;;  %vm5586_vm4 = vcmp.ne.s32.totalorder %v5554_v56, 0  ;;  %v5619_v9 = vsub.f32 0.0, %v5491_v63  ;;  %v5556_v31 = vand.u32 2, %v13036_v33 }
 0x60d   :  { %v5650_v21 = vsel %vm5586_vm4, %v5618_v3, %v5490_v39  ;;  %vm5587_vm6 = vcmp.ne.s32.totalorder %v5555_v48, 0  ;;  %v5620_v37 = vsub.f32 0.0, %v5492_v6 }
 0x60e   :  { %5939 = vst [vmem:[#allocation9 + $0x3e0] sm:$0xff] %v5906_v58  ;;  %v5907_v42 = vmul.f32 %v5650_v21, %v12895_v38  ;;  %v5651_v41 = vsel %vm5587_vm6, %v5619_v9, %v5491_v63  ;;  %vm5588_vm12 = vcmp.ne.s32.totalorder %v5556_v31, 0 }
 0x60f   :  { %v5908_v53 = vmul.f32 %v5651_v41, %v12909_v59  ;;  %v5652_v18 = vsel %vm5588_vm12, %v5620_v37, %v5492_v6 }
 0x610   :  { %5940 = vst [vmem:[#allocation9 + $0x3e8] sm:$0xff] %v5907_v42  ;;  %v5909_v62 = vmul.f32 %v5652_v18, %v12921_v24 }
 0x611   :  { %5941 = vst [vmem:[#allocation9 + $0x3f0] sm:$0xff] %v5908_v53 }
 0x612   :  { %5942 = vst [vmem:[#allocation9 + $0x3f8] sm:$0xff] %v5909_v62 }
 0x613   :  { %6468 = shalt.err (!%p6465_p11)
}
 0x614   :  { %s6469_s26 = scalar_lea.hbm %s11063_s4, 16384 }
 0x615   :  { %p6470_p12 = scmp.ne.s32.totalorder %s11063_s4, %s6469_s26  ;;  %p6473_p13 = scmp.lt.u32.totalorder %s6469_s26, %s11063_s4 }
 0x617   :  { %p6475_p0 = pnand %p6473_p13, %p6470_p12 }
 0x619   :  { %6478 = shalt.err (!%p6475_p0)
}
 0x61a   :  { %5966 = dma.vmem_to_hbm [thread:$0]  %s5961_s22, 16384, %s11063_s4, [#allocation10], %s6489_s29, %s6489_s29, %s6490_s30  }
 0x61b   :  { %6483 = dma.done.wait [#allocation7], 16384  }
 0x61c   :  { %6484 = vsyncadd [#allocation7], 4294950912 }
 0x61d   :  { %6485 = dma.done.wait [#allocation10], 16384  }
 0x61e   :  { %6486 = vsyncadd [#allocation10], 4294950912 }
 0x61f   :  { %5973 = vsyncpa [#allocation6], 1 }
 0x620   :  { %5974 = vsyncpa [#allocation7], 1 }
 0x621   :  { %5975 = vsyncpa [#allocation10], 1 }

</bundles_post_ra>
